<compile_context>
chip_gen: v7x
topology: tpu7x:2x2x1
jax: 0.10.0
libtpu: 0.0.40
codegen_flags: <defaults>
</compile_context>

<pallas_src>
import functools

import jax
import jax.numpy as jnp
from jax import lax
from jax.experimental import pallas as pl
from jax.experimental.pallas import tpu as pltpu


def _linear_kernel(x_ref, w_ref, b_ref, o_ref, acc_ref, *, k_axis, split_axis):
    """One K-tile of y = x @ w.T + b, accumulated in f32 VMEM scratch."""
    k = pl.program_id(k_axis)

    @pl.when(k == 0)
    def _():
        bias = jnp.broadcast_to(b_ref[...], acc_ref.shape).astype(jnp.float32)
        if split_axis is None:
            acc_ref[...] = bias
        else:
            # Only split 0 carries the bias so the cross-split sum adds it once.
            p = pl.program_id(split_axis)
            acc_ref[...] = jnp.where(p == 0, bias, jnp.zeros_like(bias))

    # x_ref: (M, tk), w_ref: (N, tk)  -> contract last axes -> (M, N).
    # Expressed as dot_general (no explicit transpose) so Mosaic can lower the
    # transposed-RHS contraction straight to the MXU.
    acc_ref[...] += lax.dot_general(
        x_ref[...],
        w_ref[...],
        dimension_numbers=(((1,), (1,)), ((), ())),
        preferred_element_type=jnp.float32,
    )

    # Write the lane-sparse output block exactly once, at the last K step.
    @pl.when(k == pl.num_programs(k_axis) - 1)
    def _():
        o_ref[...] = acc_ref[...].astype(o_ref.dtype)


def pallas_linear(x, w_nk, b, *, tk=98304, num_splits=1,
                  vmem_limit_bytes=32 << 20):
    """y = x @ w_nk.T + b.

    x:    (M, K) float32
    w_nk: (N, K) float32   (PyTorch-native nn.Linear weight layout, lane-dense)
    b:    (1, N) float32

    num_splits=1  -> single K grid axis (best on single-TC v5e/v6e).
    num_splits=2  -> leading "parallel" axis over K halves (v7x two-TC option);
                     partials are summed in the wrapper (bias counted once).
    """
    M, K = x.shape
    N, Kw = w_nk.shape
    assert K == Kw, (K, Kw)
    assert b.shape == (1, N), b.shape
    assert K % (num_splits * tk) == 0, (K, num_splits, tk)
    kt = K // (num_splits * tk)

    cost = pl.CostEstimate(
        flops=2 * M * N * K,
        transcendentals=0,
        bytes_accessed=(M * K + N * K + N + num_splits * M * N) * 4,
    )

    if num_splits == 1:
        kernel = functools.partial(_linear_kernel, k_axis=0, split_axis=None)
        return pl.pallas_call(
            kernel,
            out_shape=jax.ShapeDtypeStruct((M, N), jnp.float32),
            grid_spec=pltpu.PrefetchScalarGridSpec(
                num_scalar_prefetch=0,
                grid=(kt,),
                in_specs=[
                    pl.BlockSpec((M, tk), lambda k: (0, k)),   # activations
                    pl.BlockSpec((N, tk), lambda k: (0, k)),   # lane-dense weight
                    pl.BlockSpec((1, N), lambda k: (0, 0)),    # bias (tiny, resident)
                ],
                out_specs=pl.BlockSpec((M, N), lambda k: (0, 0)),
                scratch_shapes=[pltpu.VMEM((M, N), jnp.float32)],
            ),
            compiler_params=pltpu.CompilerParams(
                dimension_semantics=("arbitrary",),
                vmem_limit_bytes=vmem_limit_bytes,
            ),
            cost_estimate=cost,
        )(x, w_nk, b)

    # Multi-split path (intended for v7x: each TensorCore streams K/num_splits).
    kernel = functools.partial(_linear_kernel, k_axis=1, split_axis=0)
    partials = pl.pallas_call(
        kernel,
        out_shape=jax.ShapeDtypeStruct((num_splits, M, N), jnp.float32),
        grid_spec=pltpu.PrefetchScalarGridSpec(
            num_scalar_prefetch=0,
            grid=(num_splits, kt),
            in_specs=[
                pl.BlockSpec((M, tk), lambda p, k: (0, p * kt + k)),
                pl.BlockSpec((N, tk), lambda p, k: (0, p * kt + k)),
                pl.BlockSpec((1, N), lambda p, k: (0, 0)),
            ],
            out_specs=pl.BlockSpec((None, M, N), lambda p, k: (p, 0, 0)),
            scratch_shapes=[pltpu.VMEM((M, N), jnp.float32)],
        ),
        compiler_params=pltpu.CompilerParams(
            dimension_semantics=("parallel", "arbitrary"),
            vmem_limit_bytes=vmem_limit_bytes,
        ),
        cost_estimate=cost,
    )(x, w_nk, b)
    return partials.sum(axis=0)


def tudui_forward(x_flat, params):
    """Forward pass of Tudui: output = linear1(input)."""
    return pallas_linear(x_flat, params["w"], params["b"])


def init_params(key, in_features=196608, out_features=10):
    # Deterministic init mimicking PyTorch's uniform(-1/sqrt(K), 1/sqrt(K)).
    kw, kb = jax.random.split(key)
    bound = 1.0 / jnp.sqrt(jnp.float32(in_features))
    # PyTorch-native (out, in) layout — lane-dense for the kernel.
    w = jax.random.uniform(
        kw, (out_features, in_features), jnp.float32, -bound, bound
    )
    b = jax.random.uniform(kb, (1, out_features), jnp.float32, -bound, bound)
    return {"w": w, "b": b}


if __name__ == "__main__":
    key = jax.random.PRNGKey(0)
    k_params, k_input = jax.random.split(key)

    # The module hard-codes Linear(196608, 10) == 3*256*256 input features;
    # keep the feature dim as the spec requires, small batch of 2.
    B, C, H, W = 2, 3, 256, 256
    in_features, out_features = C * H * W, 10

    params = init_params(k_params, in_features, out_features)

    img = jax.random.normal(k_input, (B, C, H, W), jnp.float32)
    x_flat = img.reshape(B, -1)          # (B, 196608)

    out = tudui_forward(x_flat, params)
    out = jax.block_until_ready(out)

    # Reference check in plain JAX (same math as nn.Linear: x @ W.T + b).
    ref = x_flat @ params["w"].T + params["b"]
    assert out.shape == (B, out_features), out.shape
    assert jnp.allclose(out, ref, atol=1e-3, rtol=1e-3), (
        float(jnp.max(jnp.abs(out - ref)))
    )

    print("KERNEL_OK")
</pallas_src>

<mosaic_0001>
module attributes {stable_mosaic.version = 11 : i64} {
  func.func @_linear_kernel(%arg0: i32, %arg1: memref<2x98304xf32, #tpu.memory_space<vmem>>, %arg2: memref<10x98304xf32, #tpu.memory_space<vmem>>, %arg3: memref<1x10xf32, #tpu.memory_space<vmem>>, %arg4: memref<2x10xf32, #tpu.memory_space<vmem>>, %arg5: memref<2x10xf32, #tpu.memory_space<vmem>>) attributes {dimension_semantics = [#tpu.dimension_semantics<arbitrary>], iteration_bounds = array<i64: 2>, scalar_prefetch = 0 : i64, scratch_operands = 1 : i64, tpu.core_type = #tpu.core_type<tc>, window_params = [{transform_indices = @transform_0, window_bounds = array<i64: 2, 98304>}, {transform_indices = @transform_1, window_bounds = array<i64: 10, 98304>}, {pipeline_mode = #tpu.pipeline_mode<synchronous>, transform_indices = @transform_2, window_bounds = array<i64: 1, 10>}, {pipeline_mode = #tpu.pipeline_mode<synchronous>, transform_indices = @transform_3, window_bounds = array<i64: 2, 10>}]} {
    %c0_i32 = arith.constant 0 : i32
    %0 = arith.cmpi eq, %arg0, %c0_i32 : i32
    %1 = arith.extui %0 : i1 to i32
    %c0_i32_0 = arith.constant 0 : i32
    %2 = arith.cmpi ne, %1, %c0_i32_0 : i32
    scf.if %2 {
      %c0_9 = arith.constant 0 : index
      %c0_10 = arith.constant 0 : index
      %12 = vector.load %arg3[%c0_9, %c0_10] : memref<1x10xf32, #tpu.memory_space<vmem>>, vector<1x10xf32>
      %13 = vector.shape_cast %12 : vector<1x10xf32> to vector<1x10xf32>
      %14 = vector.broadcast %13 : vector<1x10xf32> to vector<2x10xf32>
      %c0_11 = arith.constant 0 : index
      %c0_12 = arith.constant 0 : index
      %15 = vector.load %arg5[%c0_11, %c0_12] : memref<2x10xf32, #tpu.memory_space<vmem>>, vector<2x10xf32>
      tpu.vector_store %arg5[%c0_11, %c0_12], %14 {strides = array<i32>} : memref<2x10xf32, #tpu.memory_space<vmem>>, vector<2x10xf32>,
    } else {
    }
    %c0 = arith.constant 0 : index
    %c0_1 = arith.constant 0 : index
    %3 = vector.load %arg5[%c0, %c0_1] : memref<2x10xf32, #tpu.memory_space<vmem>>, vector<2x10xf32>
    %c0_2 = arith.constant 0 : index
    %c0_3 = arith.constant 0 : index
    %4 = vector.load %arg1[%c0_2, %c0_3] : memref<2x98304xf32, #tpu.memory_space<vmem>>, vector<2x98304xf32>
    %c0_4 = arith.constant 0 : index
    %c0_5 = arith.constant 0 : index
    %5 = vector.load %arg2[%c0_4, %c0_5] : memref<10x98304xf32, #tpu.memory_space<vmem>>, vector<10x98304xf32>
    %cst = arith.constant dense<0.000000e+00> : vector<2x10xf32>
    %6 = tpu.matmul %4, %5, %cst {dimension_numbers = #tpu.dot_dimension_numbers<[1], [1], [0], [0], [0, 0, 1, 0], [], []>} : vector<2x98304xf32>, vector<10x98304xf32>, vector<2x10xf32> -> vector<2x10xf32>
    %7 = arith.addf %3, %6 : vector<2x10xf32>
    %c0_6 = arith.constant 0 : index
    %c0_7 = arith.constant 0 : index
    %8 = vector.load %arg5[%c0_6, %c0_7] : memref<2x10xf32, #tpu.memory_space<vmem>>, vector<2x10xf32>
    tpu.vector_store %arg5[%c0_6, %c0_7], %7 {strides = array<i32>} : memref<2x10xf32, #tpu.memory_space<vmem>>, vector<2x10xf32>,
    %c1_i32 = arith.constant 1 : i32
    %9 = arith.cmpi eq, %arg0, %c1_i32 : i32
    %10 = arith.extui %9 : i1 to i32
    %c0_i32_8 = arith.constant 0 : i32
    %11 = arith.cmpi ne, %10, %c0_i32_8 : i32
    scf.if %11 {
      %c0_9 = arith.constant 0 : index
      %c0_10 = arith.constant 0 : index
      %12 = vector.load %arg5[%c0_9, %c0_10] : memref<2x10xf32, #tpu.memory_space<vmem>>, vector<2x10xf32>
      %c0_11 = arith.constant 0 : index
      %c0_12 = arith.constant 0 : index
      %13 = vector.load %arg4[%c0_11, %c0_12] : memref<2x10xf32, #tpu.memory_space<vmem>>, vector<2x10xf32>
      tpu.vector_store %arg4[%c0_11, %c0_12], %12 {strides = array<i32>} : memref<2x10xf32, #tpu.memory_space<vmem>>, vector<2x10xf32>,
    } else {
    }
    return
  }
  func.func @transform_0(%arg0: i32) -> (i32, i32) {
    %c0_i32 = arith.constant 0 : i32
    %c0_i32_0 = arith.constant 0 : i32
    return %c0_i32, %arg0 : i32, i32
  }
  func.func @transform_1(%arg0: i32) -> (i32, i32) {
    %c0_i32 = arith.constant 0 : i32
    %c0_i32_0 = arith.constant 0 : i32
    return %c0_i32, %arg0 : i32, i32
  }
  func.func @transform_2(%arg0: i32) -> (i32, i32) {
    %c0_i32 = arith.constant 0 : i32
    %c0_i32_0 = arith.constant 0 : i32
    %c0_i32_1 = arith.constant 0 : i32
    return %c0_i32, %c0_i32_0 : i32, i32
  }
  func.func @transform_3(%arg0: i32) -> (i32, i32) {
    %c0_i32 = arith.constant 0 : i32
    %c0_i32_0 = arith.constant 0 : i32
    %c0_i32_1 = arith.constant 0 : i32
    return %c0_i32, %c0_i32_0 : i32, i32
  }
}

</mosaic_0001>

<bundles_post_ra>
// kernel: tpu_custom_call.1
= control target key start
LH: loop header
LB: loop body
LE: loop exit
PB: predicated region body
PF: predicated region fallthrough
CT: control target
= control target key end

     0   :  { %8 = vsyncpa [#allocation4], 0  ;;  %s37507_s0 = inlined_call_operand.hbm [shape: f32[2,196608], index: 0, kind: input, shape index: {}]   ;;  %s37508_s1 = inlined_call_operand.hbm [shape: f32[10,196608], index: 1, kind: input, shape index: {}]   ;;  %s37509_s2 = inlined_call_operand.hbm [shape: f32[1,10], index: 2, kind: input, shape index: {}]   ;;  %s37510_s3 = inlined_call_operand.hbm [shape: f32[2,10], index: 3, kind: output, shape index: {}]  }
   0x1   :  { %10 = vsyncpa [#allocation4 + $0x1], 0 }
   0x2   :  { %11 = vsyncpa [#allocation7], 0 }
   0x3   :  { %13 = vsyncpa [#allocation7 + $0x1], 0 }
   0x4   :  { %14 = vsyncpa [#allocation5], 0  ;;  %s35178_s12 = smov 0   ;;  %s35180_s13 = smov 0  }
   0x5   :  { %s35182_s14 = smov 0   ;;  %s35184_s15 = smov 0  }
   0x6 LB: > { %s35197_s16 = sadd.s32 4294967295, %s35148_s15   ;;  %s35200_s17 = sadd.s32 1, %s35148_s15   ;;  %s35148_s15 = sphi %s35184_s15, %s37528_s15   ;;  %s35144_s14 = sphi %s35182_s14, %s37527_s14   ;;  %s35140_s13 = sphi %s35180_s13, %s37526_s13   ;;  %s35136_s12 = sphi %s35178_s12, %s37525_s12  }
   0x7   : > { %s24_s18 = ssub.s32 %s35148_s15, %s35200_s17  ;;  %s27_s19 = sadd.s32 1, %s35144_s14 }
   0x8   : > { %p25_p0 = scmp.eq.s32.totalorder %s24_s18, 0  ;;  %p34_p1 = scmp.ne.s32.totalorder %s35144_s14, %s35140_s13 }
   0x9   : > { %p40_p2 = scmp.ne.s32.totalorder %s35140_s13, %s35136_s12  ;;  %p37511_p3 = scmp.eq.s32.totalorder %s35197_s16, 0 }
   0xa   : > { %s35210_s20 = scalar_select %p25_p0, %s35144_s14, %s27_s19  }
   0xb   : > { %p35214_p4 = por %p37511_p3, %p40_p2  ;;  %p33174_p5 = scmp.ge.s32.totalorder %s35148_s15, 1 }
   0xc   : > { %p119_p6 = scmp.lt.s32.totalorder %s35148_s15, 3  ;;  %s35150_s23 = smov [#allocation8]  }
   0xd   : > { %s37515_s21 = scalar_select %p35214_p4, 1, 0 }
   0xe   : > { %p35221_p8 = pnand %p33174_p5, %p119_p6  ;;  %s132_s24 = sshll.u32 %s35150_s23, 4  ;;  %s133_s24 = int_to_ptr.vmem [resolvable:$true] %s132_s24 }
   0xf   : > { %p35_p9 = scmp.eq.s32.totalorder %s35148_s15, 0  ;;  %p34754_p11 = scmp.lt.s32.totalorder %s35148_s15, 2 }
  0x10   : > { %s37516_s22 = scalar_select %p35221_p8, 1, 0 }
  0x11   : > { %p34742_p10 = pneg %p35221_p8  ;;  %p36_p12 = por %p35_p9, %p34_p1 }
  0x12   : > { %s35233_s25 = sand.u32 1, %s35144_s14   ;;  %s33188_s29 = smul.u32 24576, %s35148_s15 }
  0x13   : > { %p35237_p13 = pnand %p34742_p10, %p37511_p3  ;;  %s34726_s27 = smul.u32 1536, %s35233_s25 }
  0x14   : > { %p35242_p0 = pnand %p34754_p11, %p36_p12  ;;  %s34988_s5 = scalar_lea.hbm %s37509_s2, 16 }
  0x15   : > { %p34989_p1 = scmp.ne.s32.totalorder %s37509_s2, %s34988_s5  ;;  %p34990_p2 = pneg %p35237_p13 }
  0x16   : > { %s37518_s28 = scalar_select %p35242_p0, 1, 0 }
  0x17   : > { %p34991_p5 = pnand %p34990_p2, %p34989_p1  ;;  %p34995_p9 = scmp.lt.u32.totalorder %s34988_s5, %s37509_s2 }
  0x19   : > { %p34992_p6 = pneg %p34991_p5 }
  0x1b   : > { %p34997_p10 = pnand %p34995_p9, %p34992_p6 }
  0x1d   : > { %35000 = shalt.err (!%p34997_p10)
}
  0x1e   : > { %s35001_s10 = scalar_lea.vmem %s133_s24, 16  ;;  %s35008_s11 = scalar_lea.vmem %s133_s24, 32 }
  0x1f   : > { %p35002_p11 = scmp.ne.s32.totalorder %s133_s24, %s35001_s10  ;;  %p35009_p3 = scmp.lt.s32.totalorder %s133_s24, %s133_s24 }
  0x20   : > { %p35010_p4 = scmp.lt.s32.totalorder %s35008_s11, %s35001_s10 }
  0x21   : > { %p35004_p12 = pnand %p35002_p11, %p34990_p2 }
  0x22   : > { %p35011_p8 = por %p35010_p4, %p35009_p3 }
  0x23   : > { %p35005_p7 = pneg %p35004_p12 }
  0x25   : > { %p35012_p0 = pnand %p35011_p8, %p35005_p7 }
  0x27   : > { %35015 = shalt.err (!%p35012_p0)
}
  0x28   : > { %34745 = dma.hbm_to_vmem [thread:$0]  (!%p35237_p13), %s37509_s2, 16, %s133_s24, [#allocation7]  }
  0x29   : > { %s35266_s30 = scalar_lea.hbm %s37507_s0, %s33188_s29  ;;  %s147_s4 = scalar_lea.vmem [#allocation3], %s34726_s27 }
  0x2a   : > { %s155_s5 = sshll.u32 %s147_s4, 4  ;;  %s34727_s26 = smul.u32 12288, %s35233_s25  ;;  %s35268_s5 = int_to_ptr.vmem [resolvable:$true] %s155_s5 }
  0x2b   : > { %s144_s6 = scalar_lea.sflag [#allocation4], %s35233_s25  ;;  %s35016_s7 = scalar_lea.hbm %s35266_s30, 24576 }
  0x2c   : > { %p35017_p3 = scmp.ne.s32.totalorder %s35266_s30, %s35016_s7  ;;  %p37519_p4 = scmp.ne.s32.totalorder %s37518_s28, 0 }
  0x2d   : > { %s35021_s8 = scalar_lea.hbm %s37507_s0, 49152  ;;  %p35022_p0 = scmp.lt.u32.totalorder %s35266_s30, %s37507_s0 }
  0x2e   : > { %p35018_p7 = pneg %p37519_p4  ;;  %p35023_p1 = scmp.lt.u32.totalorder %s35021_s8, %s35016_s7 }
  0x2f   : > { %p35025_p5 = scmp.lt.u32.totalorder %s35016_s7, %s35266_s30 }
  0x30   : > { %p35019_p8 = pnand %p35018_p7, %p35017_p3  ;;  %p35024_p2 = por %p35023_p1, %p35022_p0 }
  0x32   : > { %p35020_p13 = pneg %p35019_p8  ;;  %p35026_p6 = por %p35025_p5, %p35024_p2 }
  0x34   : > { %p35027_p9 = pnand %p35026_p6, %p35020_p13 }
  0x36   : > { %35030 = shalt.err (!%p35027_p9)
}
  0x37   : > { %s35031_s27 = scalar_lea.vmem %s35268_s5, 24576  ;;  %s35151_s11 = smov [#allocation3]  }
  0x38   : > { %p35032_p10 = scmp.ne.s32.totalorder %s35268_s5, %s35031_s27  ;;  %s35036_s12 = sshll.u32 %s35151_s11, 4  ;;  %s35037_s12 = int_to_ptr.vmem [resolvable:$false] %s35036_s12 }
  0x39   : > { %s35038_s18 = scalar_lea.vmem %s35037_s12, 49152  ;;  %p35039_p3 = scmp.lt.s32.totalorder %s35268_s5, %s35037_s12 }
  0x3a   : > { %p35034_p11 = pnand %p35032_p10, %p35018_p7  ;;  %p35040_p8 = scmp.lt.s32.totalorder %s35038_s18, %s35031_s27 }
  0x3c   : > { %p35035_p12 = pneg %p35034_p11  ;;  %p35041_p0 = por %p35040_p8, %p35039_p3 }
  0x3e   : > { %p35042_p1 = pnand %p35041_p0, %p35035_p12 }
  0x40   : > { %35045 = shalt.err (!%p35042_p1)
}
  0x41   : > { %34749 = dma.hbm_to_vmem [thread:$0]  (!%p37519_p4), %s35266_s30, 24576, %s35268_s5, %s144_s6  }
  0x42   : > { %s162_s19 = sand.u32 1, %s35148_s15   ;;  %s166_s23 = scalar_lea.vmem [#allocation6], %s34727_s26 }
  0x43   : > { %s173_s4 = sshll.u32 %s166_s23, 4  ;;  %s33189_s7 = smul.u32 98304, %s35148_s15  ;;  %s35300_s4 = int_to_ptr.vmem [resolvable:$true] %s173_s4 }
  0x44   : > { %s35308_s9 = scalar_lea.sflag [#allocation7], %s162_s19  ;;  %s35051_s15 = scalar_lea.hbm %s37508_s1, 393216 }
  0x45   : > { %s35306_s8 = scalar_lea.hbm %s37508_s1, %s33189_s7 }
  0x46   : > { %s35046_s10 = scalar_lea.hbm %s35306_s8, 196608  ;;  %p35052_p6 = scmp.lt.u32.totalorder %s35306_s8, %s37508_s1 }
  0x47   : > { %p35047_p13 = scmp.ne.s32.totalorder %s35306_s8, %s35046_s10  ;;  %p35053_p9 = scmp.lt.u32.totalorder %s35051_s15, %s35046_s10 }
  0x48   : > { %p35055_p11 = scmp.lt.u32.totalorder %s35046_s10, %s35306_s8 }
  0x49   : > { %p35049_p2 = pnand %p35047_p13, %p35018_p7  ;;  %p35054_p10 = por %p35053_p9, %p35052_p6 }
  0x4b   : > { %p35050_p5 = pneg %p35049_p2  ;;  %p35056_p12 = por %p35055_p11, %p35054_p10 }
  0x4d   : > { %p35057_p3 = pnand %p35056_p12, %p35050_p5 }
  0x4f   : > { %35060 = shalt.err (!%p35057_p3)
}
  0x50   : > { %s35061_s6 = scalar_lea.vmem %s35300_s4, 196608  ;;  %s35152_s27 = smov [#allocation6]  }
  0x51   : > { %p35062_p8 = scmp.ne.s32.totalorder %s35300_s4, %s35061_s6  ;;  %s35066_s11 = sshll.u32 %s35152_s27, 4  ;;  %s35067_s11 = int_to_ptr.vmem [resolvable:$false] %s35066_s11 }
  0x52   : > { %s35068_s12 = scalar_lea.vmem %s35067_s11, 393216  ;;  %p35069_p13 = scmp.lt.s32.totalorder %s35300_s4, %s35067_s11 }
  0x53   : > { %p35064_p0 = pnand %p35062_p8, %p35018_p7  ;;  %p35070_p2 = scmp.lt.s32.totalorder %s35068_s12, %s35061_s6 }
  0x55   : > { %p35065_p1 = pneg %p35064_p0  ;;  %p35071_p6 = por %p35070_p2, %p35069_p13 }
  0x57   : > { %p35072_p9 = pnand %p35071_p6, %p35065_p1 }
  0x59   : > { %35075 = shalt.err (!%p35072_p9)
}
  0x5a   : > { %s35153_s18 = smov 196608   ;;  %s35154_s19 = smov 98304  }
  0x5b   : > { %s35155_s23 = smov 6144   ;;  %p37520_p7 = scmp.ne.s32.totalorder %s37516_s22, 0 }
  0x5c   : > { %34752 = dma.hbm_to_vmem [thread:$0]  (!%p37519_p4), %s35306_s8, 196608, %s35300_s4, %s35308_s9, %s35153_s18, %s35154_s19, %s35155_s23  }
  0x5d   : > { %185 = sbr.rel (%p37520_p7) target bundleno = 1909 (0x775), region = 32  ;;  %s187_s7 = sand.u32 (!%p37520_p7), 1, %s35140_s13  }
  0x5e   : > { %s34728_s24 = smul.u32 (!%p37520_p7), 1536, %s187_s7  ;;  %s188_s29 = scalar_lea.sflag (!%p37520_p7), [#allocation4], %s187_s7 }
  0x5f   : > { %p37521_p5 = scmp.ne.s32.totalorder (!%p37520_p7), %s37515_s21, 0 }
  0x60   : > { %s35337_s10 = scalar_lea.vmem (!%p37520_p7), [#allocation3], %s34728_s24 }
  0x64   : > { %35119 = dma.done.wait (%p37521_p5), %s188_s29, 24576  }
  0x65   : > { %35121 = vsyncadd (%p37521_p5), %s188_s29, 4294942720  ;;  %s196_s25 = sand.u32 1, %s35197_s16   ;;  %s34729_s28 = smul.u32 12288, %s187_s7 }
  0x66   : > { %s197_s4 = scalar_lea.sflag [#allocation7], %s196_s25 }
  0x67   : > { %s35344_s8 = scalar_lea.vmem [#allocation6], %s34729_s28 }
  0x68   : > { %35123 = dma.done.wait (%p37521_p5), %s197_s4, 196608  }
  0x69   : > { %35125 = vsyncadd (%p37521_p5), %s197_s4, 4294770688  ;;  %p37522_p4 = scmp.eq.s32.totalorder %s35197_s16, 0 }
  0x6b   : > { %35127 = dma.done.wait (%p37522_p4), [#allocation7], 16   ;;  %p37523_p10 = pmov %p37522_p4 }
  0x6c   : > { %p37524_p11 = scmp.ne.s32.totalorder %s35197_s16, 0 }
  0x6d   : > { %35129 = vsyncadd (%p37523_p10), [#allocation7], 4294967280  ;;  %v33182_v0 = vld [vmem:[#allocation8] ss:$0 sm:$0xff] (!%p37524_p11)  ;;  %vm240_vm0 = vcmask (!%p37524_p11), 74752  }
  0x6e   : > { %232 = sbr.rel (%p37524_p11) target bundleno = 117 (0x75), region = 48  ;;  %241 = vst.msk [vmem:[#allocation2] sm:$0x3] (!%p37524_p11), %vm240_vm0, %v33182_v0 }
  0x75 PF: > { %v436_v1 = vld [vmem:[%s35344_s8 + $0x8] sm:$0xff]  ;;  %v435_v3 = vld [vmem:[%s35344_s8] sm:$0xff]  ;;  %v2167_v4 = vlaneseq  ;;  %v438_v7 = vld [vmem:[%s35344_s8 + $0x18] sm:$0xff]  ;;  %v35156_v9 = vmov 1983009808   ;;  %vm33076_vm1 = vcmask 74752  }
  0x76   : > { %v1204_v2 = vld [vmem:[%s35344_s8 + $0x1808] sm:$0x3]  ;;  %v1203_v6 = vld [vmem:[%s35344_s8 + $0x1800] sm:$0x3]  ;;  %v1206_v8 = vld [vmem:[%s35344_s8 + $0x1818] sm:$0x3]  ;;  %v2165_v10 = vunpack.c.l.s4 %v35156_v9 }
  0x77   : > { %v33190_v5 = vpack.c.bf16 %v1204_v2, %v436_v1  ;;  %v33192_v11 = vpack.c.bf16 %v1203_v6, %v435_v3  ;;  %v33194_v12 = vpack.c.bf16 %v1206_v8, %v438_v7  ;;  %v437_v13 = vld [vmem:[%s35344_s8 + $0x10] sm:$0xff]  ;;  %v243_v15 = vld [vmem:[%s35337_s10] sm:$0xff]  ;;  %v2168_v16 = vshrl.u32 %v2167_v4, 7  ;;  %v440_v20 = vld [vmem:[%s35344_s8 + $0x28] sm:$0xff]  ;;  %p33183_p12 = scmp.ne.s32.totalorder %s35197_s16, 1 }
  0x78   : > { %v1205_v14 = vld [vmem:[%s35344_s8 + $0x1810] sm:$0x3]  ;;  %v2166_v18 = vunpack.c.0.s8 %v2165_v10  ;;  %v2163_v19 = vcombine.high %v243_v15, %v243_v15  ;;  %v1208_v21 = vld [vmem:[%s35344_s8 + $0x1828] sm:$0x3]  ;;  %v442_v23 = vld [vmem:[%s35344_s8 + $0x38] sm:$0xff] }
  0x79   : > { %33191 = vmatprep.subr.bf16.mxu0 %v33190_v5  ;;  %v33196_v17 = vpack.c.bf16 %v1205_v14, %v437_v13  ;;  %33195 = vmatprep.subr.bf16.mxu1 %v33194_v12  ;;  %v33198_v22 = vpack.c.bf16 %v1208_v21, %v440_v20  ;;  %v1210_v24 = vld [vmem:[%s35344_s8 + $0x1838] sm:$0x3]  ;;  %v439_v26 = vld [vmem:[%s35344_s8 + $0x20] sm:$0xff]  ;;  %v244_v28 = vld [vmem:[%s35337_s10 + $0x8] sm:$0xff] }
  0x7a   : > { %33193 = vmatpush1.bf16.xpose.msra.mxu0 %v33192_v11  ;;  %v35369_v25 = vsub.s32 %v2166_v18, %v2168_v16  ;;  %v33202_v27 = vpack.c.bf16 %v1210_v24, %v442_v23  ;;  %v1207_v29 = vld [vmem:[%s35344_s8 + $0x1820] sm:$0x3]  ;;  %v441_v30 = vld [vmem:[%s35344_s8 + $0x30] sm:$0xff]  ;;  %v2180_v32 = vcombine.high %v244_v28, %v244_v28  ;;  %v444_v36 = vld [vmem:[%s35344_s8 + $0x48] sm:$0xff] }
  0x7b   : > { %33197 = vmatpush1.bf16.xpose.msra.mxu1 %v33196_v17  ;;  %33199 = vmatprep.subr.bf16.mxu0 %v33198_v22  ;;  %v1209_v31 = vld [vmem:[%s35344_s8 + $0x1830] sm:$0x3]  ;;  %v1212_v37 = vld [vmem:[%s35344_s8 + $0x1848] sm:$0x3]  ;;  %v446_v39 = vld [vmem:[%s35344_s8 + $0x58] sm:$0xff]  ;;  %v33200_v44 = vpack.c.bf16 %v1207_v29, %v439_v26 }
  0x7c   : > { %v2170_v33 = vrot.slane %v243_v15, %v35369_v25  ;;  %v2177_v34 = vrot.slane %v2163_v19, %v35369_v25  ;;  %33203 = vmatprep.subr.bf16.mxu1 %v33202_v27  ;;  %v2187_v35 = vrot.slane %v244_v28, %v35369_v25  ;;  %v2194_v38 = vrot.slane %v2180_v32, %v35369_v25  ;;  %v1214_v40 = vld [vmem:[%s35344_s8 + $0x1858] sm:$0x3]  ;;  %v245_v41 = vld [vmem:[%s35337_s10 + $0x10] sm:$0xff]  ;;  %v443_v51 = vld [vmem:[%s35344_s8 + $0x40] sm:$0xff] }
  0x7d   : > { %v33204_v45 = vpack.c.bf16 %v1209_v31, %v441_v30  ;;  %v33206_v47 = vpack.c.bf16 %v1212_v37, %v444_v36  ;;  %v33210_v49 = vpack.c.bf16 %v1214_v40, %v446_v39  ;;  %v2197_v50 = vcombine.high %v245_v41, %v245_v41  ;;  %v1211_v52 = vld [vmem:[%s35344_s8 + $0x1840] sm:$0x3]  ;;  %v445_v53 = vld [vmem:[%s35344_s8 + $0x50] sm:$0xff]  ;;  %v448_v56 = vld [vmem:[%s35344_s8 + $0x68] sm:$0xff] }
  0x7e   : > { %v2178_v42 = vcombine.high %v2170_v33, %v2170_v33  ;;  %v2179_v43 = vcombine.high %v2177_v34, %v2177_v34  ;;  %v2195_v46 = vcombine.high %v2187_v35, %v2187_v35  ;;  %v2196_v48 = vcombine.high %v2194_v38, %v2194_v38  ;;  %v1213_v54 = vld [vmem:[%s35344_s8 + $0x1850] sm:$0x3]  ;;  %v1216_v57 = vld [vmem:[%s35344_s8 + $0x1868] sm:$0x3]  ;;  %v450_v59 = vld [vmem:[%s35344_s8 + $0x78] sm:$0xff] }
  0x7f   : > { %v2204_v55 = vrot.slane %v245_v41, %v35369_v25  ;;  %v2211_v58 = vrot.slane %v2197_v50, %v35369_v25  ;;  %v1218_v60 = vld [vmem:[%s35344_s8 + $0x1878] sm:$0x3]  ;;  %v33208_v62 = vpack.c.bf16 %v1211_v52, %v443_v51  ;;  %v33212_v63 = vpack.c.bf16 %v1213_v54, %v445_v53  ;;  %v447_v5 = vld [vmem:[%s35344_s8 + $0x60] sm:$0xff]  ;;  %v449_v7 = vld [vmem:[%s35344_s8 + $0x70] sm:$0xff] }
  0x80   : > { %6259 = vmatprep.mubr.f32.mxu0 %v2178_v42  ;;  %6329 = vmatprep.mubr.f32.mxu1 %v2179_v43  ;;  %v246_v61 = vld [vmem:[%s35337_s10 + $0x18] sm:$0xff]  ;;  %v33214_v1 = vpack.c.bf16 %v1216_v57, %v448_v56  ;;  %v33218_v3 = vpack.c.bf16 %v1218_v60, %v450_v59  ;;  %v1215_v6 = vld [vmem:[%s35344_s8 + $0x1860] sm:$0x3]  ;;  %v1217_v8 = vld [vmem:[%s35344_s8 + $0x1870] sm:$0x3] }
  0x81   : > { %6260 = vmatmul.mubr.f32.vlgmr.msra.gmra.mrb[0].mxu0 %v2170_v33  ;;  %v2212_v0 = vcombine.high %v2204_v55, %v2204_v55  ;;  %v2213_v2 = vcombine.high %v2211_v58, %v2211_v58  ;;  %v2214_v4 = vcombine.high %v246_v61, %v246_v61  ;;  %v2221_v9 = vrot.slane %v246_v61, %v35369_v25  ;;  %v452_v10 = vld [vmem:[%s35344_s8 + $0x88] sm:$0xff]  ;;  %v454_v13 = vld [vmem:[%s35344_s8 + $0x98] sm:$0xff]  ;;  %v247_v15 = vld [vmem:[%s35337_s10 + $0x20] sm:$0xff] }
  0x82   : > { %6330 = vmatmul.mubr.f32.vlgmr.msra.gmra.mrb[0].mxu1 %v2177_v34  ;;  %33201 = vmatpush1.bf16.xpose.msra.mxu0 %v33200_v44  ;;  %v1220_v11 = vld [vmem:[%s35344_s8 + $0x1888] sm:$0x3]  ;;  %v1222_v14 = vld [vmem:[%s35344_s8 + $0x1898] sm:$0x3]  ;;  %v33216_v16 = vpack.c.bf16 %v1215_v6, %v447_v5  ;;  %v33220_v17 = vpack.c.bf16 %v1217_v8, %v449_v7  ;;  %v2231_v22 = vcombine.high %v247_v15, %v247_v15  ;;  %v451_v23 = vld [vmem:[%s35344_s8 + $0x80] sm:$0xff] }
  0x83   : > { %33205 = vmatpush1.bf16.xpose.msra.mxu1 %v33204_v45  ;;  %6399 = vmatprep.mubr.f32.mxu0 %v2195_v46  ;;  %v2228_v12 = vrot.slane %v2214_v4, %v35369_v25  ;;  %v2229_v18 = vcombine.high %v2221_v9, %v2221_v9  ;;  %v33222_v19 = vpack.c.bf16 %v1220_v11, %v452_v10  ;;  %v1219_v24 = vld [vmem:[%s35344_s8 + $0x1880] sm:$0x3]  ;;  %v453_v26 = vld [vmem:[%s35344_s8 + $0x90] sm:$0xff]  ;;  %v456_v29 = vld [vmem:[%s35344_s8 + $0xa8] sm:$0xff] }
  0x84   : > { %33207 = vmatprep.subr.bf16.mxu0 %v33206_v47  ;;  %6469 = vmatprep.mubr.f32.mxu1 %v2196_v48  ;;  %v33226_v21 = vpack.c.bf16 %v1222_v14, %v454_v13  ;;  %v1221_v27 = vld [vmem:[%s35344_s8 + $0x1890] sm:$0x3]  ;;  %v2238_v28 = vrot.slane %v247_v15, %v35369_v25  ;;  %v1224_v30 = vld [vmem:[%s35344_s8 + $0x18a8] sm:$0x3]  ;;  %v2245_v31 = vrot.slane %v2231_v22, %v35369_v25  ;;  %v458_v32 = vld [vmem:[%s35344_s8 + $0xb8] sm:$0xff] }
  0x85   : > { %33211 = vmatprep.subr.bf16.mxu1 %v33210_v49  ;;  %v2230_v20 = vcombine.high %v2228_v12, %v2228_v12  ;;  %v1226_v33 = vld [vmem:[%s35344_s8 + $0x18b8] sm:$0x3]  ;;  %v248_v34 = vld [vmem:[%s35337_s10 + $0x28] sm:$0xff]  ;;  %v33228_v36 = vpack.c.bf16 %v1221_v27, %v453_v26  ;;  %v455_v42 = vld [vmem:[%s35344_s8 + $0xa0] sm:$0xff] }
  0x86   : > { %v2246_v37 = vcombine.high %v2238_v28, %v2238_v28  ;;  %v2247_v39 = vcombine.high %v2245_v31, %v2245_v31  ;;  %v33234_v40 = vpack.c.bf16 %v1226_v33, %v458_v32  ;;  %v2248_v41 = vcombine.high %v248_v34, %v248_v34  ;;  %v1223_v43 = vld [vmem:[%s35344_s8 + $0x18a0] sm:$0x3]  ;;  %v457_v44 = vld [vmem:[%s35344_s8 + $0xb0] sm:$0xff]  ;;  %v460_v47 = vld [vmem:[%s35344_s8 + $0xc8] sm:$0xff] }
  0x87   : > { %v1225_v45 = vld [vmem:[%s35344_s8 + $0x18b0] sm:$0x3]  ;;  %v2255_v46 = vrot.slane %v248_v34, %v35369_v25  ;;  %v1228_v48 = vld [vmem:[%s35344_s8 + $0x18c8] sm:$0x3]  ;;  %v462_v50 = vld [vmem:[%s35344_s8 + $0xd8] sm:$0xff]  ;;  %v33232_v53 = vpack.c.bf16 %v1223_v43, %v455_v42 }
  0x88   : > { %v2262_v49 = vrot.slane %v2248_v41, %v35369_v25  ;;  %v1230_v51 = vld [vmem:[%s35344_s8 + $0x18d8] sm:$0x3]  ;;  %v249_v52 = vld [vmem:[%s35337_s10 + $0x30] sm:$0xff]  ;;  %v33236_v54 = vpack.c.bf16 %v1225_v45, %v457_v44  ;;  %v33238_v56 = vpack.c.bf16 %v1228_v48, %v460_v47  ;;  %v459_v60 = vld [vmem:[%s35344_s8 + $0xc0] sm:$0xff] }
  0x89   : > { %6400 = vmatmul.mubr.f32.vlgmr.msra.gmra.mrb[2].mxu0 %v2187_v35  ;;  %v33224_v35 = vpack.c.bf16 %v1219_v24, %v451_v23  ;;  %v2265_v59 = vcombine.high %v249_v52, %v249_v52  ;;  %v1227_v61 = vld [vmem:[%s35344_s8 + $0x18c0] sm:$0x3]  ;;  %v466_v4 = vld [vmem:[%s35344_s8 + $0xf8] sm:$0xff]  ;;  %v252_v43 = vld [vmem:[%s35337_s10 + $0x48] sm:$0xff] }
  0x8a   : > { %6470 = vmatmul.mubr.f32.vlgmr.msra.gmra.mrb[2].mxu1 %v2194_v38  ;;  %33209 = vmatpush1.bf16.xpose.msra.mxu0 %v33208_v62  ;;  %v33230_v38 = vpack.c.bf16 %v1224_v30, %v456_v29  ;;  %v2264_v57 = vcombine.high %v2262_v49, %v2262_v49  ;;  %v461_v62 = vld [vmem:[%s35344_s8 + $0xd0] sm:$0xff]  ;;  %v1234_v5 = vld [vmem:[%s35344_s8 + $0x18f8] sm:$0x3]  ;;  %v33240_v7 = vpack.c.bf16 %v1227_v61, %v459_v60  ;;  %v463_v14 = vld [vmem:[%s35344_s8 + $0xe0] sm:$0xff] }
  0x8b   : > { %33213 = vmatpush1.bf16.xpose.msra.mxu1 %v33212_v63  ;;  %6539 = vmatprep.mubr.f32.mxu0 %v2212_v0  ;;  %v1229_v63 = vld [vmem:[%s35344_s8 + $0x18d0] sm:$0x3]  ;;  %v2272_v0 = vrot.slane %v249_v52, %v35369_v25  ;;  %v250_v6 = vld [vmem:[%s35337_s10 + $0x38] sm:$0xff]  ;;  %v1231_v15 = vld [vmem:[%s35344_s8 + $0x18e0] sm:$0x3] }
  0x8c   : > { %33215 = vmatprep.subr.bf16.mxu0 %v33214_v1  ;;  %6609 = vmatprep.mubr.f32.mxu1 %v2213_v2  ;;  %v464_v1 = vld [vmem:[%s35344_s8 + $0xe8] sm:$0xff]  ;;  %v33244_v8 = vpack.c.bf16 %v1229_v63, %v461_v62  ;;  %v2282_v13 = vcombine.high %v250_v6, %v250_v6  ;;  %v470_v22 = vld [vmem:[%s35344_s8 + $0x118] sm:$0xff]  ;;  %v251_v24 = vld [vmem:[%s35337_s10 + $0x40] sm:$0xff]  ;;  %v33248_v26 = vpack.c.bf16 %v1231_v15, %v463_v14 }
  0x8d   : > { %33219 = vmatprep.subr.bf16.mxu1 %v33218_v3  ;;  %v1232_v2 = vld [vmem:[%s35344_s8 + $0x18e8] sm:$0x3]  ;;  %v2279_v3 = vrot.slane %v2265_v59, %v35369_v25  ;;  %v1238_v23 = vld [vmem:[%s35344_s8 + $0x1918] sm:$0x3]  ;;  %v2299_v32 = vcombine.high %v251_v24, %v251_v24  ;;  %v467_v33 = vld [vmem:[%s35344_s8 + $0x100] sm:$0xff] }
  0x8e   : > { %v33246_v10 = vpack.c.bf16 %v1232_v2, %v464_v1  ;;  %v1235_v34 = vld [vmem:[%s35344_s8 + $0x1900] sm:$0x3]  ;;  %v474_v41 = vld [vmem:[%s35344_s8 + $0x138] sm:$0xff]  ;;  %v253_v61 = vld [vmem:[%s35337_s10 + $0x50] sm:$0xff] }
  0x8f   : > { %v2281_v11 = vcombine.high %v2279_v3, %v2279_v3  ;;  %v1242_v42 = vld [vmem:[%s35344_s8 + $0x1938] sm:$0x3]  ;;  %v33256_v44 = vpack.c.bf16 %v1235_v34, %v467_v33  ;;  %v1239_v52 = vld [vmem:[%s35344_s8 + $0x1920] sm:$0x3] }
  0x90   : > { %v478_v59 = vld [vmem:[%s35344_s8 + $0x158] sm:$0xff]  ;;  %v255_v34 = vld [vmem:[%s35337_s10 + $0x60] sm:$0xff] }
  0x91   : > { %6540 = vmatmul.mubr.f32.vlgmr.msra.gmra.mrb[4].mxu0 %v2204_v55  ;;  %v2263_v55 = vcombine.high %v2255_v46, %v2255_v46  ;;  %v1246_v60 = vld [vmem:[%s35344_s8 + $0x1958] sm:$0x3] }
  0x92   : > { %6610 = vmatmul.mubr.f32.vlgmr.msra.gmra.mrb[4].mxu1 %v2211_v58  ;;  %33217 = vmatpush1.bf16.xpose.msra.mxu0 %v33216_v16  ;;  %v33242_v58 = vpack.c.bf16 %v1230_v51, %v462_v50  ;;  %v465_v16 = vld [vmem:[%s35344_s8 + $0xf0] sm:$0xff]  ;;  %v2316_v50 = vcombine.high %v252_v43, %v252_v43  ;;  %v471_v51 = vld [vmem:[%s35344_s8 + $0x120] sm:$0xff]  ;;  %v1250_v14 = vld [vmem:[%s35344_s8 + $0x1978] sm:$0x3] }
  0x93   : > { %33221 = vmatpush1.bf16.xpose.msra.mxu1 %v33220_v17  ;;  %6679 = vmatprep.mubr.f32.mxu0 %v2229_v18  ;;  %v1233_v17 = vld [vmem:[%s35344_s8 + $0x18f0] sm:$0x3]  ;;  %v2289_v18 = vrot.slane %v250_v6, %v35369_v25  ;;  %v33264_v62 = vpack.c.bf16 %v1239_v52, %v471_v51  ;;  %v1243_v6 = vld [vmem:[%s35344_s8 + $0x1940] sm:$0x3]  ;;  %v254_v15 = vld [vmem:[%s35337_s10 + $0x58] sm:$0xff] }
  0x94   : > { %33223 = vmatprep.subr.bf16.mxu0 %v33222_v19  ;;  %6749 = vmatprep.mubr.f32.mxu1 %v2230_v20  ;;  %v468_v19 = vld [vmem:[%s35344_s8 + $0x108] sm:$0xff]  ;;  %v33252_v27 = vpack.c.bf16 %v1233_v17, %v465_v16  ;;  %v1254_v33 = vld [vmem:[%s35344_s8 + $0x1998] sm:$0x3] }
  0x95   : > { %33227 = vmatprep.subr.bf16.mxu1 %v33226_v21  ;;  %v1236_v20 = vld [vmem:[%s35344_s8 + $0x1908] sm:$0x3]  ;;  %v2296_v21 = vrot.slane %v2282_v13, %v35369_v25  ;;  %v482_v13 = vld [vmem:[%s35344_s8 + $0x178] sm:$0xff] }
  0x96   : > { %v33254_v29 = vpack.c.bf16 %v1236_v20, %v468_v19  ;;  %v1258_v51 = vld [vmem:[%s35344_s8 + $0x19b8] sm:$0x3]  ;;  %v256_v52 = vld [vmem:[%s35337_s10 + $0x68] sm:$0xff] }
  0x97   : > { %v2298_v30 = vcombine.high %v2296_v21, %v2296_v21 }
  0x99   : > { %6680 = vmatmul.mubr.f32.vlgmr.msra.gmra.mrb[6].mxu0 %v2221_v9  ;;  %v2280_v9 = vcombine.high %v2272_v0, %v2272_v0 }
  0x9a   : > { %6750 = vmatmul.mubr.f32.vlgmr.msra.gmra.mrb[6].mxu1 %v2228_v12  ;;  %33225 = vmatpush1.bf16.xpose.msra.mxu0 %v33224_v35  ;;  %v33250_v12 = vpack.c.bf16 %v1234_v5, %v466_v4  ;;  %v469_v35 = vld [vmem:[%s35344_s8 + $0x110] sm:$0xff]  ;;  %v2333_v4 = vcombine.high %v253_v61, %v253_v61  ;;  %v475_v5 = vld [vmem:[%s35344_s8 + $0x140] sm:$0xff] }
  0x9b   : > { %33229 = vmatpush1.bf16.xpose.msra.mxu1 %v33228_v36  ;;  %6819 = vmatprep.mubr.f32.mxu0 %v2246_v37  ;;  %v1237_v36 = vld [vmem:[%s35344_s8 + $0x1910] sm:$0x3]  ;;  %v2306_v37 = vrot.slane %v251_v24, %v35369_v25  ;;  %v33272_v16 = vpack.c.bf16 %v1243_v6, %v475_v5  ;;  %v1247_v24 = vld [vmem:[%s35344_s8 + $0x1960] sm:$0x3]  ;;  %v1262_v5 = vld [vmem:[%s35344_s8 + $0x19d8] sm:$0x3] }
  0x9c   : > { %33231 = vmatprep.subr.bf16.mxu0 %v33230_v38  ;;  %6889 = vmatprep.mubr.f32.mxu1 %v2247_v39  ;;  %v472_v38 = vld [vmem:[%s35344_s8 + $0x128] sm:$0xff]  ;;  %v33260_v45 = vpack.c.bf16 %v1237_v36, %v469_v35  ;;  %v257_v6 = vld [vmem:[%s35337_s10 + $0x70] sm:$0xff] }
  0x9d   : > { %33235 = vmatprep.subr.bf16.mxu1 %v33234_v40  ;;  %v1240_v39 = vld [vmem:[%s35344_s8 + $0x1928] sm:$0x3]  ;;  %v2313_v40 = vrot.slane %v2299_v32, %v35369_v25  ;;  %v486_v32 = vld [vmem:[%s35344_s8 + $0x198] sm:$0xff] }
  0x9e   : > { %v33262_v47 = vpack.c.bf16 %v1240_v39, %v472_v38 }
  0x9f   : > { %v2315_v48 = vcombine.high %v2313_v40, %v2313_v40 }
  0xa1   : > { %6820 = vmatmul.mubr.f32.vlgmr.msra.gmra.mrb[8].mxu0 %v2238_v28  ;;  %v2297_v28 = vcombine.high %v2289_v18, %v2289_v18 }
  0xa2   : > { %6890 = vmatmul.mubr.f32.vlgmr.msra.gmra.mrb[8].mxu1 %v2245_v31  ;;  %33233 = vmatpush1.bf16.xpose.msra.mxu0 %v33232_v53  ;;  %v33258_v31 = vpack.c.bf16 %v1238_v23, %v470_v22  ;;  %v473_v53 = vld [vmem:[%s35344_s8 + $0x130] sm:$0xff]  ;;  %v2350_v22 = vcombine.high %v254_v15, %v254_v15  ;;  %v479_v23 = vld [vmem:[%s35344_s8 + $0x160] sm:$0xff] }
  0xa3   : > { %33237 = vmatpush1.bf16.xpose.msra.mxu1 %v33236_v54  ;;  %6959 = vmatprep.mubr.f32.mxu0 %v2263_v55  ;;  %v1241_v54 = vld [vmem:[%s35344_s8 + $0x1930] sm:$0x3]  ;;  %v2323_v55 = vrot.slane %v252_v43, %v35369_v25  ;;  %v33280_v35 = vpack.c.bf16 %v1247_v24, %v479_v23  ;;  %v1251_v43 = vld [vmem:[%s35344_s8 + $0x1980] sm:$0x3]  ;;  %v1266_v23 = vld [vmem:[%s35344_s8 + $0x19f8] sm:$0x3] }
  0xa4   : > { %33239 = vmatprep.subr.bf16.mxu0 %v33238_v56  ;;  %7029 = vmatprep.mubr.f32.mxu1 %v2264_v57  ;;  %v476_v56 = vld [vmem:[%s35344_s8 + $0x148] sm:$0xff]  ;;  %v33268_v63 = vpack.c.bf16 %v1241_v54, %v473_v53  ;;  %v258_v24 = vld [vmem:[%s35337_s10 + $0x78] sm:$0xff] }
  0xa5   : > { %33243 = vmatprep.subr.bf16.mxu1 %v33242_v58  ;;  %v1244_v57 = vld [vmem:[%s35344_s8 + $0x1948] sm:$0x3]  ;;  %v2330_v58 = vrot.slane %v2316_v50, %v35369_v25  ;;  %v490_v50 = vld [vmem:[%s35344_s8 + $0x1b8] sm:$0xff] }
  0xa6   : > { %v33270_v1 = vpack.c.bf16 %v1244_v57, %v476_v56 }
  0xa7   : > { %v2332_v2 = vcombine.high %v2330_v58, %v2330_v58 }
  0xa9   : > { %6960 = vmatmul.mubr.f32.vlgmr.msra.gmra.mrb[10].mxu0 %v2255_v46  ;;  %v2314_v46 = vcombine.high %v2306_v37, %v2306_v37 }
  0xaa   : > { %7030 = vmatmul.mubr.f32.vlgmr.msra.gmra.mrb[10].mxu1 %v2262_v49  ;;  %33241 = vmatpush1.bf16.xpose.msra.mxu0 %v33240_v7  ;;  %v33266_v49 = vpack.c.bf16 %v1242_v42, %v474_v41  ;;  %v477_v7 = vld [vmem:[%s35344_s8 + $0x150] sm:$0xff]  ;;  %v2367_v41 = vcombine.high %v255_v34, %v255_v34  ;;  %v483_v42 = vld [vmem:[%s35344_s8 + $0x180] sm:$0xff] }
  0xab   : > { %33245 = vmatpush1.bf16.xpose.msra.mxu1 %v33244_v8  ;;  %7099 = vmatprep.mubr.f32.mxu0 %v2280_v9  ;;  %v1245_v8 = vld [vmem:[%s35344_s8 + $0x1950] sm:$0x3]  ;;  %v2340_v9 = vrot.slane %v253_v61, %v35369_v25  ;;  %v33288_v53 = vpack.c.bf16 %v1251_v43, %v483_v42  ;;  %v1255_v61 = vld [vmem:[%s35344_s8 + $0x19a0] sm:$0x3]  ;;  %v1270_v42 = vld [vmem:[%s35344_s8 + $0x1a18] sm:$0x3] }
  0xac   : > { %33247 = vmatprep.subr.bf16.mxu0 %v33246_v10  ;;  %7169 = vmatprep.mubr.f32.mxu1 %v2281_v11  ;;  %v480_v10 = vld [vmem:[%s35344_s8 + $0x168] sm:$0xff]  ;;  %v33276_v17 = vpack.c.bf16 %v1245_v8, %v477_v7  ;;  %v259_v43 = vld [vmem:[%s35337_s10 + $0x80] sm:$0xff] }
  0xad   : > { %33251 = vmatprep.subr.bf16.mxu1 %v33250_v12  ;;  %v1248_v11 = vld [vmem:[%s35344_s8 + $0x1968] sm:$0x3]  ;;  %v2347_v12 = vrot.slane %v2333_v4, %v35369_v25  ;;  %v494_v4 = vld [vmem:[%s35344_s8 + $0x1d8] sm:$0xff] }
  0xae   : > { %v33278_v19 = vpack.c.bf16 %v1248_v11, %v480_v10 }
  0xaf   : > { %v2349_v20 = vcombine.high %v2347_v12, %v2347_v12 }
  0xb1   : > { %7100 = vmatmul.mubr.f32.vlgmr.msra.gmra.mrb[12].mxu0 %v2272_v0  ;;  %v2331_v0 = vcombine.high %v2323_v55, %v2323_v55 }
  0xb2   : > { %7170 = vmatmul.mubr.f32.vlgmr.msra.gmra.mrb[12].mxu1 %v2279_v3  ;;  %33249 = vmatpush1.bf16.xpose.msra.mxu0 %v33248_v26  ;;  %v33274_v3 = vpack.c.bf16 %v1246_v60, %v478_v59  ;;  %v481_v26 = vld [vmem:[%s35344_s8 + $0x170] sm:$0xff]  ;;  %v2384_v59 = vcombine.high %v256_v52, %v256_v52  ;;  %v487_v60 = vld [vmem:[%s35344_s8 + $0x1a0] sm:$0xff] }
  0xb3   : > { %33253 = vmatpush1.bf16.xpose.msra.mxu1 %v33252_v27  ;;  %7239 = vmatprep.mubr.f32.mxu0 %v2297_v28  ;;  %v1249_v27 = vld [vmem:[%s35344_s8 + $0x1970] sm:$0x3]  ;;  %v2357_v28 = vrot.slane %v254_v15, %v35369_v25  ;;  %v33296_v7 = vpack.c.bf16 %v1255_v61, %v487_v60  ;;  %v1259_v15 = vld [vmem:[%s35344_s8 + $0x19c0] sm:$0x3]  ;;  %v1274_v60 = vld [vmem:[%s35344_s8 + $0x1a38] sm:$0x3] }
  0xb4   : > { %33255 = vmatprep.subr.bf16.mxu0 %v33254_v29  ;;  %7309 = vmatprep.mubr.f32.mxu1 %v2298_v30  ;;  %v484_v29 = vld [vmem:[%s35344_s8 + $0x188] sm:$0xff]  ;;  %v33284_v36 = vpack.c.bf16 %v1249_v27, %v481_v26 }
  0xb5   : > { %33259 = vmatprep.subr.bf16.mxu1 %v33258_v31  ;;  %v1252_v30 = vld [vmem:[%s35344_s8 + $0x1988] sm:$0x3]  ;;  %v2364_v31 = vrot.slane %v2350_v22, %v35369_v25  ;;  %v498_v22 = vld [vmem:[%s35344_s8 + $0x1f8] sm:$0xff] }
  0xb6   : > { %v33286_v38 = vpack.c.bf16 %v1252_v30, %v484_v29  ;;  %v260_v61 = vld [vmem:[%s35337_s10 + $0x88] sm:$0xff] }
  0xb7   : > { %v2366_v39 = vcombine.high %v2364_v31, %v2364_v31 }
  0xb9   : > { %7240 = vmatmul.mubr.f32.vlgmr.msra.gmra.mrb[14].mxu0 %v2289_v18  ;;  %v2348_v18 = vcombine.high %v2340_v9, %v2340_v9 }
  0xba   : > { %7310 = vmatmul.mubr.f32.vlgmr.msra.gmra.mrb[14].mxu1 %v2296_v21  ;;  %33257 = vmatpush1.bf16.xpose.msra.mxu0 %v33256_v44  ;;  %v33282_v21 = vpack.c.bf16 %v1250_v14, %v482_v13  ;;  %v485_v44 = vld [vmem:[%s35344_s8 + $0x190] sm:$0xff]  ;;  %v2401_v13 = vcombine.high %v257_v6, %v257_v6  ;;  %v491_v14 = vld [vmem:[%s35344_s8 + $0x1c0] sm:$0xff] }
  0xbb   : > { %33261 = vmatpush1.bf16.xpose.msra.mxu1 %v33260_v45  ;;  %7379 = vmatprep.mubr.f32.mxu0 %v2314_v46  ;;  %v1253_v45 = vld [vmem:[%s35344_s8 + $0x1990] sm:$0x3]  ;;  %v2374_v46 = vrot.slane %v255_v34, %v35369_v25  ;;  %v33304_v26 = vpack.c.bf16 %v1259_v15, %v491_v14  ;;  %v1263_v34 = vld [vmem:[%s35344_s8 + $0x19e0] sm:$0x3]  ;;  %v1278_v14 = vld [vmem:[%s35344_s8 + $0x1a58] sm:$0x3] }
  0xbc   : > { %33263 = vmatprep.subr.bf16.mxu0 %v33262_v47  ;;  %7449 = vmatprep.mubr.f32.mxu1 %v2315_v48  ;;  %v488_v47 = vld [vmem:[%s35344_s8 + $0x1a8] sm:$0xff]  ;;  %v33292_v54 = vpack.c.bf16 %v1253_v45, %v485_v44  ;;  %v261_v15 = vld [vmem:[%s35337_s10 + $0x90] sm:$0xff] }
  0xbd   : > { %33267 = vmatprep.subr.bf16.mxu1 %v33266_v49  ;;  %v1256_v48 = vld [vmem:[%s35344_s8 + $0x19a8] sm:$0x3]  ;;  %v2381_v49 = vrot.slane %v2367_v41, %v35369_v25  ;;  %v502_v41 = vld [vmem:[%s35344_s8 + $0x218] sm:$0xff] }
  0xbe   : > { %v33294_v56 = vpack.c.bf16 %v1256_v48, %v488_v47 }
  0xbf   : > { %v2383_v57 = vcombine.high %v2381_v49, %v2381_v49 }
  0xc1   : > { %7380 = vmatmul.mubr.f32.vlgmr.msra.gmra.mrb[16].mxu0 %v2306_v37  ;;  %v2365_v37 = vcombine.high %v2357_v28, %v2357_v28 }
  0xc2   : > { %7450 = vmatmul.mubr.f32.vlgmr.msra.gmra.mrb[16].mxu1 %v2313_v40  ;;  %33265 = vmatpush1.bf16.xpose.msra.mxu0 %v33264_v62  ;;  %v33290_v40 = vpack.c.bf16 %v1254_v33, %v486_v32  ;;  %v489_v62 = vld [vmem:[%s35344_s8 + $0x1b0] sm:$0xff]  ;;  %v2418_v32 = vcombine.high %v258_v24, %v258_v24  ;;  %v495_v33 = vld [vmem:[%s35344_s8 + $0x1e0] sm:$0xff] }
  0xc3   : > { %33269 = vmatpush1.bf16.xpose.msra.mxu1 %v33268_v63  ;;  %7519 = vmatprep.mubr.f32.mxu0 %v2331_v0  ;;  %v1257_v63 = vld [vmem:[%s35344_s8 + $0x19b0] sm:$0x3]  ;;  %v2391_v0 = vrot.slane %v256_v52, %v35369_v25  ;;  %v33312_v44 = vpack.c.bf16 %v1263_v34, %v495_v33  ;;  %v1267_v52 = vld [vmem:[%s35344_s8 + $0x1a00] sm:$0x3]  ;;  %v1282_v33 = vld [vmem:[%s35344_s8 + $0x1a78] sm:$0x3] }
  0xc4   : > { %33271 = vmatprep.subr.bf16.mxu0 %v33270_v1  ;;  %7589 = vmatprep.mubr.f32.mxu1 %v2332_v2  ;;  %v492_v1 = vld [vmem:[%s35344_s8 + $0x1c8] sm:$0xff]  ;;  %v33300_v8 = vpack.c.bf16 %v1257_v63, %v489_v62  ;;  %v262_v34 = vld [vmem:[%s35337_s10 + $0x98] sm:$0xff] }
  0xc5   : > { %33275 = vmatprep.subr.bf16.mxu1 %v33274_v3  ;;  %v1260_v2 = vld [vmem:[%s35344_s8 + $0x19c8] sm:$0x3]  ;;  %v2398_v3 = vrot.slane %v2384_v59, %v35369_v25  ;;  %v506_v59 = vld [vmem:[%s35344_s8 + $0x238] sm:$0xff] }
  0xc6   : > { %v33302_v10 = vpack.c.bf16 %v1260_v2, %v492_v1 }
  0xc7   : > { %v2400_v11 = vcombine.high %v2398_v3, %v2398_v3 }
  0xc9   : > { %7520 = vmatmul.mubr.f32.vlgmr.msra.gmra.mrb[18].mxu0 %v2323_v55  ;;  %v2382_v55 = vcombine.high %v2374_v46, %v2374_v46 }
  0xca   : > { %7590 = vmatmul.mubr.f32.vlgmr.msra.gmra.mrb[18].mxu1 %v2330_v58  ;;  %33273 = vmatpush1.bf16.xpose.msra.mxu0 %v33272_v16  ;;  %v33298_v58 = vpack.c.bf16 %v1258_v51, %v490_v50  ;;  %v493_v16 = vld [vmem:[%s35344_s8 + $0x1d0] sm:$0xff]  ;;  %v2435_v50 = vcombine.high %v259_v43, %v259_v43  ;;  %v499_v51 = vld [vmem:[%s35344_s8 + $0x200] sm:$0xff] }
  0xcb   : > { %33277 = vmatpush1.bf16.xpose.msra.mxu1 %v33276_v17  ;;  %7659 = vmatprep.mubr.f32.mxu0 %v2348_v18  ;;  %v1261_v17 = vld [vmem:[%s35344_s8 + $0x19d0] sm:$0x3]  ;;  %v2408_v18 = vrot.slane %v257_v6, %v35369_v25  ;;  %v33320_v62 = vpack.c.bf16 %v1267_v52, %v499_v51  ;;  %v1271_v6 = vld [vmem:[%s35344_s8 + $0x1a20] sm:$0x3]  ;;  %v1286_v51 = vld [vmem:[%s35344_s8 + $0x1a98] sm:$0x3] }
  0xcc   : > { %33279 = vmatprep.subr.bf16.mxu0 %v33278_v19  ;;  %7729 = vmatprep.mubr.f32.mxu1 %v2349_v20  ;;  %v496_v19 = vld [vmem:[%s35344_s8 + $0x1e8] sm:$0xff]  ;;  %v33308_v27 = vpack.c.bf16 %v1261_v17, %v493_v16  ;;  %v263_v52 = vld [vmem:[%s35337_s10 + $0xa0] sm:$0xff] }
  0xcd   : > { %33283 = vmatprep.subr.bf16.mxu1 %v33282_v21  ;;  %v1264_v20 = vld [vmem:[%s35344_s8 + $0x19e8] sm:$0x3]  ;;  %v2415_v21 = vrot.slane %v2401_v13, %v35369_v25  ;;  %v510_v13 = vld [vmem:[%s35344_s8 + $0x258] sm:$0xff] }
  0xce   : > { %v33310_v29 = vpack.c.bf16 %v1264_v20, %v496_v19 }
  0xcf   : > { %v2417_v30 = vcombine.high %v2415_v21, %v2415_v21 }
  0xd1   : > { %7660 = vmatmul.mubr.f32.vlgmr.msra.gmra.mrb[20].mxu0 %v2340_v9  ;;  %v2399_v9 = vcombine.high %v2391_v0, %v2391_v0 }
  0xd2   : > { %7730 = vmatmul.mubr.f32.vlgmr.msra.gmra.mrb[20].mxu1 %v2347_v12  ;;  %33281 = vmatpush1.bf16.xpose.msra.mxu0 %v33280_v35  ;;  %v33306_v12 = vpack.c.bf16 %v1262_v5, %v494_v4  ;;  %v497_v35 = vld [vmem:[%s35344_s8 + $0x1f0] sm:$0xff]  ;;  %v2452_v4 = vcombine.high %v260_v61, %v260_v61  ;;  %v503_v5 = vld [vmem:[%s35344_s8 + $0x220] sm:$0xff] }
  0xd3   : > { %33285 = vmatpush1.bf16.xpose.msra.mxu1 %v33284_v36  ;;  %7799 = vmatprep.mubr.f32.mxu0 %v2365_v37  ;;  %v1265_v36 = vld [vmem:[%s35344_s8 + $0x19f0] sm:$0x3]  ;;  %v2425_v37 = vrot.slane %v258_v24, %v35369_v25  ;;  %v33328_v16 = vpack.c.bf16 %v1271_v6, %v503_v5  ;;  %v1275_v24 = vld [vmem:[%s35344_s8 + $0x1a40] sm:$0x3]  ;;  %v1290_v5 = vld [vmem:[%s35344_s8 + $0x1ab8] sm:$0x3] }
  0xd4   : > { %33287 = vmatprep.subr.bf16.mxu0 %v33286_v38  ;;  %7869 = vmatprep.mubr.f32.mxu1 %v2366_v39  ;;  %v500_v38 = vld [vmem:[%s35344_s8 + $0x208] sm:$0xff]  ;;  %v33316_v45 = vpack.c.bf16 %v1265_v36, %v497_v35 }
  0xd5   : > { %33291 = vmatprep.subr.bf16.mxu1 %v33290_v40  ;;  %v1268_v39 = vld [vmem:[%s35344_s8 + $0x1a08] sm:$0x3]  ;;  %v2432_v40 = vrot.slane %v2418_v32, %v35369_v25  ;;  %v514_v32 = vld [vmem:[%s35344_s8 + $0x278] sm:$0xff] }
  0xd6   : > { %v33318_v47 = vpack.c.bf16 %v1268_v39, %v500_v38  ;;  %v264_v6 = vld [vmem:[%s35337_s10 + $0xa8] sm:$0xff] }
  0xd7   : > { %v2434_v48 = vcombine.high %v2432_v40, %v2432_v40 }
  0xd9   : > { %7800 = vmatmul.mubr.f32.vlgmr.msra.gmra.mrb[22].mxu0 %v2357_v28  ;;  %v2416_v28 = vcombine.high %v2408_v18, %v2408_v18 }
  0xda   : > { %7870 = vmatmul.mubr.f32.vlgmr.msra.gmra.mrb[22].mxu1 %v2364_v31  ;;  %33289 = vmatpush1.bf16.xpose.msra.mxu0 %v33288_v53  ;;  %v33314_v31 = vpack.c.bf16 %v1266_v23, %v498_v22  ;;  %v501_v53 = vld [vmem:[%s35344_s8 + $0x210] sm:$0xff]  ;;  %v2469_v22 = vcombine.high %v261_v15, %v261_v15  ;;  %v507_v23 = vld [vmem:[%s35344_s8 + $0x240] sm:$0xff] }
  0xdb   : > { %33293 = vmatpush1.bf16.xpose.msra.mxu1 %v33292_v54  ;;  %7939 = vmatprep.mubr.f32.mxu0 %v2382_v55  ;;  %v1269_v54 = vld [vmem:[%s35344_s8 + $0x1a10] sm:$0x3]  ;;  %v2442_v55 = vrot.slane %v259_v43, %v35369_v25  ;;  %v33336_v35 = vpack.c.bf16 %v1275_v24, %v507_v23  ;;  %v1279_v43 = vld [vmem:[%s35344_s8 + $0x1a60] sm:$0x3]  ;;  %v1294_v23 = vld [vmem:[%s35344_s8 + $0x1ad8] sm:$0x3] }
  0xdc   : > { %33295 = vmatprep.subr.bf16.mxu0 %v33294_v56  ;;  %8009 = vmatprep.mubr.f32.mxu1 %v2383_v57  ;;  %v504_v56 = vld [vmem:[%s35344_s8 + $0x228] sm:$0xff]  ;;  %v33324_v63 = vpack.c.bf16 %v1269_v54, %v501_v53  ;;  %v265_v24 = vld [vmem:[%s35337_s10 + $0xb0] sm:$0xff] }
  0xdd   : > { %33299 = vmatprep.subr.bf16.mxu1 %v33298_v58  ;;  %v1272_v57 = vld [vmem:[%s35344_s8 + $0x1a28] sm:$0x3]  ;;  %v2449_v58 = vrot.slane %v2435_v50, %v35369_v25  ;;  %v518_v50 = vld [vmem:[%s35344_s8 + $0x298] sm:$0xff] }
  0xde   : > { %v33326_v1 = vpack.c.bf16 %v1272_v57, %v504_v56 }
  0xdf   : > { %v2451_v2 = vcombine.high %v2449_v58, %v2449_v58 }
  0xe1   : > { %7940 = vmatmul.mubr.f32.vlgmr.msra.gmra.mrb[24].mxu0 %v2374_v46  ;;  %v2433_v46 = vcombine.high %v2425_v37, %v2425_v37 }
  0xe2   : > { %8010 = vmatmul.mubr.f32.vlgmr.msra.gmra.mrb[24].mxu1 %v2381_v49  ;;  %33297 = vmatpush1.bf16.xpose.msra.mxu0 %v33296_v7  ;;  %v33322_v49 = vpack.c.bf16 %v1270_v42, %v502_v41  ;;  %v505_v7 = vld [vmem:[%s35344_s8 + $0x230] sm:$0xff]  ;;  %v2486_v41 = vcombine.high %v262_v34, %v262_v34  ;;  %v511_v42 = vld [vmem:[%s35344_s8 + $0x260] sm:$0xff] }
  0xe3   : > { %33301 = vmatpush1.bf16.xpose.msra.mxu1 %v33300_v8  ;;  %8079 = vmatprep.mubr.f32.mxu0 %v2399_v9  ;;  %v1273_v8 = vld [vmem:[%s35344_s8 + $0x1a30] sm:$0x3]  ;;  %v2459_v9 = vrot.slane %v260_v61, %v35369_v25  ;;  %v33344_v53 = vpack.c.bf16 %v1279_v43, %v511_v42  ;;  %v1283_v61 = vld [vmem:[%s35344_s8 + $0x1a80] sm:$0x3]  ;;  %v1298_v42 = vld [vmem:[%s35344_s8 + $0x1af8] sm:$0x3] }
  0xe4   : > { %33303 = vmatprep.subr.bf16.mxu0 %v33302_v10  ;;  %8149 = vmatprep.mubr.f32.mxu1 %v2400_v11  ;;  %v508_v10 = vld [vmem:[%s35344_s8 + $0x248] sm:$0xff]  ;;  %v33332_v17 = vpack.c.bf16 %v1273_v8, %v505_v7  ;;  %v266_v43 = vld [vmem:[%s35337_s10 + $0xb8] sm:$0xff] }
  0xe5   : > { %33307 = vmatprep.subr.bf16.mxu1 %v33306_v12  ;;  %v1276_v11 = vld [vmem:[%s35344_s8 + $0x1a48] sm:$0x3]  ;;  %v2466_v12 = vrot.slane %v2452_v4, %v35369_v25  ;;  %v522_v4 = vld [vmem:[%s35344_s8 + $0x2b8] sm:$0xff] }
  0xe6   : > { %v33334_v19 = vpack.c.bf16 %v1276_v11, %v508_v10 }
  0xe7   : > { %v2468_v20 = vcombine.high %v2466_v12, %v2466_v12 }
  0xe9   : > { %8080 = vmatmul.mubr.f32.vlgmr.msra.gmra.mrb[26].mxu0 %v2391_v0  ;;  %v2450_v0 = vcombine.high %v2442_v55, %v2442_v55 }
  0xea   : > { %8150 = vmatmul.mubr.f32.vlgmr.msra.gmra.mrb[26].mxu1 %v2398_v3  ;;  %33305 = vmatpush1.bf16.xpose.msra.mxu0 %v33304_v26  ;;  %v33330_v3 = vpack.c.bf16 %v1274_v60, %v506_v59  ;;  %v509_v26 = vld [vmem:[%s35344_s8 + $0x250] sm:$0xff]  ;;  %v2503_v59 = vcombine.high %v263_v52, %v263_v52  ;;  %v515_v60 = vld [vmem:[%s35344_s8 + $0x280] sm:$0xff] }
  0xeb   : > { %33309 = vmatpush1.bf16.xpose.msra.mxu1 %v33308_v27  ;;  %8219 = vmatprep.mubr.f32.mxu0 %v2416_v28  ;;  %v1277_v27 = vld [vmem:[%s35344_s8 + $0x1a50] sm:$0x3]  ;;  %v2476_v28 = vrot.slane %v261_v15, %v35369_v25  ;;  %v33352_v7 = vpack.c.bf16 %v1283_v61, %v515_v60  ;;  %v1287_v15 = vld [vmem:[%s35344_s8 + $0x1aa0] sm:$0x3]  ;;  %v1302_v60 = vld [vmem:[%s35344_s8 + $0x1b18] sm:$0x3] }
  0xec   : > { %33311 = vmatprep.subr.bf16.mxu0 %v33310_v29  ;;  %8289 = vmatprep.mubr.f32.mxu1 %v2417_v30  ;;  %v512_v29 = vld [vmem:[%s35344_s8 + $0x268] sm:$0xff]  ;;  %v33340_v36 = vpack.c.bf16 %v1277_v27, %v509_v26  ;;  %v267_v61 = vld [vmem:[%s35337_s10 + $0xc0] sm:$0xff] }
  0xed   : > { %33315 = vmatprep.subr.bf16.mxu1 %v33314_v31  ;;  %v1280_v30 = vld [vmem:[%s35344_s8 + $0x1a68] sm:$0x3]  ;;  %v2483_v31 = vrot.slane %v2469_v22, %v35369_v25  ;;  %v526_v22 = vld [vmem:[%s35344_s8 + $0x2d8] sm:$0xff] }
  0xee   : > { %v33342_v38 = vpack.c.bf16 %v1280_v30, %v512_v29 }
  0xef   : > { %v2485_v39 = vcombine.high %v2483_v31, %v2483_v31 }
  0xf1   : > { %8220 = vmatmul.mubr.f32.vlgmr.msra.gmra.mrb[28].mxu0 %v2408_v18  ;;  %v2467_v18 = vcombine.high %v2459_v9, %v2459_v9 }
  0xf2   : > { %8290 = vmatmul.mubr.f32.vlgmr.msra.gmra.mrb[28].mxu1 %v2415_v21  ;;  %33313 = vmatpush1.bf16.xpose.msra.mxu0 %v33312_v44  ;;  %v33338_v21 = vpack.c.bf16 %v1278_v14, %v510_v13  ;;  %v513_v44 = vld [vmem:[%s35344_s8 + $0x270] sm:$0xff]  ;;  %v2520_v13 = vcombine.high %v264_v6, %v264_v6  ;;  %v519_v14 = vld [vmem:[%s35344_s8 + $0x2a0] sm:$0xff] }
  0xf3   : > { %33317 = vmatpush1.bf16.xpose.msra.mxu1 %v33316_v45  ;;  %8359 = vmatprep.mubr.f32.mxu0 %v2433_v46  ;;  %v1281_v45 = vld [vmem:[%s35344_s8 + $0x1a70] sm:$0x3]  ;;  %v2493_v46 = vrot.slane %v262_v34, %v35369_v25  ;;  %v33360_v26 = vpack.c.bf16 %v1287_v15, %v519_v14  ;;  %v1291_v34 = vld [vmem:[%s35344_s8 + $0x1ac0] sm:$0x3]  ;;  %v1306_v14 = vld [vmem:[%s35344_s8 + $0x1b38] sm:$0x3] }
  0xf4   : > { %33319 = vmatprep.subr.bf16.mxu0 %v33318_v47  ;;  %8429 = vmatprep.mubr.f32.mxu1 %v2434_v48  ;;  %v516_v47 = vld [vmem:[%s35344_s8 + $0x288] sm:$0xff]  ;;  %v33348_v54 = vpack.c.bf16 %v1281_v45, %v513_v44 }
  0xf5   : > { %33323 = vmatprep.subr.bf16.mxu1 %v33322_v49  ;;  %v1284_v48 = vld [vmem:[%s35344_s8 + $0x1a88] sm:$0x3]  ;;  %v2500_v49 = vrot.slane %v2486_v41, %v35369_v25  ;;  %v530_v41 = vld [vmem:[%s35344_s8 + $0x2f8] sm:$0xff] }
  0xf6   : > { %v33350_v56 = vpack.c.bf16 %v1284_v48, %v516_v47  ;;  %v268_v15 = vld [vmem:[%s35337_s10 + $0xc8] sm:$0xff] }
  0xf7   : > { %v2502_v57 = vcombine.high %v2500_v49, %v2500_v49 }
  0xf9   : > { %8360 = vmatmul.mubr.f32.vlgmr.msra.gmra.mrb[30].mxu0 %v2425_v37  ;;  %v2484_v37 = vcombine.high %v2476_v28, %v2476_v28 }
  0xfa   : > { %8430 = vmatmul.mubr.f32.vlgmr.msra.gmra.mrb[30].mxu1 %v2432_v40  ;;  %33321 = vmatpush1.bf16.xpose.msra.mxu0 %v33320_v62  ;;  %v33346_v40 = vpack.c.bf16 %v1282_v33, %v514_v32  ;;  %v517_v62 = vld [vmem:[%s35344_s8 + $0x290] sm:$0xff]  ;;  %v2537_v32 = vcombine.high %v265_v24, %v265_v24  ;;  %v523_v33 = vld [vmem:[%s35344_s8 + $0x2c0] sm:$0xff] }
  0xfb   : > { %33325 = vmatpush1.bf16.xpose.msra.mxu1 %v33324_v63  ;;  %8499 = vmatprep.mubr.f32.mxu0 %v2450_v0  ;;  %v1285_v63 = vld [vmem:[%s35344_s8 + $0x1a90] sm:$0x3]  ;;  %v2510_v0 = vrot.slane %v263_v52, %v35369_v25  ;;  %v33368_v44 = vpack.c.bf16 %v1291_v34, %v523_v33  ;;  %v1295_v52 = vld [vmem:[%s35344_s8 + $0x1ae0] sm:$0x3]  ;;  %v1310_v33 = vld [vmem:[%s35344_s8 + $0x1b58] sm:$0x3] }
  0xfc   : > { %33327 = vmatprep.subr.bf16.mxu0 %v33326_v1  ;;  %8569 = vmatprep.mubr.f32.mxu1 %v2451_v2  ;;  %v520_v1 = vld [vmem:[%s35344_s8 + $0x2a8] sm:$0xff]  ;;  %v33356_v8 = vpack.c.bf16 %v1285_v63, %v517_v62  ;;  %v269_v34 = vld [vmem:[%s35337_s10 + $0xd0] sm:$0xff] }
  0xfd   : > { %33331 = vmatprep.subr.bf16.mxu1 %v33330_v3  ;;  %v1288_v2 = vld [vmem:[%s35344_s8 + $0x1aa8] sm:$0x3]  ;;  %v2517_v3 = vrot.slane %v2503_v59, %v35369_v25  ;;  %v534_v59 = vld [vmem:[%s35344_s8 + $0x318] sm:$0xff] }
  0xfe   : > { %v33358_v10 = vpack.c.bf16 %v1288_v2, %v520_v1 }
  0xff   : > { %v2519_v11 = vcombine.high %v2517_v3, %v2517_v3 }
 0x101   : > { %8500 = vmatmul.mubr.f32.vlgmr.msra.gmra.mrb[32].mxu0 %v2442_v55  ;;  %v2501_v55 = vcombine.high %v2493_v46, %v2493_v46 }
 0x102   : > { %8570 = vmatmul.mubr.f32.vlgmr.msra.gmra.mrb[32].mxu1 %v2449_v58  ;;  %33329 = vmatpush1.bf16.xpose.msra.mxu0 %v33328_v16  ;;  %v33354_v58 = vpack.c.bf16 %v1286_v51, %v518_v50  ;;  %v521_v16 = vld [vmem:[%s35344_s8 + $0x2b0] sm:$0xff]  ;;  %v2554_v50 = vcombine.high %v266_v43, %v266_v43  ;;  %v527_v51 = vld [vmem:[%s35344_s8 + $0x2e0] sm:$0xff] }
 0x103   : > { %33333 = vmatpush1.bf16.xpose.msra.mxu1 %v33332_v17  ;;  %8639 = vmatprep.mubr.f32.mxu0 %v2467_v18  ;;  %v1289_v17 = vld [vmem:[%s35344_s8 + $0x1ab0] sm:$0x3]  ;;  %v2527_v18 = vrot.slane %v264_v6, %v35369_v25  ;;  %v33376_v62 = vpack.c.bf16 %v1295_v52, %v527_v51  ;;  %v1299_v6 = vld [vmem:[%s35344_s8 + $0x1b00] sm:$0x3]  ;;  %v1314_v51 = vld [vmem:[%s35344_s8 + $0x1b78] sm:$0x3] }
 0x104   : > { %33335 = vmatprep.subr.bf16.mxu0 %v33334_v19  ;;  %8709 = vmatprep.mubr.f32.mxu1 %v2468_v20  ;;  %v524_v19 = vld [vmem:[%s35344_s8 + $0x2c8] sm:$0xff]  ;;  %v33364_v27 = vpack.c.bf16 %v1289_v17, %v521_v16  ;;  %v270_v52 = vld [vmem:[%s35337_s10 + $0xd8] sm:$0xff] }
 0x105   : > { %33339 = vmatprep.subr.bf16.mxu1 %v33338_v21  ;;  %v1292_v20 = vld [vmem:[%s35344_s8 + $0x1ac8] sm:$0x3]  ;;  %v2534_v21 = vrot.slane %v2520_v13, %v35369_v25  ;;  %v538_v13 = vld [vmem:[%s35344_s8 + $0x338] sm:$0xff] }
 0x106   : > { %v33366_v29 = vpack.c.bf16 %v1292_v20, %v524_v19 }
 0x107   : > { %v2536_v30 = vcombine.high %v2534_v21, %v2534_v21 }
 0x109   : > { %8640 = vmatmul.mubr.f32.vlgmr.msra.gmra.mrb[34].mxu0 %v2459_v9  ;;  %v2518_v9 = vcombine.high %v2510_v0, %v2510_v0 }
 0x10a   : > { %8710 = vmatmul.mubr.f32.vlgmr.msra.gmra.mrb[34].mxu1 %v2466_v12  ;;  %33337 = vmatpush1.bf16.xpose.msra.mxu0 %v33336_v35  ;;  %v33362_v12 = vpack.c.bf16 %v1290_v5, %v522_v4  ;;  %v525_v35 = vld [vmem:[%s35344_s8 + $0x2d0] sm:$0xff]  ;;  %v2571_v4 = vcombine.high %v267_v61, %v267_v61  ;;  %v531_v5 = vld [vmem:[%s35344_s8 + $0x300] sm:$0xff] }
 0x10b   : > { %33341 = vmatpush1.bf16.xpose.msra.mxu1 %v33340_v36  ;;  %8779 = vmatprep.mubr.f32.mxu0 %v2484_v37  ;;  %v1293_v36 = vld [vmem:[%s35344_s8 + $0x1ad0] sm:$0x3]  ;;  %v2544_v37 = vrot.slane %v265_v24, %v35369_v25  ;;  %v33384_v16 = vpack.c.bf16 %v1299_v6, %v531_v5  ;;  %v1303_v24 = vld [vmem:[%s35344_s8 + $0x1b20] sm:$0x3]  ;;  %v1318_v5 = vld [vmem:[%s35344_s8 + $0x1b98] sm:$0x3] }
 0x10c   : > { %33343 = vmatprep.subr.bf16.mxu0 %v33342_v38  ;;  %8849 = vmatprep.mubr.f32.mxu1 %v2485_v39  ;;  %v528_v38 = vld [vmem:[%s35344_s8 + $0x2e8] sm:$0xff]  ;;  %v33372_v45 = vpack.c.bf16 %v1293_v36, %v525_v35  ;;  %v271_v6 = vld [vmem:[%s35337_s10 + $0xe0] sm:$0xff] }
 0x10d   : > { %33347 = vmatprep.subr.bf16.mxu1 %v33346_v40  ;;  %v1296_v39 = vld [vmem:[%s35344_s8 + $0x1ae8] sm:$0x3]  ;;  %v2551_v40 = vrot.slane %v2537_v32, %v35369_v25  ;;  %v542_v32 = vld [vmem:[%s35344_s8 + $0x358] sm:$0xff] }
 0x10e   : > { %v33374_v47 = vpack.c.bf16 %v1296_v39, %v528_v38 }
 0x10f   : > { %v2553_v48 = vcombine.high %v2551_v40, %v2551_v40 }
 0x111   : > { %8780 = vmatmul.mubr.f32.vlgmr.msra.gmra.mrb[36].mxu0 %v2476_v28  ;;  %v2535_v28 = vcombine.high %v2527_v18, %v2527_v18 }
 0x112   : > { %8850 = vmatmul.mubr.f32.vlgmr.msra.gmra.mrb[36].mxu1 %v2483_v31  ;;  %33345 = vmatpush1.bf16.xpose.msra.mxu0 %v33344_v53  ;;  %v33370_v31 = vpack.c.bf16 %v1294_v23, %v526_v22  ;;  %v529_v53 = vld [vmem:[%s35344_s8 + $0x2f0] sm:$0xff]  ;;  %v2588_v22 = vcombine.high %v268_v15, %v268_v15  ;;  %v535_v23 = vld [vmem:[%s35344_s8 + $0x320] sm:$0xff] }
 0x113   : > { %33349 = vmatpush1.bf16.xpose.msra.mxu1 %v33348_v54  ;;  %8919 = vmatprep.mubr.f32.mxu0 %v2501_v55  ;;  %v1297_v54 = vld [vmem:[%s35344_s8 + $0x1af0] sm:$0x3]  ;;  %v2561_v55 = vrot.slane %v266_v43, %v35369_v25  ;;  %v33392_v35 = vpack.c.bf16 %v1303_v24, %v535_v23  ;;  %v1307_v43 = vld [vmem:[%s35344_s8 + $0x1b40] sm:$0x3] }
 0x114   : > { %33351 = vmatprep.subr.bf16.mxu0 %v33350_v56  ;;  %8989 = vmatprep.mubr.f32.mxu1 %v2502_v57  ;;  %v532_v56 = vld [vmem:[%s35344_s8 + $0x308] sm:$0xff]  ;;  %v33380_v63 = vpack.c.bf16 %v1297_v54, %v529_v53 }
 0x115   : > { %33355 = vmatprep.subr.bf16.mxu1 %v33354_v58  ;;  %v1300_v57 = vld [vmem:[%s35344_s8 + $0x1b08] sm:$0x3]  ;;  %v2568_v58 = vrot.slane %v2554_v50, %v35369_v25  ;;  %v546_v50 = vld [vmem:[%s35344_s8 + $0x378] sm:$0xff] }
 0x116   : > { %v33382_v1 = vpack.c.bf16 %v1300_v57, %v532_v56 }
 0x117   : > { %v2570_v2 = vcombine.high %v2568_v58, %v2568_v58 }
 0x119   : > { %8920 = vmatmul.mubr.f32.vlgmr.msra.gmra.mrb[38].mxu0 %v2493_v46  ;;  %v2552_v46 = vcombine.high %v2544_v37, %v2544_v37 }
 0x11a   : > { %8990 = vmatmul.mubr.f32.vlgmr.msra.gmra.mrb[38].mxu1 %v2500_v49  ;;  %33353 = vmatpush1.bf16.xpose.msra.mxu0 %v33352_v7  ;;  %v33378_v49 = vpack.c.bf16 %v1298_v42, %v530_v41  ;;  %v533_v7 = vld [vmem:[%s35344_s8 + $0x310] sm:$0xff]  ;;  %v2605_v41 = vcombine.high %v269_v34, %v269_v34  ;;  %v539_v42 = vld [vmem:[%s35344_s8 + $0x340] sm:$0xff] }
 0x11b   : > { %33357 = vmatpush1.bf16.xpose.msra.mxu1 %v33356_v8  ;;  %9059 = vmatprep.mubr.f32.mxu0 %v2518_v9  ;;  %v1301_v8 = vld [vmem:[%s35344_s8 + $0x1b10] sm:$0x3]  ;;  %v2578_v9 = vrot.slane %v267_v61, %v35369_v25  ;;  %v33400_v53 = vpack.c.bf16 %v1307_v43, %v539_v42  ;;  %v1311_v61 = vld [vmem:[%s35344_s8 + $0x1b60] sm:$0x3] }
 0x11c   : > { %33359 = vmatprep.subr.bf16.mxu0 %v33358_v10  ;;  %9129 = vmatprep.mubr.f32.mxu1 %v2519_v11  ;;  %v536_v10 = vld [vmem:[%s35344_s8 + $0x328] sm:$0xff]  ;;  %v33388_v17 = vpack.c.bf16 %v1301_v8, %v533_v7 }
 0x11d   : > { %33363 = vmatprep.subr.bf16.mxu1 %v33362_v12  ;;  %v1304_v11 = vld [vmem:[%s35344_s8 + $0x1b28] sm:$0x3]  ;;  %v2585_v12 = vrot.slane %v2571_v4, %v35369_v25  ;;  %v550_v4 = vld [vmem:[%s35344_s8 + $0x398] sm:$0xff] }
 0x11e   : > { %v33390_v19 = vpack.c.bf16 %v1304_v11, %v536_v10 }
 0x11f   : > { %v2587_v20 = vcombine.high %v2585_v12, %v2585_v12 }
 0x121   : > { %9060 = vmatmul.mubr.f32.vlgmr.msra.gmra.mrb[40].mxu0 %v2510_v0  ;;  %v2569_v0 = vcombine.high %v2561_v55, %v2561_v55 }
 0x122   : > { %9130 = vmatmul.mubr.f32.vlgmr.msra.gmra.mrb[40].mxu1 %v2517_v3  ;;  %33361 = vmatpush1.bf16.xpose.msra.mxu0 %v33360_v26  ;;  %v33386_v3 = vpack.c.bf16 %v1302_v60, %v534_v59  ;;  %v537_v26 = vld [vmem:[%s35344_s8 + $0x330] sm:$0xff]  ;;  %v2622_v59 = vcombine.high %v270_v52, %v270_v52  ;;  %v543_v60 = vld [vmem:[%s35344_s8 + $0x360] sm:$0xff] }
 0x123   : > { %33365 = vmatpush1.bf16.xpose.msra.mxu1 %v33364_v27  ;;  %9199 = vmatprep.mubr.f32.mxu0 %v2535_v28  ;;  %v1305_v27 = vld [vmem:[%s35344_s8 + $0x1b30] sm:$0x3]  ;;  %v2595_v28 = vrot.slane %v268_v15, %v35369_v25  ;;  %v33408_v7 = vpack.c.bf16 %v1311_v61, %v543_v60  ;;  %v1315_v15 = vld [vmem:[%s35344_s8 + $0x1b80] sm:$0x3] }
 0x124   : > { %33367 = vmatprep.subr.bf16.mxu0 %v33366_v29  ;;  %9269 = vmatprep.mubr.f32.mxu1 %v2536_v30  ;;  %v540_v29 = vld [vmem:[%s35344_s8 + $0x348] sm:$0xff]  ;;  %v33396_v36 = vpack.c.bf16 %v1305_v27, %v537_v26 }
 0x125   : > { %33371 = vmatprep.subr.bf16.mxu1 %v33370_v31  ;;  %v1308_v30 = vld [vmem:[%s35344_s8 + $0x1b48] sm:$0x3]  ;;  %v2602_v31 = vrot.slane %v2588_v22, %v35369_v25 }
 0x126   : > { %v33398_v38 = vpack.c.bf16 %v1308_v30, %v540_v29  ;;  %v1320_v22 = vld [vmem:[%s35344_s8 + $0x1ba8] sm:$0x3]  ;;  %v1322_v29 = vld [vmem:[%s35344_s8 + $0x1bb8] sm:$0x3] }
 0x127   : > { %v2604_v39 = vcombine.high %v2602_v31, %v2602_v31  ;;  %v272_v30 = vld [vmem:[%s35337_s10 + $0xe8] sm:$0xff] }
 0x128   : > { %v2663_v42 = vrot.slane %v272_v30, %v35369_v25 }
 0x129   : > { %9200 = vmatmul.mubr.f32.vlgmr.msra.gmra.mrb[42].mxu0 %v2527_v18  ;;  %v2586_v18 = vcombine.high %v2578_v9, %v2578_v9 }
 0x12a   : > { %9270 = vmatmul.mubr.f32.vlgmr.msra.gmra.mrb[42].mxu1 %v2534_v21  ;;  %33369 = vmatpush1.bf16.xpose.msra.mxu0 %v33368_v44  ;;  %v33394_v21 = vpack.c.bf16 %v1306_v14, %v538_v13  ;;  %v541_v44 = vld [vmem:[%s35344_s8 + $0x350] sm:$0xff]  ;;  %v2639_v13 = vcombine.high %v271_v6, %v271_v6  ;;  %v547_v14 = vld [vmem:[%s35344_s8 + $0x380] sm:$0xff] }
 0x12b   : > { %33373 = vmatpush1.bf16.xpose.msra.mxu1 %v33372_v45  ;;  %9339 = vmatprep.mubr.f32.mxu0 %v2552_v46  ;;  %v1309_v45 = vld [vmem:[%s35344_s8 + $0x1b50] sm:$0x3]  ;;  %v2612_v46 = vrot.slane %v269_v34, %v35369_v25 }
 0x12c   : > { %33375 = vmatprep.subr.bf16.mxu0 %v33374_v47  ;;  %9409 = vmatprep.mubr.f32.mxu1 %v2553_v48  ;;  %v544_v47 = vld [vmem:[%s35344_s8 + $0x368] sm:$0xff]  ;;  %v33404_v54 = vpack.c.bf16 %v1309_v45, %v541_v44  ;;  %v2653_v23 = vrot.slane %v2639_v13, %v35369_v25  ;;  %v274_v13 = vld [vmem:[%s35337_s10 + $0xf8] sm:$0xff] }
 0x12d   : > { %33379 = vmatprep.subr.bf16.mxu1 %v33378_v49  ;;  %v1312_v48 = vld [vmem:[%s35344_s8 + $0x1b68] sm:$0x3]  ;;  %v2619_v49 = vrot.slane %v2605_v41, %v35369_v25  ;;  %v1321_v41 = vld [vmem:[%s35344_s8 + $0x1bb0] sm:$0x3] }
 0x12e   : > { %v33406_v56 = vpack.c.bf16 %v1312_v48, %v544_v47  ;;  %v556_v45 = vld [vmem:[%s35344_s8 + $0x3c8] sm:$0xff] }
 0x12f   : > { %v2621_v57 = vcombine.high %v2619_v49, %v2619_v49 }
 0x131   : > { %9340 = vmatmul.mubr.f32.vlgmr.msra.gmra.mrb[44].mxu0 %v2544_v37  ;;  %v2603_v37 = vcombine.high %v2595_v28, %v2595_v28 }
 0x132   : > { %9410 = vmatmul.mubr.f32.vlgmr.msra.gmra.mrb[44].mxu1 %v2551_v40  ;;  %33377 = vmatpush1.bf16.xpose.msra.mxu0 %v33376_v62  ;;  %v33402_v40 = vpack.c.bf16 %v1310_v33, %v542_v32  ;;  %v545_v62 = vld [vmem:[%s35344_s8 + $0x370] sm:$0xff] }
 0x133   : > { %33381 = vmatpush1.bf16.xpose.msra.mxu1 %v33380_v63  ;;  %9479 = vmatprep.mubr.f32.mxu0 %v2569_v0  ;;  %v1313_v63 = vld [vmem:[%s35344_s8 + $0x1b70] sm:$0x3]  ;;  %v2629_v0 = vrot.slane %v270_v52, %v35369_v25  ;;  %v1326_v52 = vld [vmem:[%s35344_s8 + $0x1bd8] sm:$0x3] }
 0x134   : > { %33383 = vmatprep.subr.bf16.mxu0 %v33382_v1  ;;  %9549 = vmatprep.mubr.f32.mxu1 %v2570_v2  ;;  %v548_v1 = vld [vmem:[%s35344_s8 + $0x388] sm:$0xff]  ;;  %v33412_v8 = vpack.c.bf16 %v1313_v63, %v545_v62  ;;  %v555_v62 = vld [vmem:[%s35344_s8 + $0x3c0] sm:$0xff] }
 0x135   : > { %33387 = vmatprep.subr.bf16.mxu1 %v33386_v3  ;;  %v1316_v2 = vld [vmem:[%s35344_s8 + $0x1b88] sm:$0x3]  ;;  %v2636_v3 = vrot.slane %v2622_v59, %v35369_v25  ;;  %v1323_v63 = vld [vmem:[%s35344_s8 + $0x1bc0] sm:$0x3] }
 0x136   : > { %v33414_v10 = vpack.c.bf16 %v1316_v2, %v548_v1  ;;  %v1325_v1 = vld [vmem:[%s35344_s8 + $0x1bd0] sm:$0x3] }
 0x137   : > { %v2638_v11 = vcombine.high %v2636_v3, %v2636_v3 }
 0x139   : > { %9480 = vmatmul.mubr.f32.vlgmr.msra.gmra.mrb[46].mxu0 %v2561_v55  ;;  %v2620_v55 = vcombine.high %v2612_v46, %v2612_v46 }
 0x13a   : > { %9550 = vmatmul.mubr.f32.vlgmr.msra.gmra.mrb[46].mxu1 %v2568_v58  ;;  %33385 = vmatpush1.bf16.xpose.msra.mxu0 %v33384_v16  ;;  %v33410_v58 = vpack.c.bf16 %v1314_v51, %v546_v50  ;;  %v549_v16 = vld [vmem:[%s35344_s8 + $0x390] sm:$0xff]  ;;  %v558_v51 = vld [vmem:[%s35344_s8 + $0x3d8] sm:$0xff] }
 0x13b   : > { %33389 = vmatpush1.bf16.xpose.msra.mxu1 %v33388_v17  ;;  %9619 = vmatprep.mubr.f32.mxu0 %v2586_v18  ;;  %v1317_v17 = vld [vmem:[%s35344_s8 + $0x1b90] sm:$0x3]  ;;  %v2646_v18 = vrot.slane %v271_v6, %v35369_v25  ;;  %v33434_v60 = vpack.c.bf16 %v1326_v52, %v558_v51  ;;  %v1328_v6 = vld [vmem:[%s35344_s8 + $0x1be8] sm:$0x3] }
 0x13c   : > { %33391 = vmatprep.subr.bf16.mxu0 %v33390_v19  ;;  %9689 = vmatprep.mubr.f32.mxu1 %v2587_v20  ;;  %v33420_v32 = vpack.c.bf16 %v1317_v17, %v549_v16 }
 0x13d   : > { %33395 = vmatprep.subr.bf16.mxu1 %v33394_v21  ;;  %v552_v21 = vld [vmem:[%s35344_s8 + $0x3a8] sm:$0xff]  ;;  %v2654_v33 = vcombine.high %v2646_v18, %v2646_v18 }
 0x13e   : > { %v33422_v34 = vpack.c.bf16 %v1320_v22, %v552_v21  ;;  %v2690_v21 = vcombine.high %v274_v13, %v274_v13  ;;  %v559_v22 = vld [vmem:[%s35344_s8 + $0x3e0] sm:$0xff] }
 0x141   : > { %9620 = vmatmul.mubr.f32.vlgmr.msra.gmra.mrb[48].mxu0 %v2578_v9  ;;  %v2637_v9 = vcombine.high %v2629_v0, %v2629_v0 }
 0x142   : > { %9690 = vmatmul.mubr.f32.vlgmr.msra.gmra.mrb[48].mxu1 %v2585_v12  ;;  %33393 = vmatpush1.bf16.xpose.msra.mxu0 %v33392_v35  ;;  %v33418_v12 = vpack.c.bf16 %v1318_v5, %v550_v4  ;;  %v2655_v35 = vcombine.high %v2653_v23, %v2653_v23  ;;  %v560_v5 = vld [vmem:[%s35344_s8 + $0x3e8] sm:$0xff] }
 0x143   : > { %33397 = vmatpush1.bf16.xpose.msra.mxu1 %v33396_v36  ;;  %9759 = vmatprep.mubr.f32.mxu0 %v2603_v37  ;;  %v2656_v37 = vcombine.high %v272_v30, %v272_v30  ;;  %v564_v30 = vld [vmem:[%s35344_s8 + $0x408] sm:$0xff] }
 0x144   : > { %33399 = vmatprep.subr.bf16.mxu0 %v33398_v38  ;;  %9829 = vmatprep.mubr.f32.mxu1 %v2604_v39  ;;  %v551_v38 = vld [vmem:[%s35344_s8 + $0x3a0] sm:$0xff] }
 0x145   : > { %33403 = vmatprep.subr.bf16.mxu1 %v33402_v40  ;;  %v1319_v39 = vld [vmem:[%s35344_s8 + $0x1ba0] sm:$0x3]  ;;  %v553_v40 = vld [vmem:[%s35344_s8 + $0x3b0] sm:$0xff]  ;;  %v2670_v47 = vrot.slane %v2656_v37, %v35369_v25  ;;  %v1334_v37 = vld [vmem:[%s35344_s8 + $0x1c18] sm:$0x3] }
 0x147   : > { %v2672_v59 = vcombine.high %v2670_v47, %v2670_v47 }
 0x149   : > { %9760 = vmatmul.mubr.f32.vlgmr.msra.gmra.mrb[50].mxu0 %v2595_v28  ;;  %v554_v28 = vld [vmem:[%s35344_s8 + $0x3b8] sm:$0xff] }
 0x14a   : > { %9830 = vmatmul.mubr.f32.vlgmr.msra.gmra.mrb[50].mxu1 %v2602_v31  ;;  %33401 = vmatpush1.bf16.xpose.msra.mxu0 %v33400_v53  ;;  %v33416_v31 = vpack.c.bf16 %v1315_v15, %v547_v14  ;;  %v33426_v36 = vpack.c.bf16 %v1322_v29, %v554_v28  ;;  %v273_v53 = vld [vmem:[%s35337_s10 + $0xf0] sm:$0xff]  ;;  %v33432_v14 = vpack.c.bf16 %v1323_v63, %v555_v62  ;;  %v276_v62 = vld [vmem:[%s35337_s10 + $0x108] sm:$0xff] }
 0x14b   : > { %33405 = vmatpush1.bf16.xpose.msra.mxu1 %v33404_v54  ;;  %9899 = vmatprep.mubr.f32.mxu0 %v2620_v55  ;;  %v33424_v54 = vpack.c.bf16 %v1319_v39, %v551_v38  ;;  %v33428_v55 = vpack.c.bf16 %v1321_v41, %v553_v40  ;;  %v2673_v61 = vcombine.high %v273_v53, %v273_v53  ;;  %v275_v38 = vld [vmem:[%s35337_s10 + $0x100] sm:$0xff] }
 0x14c   : > { %33407 = vmatprep.subr.bf16.mxu0 %v33406_v56  ;;  %9969 = vmatprep.mubr.f32.mxu1 %v2621_v57  ;;  %v2671_v57 = vcombine.high %v2663_v42, %v2663_v42  ;;  %v2680_v2 = vrot.slane %v273_v53, %v35369_v25  ;;  %v2714_v51 = vrot.slane %v275_v38, %v35369_v25 }
 0x14d   : > { %33411 = vmatprep.subr.bf16.mxu1 %v33410_v58 }
 0x14e   : > { %v2688_v17 = vcombine.high %v2680_v2, %v2680_v2 }
 0x151   : > { %9900 = vmatmul.mubr.f32.vlgmr.msra.gmra.mrb[52].mxu0 %v2612_v46  ;;  %v1324_v46 = vld [vmem:[%s35344_s8 + $0x1bc8] sm:$0x3] }
 0x152   : > { %9970 = vmatmul.mubr.f32.vlgmr.msra.gmra.mrb[52].mxu1 %v2619_v49  ;;  %33409 = vmatpush1.bf16.xpose.msra.mxu0 %v33408_v7  ;;  %v33430_v58 = vpack.c.bf16 %v1324_v46, %v556_v45  ;;  %v2687_v7 = vrot.slane %v2673_v61, %v35369_v25  ;;  %v2707_v46 = vcombine.high %v275_v38, %v275_v38  ;;  %v1338_v61 = vld [vmem:[%s35344_s8 + $0x1c38] sm:$0x3] }
 0x153   : > { %33413 = vmatpush1.bf16.xpose.msra.mxu1 %v33412_v8  ;;  %10039 = vmatprep.mubr.f32.mxu0 %v2637_v9 }
 0x154   : > { %33415 = vmatprep.subr.bf16.mxu0 %v33414_v10  ;;  %v6261_v19 = vpop.f32.mrb[0].mxu0  ;;  %10109 = vmatprep.mubr.f32.mxu1 %v2638_v11  ;;  %v562_v11 = vld [vmem:[%s35344_s8 + $0x3f8] sm:$0xff] }
 0x155   : > { %v6331_v20 = vpop.f32.mrb[0].mxu1  ;;  %33419 = vmatprep.subr.bf16.mxu1 %v33418_v12  ;;  %v6263_v26 = vpop.f32.mrb[1].mxu0  ;;  %v1330_v12 = vld [vmem:[%s35344_s8 + $0x1bf8] sm:$0x3] }
 0x156   : > { %v6332_v24 = vadd.f32 %v6331_v20, %v6261_v19  ;;  %v6333_v27 = vpop.f32.mrb[1].mxu1  ;;  %v2689_v19 = vcombine.high %v2687_v7, %v2687_v7  ;;  %v33442_v20 = vpack.c.bf16 %v1330_v12, %v562_v11  ;;  %v1329_v26 = vld [vmem:[%s35344_s8 + $0x1bf0] sm:$0x3]  ;;  %v2731_v11 = vrot.slane %v276_v62, %v35369_v25 }
 0x157   : > { %v2697_v27 = vrot.slane %v274_v13, %v35369_v25 }
 0x159   : > { %10040 = vmatmul.mubr.f32.vlgmr.msra.gmra.mrb[54].mxu0 %v2629_v0  ;;  %v557_v0 = vld [vmem:[%s35344_s8 + $0x3d0] sm:$0xff] }
 0x15a   : > { %10110 = vmatmul.mubr.f32.vlgmr.msra.gmra.mrb[54].mxu1 %v2636_v3  ;;  %33417 = vmatpush1.bf16.xpose.msra.mxu0 %v33416_v31  ;;  %v33436_v15 = vpack.c.bf16 %v1325_v1, %v557_v0  ;;  %v1332_v31 = vld [vmem:[%s35344_s8 + $0x1c08] sm:$0x3] }
 0x15b   : > { %33421 = vmatpush1.bf16.xpose.msra.mxu1 %v33420_v32  ;;  %10179 = vmatprep.mubr.f32.mxu0 %v2654_v33  ;;  %v2704_v32 = vrot.slane %v2690_v21, %v35369_v25  ;;  %v1342_v21 = vld [vmem:[%s35344_s8 + $0x1c58] sm:$0x3] }
 0x15c   : > { %33423 = vmatprep.subr.bf16.mxu0 %v33422_v34  ;;  %v6401_v43 = vpop.f32.mrb[2].mxu0  ;;  %10249 = vmatprep.mubr.f32.mxu1 %v2655_v35 }
 0x15d   : > { %v6471_v44 = vpop.f32.mrb[2].mxu1  ;;  %33427 = vmatprep.subr.bf16.mxu1 %v33426_v36  ;;  %v6402_v48 = vadd.f32 %v6401_v43, %v6332_v24  ;;  %v6403_v49 = vpop.f32.mrb[3].mxu0  ;;  %v561_v24 = vld [vmem:[%s35344_s8 + $0x3f0] sm:$0xff]  ;;  %v566_v36 = vld [vmem:[%s35344_s8 + $0x418] sm:$0xff]  ;;  %v33446_v43 = vpack.c.bf16 %v1332_v31, %v564_v30 }
 0x15e   : > { %v6473_v50 = vpop.f32.mrb[3].mxu1  ;;  %v33444_v40 = vpack.c.bf16 %v1329_v26, %v561_v24  ;;  %v33450_v45 = vpack.c.bf16 %v1334_v37, %v566_v36  ;;  %v565_v49 = vld [vmem:[%s35344_s8 + $0x410] sm:$0xff] }
 0x15f   : > { %v6472_v56 = vadd.f32 %v6471_v44, %v6402_v48  ;;  %v2706_v44 = vcombine.high %v2704_v32, %v2704_v32  ;;  %v1331_v48 = vld [vmem:[%s35344_s8 + $0x1c00] sm:$0x3]  ;;  %v1333_v50 = vld [vmem:[%s35344_s8 + $0x1c10] sm:$0x3] }
 0x160   : > { %v33452_v0 = vpack.c.bf16 %v1333_v50, %v565_v49 }
 0x161   : > { %10180 = vmatmul.mubr.f32.vlgmr.msra.gmra.mrb[56].mxu0 %v2646_v18  ;;  %v33438_v18 = vpack.c.bf16 %v1328_v6, %v560_v5  ;;  %v2724_v6 = vcombine.high %v276_v62, %v276_v62 }
 0x162   : > { %10250 = vmatmul.mubr.f32.vlgmr.msra.gmra.mrb[56].mxu1 %v2653_v23  ;;  %33425 = vmatpush1.bf16.xpose.msra.mxu0 %v33424_v54  ;;  %v1327_v23 = vld [vmem:[%s35344_s8 + $0x1be0] sm:$0x3]  ;;  %v568_v54 = vld [vmem:[%s35344_s8 + $0x428] sm:$0xff] }
 0x163   : > { %33429 = vmatpush1.bf16.xpose.msra.mxu1 %v33428_v55  ;;  %10319 = vmatprep.mubr.f32.mxu0 %v2671_v57  ;;  %v33440_v39 = vpack.c.bf16 %v1327_v23, %v559_v22  ;;  %v1336_v55 = vld [vmem:[%s35344_s8 + $0x1c28] sm:$0x3]  ;;  %v277_v22 = vld [vmem:[%s35337_s10 + $0x110] sm:$0xff] }
 0x164   : > { %33431 = vmatprep.subr.bf16.mxu0 %v33430_v58  ;;  %v6541_v3 = vpop.f32.mrb[4].mxu0  ;;  %10389 = vmatprep.mubr.f32.mxu1 %v2672_v59  ;;  %v2741_v31 = vcombine.high %v277_v22, %v277_v22  ;;  %v2748_v36 = vrot.slane %v277_v22, %v35369_v25 }
 0x165   : > { %v6611_v4 = vpop.f32.mrb[4].mxu1  ;;  %33435 = vmatprep.subr.bf16.mxu1 %v33434_v60  ;;  %v6542_v8 = vadd.f32 %v6541_v3, %v6472_v56  ;;  %v6543_v9 = vpop.f32.mrb[5].mxu0  ;;  %v2721_v56 = vrot.slane %v2707_v46, %v35369_v25  ;;  %v570_v60 = vld [vmem:[%s35344_s8 + $0x438] sm:$0xff]  ;;  %v33454_v3 = vpack.c.bf16 %v1336_v55, %v568_v54 }
 0x166   : > { %v6613_v10 = vpop.f32.mrb[5].mxu1  ;;  %v33458_v5 = vpack.c.bf16 %v1338_v61, %v570_v60  ;;  %v569_v9 = vld [vmem:[%s35344_s8 + $0x430] sm:$0xff]  ;;  %v1346_v46 = vld [vmem:[%s35344_s8 + $0x1c78] sm:$0x3] }
 0x167   : > { %v6612_v16 = vadd.f32 %v6611_v4, %v6542_v8  ;;  %v2723_v4 = vcombine.high %v2721_v56, %v2721_v56  ;;  %v1335_v8 = vld [vmem:[%s35344_s8 + $0x1c20] sm:$0x3]  ;;  %v1337_v10 = vld [vmem:[%s35344_s8 + $0x1c30] sm:$0x3] }
 0x168   : > { %v33460_v24 = vpack.c.bf16 %v1337_v10, %v569_v9 }
 0x169   : > { %10320 = vmatmul.mubr.f32.vlgmr.msra.gmra.mrb[58].mxu0 %v2663_v42  ;;  %v2705_v42 = vcombine.high %v2697_v27, %v2697_v27 }
 0x16a   : > { %10390 = vmatmul.mubr.f32.vlgmr.msra.gmra.mrb[58].mxu1 %v2670_v47  ;;  %33433 = vmatpush1.bf16.xpose.msra.mxu0 %v33432_v14  ;;  %v563_v47 = vld [vmem:[%s35344_s8 + $0x400] sm:$0xff]  ;;  %v572_v14 = vld [vmem:[%s35344_s8 + $0x448] sm:$0xff] }
 0x16b   : > { %33437 = vmatpush1.bf16.xpose.msra.mxu1 %v33436_v15  ;;  %10459 = vmatprep.mubr.f32.mxu0 %v2688_v17  ;;  %v33448_v63 = vpack.c.bf16 %v1331_v48, %v563_v47  ;;  %v1340_v15 = vld [vmem:[%s35344_s8 + $0x1c48] sm:$0x3]  ;;  %v278_v47 = vld [vmem:[%s35337_s10 + $0x118] sm:$0xff] }
 0x16c   : > { %33439 = vmatprep.subr.bf16.mxu0 %v33438_v18  ;;  %v6681_v28 = vpop.f32.mrb[6].mxu0  ;;  %10529 = vmatprep.mubr.f32.mxu1 %v2689_v19  ;;  %v2758_v55 = vcombine.high %v278_v47, %v278_v47  ;;  %v2765_v60 = vrot.slane %v278_v47, %v35369_v25 }
 0x16d   : > { %v6751_v29 = vpop.f32.mrb[6].mxu1  ;;  %33443 = vmatprep.subr.bf16.mxu1 %v33442_v20  ;;  %v6682_v33 = vadd.f32 %v6681_v28, %v6612_v16  ;;  %v6683_v34 = vpop.f32.mrb[7].mxu0  ;;  %v2738_v16 = vrot.slane %v2724_v6, %v35369_v25  ;;  %v574_v20 = vld [vmem:[%s35344_s8 + $0x458] sm:$0xff]  ;;  %v33462_v28 = vpack.c.bf16 %v1340_v15, %v572_v14 }
 0x16e   : > { %v6753_v35 = vpop.f32.mrb[7].mxu1  ;;  %v33466_v30 = vpack.c.bf16 %v1342_v21, %v574_v20  ;;  %v573_v34 = vld [vmem:[%s35344_s8 + $0x450] sm:$0xff]  ;;  %v1350_v6 = vld [vmem:[%s35344_s8 + $0x1c98] sm:$0x3] }
 0x16f   : > { %v6752_v41 = vadd.f32 %v6751_v29, %v6682_v33  ;;  %v2740_v29 = vcombine.high %v2738_v16, %v2738_v16  ;;  %v1339_v33 = vld [vmem:[%s35344_s8 + $0x1c40] sm:$0x3]  ;;  %v1341_v35 = vld [vmem:[%s35344_s8 + $0x1c50] sm:$0x3] }
 0x170   : > { %v33468_v49 = vpack.c.bf16 %v1341_v35, %v573_v34 }
 0x171   : > { %10460 = vmatmul.mubr.f32.vlgmr.msra.gmra.mrb[60].mxu0 %v2680_v2  ;;  %v2722_v2 = vcombine.high %v2714_v51, %v2714_v51 }
 0x172   : > { %10530 = vmatmul.mubr.f32.vlgmr.msra.gmra.mrb[60].mxu1 %v2687_v7  ;;  %33441 = vmatpush1.bf16.xpose.msra.mxu0 %v33440_v39  ;;  %v567_v7 = vld [vmem:[%s35344_s8 + $0x420] sm:$0xff]  ;;  %v576_v39 = vld [vmem:[%s35344_s8 + $0x468] sm:$0xff] }
 0x173   : > { %33445 = vmatpush1.bf16.xpose.msra.mxu1 %v33444_v40  ;;  %10599 = vmatprep.mubr.f32.mxu0 %v2705_v42  ;;  %v33456_v23 = vpack.c.bf16 %v1335_v8, %v567_v7  ;;  %v1344_v40 = vld [vmem:[%s35344_s8 + $0x1c68] sm:$0x3]  ;;  %v279_v7 = vld [vmem:[%s35337_s10 + $0x120] sm:$0xff] }
 0x174   : > { %33447 = vmatprep.subr.bf16.mxu0 %v33446_v43  ;;  %v6821_v52 = vpop.f32.mrb[8].mxu0  ;;  %10669 = vmatprep.mubr.f32.mxu1 %v2706_v44  ;;  %v2775_v15 = vcombine.high %v279_v7, %v279_v7  ;;  %v2782_v20 = vrot.slane %v279_v7, %v35369_v25 }
 0x175   : > { %v6891_v53 = vpop.f32.mrb[8].mxu1  ;;  %33451 = vmatprep.subr.bf16.mxu1 %v33450_v45  ;;  %v6822_v57 = vadd.f32 %v6821_v52, %v6752_v41  ;;  %v6823_v58 = vpop.f32.mrb[9].mxu0  ;;  %v2755_v41 = vrot.slane %v2741_v31, %v35369_v25  ;;  %v578_v45 = vld [vmem:[%s35344_s8 + $0x478] sm:$0xff]  ;;  %v33470_v52 = vpack.c.bf16 %v1344_v40, %v576_v39 }
 0x176   : > { %v6893_v59 = vpop.f32.mrb[9].mxu1  ;;  %v33474_v54 = vpack.c.bf16 %v1346_v46, %v578_v45  ;;  %v577_v58 = vld [vmem:[%s35344_s8 + $0x470] sm:$0xff]  ;;  %v1354_v31 = vld [vmem:[%s35344_s8 + $0x1cb8] sm:$0x3] }
 0x177   : > { %v6892_v1 = vadd.f32 %v6891_v53, %v6822_v57  ;;  %v2757_v53 = vcombine.high %v2755_v41, %v2755_v41  ;;  %v1343_v57 = vld [vmem:[%s35344_s8 + $0x1c60] sm:$0x3]  ;;  %v1345_v59 = vld [vmem:[%s35344_s8 + $0x1c70] sm:$0x3] }
 0x178   : > { %v33476_v9 = vpack.c.bf16 %v1345_v59, %v577_v58 }
 0x179   : > { %10600 = vmatmul.mubr.f32.vlgmr.msra.gmra.mrb[62].mxu0 %v2697_v27  ;;  %v2739_v27 = vcombine.high %v2731_v11, %v2731_v11 }
 0x17a   : > { %10670 = vmatmul.mubr.f32.vlgmr.msra.gmra.mrb[62].mxu1 %v2704_v32  ;;  %33449 = vmatpush1.bf16.xpose.msra.mxu0 %v33448_v63  ;;  %v571_v32 = vld [vmem:[%s35344_s8 + $0x440] sm:$0xff]  ;;  %v580_v63 = vld [vmem:[%s35344_s8 + $0x488] sm:$0xff] }
 0x17b   : > { %33453 = vmatpush1.bf16.xpose.msra.mxu1 %v33452_v0  ;;  %10739 = vmatprep.mubr.f32.mxu0 %v2722_v2  ;;  %v33464_v48 = vpack.c.bf16 %v1339_v33, %v571_v32  ;;  %v1348_v0 = vld [vmem:[%s35344_s8 + $0x1c88] sm:$0x3] }
 0x17c   : > { %33455 = vmatprep.subr.bf16.mxu0 %v33454_v3  ;;  %v6961_v12 = vpop.f32.mrb[10].mxu0  ;;  %10809 = vmatprep.mubr.f32.mxu1 %v2723_v4  ;;  %v280_v32 = vld [vmem:[%s35337_s10 + $0x128] sm:$0xff] }
 0x17d   : > { %v7031_v13 = vpop.f32.mrb[10].mxu1  ;;  %33459 = vmatprep.subr.bf16.mxu1 %v33458_v5  ;;  %v6962_v17 = vadd.f32 %v6961_v12, %v6892_v1  ;;  %v6963_v18 = vpop.f32.mrb[11].mxu0  ;;  %v2772_v1 = vrot.slane %v2758_v55, %v35369_v25  ;;  %v582_v5 = vld [vmem:[%s35344_s8 + $0x498] sm:$0xff]  ;;  %v33478_v12 = vpack.c.bf16 %v1348_v0, %v580_v63  ;;  %v2792_v40 = vcombine.high %v280_v32, %v280_v32 }
 0x17e   : > { %v7033_v19 = vpop.f32.mrb[11].mxu1  ;;  %v33482_v14 = vpack.c.bf16 %v1350_v6, %v582_v5  ;;  %v581_v18 = vld [vmem:[%s35344_s8 + $0x490] sm:$0xff]  ;;  %v2799_v45 = vrot.slane %v280_v32, %v35369_v25  ;;  %v1358_v55 = vld [vmem:[%s35344_s8 + $0x1cd8] sm:$0x3] }
 0x17f   : > { %v7032_v26 = vadd.f32 %v7031_v13, %v6962_v17  ;;  %v2774_v13 = vcombine.high %v2772_v1, %v2772_v1  ;;  %v1347_v17 = vld [vmem:[%s35344_s8 + $0x1c80] sm:$0x3]  ;;  %v1349_v19 = vld [vmem:[%s35344_s8 + $0x1c90] sm:$0x3] }
 0x180   : > { %v33484_v34 = vpack.c.bf16 %v1349_v19, %v581_v18 }
 0x181   : > { %10740 = vmatmul.mubr.f32.vlgmr.msra.gmra.mrb[64].mxu0 %v2714_v51  ;;  %v2756_v51 = vcombine.high %v2748_v36, %v2748_v36 }
 0x182   : > { %10810 = vmatmul.mubr.f32.vlgmr.msra.gmra.mrb[64].mxu1 %v2721_v56  ;;  %33457 = vmatpush1.bf16.xpose.msra.mxu0 %v33456_v23  ;;  %v575_v56 = vld [vmem:[%s35344_s8 + $0x460] sm:$0xff]  ;;  %v584_v23 = vld [vmem:[%s35344_s8 + $0x4a8] sm:$0xff] }
 0x183   : > { %33461 = vmatpush1.bf16.xpose.msra.mxu1 %v33460_v24  ;;  %10879 = vmatprep.mubr.f32.mxu0 %v2739_v27  ;;  %v33472_v8 = vpack.c.bf16 %v1343_v57, %v575_v56  ;;  %v1352_v24 = vld [vmem:[%s35344_s8 + $0x1ca8] sm:$0x3]  ;;  %v281_v56 = vld [vmem:[%s35337_s10 + $0x130] sm:$0xff] }
 0x184   : > { %33463 = vmatprep.subr.bf16.mxu0 %v33462_v28  ;;  %v7101_v37 = vpop.f32.mrb[12].mxu0  ;;  %10949 = vmatprep.mubr.f32.mxu1 %v2740_v29  ;;  %v2809_v0 = vcombine.high %v281_v56, %v281_v56  ;;  %v2816_v5 = vrot.slane %v281_v56, %v35369_v25 }
 0x185   : > { %v7171_v38 = vpop.f32.mrb[12].mxu1  ;;  %33467 = vmatprep.subr.bf16.mxu1 %v33466_v30  ;;  %v7102_v42 = vadd.f32 %v7101_v37, %v7032_v26  ;;  %v7103_v43 = vpop.f32.mrb[13].mxu0  ;;  %v2789_v26 = vrot.slane %v2775_v15, %v35369_v25  ;;  %v586_v30 = vld [vmem:[%s35344_s8 + $0x4b8] sm:$0xff]  ;;  %v33486_v37 = vpack.c.bf16 %v1352_v24, %v584_v23 }
 0x186   : > { %v7173_v44 = vpop.f32.mrb[13].mxu1  ;;  %v33490_v39 = vpack.c.bf16 %v1354_v31, %v586_v30  ;;  %v585_v43 = vld [vmem:[%s35344_s8 + $0x4b0] sm:$0xff]  ;;  %v1362_v15 = vld [vmem:[%s35344_s8 + $0x1cf8] sm:$0x3] }
 0x187   : > { %v7172_v50 = vadd.f32 %v7171_v38, %v7102_v42  ;;  %v2791_v38 = vcombine.high %v2789_v26, %v2789_v26  ;;  %v1351_v42 = vld [vmem:[%s35344_s8 + $0x1ca0] sm:$0x3]  ;;  %v1353_v44 = vld [vmem:[%s35344_s8 + $0x1cb0] sm:$0x3] }
 0x188   : > { %v33492_v58 = vpack.c.bf16 %v1353_v44, %v585_v43 }
 0x189   : > { %10880 = vmatmul.mubr.f32.vlgmr.msra.gmra.mrb[66].mxu0 %v2731_v11  ;;  %v2773_v11 = vcombine.high %v2765_v60, %v2765_v60 }
 0x18a   : > { %10950 = vmatmul.mubr.f32.vlgmr.msra.gmra.mrb[66].mxu1 %v2738_v16  ;;  %33465 = vmatpush1.bf16.xpose.msra.mxu0 %v33464_v48  ;;  %v579_v16 = vld [vmem:[%s35344_s8 + $0x480] sm:$0xff]  ;;  %v588_v48 = vld [vmem:[%s35344_s8 + $0x4c8] sm:$0xff] }
 0x18b   : > { %33469 = vmatpush1.bf16.xpose.msra.mxu1 %v33468_v49  ;;  %11019 = vmatprep.mubr.f32.mxu0 %v2756_v51  ;;  %v33480_v33 = vpack.c.bf16 %v1347_v17, %v579_v16  ;;  %v1356_v49 = vld [vmem:[%s35344_s8 + $0x1cc8] sm:$0x3]  ;;  %v282_v16 = vld [vmem:[%s35337_s10 + $0x138] sm:$0xff] }
 0x18c   : > { %33471 = vmatprep.subr.bf16.mxu0 %v33470_v52  ;;  %v7241_v61 = vpop.f32.mrb[14].mxu0  ;;  %11089 = vmatprep.mubr.f32.mxu1 %v2757_v53  ;;  %v2826_v24 = vcombine.high %v282_v16, %v282_v16  ;;  %v2833_v30 = vrot.slane %v282_v16, %v35369_v25 }
 0x18d   : > { %v7311_v62 = vpop.f32.mrb[14].mxu1  ;;  %33475 = vmatprep.subr.bf16.mxu1 %v33474_v54  ;;  %v7242_v2 = vadd.f32 %v7241_v61, %v7172_v50  ;;  %v7243_v3 = vpop.f32.mrb[15].mxu0  ;;  %v2806_v50 = vrot.slane %v2792_v40, %v35369_v25  ;;  %v590_v54 = vld [vmem:[%s35344_s8 + $0x4d8] sm:$0xff]  ;;  %v33494_v61 = vpack.c.bf16 %v1356_v49, %v588_v48 }
 0x18e   : > { %v7313_v4 = vpop.f32.mrb[15].mxu1  ;;  %v33498_v63 = vpack.c.bf16 %v1358_v55, %v590_v54  ;;  %v589_v3 = vld [vmem:[%s35344_s8 + $0x4d0] sm:$0xff]  ;;  %v1366_v40 = vld [vmem:[%s35344_s8 + $0x1d18] sm:$0x3] }
 0x18f   : > { %v7312_v10 = vadd.f32 %v7311_v62, %v7242_v2  ;;  %v2808_v62 = vcombine.high %v2806_v50, %v2806_v50  ;;  %v1355_v2 = vld [vmem:[%s35344_s8 + $0x1cc0] sm:$0x3]  ;;  %v1357_v4 = vld [vmem:[%s35344_s8 + $0x1cd0] sm:$0x3] }
 0x190   : > { %v33500_v18 = vpack.c.bf16 %v1357_v4, %v589_v3 }
 0x191   : > { %11020 = vmatmul.mubr.f32.vlgmr.msra.gmra.mrb[68].mxu0 %v2748_v36  ;;  %v2790_v36 = vcombine.high %v2782_v20, %v2782_v20 }
 0x192   : > { %11090 = vmatmul.mubr.f32.vlgmr.msra.gmra.mrb[68].mxu1 %v2755_v41  ;;  %33473 = vmatpush1.bf16.xpose.msra.mxu0 %v33472_v8  ;;  %v583_v41 = vld [vmem:[%s35344_s8 + $0x4a0] sm:$0xff]  ;;  %v592_v8 = vld [vmem:[%s35344_s8 + $0x4e8] sm:$0xff] }
 0x193   : > { %33477 = vmatpush1.bf16.xpose.msra.mxu1 %v33476_v9  ;;  %11159 = vmatprep.mubr.f32.mxu0 %v2773_v11  ;;  %v33488_v57 = vpack.c.bf16 %v1351_v42, %v583_v41  ;;  %v1360_v9 = vld [vmem:[%s35344_s8 + $0x1ce8] sm:$0x3]  ;;  %v283_v41 = vld [vmem:[%s35337_s10 + $0x140] sm:$0xff] }
 0x194   : > { %33479 = vmatprep.subr.bf16.mxu0 %v33478_v12  ;;  %v7381_v21 = vpop.f32.mrb[16].mxu0  ;;  %11229 = vmatprep.mubr.f32.mxu1 %v2774_v13  ;;  %v2843_v49 = vcombine.high %v283_v41, %v283_v41  ;;  %v2850_v54 = vrot.slane %v283_v41, %v35369_v25 }
 0x195   : > { %v7451_v22 = vpop.f32.mrb[16].mxu1  ;;  %33483 = vmatprep.subr.bf16.mxu1 %v33482_v14  ;;  %v7382_v27 = vadd.f32 %v7381_v21, %v7312_v10  ;;  %v7383_v28 = vpop.f32.mrb[17].mxu0  ;;  %v2823_v10 = vrot.slane %v2809_v0, %v35369_v25  ;;  %v594_v14 = vld [vmem:[%s35344_s8 + $0x4f8] sm:$0xff]  ;;  %v33502_v21 = vpack.c.bf16 %v1360_v9, %v592_v8 }
 0x196   : > { %v7453_v29 = vpop.f32.mrb[17].mxu1  ;;  %v33506_v23 = vpack.c.bf16 %v1362_v15, %v594_v14  ;;  %v593_v28 = vld [vmem:[%s35344_s8 + $0x4f0] sm:$0xff]  ;;  %v1370_v0 = vld [vmem:[%s35344_s8 + $0x1d38] sm:$0x3] }
 0x197   : > { %v7452_v35 = vadd.f32 %v7451_v22, %v7382_v27  ;;  %v2825_v22 = vcombine.high %v2823_v10, %v2823_v10  ;;  %v1359_v27 = vld [vmem:[%s35344_s8 + $0x1ce0] sm:$0x3]  ;;  %v1361_v29 = vld [vmem:[%s35344_s8 + $0x1cf0] sm:$0x3] }
 0x198   : > { %v33508_v43 = vpack.c.bf16 %v1361_v29, %v593_v28 }
 0x199   : > { %11160 = vmatmul.mubr.f32.vlgmr.msra.gmra.mrb[70].mxu0 %v2765_v60  ;;  %v2807_v60 = vcombine.high %v2799_v45, %v2799_v45 }
 0x19a   : > { %11230 = vmatmul.mubr.f32.vlgmr.msra.gmra.mrb[70].mxu1 %v2772_v1  ;;  %33481 = vmatpush1.bf16.xpose.msra.mxu0 %v33480_v33  ;;  %v587_v1 = vld [vmem:[%s35344_s8 + $0x4c0] sm:$0xff]  ;;  %v596_v33 = vld [vmem:[%s35344_s8 + $0x508] sm:$0xff] }
 0x19b   : > { %33485 = vmatpush1.bf16.xpose.msra.mxu1 %v33484_v34  ;;  %11299 = vmatprep.mubr.f32.mxu0 %v2790_v36  ;;  %v33496_v17 = vpack.c.bf16 %v1355_v2, %v587_v1  ;;  %v1364_v34 = vld [vmem:[%s35344_s8 + $0x1d08] sm:$0x3] }
 0x19c   : > { %33487 = vmatprep.subr.bf16.mxu0 %v33486_v37  ;;  %v7521_v46 = vpop.f32.mrb[18].mxu0  ;;  %11369 = vmatprep.mubr.f32.mxu1 %v2791_v38  ;;  %v284_v1 = vld [vmem:[%s35337_s10 + $0x148] sm:$0xff] }
 0x19d   : > { %v7591_v47 = vpop.f32.mrb[18].mxu1  ;;  %33491 = vmatprep.subr.bf16.mxu1 %v33490_v39  ;;  %v7522_v51 = vadd.f32 %v7521_v46, %v7452_v35  ;;  %v7523_v52 = vpop.f32.mrb[19].mxu0  ;;  %v2840_v35 = vrot.slane %v2826_v24, %v35369_v25  ;;  %v598_v39 = vld [vmem:[%s35344_s8 + $0x518] sm:$0xff]  ;;  %v33510_v46 = vpack.c.bf16 %v1364_v34, %v596_v33  ;;  %v2860_v9 = vcombine.high %v284_v1, %v284_v1 }
 0x19e   : > { %v7593_v53 = vpop.f32.mrb[19].mxu1  ;;  %v33514_v48 = vpack.c.bf16 %v1366_v40, %v598_v39  ;;  %v597_v52 = vld [vmem:[%s35344_s8 + $0x510] sm:$0xff]  ;;  %v2867_v14 = vrot.slane %v284_v1, %v35369_v25  ;;  %v1374_v24 = vld [vmem:[%s35344_s8 + $0x1d58] sm:$0x3] }
 0x19f   : > { %v7592_v59 = vadd.f32 %v7591_v47, %v7522_v51  ;;  %v2842_v47 = vcombine.high %v2840_v35, %v2840_v35  ;;  %v1363_v51 = vld [vmem:[%s35344_s8 + $0x1d00] sm:$0x3]  ;;  %v1365_v53 = vld [vmem:[%s35344_s8 + $0x1d10] sm:$0x3] }
 0x1a0   : > { %v33516_v3 = vpack.c.bf16 %v1365_v53, %v597_v52 }
 0x1a1   : > { %11300 = vmatmul.mubr.f32.vlgmr.msra.gmra.mrb[72].mxu0 %v2782_v20  ;;  %v2824_v20 = vcombine.high %v2816_v5, %v2816_v5 }
 0x1a2   : > { %11370 = vmatmul.mubr.f32.vlgmr.msra.gmra.mrb[72].mxu1 %v2789_v26  ;;  %33489 = vmatpush1.bf16.xpose.msra.mxu0 %v33488_v57  ;;  %v591_v26 = vld [vmem:[%s35344_s8 + $0x4e0] sm:$0xff]  ;;  %v600_v57 = vld [vmem:[%s35344_s8 + $0x528] sm:$0xff] }
 0x1a3   : > { %33493 = vmatpush1.bf16.xpose.msra.mxu1 %v33492_v58  ;;  %11439 = vmatprep.mubr.f32.mxu0 %v2807_v60  ;;  %v33504_v42 = vpack.c.bf16 %v1359_v27, %v591_v26  ;;  %v1368_v58 = vld [vmem:[%s35344_s8 + $0x1d28] sm:$0x3]  ;;  %v285_v26 = vld [vmem:[%s35337_s10 + $0x150] sm:$0xff] }
 0x1a4   : > { %33495 = vmatprep.subr.bf16.mxu0 %v33494_v61  ;;  %v7661_v6 = vpop.f32.mrb[20].mxu0  ;;  %11509 = vmatprep.mubr.f32.mxu1 %v2808_v62  ;;  %v2877_v34 = vcombine.high %v285_v26, %v285_v26  ;;  %v2884_v39 = vrot.slane %v285_v26, %v35369_v25 }
 0x1a5   : > { %v7731_v7 = vpop.f32.mrb[20].mxu1  ;;  %33499 = vmatprep.subr.bf16.mxu1 %v33498_v63  ;;  %v7662_v11 = vadd.f32 %v7661_v6, %v7592_v59  ;;  %v7663_v12 = vpop.f32.mrb[21].mxu0  ;;  %v2857_v59 = vrot.slane %v2843_v49, %v35369_v25  ;;  %v602_v63 = vld [vmem:[%s35344_s8 + $0x538] sm:$0xff]  ;;  %v33518_v6 = vpack.c.bf16 %v1368_v58, %v600_v57 }
 0x1a6   : > { %v7733_v13 = vpop.f32.mrb[21].mxu1  ;;  %v33522_v8 = vpack.c.bf16 %v1370_v0, %v602_v63  ;;  %v601_v12 = vld [vmem:[%s35344_s8 + $0x530] sm:$0xff]  ;;  %v1378_v49 = vld [vmem:[%s35344_s8 + $0x1d78] sm:$0x3] }
 0x1a7   : > { %v7732_v19 = vadd.f32 %v7731_v7, %v7662_v11  ;;  %v2859_v7 = vcombine.high %v2857_v59, %v2857_v59  ;;  %v1367_v11 = vld [vmem:[%s35344_s8 + $0x1d20] sm:$0x3]  ;;  %v1369_v13 = vld [vmem:[%s35344_s8 + $0x1d30] sm:$0x3] }
 0x1a8   : > { %v33524_v28 = vpack.c.bf16 %v1369_v13, %v601_v12 }
 0x1a9   : > { %11440 = vmatmul.mubr.f32.vlgmr.msra.gmra.mrb[74].mxu0 %v2799_v45  ;;  %v2841_v45 = vcombine.high %v2833_v30, %v2833_v30 }
 0x1aa   : > { %11510 = vmatmul.mubr.f32.vlgmr.msra.gmra.mrb[74].mxu1 %v2806_v50  ;;  %33497 = vmatpush1.bf16.xpose.msra.mxu0 %v33496_v17  ;;  %v595_v50 = vld [vmem:[%s35344_s8 + $0x500] sm:$0xff]  ;;  %v604_v17 = vld [vmem:[%s35344_s8 + $0x548] sm:$0xff] }
 0x1ab   : > { %33501 = vmatpush1.bf16.xpose.msra.mxu1 %v33500_v18  ;;  %11579 = vmatprep.mubr.f32.mxu0 %v2824_v20  ;;  %v33512_v2 = vpack.c.bf16 %v1363_v51, %v595_v50  ;;  %v1372_v18 = vld [vmem:[%s35344_s8 + $0x1d48] sm:$0x3]  ;;  %v286_v50 = vld [vmem:[%s35337_s10 + $0x158] sm:$0xff] }
 0x1ac   : > { %33503 = vmatprep.subr.bf16.mxu0 %v33502_v21  ;;  %v7801_v31 = vpop.f32.mrb[22].mxu0  ;;  %11649 = vmatprep.mubr.f32.mxu1 %v2825_v22  ;;  %v2894_v58 = vcombine.high %v286_v50, %v286_v50  ;;  %v2901_v63 = vrot.slane %v286_v50, %v35369_v25 }
 0x1ad   : > { %v7871_v32 = vpop.f32.mrb[22].mxu1  ;;  %33507 = vmatprep.subr.bf16.mxu1 %v33506_v23  ;;  %v7802_v36 = vadd.f32 %v7801_v31, %v7732_v19  ;;  %v7803_v37 = vpop.f32.mrb[23].mxu0  ;;  %v2874_v19 = vrot.slane %v2860_v9, %v35369_v25  ;;  %v606_v23 = vld [vmem:[%s35344_s8 + $0x558] sm:$0xff]  ;;  %v33526_v31 = vpack.c.bf16 %v1372_v18, %v604_v17 }
 0x1ae   : > { %v7873_v38 = vpop.f32.mrb[23].mxu1  ;;  %v33530_v33 = vpack.c.bf16 %v1374_v24, %v606_v23  ;;  %v605_v37 = vld [vmem:[%s35344_s8 + $0x550] sm:$0xff]  ;;  %v1382_v9 = vld [vmem:[%s35344_s8 + $0x1d98] sm:$0x3] }
 0x1af   : > { %v7872_v44 = vadd.f32 %v7871_v32, %v7802_v36  ;;  %v2876_v32 = vcombine.high %v2874_v19, %v2874_v19  ;;  %v1371_v36 = vld [vmem:[%s35344_s8 + $0x1d40] sm:$0x3]  ;;  %v1373_v38 = vld [vmem:[%s35344_s8 + $0x1d50] sm:$0x3] }
 0x1b0   : > { %v33532_v52 = vpack.c.bf16 %v1373_v38, %v605_v37 }
 0x1b1   : > { %11580 = vmatmul.mubr.f32.vlgmr.msra.gmra.mrb[76].mxu0 %v2816_v5  ;;  %v2858_v5 = vcombine.high %v2850_v54, %v2850_v54 }
 0x1b2   : > { %11650 = vmatmul.mubr.f32.vlgmr.msra.gmra.mrb[76].mxu1 %v2823_v10  ;;  %33505 = vmatpush1.bf16.xpose.msra.mxu0 %v33504_v42  ;;  %v599_v10 = vld [vmem:[%s35344_s8 + $0x520] sm:$0xff]  ;;  %v608_v42 = vld [vmem:[%s35344_s8 + $0x568] sm:$0xff] }
 0x1b3   : > { %33509 = vmatpush1.bf16.xpose.msra.mxu1 %v33508_v43  ;;  %11719 = vmatprep.mubr.f32.mxu0 %v2841_v45  ;;  %v33520_v27 = vpack.c.bf16 %v1367_v11, %v599_v10  ;;  %v1376_v43 = vld [vmem:[%s35344_s8 + $0x1d68] sm:$0x3]  ;;  %v287_v10 = vld [vmem:[%s35337_s10 + $0x160] sm:$0xff] }
 0x1b4   : > { %33511 = vmatprep.subr.bf16.mxu0 %v33510_v46  ;;  %v7941_v55 = vpop.f32.mrb[24].mxu0  ;;  %11789 = vmatprep.mubr.f32.mxu1 %v2842_v47  ;;  %v2911_v18 = vcombine.high %v287_v10, %v287_v10  ;;  %v2918_v23 = vrot.slane %v287_v10, %v35369_v25 }
 0x1b5   : > { %v8011_v56 = vpop.f32.mrb[24].mxu1  ;;  %33515 = vmatprep.subr.bf16.mxu1 %v33514_v48  ;;  %v7942_v60 = vadd.f32 %v7941_v55, %v7872_v44  ;;  %v7943_v61 = vpop.f32.mrb[25].mxu0  ;;  %v2891_v44 = vrot.slane %v2877_v34, %v35369_v25  ;;  %v610_v48 = vld [vmem:[%s35344_s8 + $0x578] sm:$0xff]  ;;  %v33534_v55 = vpack.c.bf16 %v1376_v43, %v608_v42 }
 0x1b6   : > { %v8013_v62 = vpop.f32.mrb[25].mxu1  ;;  %v33538_v57 = vpack.c.bf16 %v1378_v49, %v610_v48  ;;  %v609_v61 = vld [vmem:[%s35344_s8 + $0x570] sm:$0xff]  ;;  %v1386_v34 = vld [vmem:[%s35344_s8 + $0x1db8] sm:$0x3] }
 0x1b7   : > { %v8012_v4 = vadd.f32 %v8011_v56, %v7942_v60  ;;  %v2893_v56 = vcombine.high %v2891_v44, %v2891_v44  ;;  %v1375_v60 = vld [vmem:[%s35344_s8 + $0x1d60] sm:$0x3]  ;;  %v1377_v62 = vld [vmem:[%s35344_s8 + $0x1d70] sm:$0x3] }
 0x1b8   : > { %v33540_v12 = vpack.c.bf16 %v1377_v62, %v609_v61 }
 0x1b9   : > { %11720 = vmatmul.mubr.f32.vlgmr.msra.gmra.mrb[78].mxu0 %v2833_v30  ;;  %v2875_v30 = vcombine.high %v2867_v14, %v2867_v14 }
 0x1ba   : > { %11790 = vmatmul.mubr.f32.vlgmr.msra.gmra.mrb[78].mxu1 %v2840_v35  ;;  %33513 = vmatpush1.bf16.xpose.msra.mxu0 %v33512_v2  ;;  %v603_v35 = vld [vmem:[%s35344_s8 + $0x540] sm:$0xff]  ;;  %v612_v2 = vld [vmem:[%s35344_s8 + $0x588] sm:$0xff] }
 0x1bb   : > { %33517 = vmatpush1.bf16.xpose.msra.mxu1 %v33516_v3  ;;  %11859 = vmatprep.mubr.f32.mxu0 %v2858_v5  ;;  %v33528_v51 = vpack.c.bf16 %v1371_v36, %v603_v35  ;;  %v1380_v3 = vld [vmem:[%s35344_s8 + $0x1d88] sm:$0x3] }
 0x1bc   : > { %33519 = vmatprep.subr.bf16.mxu0 %v33518_v6  ;;  %v8081_v15 = vpop.f32.mrb[26].mxu0  ;;  %11929 = vmatprep.mubr.f32.mxu1 %v2859_v7  ;;  %v288_v35 = vld [vmem:[%s35337_s10 + $0x168] sm:$0xff] }
 0x1bd   : > { %v8151_v16 = vpop.f32.mrb[26].mxu1  ;;  %33523 = vmatprep.subr.bf16.mxu1 %v33522_v8  ;;  %v8082_v20 = vadd.f32 %v8081_v15, %v8012_v4  ;;  %v8083_v21 = vpop.f32.mrb[27].mxu0  ;;  %v2908_v4 = vrot.slane %v2894_v58, %v35369_v25  ;;  %v614_v8 = vld [vmem:[%s35344_s8 + $0x598] sm:$0xff]  ;;  %v33542_v15 = vpack.c.bf16 %v1380_v3, %v612_v2  ;;  %v2928_v43 = vcombine.high %v288_v35, %v288_v35 }
 0x1be   : > { %v8153_v22 = vpop.f32.mrb[27].mxu1  ;;  %v33546_v17 = vpack.c.bf16 %v1382_v9, %v614_v8  ;;  %v613_v21 = vld [vmem:[%s35344_s8 + $0x590] sm:$0xff]  ;;  %v2935_v48 = vrot.slane %v288_v35, %v35369_v25  ;;  %v1390_v58 = vld [vmem:[%s35344_s8 + $0x1dd8] sm:$0x3] }
 0x1bf   : > { %v8152_v29 = vadd.f32 %v8151_v16, %v8082_v20  ;;  %v2910_v16 = vcombine.high %v2908_v4, %v2908_v4  ;;  %v1379_v20 = vld [vmem:[%s35344_s8 + $0x1d80] sm:$0x3]  ;;  %v1381_v22 = vld [vmem:[%s35344_s8 + $0x1d90] sm:$0x3] }
 0x1c0   : > { %v33548_v37 = vpack.c.bf16 %v1381_v22, %v613_v21 }
 0x1c1   : > { %11860 = vmatmul.mubr.f32.vlgmr.msra.gmra.mrb[80].mxu0 %v2850_v54  ;;  %v2892_v54 = vcombine.high %v2884_v39, %v2884_v39 }
 0x1c2   : > { %11930 = vmatmul.mubr.f32.vlgmr.msra.gmra.mrb[80].mxu1 %v2857_v59  ;;  %33521 = vmatpush1.bf16.xpose.msra.mxu0 %v33520_v27  ;;  %v607_v59 = vld [vmem:[%s35344_s8 + $0x560] sm:$0xff]  ;;  %v616_v27 = vld [vmem:[%s35344_s8 + $0x5a8] sm:$0xff] }
 0x1c3   : > { %33525 = vmatpush1.bf16.xpose.msra.mxu1 %v33524_v28  ;;  %11999 = vmatprep.mubr.f32.mxu0 %v2875_v30  ;;  %v33536_v11 = vpack.c.bf16 %v1375_v60, %v607_v59  ;;  %v1384_v28 = vld [vmem:[%s35344_s8 + $0x1da8] sm:$0x3]  ;;  %v289_v59 = vld [vmem:[%s35337_s10 + $0x170] sm:$0xff] }
 0x1c4   : > { %33527 = vmatprep.subr.bf16.mxu0 %v33526_v31  ;;  %v8221_v40 = vpop.f32.mrb[28].mxu0  ;;  %12069 = vmatprep.mubr.f32.mxu1 %v2876_v32  ;;  %v2945_v3 = vcombine.high %v289_v59, %v289_v59  ;;  %v2952_v8 = vrot.slane %v289_v59, %v35369_v25 }
 0x1c5   : > { %v8291_v41 = vpop.f32.mrb[28].mxu1  ;;  %33531 = vmatprep.subr.bf16.mxu1 %v33530_v33  ;;  %v8222_v45 = vadd.f32 %v8221_v40, %v8152_v29  ;;  %v8223_v46 = vpop.f32.mrb[29].mxu0  ;;  %v2925_v29 = vrot.slane %v2911_v18, %v35369_v25  ;;  %v618_v33 = vld [vmem:[%s35344_s8 + $0x5b8] sm:$0xff]  ;;  %v33550_v40 = vpack.c.bf16 %v1384_v28, %v616_v27 }
 0x1c6   : > { %v8293_v47 = vpop.f32.mrb[29].mxu1  ;;  %v33554_v42 = vpack.c.bf16 %v1386_v34, %v618_v33  ;;  %v617_v46 = vld [vmem:[%s35344_s8 + $0x5b0] sm:$0xff]  ;;  %v1394_v18 = vld [vmem:[%s35344_s8 + $0x1df8] sm:$0x3] }
 0x1c7   : > { %v8292_v53 = vadd.f32 %v8291_v41, %v8222_v45  ;;  %v2927_v41 = vcombine.high %v2925_v29, %v2925_v29  ;;  %v1383_v45 = vld [vmem:[%s35344_s8 + $0x1da0] sm:$0x3]  ;;  %v1385_v47 = vld [vmem:[%s35344_s8 + $0x1db0] sm:$0x3] }
 0x1c8   : > { %v33556_v61 = vpack.c.bf16 %v1385_v47, %v617_v46 }
 0x1c9   : > { %12000 = vmatmul.mubr.f32.vlgmr.msra.gmra.mrb[82].mxu0 %v2867_v14  ;;  %v2909_v14 = vcombine.high %v2901_v63, %v2901_v63 }
 0x1ca   : > { %12070 = vmatmul.mubr.f32.vlgmr.msra.gmra.mrb[82].mxu1 %v2874_v19  ;;  %33529 = vmatpush1.bf16.xpose.msra.mxu0 %v33528_v51  ;;  %v611_v19 = vld [vmem:[%s35344_s8 + $0x580] sm:$0xff]  ;;  %v620_v51 = vld [vmem:[%s35344_s8 + $0x5c8] sm:$0xff] }
 0x1cb   : > { %33533 = vmatpush1.bf16.xpose.msra.mxu1 %v33532_v52  ;;  %12139 = vmatprep.mubr.f32.mxu0 %v2892_v54  ;;  %v33544_v36 = vpack.c.bf16 %v1379_v20, %v611_v19  ;;  %v1388_v52 = vld [vmem:[%s35344_s8 + $0x1dc8] sm:$0x3]  ;;  %v290_v19 = vld [vmem:[%s35337_s10 + $0x178] sm:$0xff] }
 0x1cc   : > { %33535 = vmatprep.subr.bf16.mxu0 %v33534_v55  ;;  %v8361_v0 = vpop.f32.mrb[30].mxu0  ;;  %12209 = vmatprep.mubr.f32.mxu1 %v2893_v56  ;;  %v2962_v28 = vcombine.high %v290_v19, %v290_v19  ;;  %v2969_v33 = vrot.slane %v290_v19, %v35369_v25 }
 0x1cd   : > { %v8431_v1 = vpop.f32.mrb[30].mxu1  ;;  %33539 = vmatprep.subr.bf16.mxu1 %v33538_v57  ;;  %v8362_v5 = vadd.f32 %v8361_v0, %v8292_v53  ;;  %v8363_v6 = vpop.f32.mrb[31].mxu0  ;;  %v2942_v53 = vrot.slane %v2928_v43, %v35369_v25  ;;  %v622_v57 = vld [vmem:[%s35344_s8 + $0x5d8] sm:$0xff]  ;;  %v33558_v0 = vpack.c.bf16 %v1388_v52, %v620_v51 }
 0x1ce   : > { %v8433_v7 = vpop.f32.mrb[31].mxu1  ;;  %v33562_v2 = vpack.c.bf16 %v1390_v58, %v622_v57  ;;  %v621_v6 = vld [vmem:[%s35344_s8 + $0x5d0] sm:$0xff]  ;;  %v1398_v43 = vld [vmem:[%s35344_s8 + $0x1e18] sm:$0x3] }
 0x1cf   : > { %v8432_v13 = vadd.f32 %v8431_v1, %v8362_v5  ;;  %v2944_v1 = vcombine.high %v2942_v53, %v2942_v53  ;;  %v1387_v5 = vld [vmem:[%s35344_s8 + $0x1dc0] sm:$0x3]  ;;  %v1389_v7 = vld [vmem:[%s35344_s8 + $0x1dd0] sm:$0x3] }
 0x1d0   : > { %v33564_v21 = vpack.c.bf16 %v1389_v7, %v621_v6 }
 0x1d1   : > { %12140 = vmatmul.mubr.f32.vlgmr.msra.gmra.mrb[84].mxu0 %v2884_v39  ;;  %v2926_v39 = vcombine.high %v2918_v23, %v2918_v23 }
 0x1d2   : > { %12210 = vmatmul.mubr.f32.vlgmr.msra.gmra.mrb[84].mxu1 %v2891_v44  ;;  %33537 = vmatpush1.bf16.xpose.msra.mxu0 %v33536_v11  ;;  %v615_v44 = vld [vmem:[%s35344_s8 + $0x5a0] sm:$0xff]  ;;  %v624_v11 = vld [vmem:[%s35344_s8 + $0x5e8] sm:$0xff] }
 0x1d3   : > { %33541 = vmatpush1.bf16.xpose.msra.mxu1 %v33540_v12  ;;  %12279 = vmatprep.mubr.f32.mxu0 %v2909_v14  ;;  %v33552_v60 = vpack.c.bf16 %v1383_v45, %v615_v44  ;;  %v1392_v12 = vld [vmem:[%s35344_s8 + $0x1de8] sm:$0x3]  ;;  %v291_v44 = vld [vmem:[%s35337_s10 + $0x180] sm:$0xff] }
 0x1d4   : > { %33543 = vmatprep.subr.bf16.mxu0 %v33542_v15  ;;  %v8501_v24 = vpop.f32.mrb[32].mxu0  ;;  %12349 = vmatprep.mubr.f32.mxu1 %v2910_v16  ;;  %v2979_v52 = vcombine.high %v291_v44, %v291_v44  ;;  %v2986_v57 = vrot.slane %v291_v44, %v35369_v25 }
 0x1d5   : > { %v8571_v26 = vpop.f32.mrb[32].mxu1  ;;  %33547 = vmatprep.subr.bf16.mxu1 %v33546_v17  ;;  %v8502_v30 = vadd.f32 %v8501_v24, %v8432_v13  ;;  %v8503_v31 = vpop.f32.mrb[33].mxu0  ;;  %v2959_v13 = vrot.slane %v2945_v3, %v35369_v25  ;;  %v626_v17 = vld [vmem:[%s35344_s8 + $0x5f8] sm:$0xff]  ;;  %v33566_v24 = vpack.c.bf16 %v1392_v12, %v624_v11 }
 0x1d6   : > { %v8573_v32 = vpop.f32.mrb[33].mxu1  ;;  %v33570_v27 = vpack.c.bf16 %v1394_v18, %v626_v17  ;;  %v625_v31 = vld [vmem:[%s35344_s8 + $0x5f0] sm:$0xff]  ;;  %v1402_v3 = vld [vmem:[%s35344_s8 + $0x1e38] sm:$0x3] }
 0x1d7   : > { %v8572_v38 = vadd.f32 %v8571_v26, %v8502_v30  ;;  %v2961_v26 = vcombine.high %v2959_v13, %v2959_v13  ;;  %v1391_v30 = vld [vmem:[%s35344_s8 + $0x1de0] sm:$0x3]  ;;  %v1393_v32 = vld [vmem:[%s35344_s8 + $0x1df0] sm:$0x3] }
 0x1d8   : > { %v33572_v46 = vpack.c.bf16 %v1393_v32, %v625_v31 }
 0x1d9   : > { %12280 = vmatmul.mubr.f32.vlgmr.msra.gmra.mrb[86].mxu0 %v2901_v63  ;;  %v2943_v63 = vcombine.high %v2935_v48, %v2935_v48 }
 0x1da   : > { %12350 = vmatmul.mubr.f32.vlgmr.msra.gmra.mrb[86].mxu1 %v2908_v4  ;;  %33545 = vmatpush1.bf16.xpose.msra.mxu0 %v33544_v36  ;;  %v619_v4 = vld [vmem:[%s35344_s8 + $0x5c0] sm:$0xff]  ;;  %v628_v36 = vld [vmem:[%s35344_s8 + $0x608] sm:$0xff] }
 0x1db   : > { %33549 = vmatpush1.bf16.xpose.msra.mxu1 %v33548_v37  ;;  %12419 = vmatprep.mubr.f32.mxu0 %v2926_v39  ;;  %v33560_v20 = vpack.c.bf16 %v1387_v5, %v619_v4  ;;  %v1396_v37 = vld [vmem:[%s35344_s8 + $0x1e08] sm:$0x3] }
 0x1dc   : > { %33551 = vmatprep.subr.bf16.mxu0 %v33550_v40  ;;  %v8641_v49 = vpop.f32.mrb[34].mxu0  ;;  %12489 = vmatprep.mubr.f32.mxu1 %v2927_v41  ;;  %v292_v4 = vld [vmem:[%s35337_s10 + $0x188] sm:$0xff] }
 0x1dd   : > { %v8711_v50 = vpop.f32.mrb[34].mxu1  ;;  %33555 = vmatprep.subr.bf16.mxu1 %v33554_v42  ;;  %v8642_v54 = vadd.f32 %v8641_v49, %v8572_v38  ;;  %v8643_v55 = vpop.f32.mrb[35].mxu0  ;;  %v2976_v38 = vrot.slane %v2962_v28, %v35369_v25  ;;  %v630_v42 = vld [vmem:[%s35344_s8 + $0x618] sm:$0xff]  ;;  %v33574_v49 = vpack.c.bf16 %v1396_v37, %v628_v36  ;;  %v2996_v12 = vcombine.high %v292_v4, %v292_v4 }
 0x1de   : > { %v8713_v56 = vpop.f32.mrb[35].mxu1  ;;  %v33578_v51 = vpack.c.bf16 %v1398_v43, %v630_v42  ;;  %v629_v55 = vld [vmem:[%s35344_s8 + $0x610] sm:$0xff]  ;;  %v3003_v17 = vrot.slane %v292_v4, %v35369_v25  ;;  %v1406_v28 = vld [vmem:[%s35344_s8 + $0x1e58] sm:$0x3] }
 0x1df   : > { %v8712_v62 = vadd.f32 %v8711_v50, %v8642_v54  ;;  %v2978_v50 = vcombine.high %v2976_v38, %v2976_v38  ;;  %v1395_v54 = vld [vmem:[%s35344_s8 + $0x1e00] sm:$0x3]  ;;  %v1397_v56 = vld [vmem:[%s35344_s8 + $0x1e10] sm:$0x3] }
 0x1e0   : > { %v33580_v6 = vpack.c.bf16 %v1397_v56, %v629_v55 }
 0x1e1   : > { %12420 = vmatmul.mubr.f32.vlgmr.msra.gmra.mrb[88].mxu0 %v2918_v23  ;;  %v2960_v23 = vcombine.high %v2952_v8, %v2952_v8 }
 0x1e2   : > { %12490 = vmatmul.mubr.f32.vlgmr.msra.gmra.mrb[88].mxu1 %v2925_v29  ;;  %33553 = vmatpush1.bf16.xpose.msra.mxu0 %v33552_v60  ;;  %v623_v29 = vld [vmem:[%s35344_s8 + $0x5e0] sm:$0xff]  ;;  %v632_v60 = vld [vmem:[%s35344_s8 + $0x628] sm:$0xff] }
 0x1e3   : > { %33557 = vmatpush1.bf16.xpose.msra.mxu1 %v33556_v61  ;;  %12559 = vmatprep.mubr.f32.mxu0 %v2943_v63  ;;  %v33568_v45 = vpack.c.bf16 %v1391_v30, %v623_v29  ;;  %v1400_v61 = vld [vmem:[%s35344_s8 + $0x1e28] sm:$0x3]  ;;  %v293_v29 = vld [vmem:[%s35337_s10 + $0x190] sm:$0xff] }
 0x1e4   : > { %33559 = vmatprep.subr.bf16.mxu0 %v33558_v0  ;;  %v8781_v9 = vpop.f32.mrb[36].mxu0  ;;  %12629 = vmatprep.mubr.f32.mxu1 %v2944_v1  ;;  %v3013_v37 = vcombine.high %v293_v29, %v293_v29  ;;  %v3020_v42 = vrot.slane %v293_v29, %v35369_v25 }
 0x1e5   : > { %v8851_v10 = vpop.f32.mrb[36].mxu1  ;;  %33563 = vmatprep.subr.bf16.mxu1 %v33562_v2  ;;  %v8782_v14 = vadd.f32 %v8781_v9, %v8712_v62  ;;  %v8783_v15 = vpop.f32.mrb[37].mxu0  ;;  %v2993_v62 = vrot.slane %v2979_v52, %v35369_v25  ;;  %v634_v2 = vld [vmem:[%s35344_s8 + $0x638] sm:$0xff]  ;;  %v33582_v9 = vpack.c.bf16 %v1400_v61, %v632_v60 }
 0x1e6   : > { %v8853_v16 = vpop.f32.mrb[37].mxu1  ;;  %v33586_v11 = vpack.c.bf16 %v1402_v3, %v634_v2  ;;  %v633_v15 = vld [vmem:[%s35344_s8 + $0x630] sm:$0xff]  ;;  %v1410_v52 = vld [vmem:[%s35344_s8 + $0x1e78] sm:$0x3] }
 0x1e7   : > { %v8852_v22 = vadd.f32 %v8851_v10, %v8782_v14  ;;  %v2995_v10 = vcombine.high %v2993_v62, %v2993_v62  ;;  %v1399_v14 = vld [vmem:[%s35344_s8 + $0x1e20] sm:$0x3]  ;;  %v1401_v16 = vld [vmem:[%s35344_s8 + $0x1e30] sm:$0x3] }
 0x1e8   : > { %v33588_v31 = vpack.c.bf16 %v1401_v16, %v633_v15 }
 0x1e9   : > { %12560 = vmatmul.mubr.f32.vlgmr.msra.gmra.mrb[90].mxu0 %v2935_v48  ;;  %v2977_v48 = vcombine.high %v2969_v33, %v2969_v33 }
 0x1ea   : > { %12630 = vmatmul.mubr.f32.vlgmr.msra.gmra.mrb[90].mxu1 %v2942_v53  ;;  %33561 = vmatpush1.bf16.xpose.msra.mxu0 %v33560_v20  ;;  %v627_v53 = vld [vmem:[%s35344_s8 + $0x600] sm:$0xff]  ;;  %v636_v20 = vld [vmem:[%s35344_s8 + $0x648] sm:$0xff] }
 0x1eb   : > { %33565 = vmatpush1.bf16.xpose.msra.mxu1 %v33564_v21  ;;  %12699 = vmatprep.mubr.f32.mxu0 %v2960_v23  ;;  %v33576_v5 = vpack.c.bf16 %v1395_v54, %v627_v53  ;;  %v1404_v21 = vld [vmem:[%s35344_s8 + $0x1e48] sm:$0x3]  ;;  %v294_v53 = vld [vmem:[%s35337_s10 + $0x198] sm:$0xff] }
 0x1ec   : > { %33567 = vmatprep.subr.bf16.mxu0 %v33566_v24  ;;  %v8921_v34 = vpop.f32.mrb[38].mxu0  ;;  %12769 = vmatprep.mubr.f32.mxu1 %v2961_v26  ;;  %v3030_v61 = vcombine.high %v294_v53, %v294_v53  ;;  %v3037_v2 = vrot.slane %v294_v53, %v35369_v25 }
 0x1ed   : > { %v8991_v35 = vpop.f32.mrb[38].mxu1  ;;  %33571 = vmatprep.subr.bf16.mxu1 %v33570_v27  ;;  %v8922_v39 = vadd.f32 %v8921_v34, %v8852_v22  ;;  %v8923_v40 = vpop.f32.mrb[39].mxu0  ;;  %v3010_v22 = vrot.slane %v2996_v12, %v35369_v25  ;;  %v638_v27 = vld [vmem:[%s35344_s8 + $0x658] sm:$0xff]  ;;  %v33590_v34 = vpack.c.bf16 %v1404_v21, %v636_v20 }
 0x1ee   : > { %v8993_v41 = vpop.f32.mrb[39].mxu1  ;;  %v33594_v36 = vpack.c.bf16 %v1406_v28, %v638_v27  ;;  %v637_v40 = vld [vmem:[%s35344_s8 + $0x650] sm:$0xff]  ;;  %v1414_v12 = vld [vmem:[%s35344_s8 + $0x1e98] sm:$0x3] }
 0x1ef   : > { %v8992_v47 = vadd.f32 %v8991_v35, %v8922_v39  ;;  %v3012_v35 = vcombine.high %v3010_v22, %v3010_v22  ;;  %v1403_v39 = vld [vmem:[%s35344_s8 + $0x1e40] sm:$0x3]  ;;  %v1405_v41 = vld [vmem:[%s35344_s8 + $0x1e50] sm:$0x3] }
 0x1f0   : > { %v33596_v55 = vpack.c.bf16 %v1405_v41, %v637_v40 }
 0x1f1   : > { %12700 = vmatmul.mubr.f32.vlgmr.msra.gmra.mrb[92].mxu0 %v2952_v8  ;;  %v2994_v8 = vcombine.high %v2986_v57, %v2986_v57 }
 0x1f2   : > { %12770 = vmatmul.mubr.f32.vlgmr.msra.gmra.mrb[92].mxu1 %v2959_v13  ;;  %33569 = vmatpush1.bf16.xpose.msra.mxu0 %v33568_v45  ;;  %v631_v13 = vld [vmem:[%s35344_s8 + $0x620] sm:$0xff]  ;;  %v640_v45 = vld [vmem:[%s35344_s8 + $0x668] sm:$0xff] }
 0x1f3   : > { %33573 = vmatpush1.bf16.xpose.msra.mxu1 %v33572_v46  ;;  %12839 = vmatprep.mubr.f32.mxu0 %v2977_v48  ;;  %v33584_v30 = vpack.c.bf16 %v1399_v14, %v631_v13  ;;  %v1408_v46 = vld [vmem:[%s35344_s8 + $0x1e68] sm:$0x3]  ;;  %v295_v13 = vld [vmem:[%s35337_s10 + $0x1a0] sm:$0xff] }
 0x1f4   : > { %33575 = vmatprep.subr.bf16.mxu0 %v33574_v49  ;;  %v9061_v58 = vpop.f32.mrb[40].mxu0  ;;  %12909 = vmatprep.mubr.f32.mxu1 %v2978_v50  ;;  %v3047_v21 = vcombine.high %v295_v13, %v295_v13  ;;  %v3054_v27 = vrot.slane %v295_v13, %v35369_v25 }
 0x1f5   : > { %v9131_v59 = vpop.f32.mrb[40].mxu1  ;;  %33579 = vmatprep.subr.bf16.mxu1 %v33578_v51  ;;  %v9062_v63 = vadd.f32 %v9061_v58, %v8992_v47  ;;  %v9063_v0 = vpop.f32.mrb[41].mxu0  ;;  %v3027_v47 = vrot.slane %v3013_v37, %v35369_v25  ;;  %v642_v51 = vld [vmem:[%s35344_s8 + $0x678] sm:$0xff]  ;;  %v33598_v58 = vpack.c.bf16 %v1408_v46, %v640_v45 }
 0x1f6   : > { %v9133_v1 = vpop.f32.mrb[41].mxu1  ;;  %v33602_v60 = vpack.c.bf16 %v1410_v52, %v642_v51  ;;  %v641_v0 = vld [vmem:[%s35344_s8 + $0x670] sm:$0xff]  ;;  %v1418_v37 = vld [vmem:[%s35344_s8 + $0x1eb8] sm:$0x3] }
 0x1f7   : > { %v9132_v7 = vadd.f32 %v9131_v59, %v9062_v63  ;;  %v3029_v59 = vcombine.high %v3027_v47, %v3027_v47  ;;  %v1407_v63 = vld [vmem:[%s35344_s8 + $0x1e60] sm:$0x3]  ;;  %v1409_v1 = vld [vmem:[%s35344_s8 + $0x1e70] sm:$0x3] }
 0x1f8   : > { %v33604_v15 = vpack.c.bf16 %v1409_v1, %v641_v0 }
 0x1f9   : > { %12840 = vmatmul.mubr.f32.vlgmr.msra.gmra.mrb[94].mxu0 %v2969_v33  ;;  %v3011_v33 = vcombine.high %v3003_v17, %v3003_v17 }
 0x1fa   : > { %12910 = vmatmul.mubr.f32.vlgmr.msra.gmra.mrb[94].mxu1 %v2976_v38  ;;  %33577 = vmatpush1.bf16.xpose.msra.mxu0 %v33576_v5  ;;  %v635_v38 = vld [vmem:[%s35344_s8 + $0x640] sm:$0xff]  ;;  %v644_v5 = vld [vmem:[%s35344_s8 + $0x688] sm:$0xff] }
 0x1fb   : > { %33581 = vmatpush1.bf16.xpose.msra.mxu1 %v33580_v6  ;;  %12979 = vmatprep.mubr.f32.mxu0 %v2994_v8  ;;  %v33592_v54 = vpack.c.bf16 %v1403_v39, %v635_v38  ;;  %v1412_v6 = vld [vmem:[%s35344_s8 + $0x1e88] sm:$0x3] }
 0x1fc   : > { %33583 = vmatprep.subr.bf16.mxu0 %v33582_v9  ;;  %v9201_v18 = vpop.f32.mrb[42].mxu0  ;;  %13049 = vmatprep.mubr.f32.mxu1 %v2995_v10  ;;  %v296_v38 = vld [vmem:[%s35337_s10 + $0x1a8] sm:$0xff] }
 0x1fd   : > { %v9271_v19 = vpop.f32.mrb[42].mxu1  ;;  %33587 = vmatprep.subr.bf16.mxu1 %v33586_v11  ;;  %v9202_v23 = vadd.f32 %v9201_v18, %v9132_v7  ;;  %v9203_v24 = vpop.f32.mrb[43].mxu0  ;;  %v3044_v7 = vrot.slane %v3030_v61, %v35369_v25  ;;  %v646_v11 = vld [vmem:[%s35344_s8 + $0x698] sm:$0xff]  ;;  %v33606_v18 = vpack.c.bf16 %v1412_v6, %v644_v5  ;;  %v3064_v46 = vcombine.high %v296_v38, %v296_v38 }
 0x1fe   : > { %v9273_v26 = vpop.f32.mrb[43].mxu1  ;;  %v33610_v20 = vpack.c.bf16 %v1414_v12, %v646_v11  ;;  %v645_v24 = vld [vmem:[%s35344_s8 + $0x690] sm:$0xff]  ;;  %v3071_v51 = vrot.slane %v296_v38, %v35369_v25  ;;  %v1422_v61 = vld [vmem:[%s35344_s8 + $0x1ed8] sm:$0x3] }
 0x1ff   : > { %v9272_v32 = vadd.f32 %v9271_v19, %v9202_v23  ;;  %v3046_v19 = vcombine.high %v3044_v7, %v3044_v7  ;;  %v1411_v23 = vld [vmem:[%s35344_s8 + $0x1e80] sm:$0x3]  ;;  %v1413_v26 = vld [vmem:[%s35344_s8 + $0x1e90] sm:$0x3] }
 0x200   : > { %v33612_v40 = vpack.c.bf16 %v1413_v26, %v645_v24 }
 0x201   : > { %12980 = vmatmul.mubr.f32.vlgmr.msra.gmra.mrb[96].mxu0 %v2986_v57  ;;  %v3028_v57 = vcombine.high %v3020_v42, %v3020_v42 }
 0x202   : > { %13050 = vmatmul.mubr.f32.vlgmr.msra.gmra.mrb[96].mxu1 %v2993_v62  ;;  %33585 = vmatpush1.bf16.xpose.msra.mxu0 %v33584_v30  ;;  %v639_v62 = vld [vmem:[%s35344_s8 + $0x660] sm:$0xff]  ;;  %v648_v30 = vld [vmem:[%s35344_s8 + $0x6a8] sm:$0xff] }
 0x203   : > { %33589 = vmatpush1.bf16.xpose.msra.mxu1 %v33588_v31  ;;  %13119 = vmatprep.mubr.f32.mxu0 %v3011_v33  ;;  %v33600_v14 = vpack.c.bf16 %v1407_v63, %v639_v62  ;;  %v1416_v31 = vld [vmem:[%s35344_s8 + $0x1ea8] sm:$0x3]  ;;  %v297_v62 = vld [vmem:[%s35337_s10 + $0x1b0] sm:$0xff] }
 0x204   : > { %33591 = vmatprep.subr.bf16.mxu0 %v33590_v34  ;;  %v9341_v43 = vpop.f32.mrb[44].mxu0  ;;  %13189 = vmatprep.mubr.f32.mxu1 %v3012_v35  ;;  %v3081_v6 = vcombine.high %v297_v62, %v297_v62  ;;  %v3088_v11 = vrot.slane %v297_v62, %v35369_v25 }
 0x205   : > { %v9411_v44 = vpop.f32.mrb[44].mxu1  ;;  %33595 = vmatprep.subr.bf16.mxu1 %v33594_v36  ;;  %v9342_v48 = vadd.f32 %v9341_v43, %v9272_v32  ;;  %v9343_v49 = vpop.f32.mrb[45].mxu0  ;;  %v3061_v32 = vrot.slane %v3047_v21, %v35369_v25  ;;  %v650_v36 = vld [vmem:[%s35344_s8 + $0x6b8] sm:$0xff]  ;;  %v33614_v43 = vpack.c.bf16 %v1416_v31, %v648_v30 }
 0x206   : > { %v9413_v50 = vpop.f32.mrb[45].mxu1  ;;  %v33618_v45 = vpack.c.bf16 %v1418_v37, %v650_v36  ;;  %v649_v49 = vld [vmem:[%s35344_s8 + $0x6b0] sm:$0xff]  ;;  %v1426_v21 = vld [vmem:[%s35344_s8 + $0x1ef8] sm:$0x3] }
 0x207   : > { %v9412_v56 = vadd.f32 %v9411_v44, %v9342_v48  ;;  %v3063_v44 = vcombine.high %v3061_v32, %v3061_v32  ;;  %v1415_v48 = vld [vmem:[%s35344_s8 + $0x1ea0] sm:$0x3]  ;;  %v1417_v50 = vld [vmem:[%s35344_s8 + $0x1eb0] sm:$0x3] }
 0x208   : > { %v33620_v0 = vpack.c.bf16 %v1417_v50, %v649_v49 }
 0x209   : > { %13120 = vmatmul.mubr.f32.vlgmr.msra.gmra.mrb[98].mxu0 %v3003_v17  ;;  %v3045_v17 = vcombine.high %v3037_v2, %v3037_v2 }
 0x20a   : > { %13190 = vmatmul.mubr.f32.vlgmr.msra.gmra.mrb[98].mxu1 %v3010_v22  ;;  %33593 = vmatpush1.bf16.xpose.msra.mxu0 %v33592_v54  ;;  %v643_v22 = vld [vmem:[%s35344_s8 + $0x680] sm:$0xff]  ;;  %v652_v54 = vld [vmem:[%s35344_s8 + $0x6c8] sm:$0xff] }
 0x20b   : > { %33597 = vmatpush1.bf16.xpose.msra.mxu1 %v33596_v55  ;;  %13259 = vmatprep.mubr.f32.mxu0 %v3028_v57  ;;  %v33608_v39 = vpack.c.bf16 %v1411_v23, %v643_v22  ;;  %v1420_v55 = vld [vmem:[%s35344_s8 + $0x1ec8] sm:$0x3]  ;;  %v298_v22 = vld [vmem:[%s35337_s10 + $0x1b8] sm:$0xff] }
 0x20c   : > { %33599 = vmatprep.subr.bf16.mxu0 %v33598_v58  ;;  %v9481_v3 = vpop.f32.mrb[46].mxu0  ;;  %13329 = vmatprep.mubr.f32.mxu1 %v3029_v59  ;;  %v3098_v31 = vcombine.high %v298_v22, %v298_v22  ;;  %v3105_v36 = vrot.slane %v298_v22, %v35369_v25 }
 0x20d   : > { %v9551_v4 = vpop.f32.mrb[46].mxu1  ;;  %33603 = vmatprep.subr.bf16.mxu1 %v33602_v60  ;;  %v9482_v8 = vadd.f32 %v9481_v3, %v9412_v56  ;;  %v9483_v9 = vpop.f32.mrb[47].mxu0  ;;  %v3078_v56 = vrot.slane %v3064_v46, %v35369_v25  ;;  %v654_v60 = vld [vmem:[%s35344_s8 + $0x6d8] sm:$0xff]  ;;  %v33622_v3 = vpack.c.bf16 %v1420_v55, %v652_v54 }
 0x20e   : > { %v9553_v10 = vpop.f32.mrb[47].mxu1  ;;  %v33626_v5 = vpack.c.bf16 %v1422_v61, %v654_v60  ;;  %v653_v9 = vld [vmem:[%s35344_s8 + $0x6d0] sm:$0xff]  ;;  %v1430_v46 = vld [vmem:[%s35344_s8 + $0x1f18] sm:$0x3] }
 0x20f   : > { %v9552_v16 = vadd.f32 %v9551_v4, %v9482_v8  ;;  %v3080_v4 = vcombine.high %v3078_v56, %v3078_v56  ;;  %v1419_v8 = vld [vmem:[%s35344_s8 + $0x1ec0] sm:$0x3]  ;;  %v1421_v10 = vld [vmem:[%s35344_s8 + $0x1ed0] sm:$0x3] }
 0x210   : > { %v33628_v24 = vpack.c.bf16 %v1421_v10, %v653_v9 }
 0x211   : > { %13260 = vmatmul.mubr.f32.vlgmr.msra.gmra.mrb[100].mxu0 %v3020_v42  ;;  %v3062_v42 = vcombine.high %v3054_v27, %v3054_v27 }
 0x212   : > { %13330 = vmatmul.mubr.f32.vlgmr.msra.gmra.mrb[100].mxu1 %v3027_v47  ;;  %33601 = vmatpush1.bf16.xpose.msra.mxu0 %v33600_v14  ;;  %v647_v47 = vld [vmem:[%s35344_s8 + $0x6a0] sm:$0xff]  ;;  %v656_v14 = vld [vmem:[%s35344_s8 + $0x6e8] sm:$0xff] }
 0x213   : > { %33605 = vmatpush1.bf16.xpose.msra.mxu1 %v33604_v15  ;;  %13399 = vmatprep.mubr.f32.mxu0 %v3045_v17  ;;  %v33616_v63 = vpack.c.bf16 %v1415_v48, %v647_v47  ;;  %v1424_v15 = vld [vmem:[%s35344_s8 + $0x1ee8] sm:$0x3]  ;;  %v299_v47 = vld [vmem:[%s35337_s10 + $0x1c0] sm:$0xff] }
 0x214   : > { %33607 = vmatprep.subr.bf16.mxu0 %v33606_v18  ;;  %v9621_v28 = vpop.f32.mrb[48].mxu0  ;;  %13469 = vmatprep.mubr.f32.mxu1 %v3046_v19  ;;  %v3115_v55 = vcombine.high %v299_v47, %v299_v47  ;;  %v3122_v60 = vrot.slane %v299_v47, %v35369_v25 }
 0x215   : > { %v9691_v29 = vpop.f32.mrb[48].mxu1  ;;  %33611 = vmatprep.subr.bf16.mxu1 %v33610_v20  ;;  %v9622_v33 = vadd.f32 %v9621_v28, %v9552_v16  ;;  %v9623_v34 = vpop.f32.mrb[49].mxu0  ;;  %v3095_v16 = vrot.slane %v3081_v6, %v35369_v25  ;;  %v658_v20 = vld [vmem:[%s35344_s8 + $0x6f8] sm:$0xff]  ;;  %v33630_v28 = vpack.c.bf16 %v1424_v15, %v656_v14 }
 0x216   : > { %v9693_v35 = vpop.f32.mrb[49].mxu1  ;;  %v33634_v30 = vpack.c.bf16 %v1426_v21, %v658_v20  ;;  %v657_v34 = vld [vmem:[%s35344_s8 + $0x6f0] sm:$0xff]  ;;  %v1434_v6 = vld [vmem:[%s35344_s8 + $0x1f38] sm:$0x3] }
 0x217   : > { %v9692_v41 = vadd.f32 %v9691_v29, %v9622_v33  ;;  %v3097_v29 = vcombine.high %v3095_v16, %v3095_v16  ;;  %v1423_v33 = vld [vmem:[%s35344_s8 + $0x1ee0] sm:$0x3]  ;;  %v1425_v35 = vld [vmem:[%s35344_s8 + $0x1ef0] sm:$0x3] }
 0x218   : > { %v33636_v49 = vpack.c.bf16 %v1425_v35, %v657_v34 }
 0x219   : > { %13400 = vmatmul.mubr.f32.vlgmr.msra.gmra.mrb[102].mxu0 %v3037_v2  ;;  %v3079_v2 = vcombine.high %v3071_v51, %v3071_v51 }
 0x21a   : > { %13470 = vmatmul.mubr.f32.vlgmr.msra.gmra.mrb[102].mxu1 %v3044_v7  ;;  %33609 = vmatpush1.bf16.xpose.msra.mxu0 %v33608_v39  ;;  %v651_v7 = vld [vmem:[%s35344_s8 + $0x6c0] sm:$0xff]  ;;  %v660_v39 = vld [vmem:[%s35344_s8 + $0x708] sm:$0xff] }
 0x21b   : > { %33613 = vmatpush1.bf16.xpose.msra.mxu1 %v33612_v40  ;;  %13539 = vmatprep.mubr.f32.mxu0 %v3062_v42  ;;  %v33624_v23 = vpack.c.bf16 %v1419_v8, %v651_v7  ;;  %v1428_v40 = vld [vmem:[%s35344_s8 + $0x1f08] sm:$0x3] }
 0x21c   : > { %33615 = vmatprep.subr.bf16.mxu0 %v33614_v43  ;;  %v9761_v52 = vpop.f32.mrb[50].mxu0  ;;  %13609 = vmatprep.mubr.f32.mxu1 %v3063_v44  ;;  %v300_v7 = vld [vmem:[%s35337_s10 + $0x1c8] sm:$0xff] }
 0x21d   : > { %v9831_v53 = vpop.f32.mrb[50].mxu1  ;;  %33619 = vmatprep.subr.bf16.mxu1 %v33618_v45  ;;  %v9762_v57 = vadd.f32 %v9761_v52, %v9692_v41  ;;  %v9763_v58 = vpop.f32.mrb[51].mxu0  ;;  %v3112_v41 = vrot.slane %v3098_v31, %v35369_v25  ;;  %v662_v45 = vld [vmem:[%s35344_s8 + $0x718] sm:$0xff]  ;;  %v33638_v52 = vpack.c.bf16 %v1428_v40, %v660_v39  ;;  %v3132_v15 = vcombine.high %v300_v7, %v300_v7 }
 0x21e   : > { %v9833_v59 = vpop.f32.mrb[51].mxu1  ;;  %v33642_v54 = vpack.c.bf16 %v1430_v46, %v662_v45  ;;  %v661_v58 = vld [vmem:[%s35344_s8 + $0x710] sm:$0xff]  ;;  %v3139_v20 = vrot.slane %v300_v7, %v35369_v25  ;;  %v1438_v31 = vld [vmem:[%s35344_s8 + $0x1f58] sm:$0x3] }
 0x21f   : > { %v9832_v1 = vadd.f32 %v9831_v53, %v9762_v57  ;;  %v3114_v53 = vcombine.high %v3112_v41, %v3112_v41  ;;  %v1427_v57 = vld [vmem:[%s35344_s8 + $0x1f00] sm:$0x3]  ;;  %v1429_v59 = vld [vmem:[%s35344_s8 + $0x1f10] sm:$0x3] }
 0x220   : > { %v33644_v9 = vpack.c.bf16 %v1429_v59, %v661_v58 }
 0x221   : > { %13540 = vmatmul.mubr.f32.vlgmr.msra.gmra.mrb[104].mxu0 %v3054_v27  ;;  %v3096_v27 = vcombine.high %v3088_v11, %v3088_v11 }
 0x222   : > { %13610 = vmatmul.mubr.f32.vlgmr.msra.gmra.mrb[104].mxu1 %v3061_v32  ;;  %33617 = vmatpush1.bf16.xpose.msra.mxu0 %v33616_v63  ;;  %v655_v32 = vld [vmem:[%s35344_s8 + $0x6e0] sm:$0xff]  ;;  %v664_v63 = vld [vmem:[%s35344_s8 + $0x728] sm:$0xff] }
 0x223   : > { %33621 = vmatpush1.bf16.xpose.msra.mxu1 %v33620_v0  ;;  %13679 = vmatprep.mubr.f32.mxu0 %v3079_v2  ;;  %v33632_v48 = vpack.c.bf16 %v1423_v33, %v655_v32  ;;  %v1432_v0 = vld [vmem:[%s35344_s8 + $0x1f28] sm:$0x3]  ;;  %v301_v32 = vld [vmem:[%s35337_s10 + $0x1d0] sm:$0xff] }
 0x224   : > { %33623 = vmatprep.subr.bf16.mxu0 %v33622_v3  ;;  %v9901_v12 = vpop.f32.mrb[52].mxu0  ;;  %13749 = vmatprep.mubr.f32.mxu1 %v3080_v4  ;;  %v3149_v40 = vcombine.high %v301_v32, %v301_v32  ;;  %v3156_v45 = vrot.slane %v301_v32, %v35369_v25 }
 0x225   : > { %v9971_v13 = vpop.f32.mrb[52].mxu1  ;;  %33627 = vmatprep.subr.bf16.mxu1 %v33626_v5  ;;  %v9902_v17 = vadd.f32 %v9901_v12, %v9832_v1  ;;  %v9903_v18 = vpop.f32.mrb[53].mxu0  ;;  %v3129_v1 = vrot.slane %v3115_v55, %v35369_v25  ;;  %v666_v5 = vld [vmem:[%s35344_s8 + $0x738] sm:$0xff]  ;;  %v33646_v12 = vpack.c.bf16 %v1432_v0, %v664_v63 }
 0x226   : > { %v9973_v19 = vpop.f32.mrb[53].mxu1  ;;  %v33650_v14 = vpack.c.bf16 %v1434_v6, %v666_v5  ;;  %v665_v18 = vld [vmem:[%s35344_s8 + $0x730] sm:$0xff]  ;;  %v1442_v55 = vld [vmem:[%s35344_s8 + $0x1f78] sm:$0x3] }
 0x227   : > { %v9972_v26 = vadd.f32 %v9971_v13, %v9902_v17  ;;  %v3131_v13 = vcombine.high %v3129_v1, %v3129_v1  ;;  %v1431_v17 = vld [vmem:[%s35344_s8 + $0x1f20] sm:$0x3]  ;;  %v1433_v19 = vld [vmem:[%s35344_s8 + $0x1f30] sm:$0x3] }
 0x228   : > { %v33652_v34 = vpack.c.bf16 %v1433_v19, %v665_v18 }
 0x229   : > { %13680 = vmatmul.mubr.f32.vlgmr.msra.gmra.mrb[106].mxu0 %v3071_v51  ;;  %v3113_v51 = vcombine.high %v3105_v36, %v3105_v36 }
 0x22a   : > { %13750 = vmatmul.mubr.f32.vlgmr.msra.gmra.mrb[106].mxu1 %v3078_v56  ;;  %33625 = vmatpush1.bf16.xpose.msra.mxu0 %v33624_v23  ;;  %v659_v56 = vld [vmem:[%s35344_s8 + $0x700] sm:$0xff]  ;;  %v668_v23 = vld [vmem:[%s35344_s8 + $0x748] sm:$0xff] }
 0x22b   : > { %33629 = vmatpush1.bf16.xpose.msra.mxu1 %v33628_v24  ;;  %13819 = vmatprep.mubr.f32.mxu0 %v3096_v27  ;;  %v33640_v8 = vpack.c.bf16 %v1427_v57, %v659_v56  ;;  %v1436_v24 = vld [vmem:[%s35344_s8 + $0x1f48] sm:$0x3]  ;;  %v302_v56 = vld [vmem:[%s35337_s10 + $0x1d8] sm:$0xff] }
 0x22c   : > { %33631 = vmatprep.subr.bf16.mxu0 %v33630_v28  ;;  %v10041_v37 = vpop.f32.mrb[54].mxu0  ;;  %13889 = vmatprep.mubr.f32.mxu1 %v3097_v29  ;;  %v3166_v0 = vcombine.high %v302_v56, %v302_v56  ;;  %v3173_v5 = vrot.slane %v302_v56, %v35369_v25 }
 0x22d   : > { %v10111_v38 = vpop.f32.mrb[54].mxu1  ;;  %33635 = vmatprep.subr.bf16.mxu1 %v33634_v30  ;;  %v10042_v42 = vadd.f32 %v10041_v37, %v9972_v26  ;;  %v10043_v43 = vpop.f32.mrb[55].mxu0  ;;  %v3146_v26 = vrot.slane %v3132_v15, %v35369_v25  ;;  %v670_v30 = vld [vmem:[%s35344_s8 + $0x758] sm:$0xff]  ;;  %v33654_v37 = vpack.c.bf16 %v1436_v24, %v668_v23 }
 0x22e   : > { %v10113_v44 = vpop.f32.mrb[55].mxu1  ;;  %v33658_v39 = vpack.c.bf16 %v1438_v31, %v670_v30  ;;  %v669_v43 = vld [vmem:[%s35344_s8 + $0x750] sm:$0xff]  ;;  %v1446_v15 = vld [vmem:[%s35344_s8 + $0x1f98] sm:$0x3] }
 0x22f   : > { %v10112_v50 = vadd.f32 %v10111_v38, %v10042_v42  ;;  %v3148_v38 = vcombine.high %v3146_v26, %v3146_v26  ;;  %v1435_v42 = vld [vmem:[%s35344_s8 + $0x1f40] sm:$0x3]  ;;  %v1437_v44 = vld [vmem:[%s35344_s8 + $0x1f50] sm:$0x3] }
 0x230   : > { %v33660_v58 = vpack.c.bf16 %v1437_v44, %v669_v43 }
 0x231   : > { %13820 = vmatmul.mubr.f32.vlgmr.msra.gmra.mrb[108].mxu0 %v3088_v11  ;;  %v3130_v11 = vcombine.high %v3122_v60, %v3122_v60 }
 0x232   : > { %13890 = vmatmul.mubr.f32.vlgmr.msra.gmra.mrb[108].mxu1 %v3095_v16  ;;  %33633 = vmatpush1.bf16.xpose.msra.mxu0 %v33632_v48  ;;  %v663_v16 = vld [vmem:[%s35344_s8 + $0x720] sm:$0xff]  ;;  %v672_v48 = vld [vmem:[%s35344_s8 + $0x768] sm:$0xff] }
 0x233   : > { %33637 = vmatpush1.bf16.xpose.msra.mxu1 %v33636_v49  ;;  %13959 = vmatprep.mubr.f32.mxu0 %v3113_v51  ;;  %v33648_v33 = vpack.c.bf16 %v1431_v17, %v663_v16  ;;  %v1440_v49 = vld [vmem:[%s35344_s8 + $0x1f68] sm:$0x3]  ;;  %v303_v16 = vld [vmem:[%s35337_s10 + $0x1e0] sm:$0xff] }
 0x234   : > { %33639 = vmatprep.subr.bf16.mxu0 %v33638_v52  ;;  %v10181_v61 = vpop.f32.mrb[56].mxu0  ;;  %14029 = vmatprep.mubr.f32.mxu1 %v3114_v53  ;;  %v3183_v24 = vcombine.high %v303_v16, %v303_v16  ;;  %v3190_v30 = vrot.slane %v303_v16, %v35369_v25 }
 0x235   : > { %v10251_v62 = vpop.f32.mrb[56].mxu1  ;;  %33643 = vmatprep.subr.bf16.mxu1 %v33642_v54  ;;  %v10182_v2 = vadd.f32 %v10181_v61, %v10112_v50  ;;  %v10183_v3 = vpop.f32.mrb[57].mxu0  ;;  %v3163_v50 = vrot.slane %v3149_v40, %v35369_v25  ;;  %v674_v54 = vld [vmem:[%s35344_s8 + $0x778] sm:$0xff]  ;;  %v33662_v61 = vpack.c.bf16 %v1440_v49, %v672_v48 }
 0x236   : > { %v10253_v4 = vpop.f32.mrb[57].mxu1  ;;  %v33666_v63 = vpack.c.bf16 %v1442_v55, %v674_v54  ;;  %v673_v3 = vld [vmem:[%s35344_s8 + $0x770] sm:$0xff]  ;;  %v1450_v40 = vld [vmem:[%s35344_s8 + $0x1fb8] sm:$0x3] }
 0x237   : > { %v10252_v10 = vadd.f32 %v10251_v62, %v10182_v2  ;;  %v3165_v62 = vcombine.high %v3163_v50, %v3163_v50  ;;  %v1439_v2 = vld [vmem:[%s35344_s8 + $0x1f60] sm:$0x3]  ;;  %v1441_v4 = vld [vmem:[%s35344_s8 + $0x1f70] sm:$0x3] }
 0x238   : > { %v33668_v18 = vpack.c.bf16 %v1441_v4, %v673_v3 }
 0x239   : > { %13960 = vmatmul.mubr.f32.vlgmr.msra.gmra.mrb[110].mxu0 %v3105_v36  ;;  %v3147_v36 = vcombine.high %v3139_v20, %v3139_v20 }
 0x23a   : > { %14030 = vmatmul.mubr.f32.vlgmr.msra.gmra.mrb[110].mxu1 %v3112_v41  ;;  %33641 = vmatpush1.bf16.xpose.msra.mxu0 %v33640_v8  ;;  %v667_v41 = vld [vmem:[%s35344_s8 + $0x740] sm:$0xff]  ;;  %v676_v8 = vld [vmem:[%s35344_s8 + $0x788] sm:$0xff] }
 0x23b   : > { %33645 = vmatpush1.bf16.xpose.msra.mxu1 %v33644_v9  ;;  %14099 = vmatprep.mubr.f32.mxu0 %v3130_v11  ;;  %v33656_v57 = vpack.c.bf16 %v1435_v42, %v667_v41  ;;  %v1444_v9 = vld [vmem:[%s35344_s8 + $0x1f88] sm:$0x3] }
 0x23c   : > { %33647 = vmatprep.subr.bf16.mxu0 %v33646_v12  ;;  %v10321_v21 = vpop.f32.mrb[58].mxu0  ;;  %14169 = vmatprep.mubr.f32.mxu1 %v3131_v13  ;;  %v304_v41 = vld [vmem:[%s35337_s10 + $0x1e8] sm:$0xff] }
 0x23d   : > { %v10391_v22 = vpop.f32.mrb[58].mxu1  ;;  %33651 = vmatprep.subr.bf16.mxu1 %v33650_v14  ;;  %v10322_v27 = vadd.f32 %v10321_v21, %v10252_v10  ;;  %v10323_v28 = vpop.f32.mrb[59].mxu0  ;;  %v3180_v10 = vrot.slane %v3166_v0, %v35369_v25  ;;  %v678_v14 = vld [vmem:[%s35344_s8 + $0x798] sm:$0xff]  ;;  %v33670_v21 = vpack.c.bf16 %v1444_v9, %v676_v8  ;;  %v3200_v49 = vcombine.high %v304_v41, %v304_v41 }
 0x23e   : > { %v10393_v29 = vpop.f32.mrb[59].mxu1  ;;  %v33674_v23 = vpack.c.bf16 %v1446_v15, %v678_v14  ;;  %v677_v28 = vld [vmem:[%s35344_s8 + $0x790] sm:$0xff]  ;;  %v3207_v54 = vrot.slane %v304_v41, %v35369_v25  ;;  %v1454_v0 = vld [vmem:[%s35344_s8 + $0x1fd8] sm:$0x3] }
 0x23f   : > { %v10392_v35 = vadd.f32 %v10391_v22, %v10322_v27  ;;  %v3182_v22 = vcombine.high %v3180_v10, %v3180_v10  ;;  %v1443_v27 = vld [vmem:[%s35344_s8 + $0x1f80] sm:$0x3]  ;;  %v1445_v29 = vld [vmem:[%s35344_s8 + $0x1f90] sm:$0x3] }
 0x240   : > { %v33676_v43 = vpack.c.bf16 %v1445_v29, %v677_v28 }
 0x241   : > { %14100 = vmatmul.mubr.f32.vlgmr.msra.gmra.mrb[112].mxu0 %v3122_v60  ;;  %v3164_v60 = vcombine.high %v3156_v45, %v3156_v45 }
 0x242   : > { %14170 = vmatmul.mubr.f32.vlgmr.msra.gmra.mrb[112].mxu1 %v3129_v1  ;;  %33649 = vmatpush1.bf16.xpose.msra.mxu0 %v33648_v33  ;;  %v671_v1 = vld [vmem:[%s35344_s8 + $0x760] sm:$0xff]  ;;  %v680_v33 = vld [vmem:[%s35344_s8 + $0x7a8] sm:$0xff] }
 0x243   : > { %33653 = vmatpush1.bf16.xpose.msra.mxu1 %v33652_v34  ;;  %14239 = vmatprep.mubr.f32.mxu0 %v3147_v36  ;;  %v33664_v17 = vpack.c.bf16 %v1439_v2, %v671_v1  ;;  %v1448_v34 = vld [vmem:[%s35344_s8 + $0x1fa8] sm:$0x3]  ;;  %v305_v1 = vld [vmem:[%s35337_s10 + $0x1f0] sm:$0xff] }
 0x244   : > { %33655 = vmatprep.subr.bf16.mxu0 %v33654_v37  ;;  %v10461_v46 = vpop.f32.mrb[60].mxu0  ;;  %14309 = vmatprep.mubr.f32.mxu1 %v3148_v38  ;;  %v3217_v9 = vcombine.high %v305_v1, %v305_v1  ;;  %v3224_v14 = vrot.slane %v305_v1, %v35369_v25 }
 0x245   : > { %v10531_v47 = vpop.f32.mrb[60].mxu1  ;;  %33659 = vmatprep.subr.bf16.mxu1 %v33658_v39  ;;  %v10462_v51 = vadd.f32 %v10461_v46, %v10392_v35  ;;  %v10463_v52 = vpop.f32.mrb[61].mxu0  ;;  %v3197_v35 = vrot.slane %v3183_v24, %v35369_v25  ;;  %v682_v39 = vld [vmem:[%s35344_s8 + $0x7b8] sm:$0xff]  ;;  %v33678_v46 = vpack.c.bf16 %v1448_v34, %v680_v33 }
 0x246   : > { %v10533_v53 = vpop.f32.mrb[61].mxu1  ;;  %v33682_v48 = vpack.c.bf16 %v1450_v40, %v682_v39  ;;  %v681_v52 = vld [vmem:[%s35344_s8 + $0x7b0] sm:$0xff]  ;;  %v1458_v24 = vld [vmem:[%s35344_s8 + $0x1ff8] sm:$0x3] }
 0x247   : > { %v10532_v59 = vadd.f32 %v10531_v47, %v10462_v51  ;;  %v3199_v47 = vcombine.high %v3197_v35, %v3197_v35  ;;  %v1447_v51 = vld [vmem:[%s35344_s8 + $0x1fa0] sm:$0x3]  ;;  %v1449_v53 = vld [vmem:[%s35344_s8 + $0x1fb0] sm:$0x3] }
 0x248   : > { %v33684_v3 = vpack.c.bf16 %v1449_v53, %v681_v52 }
 0x249   : > { %14240 = vmatmul.mubr.f32.vlgmr.msra.gmra.mrb[114].mxu0 %v3139_v20  ;;  %v3181_v20 = vcombine.high %v3173_v5, %v3173_v5 }
 0x24a   : > { %14310 = vmatmul.mubr.f32.vlgmr.msra.gmra.mrb[114].mxu1 %v3146_v26  ;;  %33657 = vmatpush1.bf16.xpose.msra.mxu0 %v33656_v57  ;;  %v675_v26 = vld [vmem:[%s35344_s8 + $0x780] sm:$0xff]  ;;  %v684_v57 = vld [vmem:[%s35344_s8 + $0x7c8] sm:$0xff] }
 0x24b   : > { %33661 = vmatpush1.bf16.xpose.msra.mxu1 %v33660_v58  ;;  %14379 = vmatprep.mubr.f32.mxu0 %v3164_v60  ;;  %v33672_v42 = vpack.c.bf16 %v1443_v27, %v675_v26  ;;  %v1452_v58 = vld [vmem:[%s35344_s8 + $0x1fc8] sm:$0x3]  ;;  %v306_v26 = vld [vmem:[%s35337_s10 + $0x1f8] sm:$0xff] }
 0x24c   : > { %33663 = vmatprep.subr.bf16.mxu0 %v33662_v61  ;;  %v10601_v6 = vpop.f32.mrb[62].mxu0  ;;  %14449 = vmatprep.mubr.f32.mxu1 %v3165_v62  ;;  %v3234_v34 = vcombine.high %v306_v26, %v306_v26  ;;  %v3241_v39 = vrot.slane %v306_v26, %v35369_v25 }
 0x24d   : > { %v10671_v7 = vpop.f32.mrb[62].mxu1  ;;  %33667 = vmatprep.subr.bf16.mxu1 %v33666_v63  ;;  %v10602_v11 = vadd.f32 %v10601_v6, %v10532_v59  ;;  %v10603_v12 = vpop.f32.mrb[63].mxu0  ;;  %v3214_v59 = vrot.slane %v3200_v49, %v35369_v25  ;;  %v686_v63 = vld [vmem:[%s35344_s8 + $0x7d8] sm:$0xff]  ;;  %v33686_v6 = vpack.c.bf16 %v1452_v58, %v684_v57 }
 0x24e   : > { %v10673_v13 = vpop.f32.mrb[63].mxu1  ;;  %v33690_v8 = vpack.c.bf16 %v1454_v0, %v686_v63  ;;  %v685_v12 = vld [vmem:[%s35344_s8 + $0x7d0] sm:$0xff]  ;;  %v1462_v49 = vld [vmem:[%s35344_s8 + $0x2018] sm:$0x3] }
 0x24f   : > { %v10672_v19 = vadd.f32 %v10671_v7, %v10602_v11  ;;  %v3216_v7 = vcombine.high %v3214_v59, %v3214_v59  ;;  %v1451_v11 = vld [vmem:[%s35344_s8 + $0x1fc0] sm:$0x3]  ;;  %v1453_v13 = vld [vmem:[%s35344_s8 + $0x1fd0] sm:$0x3] }
 0x250   : > { %v33692_v28 = vpack.c.bf16 %v1453_v13, %v685_v12 }
 0x251   : > { %14380 = vmatmul.mubr.f32.vlgmr.msra.gmra.mrb[116].mxu0 %v3156_v45  ;;  %v3198_v45 = vcombine.high %v3190_v30, %v3190_v30 }
 0x252   : > { %14450 = vmatmul.mubr.f32.vlgmr.msra.gmra.mrb[116].mxu1 %v3163_v50  ;;  %33665 = vmatpush1.bf16.xpose.msra.mxu0 %v33664_v17  ;;  %v679_v50 = vld [vmem:[%s35344_s8 + $0x7a0] sm:$0xff]  ;;  %v688_v17 = vld [vmem:[%s35344_s8 + $0x7e8] sm:$0xff] }
 0x253   : > { %33669 = vmatpush1.bf16.xpose.msra.mxu1 %v33668_v18  ;;  %14519 = vmatprep.mubr.f32.mxu0 %v3181_v20  ;;  %v33680_v2 = vpack.c.bf16 %v1447_v51, %v679_v50  ;;  %v1456_v18 = vld [vmem:[%s35344_s8 + $0x1fe8] sm:$0x3]  ;;  %v307_v50 = vld [vmem:[%s35337_s10 + $0x200] sm:$0xff] }
 0x254   : > { %33671 = vmatprep.subr.bf16.mxu0 %v33670_v21  ;;  %v10741_v31 = vpop.f32.mrb[64].mxu0  ;;  %14589 = vmatprep.mubr.f32.mxu1 %v3182_v22  ;;  %v3251_v58 = vcombine.high %v307_v50, %v307_v50  ;;  %v3258_v63 = vrot.slane %v307_v50, %v35369_v25 }
 0x255   : > { %v10811_v32 = vpop.f32.mrb[64].mxu1  ;;  %33675 = vmatprep.subr.bf16.mxu1 %v33674_v23  ;;  %v10742_v36 = vadd.f32 %v10741_v31, %v10672_v19  ;;  %v10743_v37 = vpop.f32.mrb[65].mxu0  ;;  %v3231_v19 = vrot.slane %v3217_v9, %v35369_v25  ;;  %v690_v23 = vld [vmem:[%s35344_s8 + $0x7f8] sm:$0xff]  ;;  %v33694_v31 = vpack.c.bf16 %v1456_v18, %v688_v17 }
 0x256   : > { %v10813_v38 = vpop.f32.mrb[65].mxu1  ;;  %v33698_v33 = vpack.c.bf16 %v1458_v24, %v690_v23  ;;  %v689_v37 = vld [vmem:[%s35344_s8 + $0x7f0] sm:$0xff]  ;;  %v1466_v9 = vld [vmem:[%s35344_s8 + $0x2038] sm:$0x3] }
 0x257   : > { %v10812_v44 = vadd.f32 %v10811_v32, %v10742_v36  ;;  %v3233_v32 = vcombine.high %v3231_v19, %v3231_v19  ;;  %v1455_v36 = vld [vmem:[%s35344_s8 + $0x1fe0] sm:$0x3]  ;;  %v1457_v38 = vld [vmem:[%s35344_s8 + $0x1ff0] sm:$0x3] }
 0x258   : > { %v33700_v52 = vpack.c.bf16 %v1457_v38, %v689_v37 }
 0x259   : > { %14520 = vmatmul.mubr.f32.vlgmr.msra.gmra.mrb[118].mxu0 %v3173_v5  ;;  %v3215_v5 = vcombine.high %v3207_v54, %v3207_v54 }
 0x25a   : > { %14590 = vmatmul.mubr.f32.vlgmr.msra.gmra.mrb[118].mxu1 %v3180_v10  ;;  %33673 = vmatpush1.bf16.xpose.msra.mxu0 %v33672_v42  ;;  %v683_v10 = vld [vmem:[%s35344_s8 + $0x7c0] sm:$0xff]  ;;  %v692_v42 = vld [vmem:[%s35344_s8 + $0x808] sm:$0xff] }
 0x25b   : > { %33677 = vmatpush1.bf16.xpose.msra.mxu1 %v33676_v43  ;;  %14659 = vmatprep.mubr.f32.mxu0 %v3198_v45  ;;  %v33688_v27 = vpack.c.bf16 %v1451_v11, %v683_v10  ;;  %v1460_v43 = vld [vmem:[%s35344_s8 + $0x2008] sm:$0x3] }
 0x25c   : > { %33679 = vmatprep.subr.bf16.mxu0 %v33678_v46  ;;  %v10881_v55 = vpop.f32.mrb[66].mxu0  ;;  %14729 = vmatprep.mubr.f32.mxu1 %v3199_v47  ;;  %v308_v10 = vld [vmem:[%s35337_s10 + $0x208] sm:$0xff] }
 0x25d   : > { %v10951_v56 = vpop.f32.mrb[66].mxu1  ;;  %33683 = vmatprep.subr.bf16.mxu1 %v33682_v48  ;;  %v10882_v60 = vadd.f32 %v10881_v55, %v10812_v44  ;;  %v10883_v61 = vpop.f32.mrb[67].mxu0  ;;  %v3248_v44 = vrot.slane %v3234_v34, %v35369_v25  ;;  %v694_v48 = vld [vmem:[%s35344_s8 + $0x818] sm:$0xff]  ;;  %v33702_v55 = vpack.c.bf16 %v1460_v43, %v692_v42  ;;  %v3268_v18 = vcombine.high %v308_v10, %v308_v10 }
 0x25e   : > { %v10953_v62 = vpop.f32.mrb[67].mxu1  ;;  %v33706_v57 = vpack.c.bf16 %v1462_v49, %v694_v48  ;;  %v693_v61 = vld [vmem:[%s35344_s8 + $0x810] sm:$0xff]  ;;  %v3275_v23 = vrot.slane %v308_v10, %v35369_v25  ;;  %v1470_v34 = vld [vmem:[%s35344_s8 + $0x2058] sm:$0x3] }
 0x25f   : > { %v10952_v4 = vadd.f32 %v10951_v56, %v10882_v60  ;;  %v3250_v56 = vcombine.high %v3248_v44, %v3248_v44  ;;  %v1459_v60 = vld [vmem:[%s35344_s8 + $0x2000] sm:$0x3]  ;;  %v1461_v62 = vld [vmem:[%s35344_s8 + $0x2010] sm:$0x3] }
 0x260   : > { %v33708_v12 = vpack.c.bf16 %v1461_v62, %v693_v61 }
 0x261   : > { %14660 = vmatmul.mubr.f32.vlgmr.msra.gmra.mrb[120].mxu0 %v3190_v30  ;;  %v3232_v30 = vcombine.high %v3224_v14, %v3224_v14 }
 0x262   : > { %14730 = vmatmul.mubr.f32.vlgmr.msra.gmra.mrb[120].mxu1 %v3197_v35  ;;  %33681 = vmatpush1.bf16.xpose.msra.mxu0 %v33680_v2  ;;  %v687_v35 = vld [vmem:[%s35344_s8 + $0x7e0] sm:$0xff]  ;;  %v696_v2 = vld [vmem:[%s35344_s8 + $0x828] sm:$0xff] }
 0x263   : > { %33685 = vmatpush1.bf16.xpose.msra.mxu1 %v33684_v3  ;;  %14799 = vmatprep.mubr.f32.mxu0 %v3215_v5  ;;  %v33696_v51 = vpack.c.bf16 %v1455_v36, %v687_v35  ;;  %v1464_v3 = vld [vmem:[%s35344_s8 + $0x2028] sm:$0x3]  ;;  %v309_v35 = vld [vmem:[%s35337_s10 + $0x210] sm:$0xff] }
 0x264   : > { %33687 = vmatprep.subr.bf16.mxu0 %v33686_v6  ;;  %v11021_v15 = vpop.f32.mrb[68].mxu0  ;;  %14869 = vmatprep.mubr.f32.mxu1 %v3216_v7  ;;  %v3285_v43 = vcombine.high %v309_v35, %v309_v35  ;;  %v3292_v48 = vrot.slane %v309_v35, %v35369_v25 }
 0x265   : > { %v11091_v16 = vpop.f32.mrb[68].mxu1  ;;  %33691 = vmatprep.subr.bf16.mxu1 %v33690_v8  ;;  %v11022_v20 = vadd.f32 %v11021_v15, %v10952_v4  ;;  %v11023_v21 = vpop.f32.mrb[69].mxu0  ;;  %v3265_v4 = vrot.slane %v3251_v58, %v35369_v25  ;;  %v698_v8 = vld [vmem:[%s35344_s8 + $0x838] sm:$0xff]  ;;  %v33710_v15 = vpack.c.bf16 %v1464_v3, %v696_v2 }
 0x266   : > { %v11093_v22 = vpop.f32.mrb[69].mxu1  ;;  %v33714_v17 = vpack.c.bf16 %v1466_v9, %v698_v8  ;;  %v697_v21 = vld [vmem:[%s35344_s8 + $0x830] sm:$0xff]  ;;  %v1474_v58 = vld [vmem:[%s35344_s8 + $0x2078] sm:$0x3] }
 0x267   : > { %v11092_v29 = vadd.f32 %v11091_v16, %v11022_v20  ;;  %v3267_v16 = vcombine.high %v3265_v4, %v3265_v4  ;;  %v1463_v20 = vld [vmem:[%s35344_s8 + $0x2020] sm:$0x3]  ;;  %v1465_v22 = vld [vmem:[%s35344_s8 + $0x2030] sm:$0x3] }
 0x268   : > { %v33716_v37 = vpack.c.bf16 %v1465_v22, %v697_v21 }
 0x269   : > { %14800 = vmatmul.mubr.f32.vlgmr.msra.gmra.mrb[122].mxu0 %v3207_v54  ;;  %v3249_v54 = vcombine.high %v3241_v39, %v3241_v39 }
 0x26a   : > { %14870 = vmatmul.mubr.f32.vlgmr.msra.gmra.mrb[122].mxu1 %v3214_v59  ;;  %33689 = vmatpush1.bf16.xpose.msra.mxu0 %v33688_v27  ;;  %v691_v59 = vld [vmem:[%s35344_s8 + $0x800] sm:$0xff]  ;;  %v700_v27 = vld [vmem:[%s35344_s8 + $0x848] sm:$0xff] }
 0x26b   : > { %33693 = vmatpush1.bf16.xpose.msra.mxu1 %v33692_v28  ;;  %14939 = vmatprep.mubr.f32.mxu0 %v3232_v30  ;;  %v33704_v11 = vpack.c.bf16 %v1459_v60, %v691_v59  ;;  %v1468_v28 = vld [vmem:[%s35344_s8 + $0x2048] sm:$0x3]  ;;  %v310_v59 = vld [vmem:[%s35337_s10 + $0x218] sm:$0xff] }
 0x26c   : > { %33695 = vmatprep.subr.bf16.mxu0 %v33694_v31  ;;  %v11161_v40 = vpop.f32.mrb[70].mxu0  ;;  %15009 = vmatprep.mubr.f32.mxu1 %v3233_v32  ;;  %v3302_v3 = vcombine.high %v310_v59, %v310_v59  ;;  %v3309_v8 = vrot.slane %v310_v59, %v35369_v25 }
 0x26d   : > { %v11231_v41 = vpop.f32.mrb[70].mxu1  ;;  %33699 = vmatprep.subr.bf16.mxu1 %v33698_v33  ;;  %v11162_v45 = vadd.f32 %v11161_v40, %v11092_v29  ;;  %v11163_v46 = vpop.f32.mrb[71].mxu0  ;;  %v3282_v29 = vrot.slane %v3268_v18, %v35369_v25  ;;  %v702_v33 = vld [vmem:[%s35344_s8 + $0x858] sm:$0xff]  ;;  %v33718_v40 = vpack.c.bf16 %v1468_v28, %v700_v27 }
 0x26e   : > { %v11233_v47 = vpop.f32.mrb[71].mxu1  ;;  %v33722_v42 = vpack.c.bf16 %v1470_v34, %v702_v33  ;;  %v701_v46 = vld [vmem:[%s35344_s8 + $0x850] sm:$0xff]  ;;  %v1478_v18 = vld [vmem:[%s35344_s8 + $0x2098] sm:$0x3] }
 0x26f   : > { %v11232_v53 = vadd.f32 %v11231_v41, %v11162_v45  ;;  %v3284_v41 = vcombine.high %v3282_v29, %v3282_v29  ;;  %v1467_v45 = vld [vmem:[%s35344_s8 + $0x2040] sm:$0x3]  ;;  %v1469_v47 = vld [vmem:[%s35344_s8 + $0x2050] sm:$0x3] }
 0x270   : > { %v33724_v61 = vpack.c.bf16 %v1469_v47, %v701_v46 }
 0x271   : > { %14940 = vmatmul.mubr.f32.vlgmr.msra.gmra.mrb[124].mxu0 %v3224_v14  ;;  %v3266_v14 = vcombine.high %v3258_v63, %v3258_v63 }
 0x272   : > { %15010 = vmatmul.mubr.f32.vlgmr.msra.gmra.mrb[124].mxu1 %v3231_v19  ;;  %33697 = vmatpush1.bf16.xpose.msra.mxu0 %v33696_v51  ;;  %v695_v19 = vld [vmem:[%s35344_s8 + $0x820] sm:$0xff]  ;;  %v704_v51 = vld [vmem:[%s35344_s8 + $0x868] sm:$0xff] }
 0x273   : > { %33701 = vmatpush1.bf16.xpose.msra.mxu1 %v33700_v52  ;;  %15079 = vmatprep.mubr.f32.mxu0 %v3249_v54  ;;  %v33712_v36 = vpack.c.bf16 %v1463_v20, %v695_v19  ;;  %v1472_v52 = vld [vmem:[%s35344_s8 + $0x2068] sm:$0x3]  ;;  %v311_v19 = vld [vmem:[%s35337_s10 + $0x220] sm:$0xff] }
 0x274   : > { %33703 = vmatprep.subr.bf16.mxu0 %v33702_v55  ;;  %v11301_v0 = vpop.f32.mrb[72].mxu0  ;;  %15149 = vmatprep.mubr.f32.mxu1 %v3250_v56  ;;  %v3319_v28 = vcombine.high %v311_v19, %v311_v19  ;;  %v3326_v33 = vrot.slane %v311_v19, %v35369_v25 }
 0x275   : > { %v11371_v1 = vpop.f32.mrb[72].mxu1  ;;  %33707 = vmatprep.subr.bf16.mxu1 %v33706_v57  ;;  %v11302_v5 = vadd.f32 %v11301_v0, %v11232_v53  ;;  %v11303_v6 = vpop.f32.mrb[73].mxu0  ;;  %v3299_v53 = vrot.slane %v3285_v43, %v35369_v25  ;;  %v706_v57 = vld [vmem:[%s35344_s8 + $0x878] sm:$0xff]  ;;  %v33726_v0 = vpack.c.bf16 %v1472_v52, %v704_v51 }
 0x276   : > { %v11373_v7 = vpop.f32.mrb[73].mxu1  ;;  %v33730_v2 = vpack.c.bf16 %v1474_v58, %v706_v57  ;;  %v705_v6 = vld [vmem:[%s35344_s8 + $0x870] sm:$0xff]  ;;  %v1482_v43 = vld [vmem:[%s35344_s8 + $0x20b8] sm:$0x3] }
 0x277   : > { %v11372_v13 = vadd.f32 %v11371_v1, %v11302_v5  ;;  %v3301_v1 = vcombine.high %v3299_v53, %v3299_v53  ;;  %v1471_v5 = vld [vmem:[%s35344_s8 + $0x2060] sm:$0x3]  ;;  %v1473_v7 = vld [vmem:[%s35344_s8 + $0x2070] sm:$0x3] }
 0x278   : > { %v33732_v21 = vpack.c.bf16 %v1473_v7, %v705_v6 }
 0x279   : > { %15080 = vmatmul.mubr.f32.vlgmr.msra.gmra.mrb[126].mxu0 %v3241_v39  ;;  %v3283_v39 = vcombine.high %v3275_v23, %v3275_v23 }
 0x27a   : > { %15150 = vmatmul.mubr.f32.vlgmr.msra.gmra.mrb[126].mxu1 %v3248_v44  ;;  %33705 = vmatpush1.bf16.xpose.msra.mxu0 %v33704_v11  ;;  %v699_v44 = vld [vmem:[%s35344_s8 + $0x840] sm:$0xff]  ;;  %v708_v11 = vld [vmem:[%s35344_s8 + $0x888] sm:$0xff] }
 0x27b   : > { %33709 = vmatpush1.bf16.xpose.msra.mxu1 %v33708_v12  ;;  %15219 = vmatprep.mubr.f32.mxu0 %v3266_v14  ;;  %v33720_v60 = vpack.c.bf16 %v1467_v45, %v699_v44  ;;  %v1476_v12 = vld [vmem:[%s35344_s8 + $0x2088] sm:$0x3] }
 0x27c   : > { %33711 = vmatprep.subr.bf16.mxu0 %v33710_v15  ;;  %v11441_v24 = vpop.f32.mrb[74].mxu0  ;;  %15289 = vmatprep.mubr.f32.mxu1 %v3267_v16  ;;  %v312_v44 = vld [vmem:[%s35337_s10 + $0x228] sm:$0xff] }
 0x27d   : > { %v11511_v26 = vpop.f32.mrb[74].mxu1  ;;  %33715 = vmatprep.subr.bf16.mxu1 %v33714_v17  ;;  %v11442_v30 = vadd.f32 %v11441_v24, %v11372_v13  ;;  %v11443_v31 = vpop.f32.mrb[75].mxu0  ;;  %v3316_v13 = vrot.slane %v3302_v3, %v35369_v25  ;;  %v710_v17 = vld [vmem:[%s35344_s8 + $0x898] sm:$0xff]  ;;  %v33734_v24 = vpack.c.bf16 %v1476_v12, %v708_v11  ;;  %v3336_v52 = vcombine.high %v312_v44, %v312_v44 }
 0x27e   : > { %v11513_v32 = vpop.f32.mrb[75].mxu1  ;;  %v33738_v27 = vpack.c.bf16 %v1478_v18, %v710_v17  ;;  %v709_v31 = vld [vmem:[%s35344_s8 + $0x890] sm:$0xff]  ;;  %v3343_v57 = vrot.slane %v312_v44, %v35369_v25  ;;  %v1486_v3 = vld [vmem:[%s35344_s8 + $0x20d8] sm:$0x3] }
 0x27f   : > { %v11512_v38 = vadd.f32 %v11511_v26, %v11442_v30  ;;  %v3318_v26 = vcombine.high %v3316_v13, %v3316_v13  ;;  %v1475_v30 = vld [vmem:[%s35344_s8 + $0x2080] sm:$0x3]  ;;  %v1477_v32 = vld [vmem:[%s35344_s8 + $0x2090] sm:$0x3] }
 0x280   : > { %v33740_v46 = vpack.c.bf16 %v1477_v32, %v709_v31 }
 0x281   : > { %15220 = vmatmul.mubr.f32.vlgmr.msra.gmra.mrb[128].mxu0 %v3258_v63  ;;  %v3300_v63 = vcombine.high %v3292_v48, %v3292_v48 }
 0x282   : > { %15290 = vmatmul.mubr.f32.vlgmr.msra.gmra.mrb[128].mxu1 %v3265_v4  ;;  %33713 = vmatpush1.bf16.xpose.msra.mxu0 %v33712_v36  ;;  %v703_v4 = vld [vmem:[%s35344_s8 + $0x860] sm:$0xff]  ;;  %v712_v36 = vld [vmem:[%s35344_s8 + $0x8a8] sm:$0xff] }
 0x283   : > { %33717 = vmatpush1.bf16.xpose.msra.mxu1 %v33716_v37  ;;  %15359 = vmatprep.mubr.f32.mxu0 %v3283_v39  ;;  %v33728_v20 = vpack.c.bf16 %v1471_v5, %v703_v4  ;;  %v1480_v37 = vld [vmem:[%s35344_s8 + $0x20a8] sm:$0x3]  ;;  %v313_v4 = vld [vmem:[%s35337_s10 + $0x230] sm:$0xff] }
 0x284   : > { %33719 = vmatprep.subr.bf16.mxu0 %v33718_v40  ;;  %v11581_v49 = vpop.f32.mrb[76].mxu0  ;;  %15429 = vmatprep.mubr.f32.mxu1 %v3284_v41  ;;  %v3353_v12 = vcombine.high %v313_v4, %v313_v4  ;;  %v3360_v17 = vrot.slane %v313_v4, %v35369_v25 }
 0x285   : > { %v11651_v50 = vpop.f32.mrb[76].mxu1  ;;  %33723 = vmatprep.subr.bf16.mxu1 %v33722_v42  ;;  %v11582_v54 = vadd.f32 %v11581_v49, %v11512_v38  ;;  %v11583_v55 = vpop.f32.mrb[77].mxu0  ;;  %v3333_v38 = vrot.slane %v3319_v28, %v35369_v25  ;;  %v714_v42 = vld [vmem:[%s35344_s8 + $0x8b8] sm:$0xff]  ;;  %v33742_v49 = vpack.c.bf16 %v1480_v37, %v712_v36 }
 0x286   : > { %v11653_v56 = vpop.f32.mrb[77].mxu1  ;;  %v33746_v51 = vpack.c.bf16 %v1482_v43, %v714_v42  ;;  %v713_v55 = vld [vmem:[%s35344_s8 + $0x8b0] sm:$0xff]  ;;  %v1490_v28 = vld [vmem:[%s35344_s8 + $0x20f8] sm:$0x3] }
 0x287   : > { %v11652_v62 = vadd.f32 %v11651_v50, %v11582_v54  ;;  %v3335_v50 = vcombine.high %v3333_v38, %v3333_v38  ;;  %v1479_v54 = vld [vmem:[%s35344_s8 + $0x20a0] sm:$0x3]  ;;  %v1481_v56 = vld [vmem:[%s35344_s8 + $0x20b0] sm:$0x3] }
 0x288   : > { %v33748_v6 = vpack.c.bf16 %v1481_v56, %v713_v55 }
 0x289   : > { %15360 = vmatmul.mubr.f32.vlgmr.msra.gmra.mrb[130].mxu0 %v3275_v23  ;;  %v3317_v23 = vcombine.high %v3309_v8, %v3309_v8 }
 0x28a   : > { %15430 = vmatmul.mubr.f32.vlgmr.msra.gmra.mrb[130].mxu1 %v3282_v29  ;;  %33721 = vmatpush1.bf16.xpose.msra.mxu0 %v33720_v60  ;;  %v707_v29 = vld [vmem:[%s35344_s8 + $0x880] sm:$0xff]  ;;  %v716_v60 = vld [vmem:[%s35344_s8 + $0x8c8] sm:$0xff] }
 0x28b   : > { %33725 = vmatpush1.bf16.xpose.msra.mxu1 %v33724_v61  ;;  %15499 = vmatprep.mubr.f32.mxu0 %v3300_v63  ;;  %v33736_v45 = vpack.c.bf16 %v1475_v30, %v707_v29  ;;  %v1484_v61 = vld [vmem:[%s35344_s8 + $0x20c8] sm:$0x3]  ;;  %v314_v29 = vld [vmem:[%s35337_s10 + $0x238] sm:$0xff] }
 0x28c   : > { %33727 = vmatprep.subr.bf16.mxu0 %v33726_v0  ;;  %v11721_v9 = vpop.f32.mrb[78].mxu0  ;;  %15569 = vmatprep.mubr.f32.mxu1 %v3301_v1  ;;  %v3370_v37 = vcombine.high %v314_v29, %v314_v29  ;;  %v3377_v42 = vrot.slane %v314_v29, %v35369_v25 }
 0x28d   : > { %v11791_v10 = vpop.f32.mrb[78].mxu1  ;;  %33731 = vmatprep.subr.bf16.mxu1 %v33730_v2  ;;  %v11722_v14 = vadd.f32 %v11721_v9, %v11652_v62  ;;  %v11723_v15 = vpop.f32.mrb[79].mxu0  ;;  %v3350_v62 = vrot.slane %v3336_v52, %v35369_v25  ;;  %v718_v2 = vld [vmem:[%s35344_s8 + $0x8d8] sm:$0xff]  ;;  %v33750_v9 = vpack.c.bf16 %v1484_v61, %v716_v60 }
 0x28e   : > { %v11793_v16 = vpop.f32.mrb[79].mxu1  ;;  %v33754_v11 = vpack.c.bf16 %v1486_v3, %v718_v2  ;;  %v717_v15 = vld [vmem:[%s35344_s8 + $0x8d0] sm:$0xff]  ;;  %v1494_v52 = vld [vmem:[%s35344_s8 + $0x2118] sm:$0x3] }
 0x28f   : > { %v11792_v22 = vadd.f32 %v11791_v10, %v11722_v14  ;;  %v3352_v10 = vcombine.high %v3350_v62, %v3350_v62  ;;  %v1483_v14 = vld [vmem:[%s35344_s8 + $0x20c0] sm:$0x3]  ;;  %v1485_v16 = vld [vmem:[%s35344_s8 + $0x20d0] sm:$0x3] }
 0x290   : > { %v33756_v31 = vpack.c.bf16 %v1485_v16, %v717_v15 }
 0x291   : > { %15500 = vmatmul.mubr.f32.vlgmr.msra.gmra.mrb[132].mxu0 %v3292_v48  ;;  %v3334_v48 = vcombine.high %v3326_v33, %v3326_v33 }
 0x292   : > { %15570 = vmatmul.mubr.f32.vlgmr.msra.gmra.mrb[132].mxu1 %v3299_v53  ;;  %33729 = vmatpush1.bf16.xpose.msra.mxu0 %v33728_v20  ;;  %v711_v53 = vld [vmem:[%s35344_s8 + $0x8a0] sm:$0xff]  ;;  %v720_v20 = vld [vmem:[%s35344_s8 + $0x8e8] sm:$0xff] }
 0x293   : > { %33733 = vmatpush1.bf16.xpose.msra.mxu1 %v33732_v21  ;;  %15639 = vmatprep.mubr.f32.mxu0 %v3317_v23  ;;  %v33744_v5 = vpack.c.bf16 %v1479_v54, %v711_v53  ;;  %v1488_v21 = vld [vmem:[%s35344_s8 + $0x20e8] sm:$0x3]  ;;  %v315_v53 = vld [vmem:[%s35337_s10 + $0x240] sm:$0xff] }
 0x294   : > { %33735 = vmatprep.subr.bf16.mxu0 %v33734_v24  ;;  %v11861_v34 = vpop.f32.mrb[80].mxu0  ;;  %15709 = vmatprep.mubr.f32.mxu1 %v3318_v26  ;;  %v3387_v61 = vcombine.high %v315_v53, %v315_v53  ;;  %v3394_v2 = vrot.slane %v315_v53, %v35369_v25 }
 0x295   : > { %v11931_v35 = vpop.f32.mrb[80].mxu1  ;;  %33739 = vmatprep.subr.bf16.mxu1 %v33738_v27  ;;  %v11862_v39 = vadd.f32 %v11861_v34, %v11792_v22  ;;  %v11863_v40 = vpop.f32.mrb[81].mxu0  ;;  %v3367_v22 = vrot.slane %v3353_v12, %v35369_v25  ;;  %v722_v27 = vld [vmem:[%s35344_s8 + $0x8f8] sm:$0xff]  ;;  %v33758_v34 = vpack.c.bf16 %v1488_v21, %v720_v20 }
 0x296   : > { %v11933_v41 = vpop.f32.mrb[81].mxu1  ;;  %v33762_v36 = vpack.c.bf16 %v1490_v28, %v722_v27  ;;  %v721_v40 = vld [vmem:[%s35344_s8 + $0x8f0] sm:$0xff]  ;;  %v1498_v12 = vld [vmem:[%s35344_s8 + $0x2138] sm:$0x3] }
 0x297   : > { %v11932_v47 = vadd.f32 %v11931_v35, %v11862_v39  ;;  %v3369_v35 = vcombine.high %v3367_v22, %v3367_v22  ;;  %v1487_v39 = vld [vmem:[%s35344_s8 + $0x20e0] sm:$0x3]  ;;  %v1489_v41 = vld [vmem:[%s35344_s8 + $0x20f0] sm:$0x3] }
 0x298   : > { %v33764_v55 = vpack.c.bf16 %v1489_v41, %v721_v40 }
 0x299   : > { %15640 = vmatmul.mubr.f32.vlgmr.msra.gmra.mrb[134].mxu0 %v3309_v8  ;;  %v3351_v8 = vcombine.high %v3343_v57, %v3343_v57 }
 0x29a   : > { %15710 = vmatmul.mubr.f32.vlgmr.msra.gmra.mrb[134].mxu1 %v3316_v13  ;;  %33737 = vmatpush1.bf16.xpose.msra.mxu0 %v33736_v45  ;;  %v715_v13 = vld [vmem:[%s35344_s8 + $0x8c0] sm:$0xff]  ;;  %v724_v45 = vld [vmem:[%s35344_s8 + $0x908] sm:$0xff] }
 0x29b   : > { %33741 = vmatpush1.bf16.xpose.msra.mxu1 %v33740_v46  ;;  %15779 = vmatprep.mubr.f32.mxu0 %v3334_v48  ;;  %v33752_v30 = vpack.c.bf16 %v1483_v14, %v715_v13  ;;  %v1492_v46 = vld [vmem:[%s35344_s8 + $0x2108] sm:$0x3] }
 0x29c   : > { %33743 = vmatprep.subr.bf16.mxu0 %v33742_v49  ;;  %v12001_v58 = vpop.f32.mrb[82].mxu0  ;;  %15849 = vmatprep.mubr.f32.mxu1 %v3335_v50  ;;  %v316_v13 = vld [vmem:[%s35337_s10 + $0x248] sm:$0xff] }
 0x29d   : > { %v12071_v59 = vpop.f32.mrb[82].mxu1  ;;  %33747 = vmatprep.subr.bf16.mxu1 %v33746_v51  ;;  %v12002_v63 = vadd.f32 %v12001_v58, %v11932_v47  ;;  %v12003_v0 = vpop.f32.mrb[83].mxu0  ;;  %v3384_v47 = vrot.slane %v3370_v37, %v35369_v25  ;;  %v726_v51 = vld [vmem:[%s35344_s8 + $0x918] sm:$0xff]  ;;  %v33766_v58 = vpack.c.bf16 %v1492_v46, %v724_v45  ;;  %v3404_v21 = vcombine.high %v316_v13, %v316_v13 }
 0x29e   : > { %v12073_v1 = vpop.f32.mrb[83].mxu1  ;;  %v33770_v60 = vpack.c.bf16 %v1494_v52, %v726_v51  ;;  %v725_v0 = vld [vmem:[%s35344_s8 + $0x910] sm:$0xff]  ;;  %v3411_v27 = vrot.slane %v316_v13, %v35369_v25  ;;  %v1502_v37 = vld [vmem:[%s35344_s8 + $0x2158] sm:$0x3] }
 0x29f   : > { %v12072_v7 = vadd.f32 %v12071_v59, %v12002_v63  ;;  %v3386_v59 = vcombine.high %v3384_v47, %v3384_v47  ;;  %v1491_v63 = vld [vmem:[%s35344_s8 + $0x2100] sm:$0x3]  ;;  %v1493_v1 = vld [vmem:[%s35344_s8 + $0x2110] sm:$0x3] }
 0x2a0   : > { %v33772_v15 = vpack.c.bf16 %v1493_v1, %v725_v0 }
 0x2a1   : > { %15780 = vmatmul.mubr.f32.vlgmr.msra.gmra.mrb[136].mxu0 %v3326_v33  ;;  %v3368_v33 = vcombine.high %v3360_v17, %v3360_v17 }
 0x2a2   : > { %15850 = vmatmul.mubr.f32.vlgmr.msra.gmra.mrb[136].mxu1 %v3333_v38  ;;  %33745 = vmatpush1.bf16.xpose.msra.mxu0 %v33744_v5  ;;  %v719_v38 = vld [vmem:[%s35344_s8 + $0x8e0] sm:$0xff]  ;;  %v728_v5 = vld [vmem:[%s35344_s8 + $0x928] sm:$0xff] }
 0x2a3   : > { %33749 = vmatpush1.bf16.xpose.msra.mxu1 %v33748_v6  ;;  %15919 = vmatprep.mubr.f32.mxu0 %v3351_v8  ;;  %v33760_v54 = vpack.c.bf16 %v1487_v39, %v719_v38  ;;  %v1496_v6 = vld [vmem:[%s35344_s8 + $0x2128] sm:$0x3]  ;;  %v317_v38 = vld [vmem:[%s35337_s10 + $0x250] sm:$0xff] }
 0x2a4   : > { %33751 = vmatprep.subr.bf16.mxu0 %v33750_v9  ;;  %v12141_v18 = vpop.f32.mrb[84].mxu0  ;;  %15989 = vmatprep.mubr.f32.mxu1 %v3352_v10  ;;  %v3421_v46 = vcombine.high %v317_v38, %v317_v38  ;;  %v3428_v51 = vrot.slane %v317_v38, %v35369_v25 }
 0x2a5   : > { %v12211_v19 = vpop.f32.mrb[84].mxu1  ;;  %33755 = vmatprep.subr.bf16.mxu1 %v33754_v11  ;;  %v12142_v23 = vadd.f32 %v12141_v18, %v12072_v7  ;;  %v12143_v24 = vpop.f32.mrb[85].mxu0  ;;  %v3401_v7 = vrot.slane %v3387_v61, %v35369_v25  ;;  %v730_v11 = vld [vmem:[%s35344_s8 + $0x938] sm:$0xff]  ;;  %v33774_v18 = vpack.c.bf16 %v1496_v6, %v728_v5 }
 0x2a6   : > { %v12213_v26 = vpop.f32.mrb[85].mxu1  ;;  %v33778_v20 = vpack.c.bf16 %v1498_v12, %v730_v11  ;;  %v729_v24 = vld [vmem:[%s35344_s8 + $0x930] sm:$0xff]  ;;  %v1506_v61 = vld [vmem:[%s35344_s8 + $0x2178] sm:$0x3] }
 0x2a7   : > { %v12212_v32 = vadd.f32 %v12211_v19, %v12142_v23  ;;  %v3403_v19 = vcombine.high %v3401_v7, %v3401_v7  ;;  %v1495_v23 = vld [vmem:[%s35344_s8 + $0x2120] sm:$0x3]  ;;  %v1497_v26 = vld [vmem:[%s35344_s8 + $0x2130] sm:$0x3] }
 0x2a8   : > { %v33780_v40 = vpack.c.bf16 %v1497_v26, %v729_v24 }
 0x2a9   : > { %15920 = vmatmul.mubr.f32.vlgmr.msra.gmra.mrb[138].mxu0 %v3343_v57  ;;  %v3385_v57 = vcombine.high %v3377_v42, %v3377_v42 }
 0x2aa   : > { %15990 = vmatmul.mubr.f32.vlgmr.msra.gmra.mrb[138].mxu1 %v3350_v62  ;;  %33753 = vmatpush1.bf16.xpose.msra.mxu0 %v33752_v30  ;;  %v723_v62 = vld [vmem:[%s35344_s8 + $0x900] sm:$0xff]  ;;  %v732_v30 = vld [vmem:[%s35344_s8 + $0x948] sm:$0xff] }
 0x2ab   : > { %33757 = vmatpush1.bf16.xpose.msra.mxu1 %v33756_v31  ;;  %16059 = vmatprep.mubr.f32.mxu0 %v3368_v33  ;;  %v33768_v14 = vpack.c.bf16 %v1491_v63, %v723_v62  ;;  %v1500_v31 = vld [vmem:[%s35344_s8 + $0x2148] sm:$0x3]  ;;  %v318_v62 = vld [vmem:[%s35337_s10 + $0x258] sm:$0xff] }
 0x2ac   : > { %33759 = vmatprep.subr.bf16.mxu0 %v33758_v34  ;;  %v12281_v43 = vpop.f32.mrb[86].mxu0  ;;  %16129 = vmatprep.mubr.f32.mxu1 %v3369_v35  ;;  %v3438_v6 = vcombine.high %v318_v62, %v318_v62  ;;  %v3445_v11 = vrot.slane %v318_v62, %v35369_v25 }
 0x2ad   : > { %v12351_v44 = vpop.f32.mrb[86].mxu1  ;;  %33763 = vmatprep.subr.bf16.mxu1 %v33762_v36  ;;  %v12282_v48 = vadd.f32 %v12281_v43, %v12212_v32  ;;  %v12283_v49 = vpop.f32.mrb[87].mxu0  ;;  %v3418_v32 = vrot.slane %v3404_v21, %v35369_v25  ;;  %v734_v36 = vld [vmem:[%s35344_s8 + $0x958] sm:$0xff]  ;;  %v33782_v43 = vpack.c.bf16 %v1500_v31, %v732_v30 }
 0x2ae   : > { %v12353_v50 = vpop.f32.mrb[87].mxu1  ;;  %v33786_v45 = vpack.c.bf16 %v1502_v37, %v734_v36  ;;  %v733_v49 = vld [vmem:[%s35344_s8 + $0x950] sm:$0xff]  ;;  %v1510_v21 = vld [vmem:[%s35344_s8 + $0x2198] sm:$0x3] }
 0x2af   : > { %v12352_v56 = vadd.f32 %v12351_v44, %v12282_v48  ;;  %v3420_v44 = vcombine.high %v3418_v32, %v3418_v32  ;;  %v1499_v48 = vld [vmem:[%s35344_s8 + $0x2140] sm:$0x3]  ;;  %v1501_v50 = vld [vmem:[%s35344_s8 + $0x2150] sm:$0x3] }
 0x2b0   : > { %v33788_v0 = vpack.c.bf16 %v1501_v50, %v733_v49 }
 0x2b1   : > { %16060 = vmatmul.mubr.f32.vlgmr.msra.gmra.mrb[140].mxu0 %v3360_v17  ;;  %v3402_v17 = vcombine.high %v3394_v2, %v3394_v2 }
 0x2b2   : > { %16130 = vmatmul.mubr.f32.vlgmr.msra.gmra.mrb[140].mxu1 %v3367_v22  ;;  %33761 = vmatpush1.bf16.xpose.msra.mxu0 %v33760_v54  ;;  %v727_v22 = vld [vmem:[%s35344_s8 + $0x920] sm:$0xff]  ;;  %v736_v54 = vld [vmem:[%s35344_s8 + $0x968] sm:$0xff] }
 0x2b3   : > { %33765 = vmatpush1.bf16.xpose.msra.mxu1 %v33764_v55  ;;  %16199 = vmatprep.mubr.f32.mxu0 %v3385_v57  ;;  %v33776_v39 = vpack.c.bf16 %v1495_v23, %v727_v22  ;;  %v1504_v55 = vld [vmem:[%s35344_s8 + $0x2168] sm:$0x3]  ;;  %v319_v22 = vld [vmem:[%s35337_s10 + $0x260] sm:$0xff] }
 0x2b4   : > { %33767 = vmatprep.subr.bf16.mxu0 %v33766_v58  ;;  %v12421_v3 = vpop.f32.mrb[88].mxu0  ;;  %16269 = vmatprep.mubr.f32.mxu1 %v3386_v59  ;;  %v3455_v31 = vcombine.high %v319_v22, %v319_v22  ;;  %v3462_v36 = vrot.slane %v319_v22, %v35369_v25 }
 0x2b5   : > { %v12491_v4 = vpop.f32.mrb[88].mxu1  ;;  %33771 = vmatprep.subr.bf16.mxu1 %v33770_v60  ;;  %v12422_v8 = vadd.f32 %v12421_v3, %v12352_v56  ;;  %v12423_v9 = vpop.f32.mrb[89].mxu0  ;;  %v3435_v56 = vrot.slane %v3421_v46, %v35369_v25  ;;  %v738_v60 = vld [vmem:[%s35344_s8 + $0x978] sm:$0xff]  ;;  %v33790_v3 = vpack.c.bf16 %v1504_v55, %v736_v54 }
 0x2b6   : > { %v12493_v10 = vpop.f32.mrb[89].mxu1  ;;  %v33794_v5 = vpack.c.bf16 %v1506_v61, %v738_v60  ;;  %v737_v9 = vld [vmem:[%s35344_s8 + $0x970] sm:$0xff]  ;;  %v1514_v46 = vld [vmem:[%s35344_s8 + $0x21b8] sm:$0x3] }
 0x2b7   : > { %v12492_v16 = vadd.f32 %v12491_v4, %v12422_v8  ;;  %v3437_v4 = vcombine.high %v3435_v56, %v3435_v56  ;;  %v1503_v8 = vld [vmem:[%s35344_s8 + $0x2160] sm:$0x3]  ;;  %v1505_v10 = vld [vmem:[%s35344_s8 + $0x2170] sm:$0x3] }
 0x2b8   : > { %v33796_v24 = vpack.c.bf16 %v1505_v10, %v737_v9 }
 0x2b9   : > { %16200 = vmatmul.mubr.f32.vlgmr.msra.gmra.mrb[142].mxu0 %v3377_v42  ;;  %v3419_v42 = vcombine.high %v3411_v27, %v3411_v27 }
 0x2ba   : > { %16270 = vmatmul.mubr.f32.vlgmr.msra.gmra.mrb[142].mxu1 %v3384_v47  ;;  %33769 = vmatpush1.bf16.xpose.msra.mxu0 %v33768_v14  ;;  %v731_v47 = vld [vmem:[%s35344_s8 + $0x940] sm:$0xff]  ;;  %v740_v14 = vld [vmem:[%s35344_s8 + $0x988] sm:$0xff] }
 0x2bb   : > { %33773 = vmatpush1.bf16.xpose.msra.mxu1 %v33772_v15  ;;  %16339 = vmatprep.mubr.f32.mxu0 %v3402_v17  ;;  %v33784_v63 = vpack.c.bf16 %v1499_v48, %v731_v47  ;;  %v1508_v15 = vld [vmem:[%s35344_s8 + $0x2188] sm:$0x3] }
 0x2bc   : > { %33775 = vmatprep.subr.bf16.mxu0 %v33774_v18  ;;  %v12561_v28 = vpop.f32.mrb[90].mxu0  ;;  %16409 = vmatprep.mubr.f32.mxu1 %v3403_v19  ;;  %v320_v47 = vld [vmem:[%s35337_s10 + $0x268] sm:$0xff] }
 0x2bd   : > { %v12631_v29 = vpop.f32.mrb[90].mxu1  ;;  %33779 = vmatprep.subr.bf16.mxu1 %v33778_v20  ;;  %v12562_v33 = vadd.f32 %v12561_v28, %v12492_v16  ;;  %v12563_v34 = vpop.f32.mrb[91].mxu0  ;;  %v3452_v16 = vrot.slane %v3438_v6, %v35369_v25  ;;  %v742_v20 = vld [vmem:[%s35344_s8 + $0x998] sm:$0xff]  ;;  %v33798_v28 = vpack.c.bf16 %v1508_v15, %v740_v14  ;;  %v3472_v55 = vcombine.high %v320_v47, %v320_v47 }
 0x2be   : > { %v12633_v35 = vpop.f32.mrb[91].mxu1  ;;  %v33802_v30 = vpack.c.bf16 %v1510_v21, %v742_v20  ;;  %v741_v34 = vld [vmem:[%s35344_s8 + $0x990] sm:$0xff]  ;;  %v3479_v60 = vrot.slane %v320_v47, %v35369_v25  ;;  %v1518_v6 = vld [vmem:[%s35344_s8 + $0x21d8] sm:$0x3] }
 0x2bf   : > { %v12632_v41 = vadd.f32 %v12631_v29, %v12562_v33  ;;  %v3454_v29 = vcombine.high %v3452_v16, %v3452_v16  ;;  %v1507_v33 = vld [vmem:[%s35344_s8 + $0x2180] sm:$0x3]  ;;  %v1509_v35 = vld [vmem:[%s35344_s8 + $0x2190] sm:$0x3] }
 0x2c0   : > { %v33804_v49 = vpack.c.bf16 %v1509_v35, %v741_v34 }
 0x2c1   : > { %16340 = vmatmul.mubr.f32.vlgmr.msra.gmra.mrb[144].mxu0 %v3394_v2  ;;  %v3436_v2 = vcombine.high %v3428_v51, %v3428_v51 }
 0x2c2   : > { %16410 = vmatmul.mubr.f32.vlgmr.msra.gmra.mrb[144].mxu1 %v3401_v7  ;;  %33777 = vmatpush1.bf16.xpose.msra.mxu0 %v33776_v39  ;;  %v735_v7 = vld [vmem:[%s35344_s8 + $0x960] sm:$0xff]  ;;  %v744_v39 = vld [vmem:[%s35344_s8 + $0x9a8] sm:$0xff] }
 0x2c3   : > { %33781 = vmatpush1.bf16.xpose.msra.mxu1 %v33780_v40  ;;  %16479 = vmatprep.mubr.f32.mxu0 %v3419_v42  ;;  %v33792_v23 = vpack.c.bf16 %v1503_v8, %v735_v7  ;;  %v1512_v40 = vld [vmem:[%s35344_s8 + $0x21a8] sm:$0x3]  ;;  %v321_v7 = vld [vmem:[%s35337_s10 + $0x270] sm:$0xff] }
 0x2c4   : > { %33783 = vmatprep.subr.bf16.mxu0 %v33782_v43  ;;  %v12701_v52 = vpop.f32.mrb[92].mxu0  ;;  %16549 = vmatprep.mubr.f32.mxu1 %v3420_v44  ;;  %v3489_v15 = vcombine.high %v321_v7, %v321_v7  ;;  %v3496_v20 = vrot.slane %v321_v7, %v35369_v25 }
 0x2c5   : > { %v12771_v53 = vpop.f32.mrb[92].mxu1  ;;  %33787 = vmatprep.subr.bf16.mxu1 %v33786_v45  ;;  %v12702_v57 = vadd.f32 %v12701_v52, %v12632_v41  ;;  %v12703_v58 = vpop.f32.mrb[93].mxu0  ;;  %v3469_v41 = vrot.slane %v3455_v31, %v35369_v25  ;;  %v746_v45 = vld [vmem:[%s35344_s8 + $0x9b8] sm:$0xff]  ;;  %v33806_v52 = vpack.c.bf16 %v1512_v40, %v744_v39 }
 0x2c6   : > { %v12773_v59 = vpop.f32.mrb[93].mxu1  ;;  %v33810_v54 = vpack.c.bf16 %v1514_v46, %v746_v45  ;;  %v745_v58 = vld [vmem:[%s35344_s8 + $0x9b0] sm:$0xff]  ;;  %v1522_v31 = vld [vmem:[%s35344_s8 + $0x21f8] sm:$0x3] }
 0x2c7   : > { %v12772_v1 = vadd.f32 %v12771_v53, %v12702_v57  ;;  %v3471_v53 = vcombine.high %v3469_v41, %v3469_v41  ;;  %v1511_v57 = vld [vmem:[%s35344_s8 + $0x21a0] sm:$0x3]  ;;  %v1513_v59 = vld [vmem:[%s35344_s8 + $0x21b0] sm:$0x3] }
 0x2c8   : > { %v33812_v9 = vpack.c.bf16 %v1513_v59, %v745_v58 }
 0x2c9   : > { %16480 = vmatmul.mubr.f32.vlgmr.msra.gmra.mrb[146].mxu0 %v3411_v27  ;;  %v3453_v27 = vcombine.high %v3445_v11, %v3445_v11 }
 0x2ca   : > { %16550 = vmatmul.mubr.f32.vlgmr.msra.gmra.mrb[146].mxu1 %v3418_v32  ;;  %33785 = vmatpush1.bf16.xpose.msra.mxu0 %v33784_v63  ;;  %v739_v32 = vld [vmem:[%s35344_s8 + $0x980] sm:$0xff]  ;;  %v748_v63 = vld [vmem:[%s35344_s8 + $0x9c8] sm:$0xff] }
 0x2cb   : > { %33789 = vmatpush1.bf16.xpose.msra.mxu1 %v33788_v0  ;;  %16619 = vmatprep.mubr.f32.mxu0 %v3436_v2  ;;  %v33800_v48 = vpack.c.bf16 %v1507_v33, %v739_v32  ;;  %v1516_v0 = vld [vmem:[%s35344_s8 + $0x21c8] sm:$0x3]  ;;  %v322_v32 = vld [vmem:[%s35337_s10 + $0x278] sm:$0xff] }
 0x2cc   : > { %33791 = vmatprep.subr.bf16.mxu0 %v33790_v3  ;;  %v12841_v12 = vpop.f32.mrb[94].mxu0  ;;  %16689 = vmatprep.mubr.f32.mxu1 %v3437_v4  ;;  %v3506_v40 = vcombine.high %v322_v32, %v322_v32  ;;  %v3513_v45 = vrot.slane %v322_v32, %v35369_v25 }
 0x2cd   : > { %v12911_v13 = vpop.f32.mrb[94].mxu1  ;;  %33795 = vmatprep.subr.bf16.mxu1 %v33794_v5  ;;  %v12842_v17 = vadd.f32 %v12841_v12, %v12772_v1  ;;  %v12843_v18 = vpop.f32.mrb[95].mxu0  ;;  %v3486_v1 = vrot.slane %v3472_v55, %v35369_v25  ;;  %v750_v5 = vld [vmem:[%s35344_s8 + $0x9d8] sm:$0xff]  ;;  %v33814_v12 = vpack.c.bf16 %v1516_v0, %v748_v63 }
 0x2ce   : > { %v12913_v19 = vpop.f32.mrb[95].mxu1  ;;  %v33818_v14 = vpack.c.bf16 %v1518_v6, %v750_v5  ;;  %v749_v18 = vld [vmem:[%s35344_s8 + $0x9d0] sm:$0xff]  ;;  %v1526_v55 = vld [vmem:[%s35344_s8 + $0x2218] sm:$0x3] }
 0x2cf   : > { %v12912_v26 = vadd.f32 %v12911_v13, %v12842_v17  ;;  %v3488_v13 = vcombine.high %v3486_v1, %v3486_v1  ;;  %v1515_v17 = vld [vmem:[%s35344_s8 + $0x21c0] sm:$0x3]  ;;  %v1517_v19 = vld [vmem:[%s35344_s8 + $0x21d0] sm:$0x3] }
 0x2d0   : > { %v33820_v34 = vpack.c.bf16 %v1517_v19, %v749_v18 }
 0x2d1   : > { %16620 = vmatmul.mubr.f32.vlgmr.msra.gmra.mrb[148].mxu0 %v3428_v51  ;;  %v3470_v51 = vcombine.high %v3462_v36, %v3462_v36 }
 0x2d2   : > { %16690 = vmatmul.mubr.f32.vlgmr.msra.gmra.mrb[148].mxu1 %v3435_v56  ;;  %33793 = vmatpush1.bf16.xpose.msra.mxu0 %v33792_v23  ;;  %v743_v56 = vld [vmem:[%s35344_s8 + $0x9a0] sm:$0xff]  ;;  %v752_v23 = vld [vmem:[%s35344_s8 + $0x9e8] sm:$0xff] }
 0x2d3   : > { %33797 = vmatpush1.bf16.xpose.msra.mxu1 %v33796_v24  ;;  %16759 = vmatprep.mubr.f32.mxu0 %v3453_v27  ;;  %v33808_v8 = vpack.c.bf16 %v1511_v57, %v743_v56  ;;  %v1520_v24 = vld [vmem:[%s35344_s8 + $0x21e8] sm:$0x3]  ;;  %v323_v56 = vld [vmem:[%s35337_s10 + $0x280] sm:$0xff] }
 0x2d4   : > { %33799 = vmatprep.subr.bf16.mxu0 %v33798_v28  ;;  %v12981_v37 = vpop.f32.mrb[96].mxu0  ;;  %16829 = vmatprep.mubr.f32.mxu1 %v3454_v29  ;;  %v3523_v0 = vcombine.high %v323_v56, %v323_v56  ;;  %v3530_v5 = vrot.slane %v323_v56, %v35369_v25 }
 0x2d5   : > { %v13051_v38 = vpop.f32.mrb[96].mxu1  ;;  %33803 = vmatprep.subr.bf16.mxu1 %v33802_v30  ;;  %v12982_v42 = vadd.f32 %v12981_v37, %v12912_v26  ;;  %v12983_v43 = vpop.f32.mrb[97].mxu0  ;;  %v3503_v26 = vrot.slane %v3489_v15, %v35369_v25  ;;  %v754_v30 = vld [vmem:[%s35344_s8 + $0x9f8] sm:$0xff]  ;;  %v33822_v37 = vpack.c.bf16 %v1520_v24, %v752_v23 }
 0x2d6   : > { %v13053_v44 = vpop.f32.mrb[97].mxu1  ;;  %v33826_v39 = vpack.c.bf16 %v1522_v31, %v754_v30  ;;  %v753_v43 = vld [vmem:[%s35344_s8 + $0x9f0] sm:$0xff]  ;;  %v1530_v15 = vld [vmem:[%s35344_s8 + $0x2238] sm:$0x3] }
 0x2d7   : > { %v13052_v50 = vadd.f32 %v13051_v38, %v12982_v42  ;;  %v3505_v38 = vcombine.high %v3503_v26, %v3503_v26  ;;  %v1519_v42 = vld [vmem:[%s35344_s8 + $0x21e0] sm:$0x3]  ;;  %v1521_v44 = vld [vmem:[%s35344_s8 + $0x21f0] sm:$0x3] }
 0x2d8   : > { %v33828_v58 = vpack.c.bf16 %v1521_v44, %v753_v43 }
 0x2d9   : > { %16760 = vmatmul.mubr.f32.vlgmr.msra.gmra.mrb[150].mxu0 %v3445_v11  ;;  %v3487_v11 = vcombine.high %v3479_v60, %v3479_v60 }
 0x2da   : > { %16830 = vmatmul.mubr.f32.vlgmr.msra.gmra.mrb[150].mxu1 %v3452_v16  ;;  %33801 = vmatpush1.bf16.xpose.msra.mxu0 %v33800_v48  ;;  %v747_v16 = vld [vmem:[%s35344_s8 + $0x9c0] sm:$0xff]  ;;  %v756_v48 = vld [vmem:[%s35344_s8 + $0xa08] sm:$0xff] }
 0x2db   : > { %33805 = vmatpush1.bf16.xpose.msra.mxu1 %v33804_v49  ;;  %16899 = vmatprep.mubr.f32.mxu0 %v3470_v51  ;;  %v33816_v33 = vpack.c.bf16 %v1515_v17, %v747_v16  ;;  %v1524_v49 = vld [vmem:[%s35344_s8 + $0x2208] sm:$0x3] }
 0x2dc   : > { %33807 = vmatprep.subr.bf16.mxu0 %v33806_v52  ;;  %v13121_v61 = vpop.f32.mrb[98].mxu0  ;;  %16969 = vmatprep.mubr.f32.mxu1 %v3471_v53  ;;  %v324_v16 = vld [vmem:[%s35337_s10 + $0x288] sm:$0xff] }
 0x2dd   : > { %v13191_v62 = vpop.f32.mrb[98].mxu1  ;;  %33811 = vmatprep.subr.bf16.mxu1 %v33810_v54  ;;  %v13122_v2 = vadd.f32 %v13121_v61, %v13052_v50  ;;  %v13123_v3 = vpop.f32.mrb[99].mxu0  ;;  %v3520_v50 = vrot.slane %v3506_v40, %v35369_v25  ;;  %v758_v54 = vld [vmem:[%s35344_s8 + $0xa18] sm:$0xff]  ;;  %v33830_v61 = vpack.c.bf16 %v1524_v49, %v756_v48  ;;  %v3540_v24 = vcombine.high %v324_v16, %v324_v16 }
 0x2de   : > { %v13193_v4 = vpop.f32.mrb[99].mxu1  ;;  %v33834_v63 = vpack.c.bf16 %v1526_v55, %v758_v54  ;;  %v757_v3 = vld [vmem:[%s35344_s8 + $0xa10] sm:$0xff]  ;;  %v3547_v30 = vrot.slane %v324_v16, %v35369_v25  ;;  %v1534_v40 = vld [vmem:[%s35344_s8 + $0x2258] sm:$0x3] }
 0x2df   : > { %v13192_v10 = vadd.f32 %v13191_v62, %v13122_v2  ;;  %v3522_v62 = vcombine.high %v3520_v50, %v3520_v50  ;;  %v1523_v2 = vld [vmem:[%s35344_s8 + $0x2200] sm:$0x3]  ;;  %v1525_v4 = vld [vmem:[%s35344_s8 + $0x2210] sm:$0x3] }
 0x2e0   : > { %v33836_v18 = vpack.c.bf16 %v1525_v4, %v757_v3 }
 0x2e1   : > { %16900 = vmatmul.mubr.f32.vlgmr.msra.gmra.mrb[152].mxu0 %v3462_v36  ;;  %v3504_v36 = vcombine.high %v3496_v20, %v3496_v20 }
 0x2e2   : > { %16970 = vmatmul.mubr.f32.vlgmr.msra.gmra.mrb[152].mxu1 %v3469_v41  ;;  %33809 = vmatpush1.bf16.xpose.msra.mxu0 %v33808_v8  ;;  %v751_v41 = vld [vmem:[%s35344_s8 + $0x9e0] sm:$0xff]  ;;  %v760_v8 = vld [vmem:[%s35344_s8 + $0xa28] sm:$0xff] }
 0x2e3   : > { %33813 = vmatpush1.bf16.xpose.msra.mxu1 %v33812_v9  ;;  %17039 = vmatprep.mubr.f32.mxu0 %v3487_v11  ;;  %v33824_v57 = vpack.c.bf16 %v1519_v42, %v751_v41  ;;  %v1528_v9 = vld [vmem:[%s35344_s8 + $0x2228] sm:$0x3]  ;;  %v325_v41 = vld [vmem:[%s35337_s10 + $0x290] sm:$0xff] }
 0x2e4   : > { %33815 = vmatprep.subr.bf16.mxu0 %v33814_v12  ;;  %v13261_v21 = vpop.f32.mrb[100].mxu0  ;;  %17109 = vmatprep.mubr.f32.mxu1 %v3488_v13  ;;  %v3557_v49 = vcombine.high %v325_v41, %v325_v41  ;;  %v3564_v54 = vrot.slane %v325_v41, %v35369_v25 }
 0x2e5   : > { %v13331_v22 = vpop.f32.mrb[100].mxu1  ;;  %33819 = vmatprep.subr.bf16.mxu1 %v33818_v14  ;;  %v13262_v27 = vadd.f32 %v13261_v21, %v13192_v10  ;;  %v13263_v28 = vpop.f32.mrb[101].mxu0  ;;  %v3537_v10 = vrot.slane %v3523_v0, %v35369_v25  ;;  %v762_v14 = vld [vmem:[%s35344_s8 + $0xa38] sm:$0xff]  ;;  %v33838_v21 = vpack.c.bf16 %v1528_v9, %v760_v8 }
 0x2e6   : > { %v13333_v29 = vpop.f32.mrb[101].mxu1  ;;  %v33842_v23 = vpack.c.bf16 %v1530_v15, %v762_v14  ;;  %v761_v28 = vld [vmem:[%s35344_s8 + $0xa30] sm:$0xff]  ;;  %v1538_v0 = vld [vmem:[%s35344_s8 + $0x2278] sm:$0x3] }
 0x2e7   : > { %v13332_v35 = vadd.f32 %v13331_v22, %v13262_v27  ;;  %v3539_v22 = vcombine.high %v3537_v10, %v3537_v10  ;;  %v1527_v27 = vld [vmem:[%s35344_s8 + $0x2220] sm:$0x3]  ;;  %v1529_v29 = vld [vmem:[%s35344_s8 + $0x2230] sm:$0x3] }
 0x2e8   : > { %v33844_v43 = vpack.c.bf16 %v1529_v29, %v761_v28 }
 0x2e9   : > { %17040 = vmatmul.mubr.f32.vlgmr.msra.gmra.mrb[154].mxu0 %v3479_v60  ;;  %v3521_v60 = vcombine.high %v3513_v45, %v3513_v45 }
 0x2ea   : > { %17110 = vmatmul.mubr.f32.vlgmr.msra.gmra.mrb[154].mxu1 %v3486_v1  ;;  %33817 = vmatpush1.bf16.xpose.msra.mxu0 %v33816_v33  ;;  %v755_v1 = vld [vmem:[%s35344_s8 + $0xa00] sm:$0xff]  ;;  %v764_v33 = vld [vmem:[%s35344_s8 + $0xa48] sm:$0xff] }
 0x2eb   : > { %33821 = vmatpush1.bf16.xpose.msra.mxu1 %v33820_v34  ;;  %17179 = vmatprep.mubr.f32.mxu0 %v3504_v36  ;;  %v33832_v17 = vpack.c.bf16 %v1523_v2, %v755_v1  ;;  %v1532_v34 = vld [vmem:[%s35344_s8 + $0x2248] sm:$0x3]  ;;  %v326_v1 = vld [vmem:[%s35337_s10 + $0x298] sm:$0xff] }
 0x2ec   : > { %33823 = vmatprep.subr.bf16.mxu0 %v33822_v37  ;;  %v13401_v46 = vpop.f32.mrb[102].mxu0  ;;  %17249 = vmatprep.mubr.f32.mxu1 %v3505_v38  ;;  %v3574_v9 = vcombine.high %v326_v1, %v326_v1  ;;  %v3581_v14 = vrot.slane %v326_v1, %v35369_v25 }
 0x2ed   : > { %v13471_v47 = vpop.f32.mrb[102].mxu1  ;;  %33827 = vmatprep.subr.bf16.mxu1 %v33826_v39  ;;  %v13402_v51 = vadd.f32 %v13401_v46, %v13332_v35  ;;  %v13403_v52 = vpop.f32.mrb[103].mxu0  ;;  %v3554_v35 = vrot.slane %v3540_v24, %v35369_v25  ;;  %v766_v39 = vld [vmem:[%s35344_s8 + $0xa58] sm:$0xff]  ;;  %v33846_v46 = vpack.c.bf16 %v1532_v34, %v764_v33 }
 0x2ee   : > { %v13473_v53 = vpop.f32.mrb[103].mxu1  ;;  %v33850_v48 = vpack.c.bf16 %v1534_v40, %v766_v39  ;;  %v765_v52 = vld [vmem:[%s35344_s8 + $0xa50] sm:$0xff]  ;;  %v1542_v24 = vld [vmem:[%s35344_s8 + $0x2298] sm:$0x3] }
 0x2ef   : > { %v13472_v59 = vadd.f32 %v13471_v47, %v13402_v51  ;;  %v3556_v47 = vcombine.high %v3554_v35, %v3554_v35  ;;  %v1531_v51 = vld [vmem:[%s35344_s8 + $0x2240] sm:$0x3]  ;;  %v1533_v53 = vld [vmem:[%s35344_s8 + $0x2250] sm:$0x3] }
 0x2f0   : > { %v33852_v3 = vpack.c.bf16 %v1533_v53, %v765_v52 }
 0x2f1   : > { %17180 = vmatmul.mubr.f32.vlgmr.msra.gmra.mrb[156].mxu0 %v3496_v20  ;;  %v3538_v20 = vcombine.high %v3530_v5, %v3530_v5 }
 0x2f2   : > { %17250 = vmatmul.mubr.f32.vlgmr.msra.gmra.mrb[156].mxu1 %v3503_v26  ;;  %33825 = vmatpush1.bf16.xpose.msra.mxu0 %v33824_v57  ;;  %v759_v26 = vld [vmem:[%s35344_s8 + $0xa20] sm:$0xff]  ;;  %v768_v57 = vld [vmem:[%s35344_s8 + $0xa68] sm:$0xff] }
 0x2f3   : > { %33829 = vmatpush1.bf16.xpose.msra.mxu1 %v33828_v58  ;;  %17319 = vmatprep.mubr.f32.mxu0 %v3521_v60  ;;  %v33840_v42 = vpack.c.bf16 %v1527_v27, %v759_v26  ;;  %v1536_v58 = vld [vmem:[%s35344_s8 + $0x2268] sm:$0x3]  ;;  %v327_v26 = vld [vmem:[%s35337_s10 + $0x2a0] sm:$0xff] }
 0x2f4   : > { %33831 = vmatprep.subr.bf16.mxu0 %v33830_v61  ;;  %v13541_v6 = vpop.f32.mrb[104].mxu0  ;;  %17389 = vmatprep.mubr.f32.mxu1 %v3522_v62  ;;  %v3591_v34 = vcombine.high %v327_v26, %v327_v26  ;;  %v3598_v39 = vrot.slane %v327_v26, %v35369_v25 }
 0x2f5   : > { %v13611_v7 = vpop.f32.mrb[104].mxu1  ;;  %33835 = vmatprep.subr.bf16.mxu1 %v33834_v63  ;;  %v13542_v11 = vadd.f32 %v13541_v6, %v13472_v59  ;;  %v13543_v12 = vpop.f32.mrb[105].mxu0  ;;  %v3571_v59 = vrot.slane %v3557_v49, %v35369_v25  ;;  %v770_v63 = vld [vmem:[%s35344_s8 + $0xa78] sm:$0xff]  ;;  %v33854_v6 = vpack.c.bf16 %v1536_v58, %v768_v57 }
 0x2f6   : > { %v13613_v13 = vpop.f32.mrb[105].mxu1  ;;  %v33858_v8 = vpack.c.bf16 %v1538_v0, %v770_v63  ;;  %v769_v12 = vld [vmem:[%s35344_s8 + $0xa70] sm:$0xff]  ;;  %v1546_v49 = vld [vmem:[%s35344_s8 + $0x22b8] sm:$0x3] }
 0x2f7   : > { %v13612_v19 = vadd.f32 %v13611_v7, %v13542_v11  ;;  %v3573_v7 = vcombine.high %v3571_v59, %v3571_v59  ;;  %v1535_v11 = vld [vmem:[%s35344_s8 + $0x2260] sm:$0x3]  ;;  %v1537_v13 = vld [vmem:[%s35344_s8 + $0x2270] sm:$0x3] }
 0x2f8   : > { %v33860_v28 = vpack.c.bf16 %v1537_v13, %v769_v12 }
 0x2f9   : > { %17320 = vmatmul.mubr.f32.vlgmr.msra.gmra.mrb[158].mxu0 %v3513_v45  ;;  %v3555_v45 = vcombine.high %v3547_v30, %v3547_v30 }
 0x2fa   : > { %17390 = vmatmul.mubr.f32.vlgmr.msra.gmra.mrb[158].mxu1 %v3520_v50  ;;  %33833 = vmatpush1.bf16.xpose.msra.mxu0 %v33832_v17  ;;  %v763_v50 = vld [vmem:[%s35344_s8 + $0xa40] sm:$0xff]  ;;  %v772_v17 = vld [vmem:[%s35344_s8 + $0xa88] sm:$0xff] }
 0x2fb   : > { %33837 = vmatpush1.bf16.xpose.msra.mxu1 %v33836_v18  ;;  %17459 = vmatprep.mubr.f32.mxu0 %v3538_v20  ;;  %v33848_v2 = vpack.c.bf16 %v1531_v51, %v763_v50  ;;  %v1540_v18 = vld [vmem:[%s35344_s8 + $0x2288] sm:$0x3] }
 0x2fc   : > { %33839 = vmatprep.subr.bf16.mxu0 %v33838_v21  ;;  %v13681_v31 = vpop.f32.mrb[106].mxu0  ;;  %17529 = vmatprep.mubr.f32.mxu1 %v3539_v22  ;;  %v328_v50 = vld [vmem:[%s35337_s10 + $0x2a8] sm:$0xff] }
 0x2fd   : > { %v13751_v32 = vpop.f32.mrb[106].mxu1  ;;  %33843 = vmatprep.subr.bf16.mxu1 %v33842_v23  ;;  %v13682_v36 = vadd.f32 %v13681_v31, %v13612_v19  ;;  %v13683_v37 = vpop.f32.mrb[107].mxu0  ;;  %v3588_v19 = vrot.slane %v3574_v9, %v35369_v25  ;;  %v774_v23 = vld [vmem:[%s35344_s8 + $0xa98] sm:$0xff]  ;;  %v33862_v31 = vpack.c.bf16 %v1540_v18, %v772_v17  ;;  %v3608_v58 = vcombine.high %v328_v50, %v328_v50 }
 0x2fe   : > { %v13753_v38 = vpop.f32.mrb[107].mxu1  ;;  %v33866_v33 = vpack.c.bf16 %v1542_v24, %v774_v23  ;;  %v773_v37 = vld [vmem:[%s35344_s8 + $0xa90] sm:$0xff]  ;;  %v3615_v63 = vrot.slane %v328_v50, %v35369_v25  ;;  %v1550_v9 = vld [vmem:[%s35344_s8 + $0x22d8] sm:$0x3] }
 0x2ff   : > { %v13752_v44 = vadd.f32 %v13751_v32, %v13682_v36  ;;  %v3590_v32 = vcombine.high %v3588_v19, %v3588_v19  ;;  %v1539_v36 = vld [vmem:[%s35344_s8 + $0x2280] sm:$0x3]  ;;  %v1541_v38 = vld [vmem:[%s35344_s8 + $0x2290] sm:$0x3] }
 0x300   : > { %v33868_v52 = vpack.c.bf16 %v1541_v38, %v773_v37 }
 0x301   : > { %17460 = vmatmul.mubr.f32.vlgmr.msra.gmra.mrb[160].mxu0 %v3530_v5  ;;  %v3572_v5 = vcombine.high %v3564_v54, %v3564_v54 }
 0x302   : > { %17530 = vmatmul.mubr.f32.vlgmr.msra.gmra.mrb[160].mxu1 %v3537_v10  ;;  %33841 = vmatpush1.bf16.xpose.msra.mxu0 %v33840_v42  ;;  %v767_v10 = vld [vmem:[%s35344_s8 + $0xa60] sm:$0xff]  ;;  %v776_v42 = vld [vmem:[%s35344_s8 + $0xaa8] sm:$0xff] }
 0x303   : > { %33845 = vmatpush1.bf16.xpose.msra.mxu1 %v33844_v43  ;;  %17599 = vmatprep.mubr.f32.mxu0 %v3555_v45  ;;  %v33856_v27 = vpack.c.bf16 %v1535_v11, %v767_v10  ;;  %v1544_v43 = vld [vmem:[%s35344_s8 + $0x22a8] sm:$0x3]  ;;  %v329_v10 = vld [vmem:[%s35337_s10 + $0x2b0] sm:$0xff] }
 0x304   : > { %33847 = vmatprep.subr.bf16.mxu0 %v33846_v46  ;;  %v13821_v55 = vpop.f32.mrb[108].mxu0  ;;  %17669 = vmatprep.mubr.f32.mxu1 %v3556_v47  ;;  %v3625_v18 = vcombine.high %v329_v10, %v329_v10  ;;  %v3632_v23 = vrot.slane %v329_v10, %v35369_v25 }
 0x305   : > { %v13891_v56 = vpop.f32.mrb[108].mxu1  ;;  %33851 = vmatprep.subr.bf16.mxu1 %v33850_v48  ;;  %v13822_v60 = vadd.f32 %v13821_v55, %v13752_v44  ;;  %v13823_v61 = vpop.f32.mrb[109].mxu0  ;;  %v3605_v44 = vrot.slane %v3591_v34, %v35369_v25  ;;  %v778_v48 = vld [vmem:[%s35344_s8 + $0xab8] sm:$0xff]  ;;  %v33870_v55 = vpack.c.bf16 %v1544_v43, %v776_v42 }
 0x306   : > { %v13893_v62 = vpop.f32.mrb[109].mxu1  ;;  %v33874_v57 = vpack.c.bf16 %v1546_v49, %v778_v48  ;;  %v777_v61 = vld [vmem:[%s35344_s8 + $0xab0] sm:$0xff]  ;;  %v1554_v34 = vld [vmem:[%s35344_s8 + $0x22f8] sm:$0x3] }
 0x307   : > { %v13892_v4 = vadd.f32 %v13891_v56, %v13822_v60  ;;  %v3607_v56 = vcombine.high %v3605_v44, %v3605_v44  ;;  %v1543_v60 = vld [vmem:[%s35344_s8 + $0x22a0] sm:$0x3]  ;;  %v1545_v62 = vld [vmem:[%s35344_s8 + $0x22b0] sm:$0x3] }
 0x308   : > { %v33876_v12 = vpack.c.bf16 %v1545_v62, %v777_v61 }
 0x309   : > { %17600 = vmatmul.mubr.f32.vlgmr.msra.gmra.mrb[162].mxu0 %v3547_v30  ;;  %v3589_v30 = vcombine.high %v3581_v14, %v3581_v14 }
 0x30a   : > { %17670 = vmatmul.mubr.f32.vlgmr.msra.gmra.mrb[162].mxu1 %v3554_v35  ;;  %33849 = vmatpush1.bf16.xpose.msra.mxu0 %v33848_v2  ;;  %v771_v35 = vld [vmem:[%s35344_s8 + $0xa80] sm:$0xff]  ;;  %v780_v2 = vld [vmem:[%s35344_s8 + $0xac8] sm:$0xff] }
 0x30b   : > { %33853 = vmatpush1.bf16.xpose.msra.mxu1 %v33852_v3  ;;  %17739 = vmatprep.mubr.f32.mxu0 %v3572_v5  ;;  %v33864_v51 = vpack.c.bf16 %v1539_v36, %v771_v35  ;;  %v1548_v3 = vld [vmem:[%s35344_s8 + $0x22c8] sm:$0x3]  ;;  %v330_v35 = vld [vmem:[%s35337_s10 + $0x2b8] sm:$0xff] }
 0x30c   : > { %33855 = vmatprep.subr.bf16.mxu0 %v33854_v6  ;;  %v13961_v15 = vpop.f32.mrb[110].mxu0  ;;  %17809 = vmatprep.mubr.f32.mxu1 %v3573_v7  ;;  %v3642_v43 = vcombine.high %v330_v35, %v330_v35  ;;  %v3649_v48 = vrot.slane %v330_v35, %v35369_v25 }
 0x30d   : > { %v14031_v16 = vpop.f32.mrb[110].mxu1  ;;  %33859 = vmatprep.subr.bf16.mxu1 %v33858_v8  ;;  %v13962_v20 = vadd.f32 %v13961_v15, %v13892_v4  ;;  %v13963_v21 = vpop.f32.mrb[111].mxu0  ;;  %v3622_v4 = vrot.slane %v3608_v58, %v35369_v25  ;;  %v782_v8 = vld [vmem:[%s35344_s8 + $0xad8] sm:$0xff]  ;;  %v33878_v15 = vpack.c.bf16 %v1548_v3, %v780_v2 }
 0x30e   : > { %v14033_v22 = vpop.f32.mrb[111].mxu1  ;;  %v33882_v17 = vpack.c.bf16 %v1550_v9, %v782_v8  ;;  %v781_v21 = vld [vmem:[%s35344_s8 + $0xad0] sm:$0xff]  ;;  %v1558_v58 = vld [vmem:[%s35344_s8 + $0x2318] sm:$0x3] }
 0x30f   : > { %v14032_v29 = vadd.f32 %v14031_v16, %v13962_v20  ;;  %v3624_v16 = vcombine.high %v3622_v4, %v3622_v4  ;;  %v1547_v20 = vld [vmem:[%s35344_s8 + $0x22c0] sm:$0x3]  ;;  %v1549_v22 = vld [vmem:[%s35344_s8 + $0x22d0] sm:$0x3] }
 0x310   : > { %v33884_v37 = vpack.c.bf16 %v1549_v22, %v781_v21 }
 0x311   : > { %17740 = vmatmul.mubr.f32.vlgmr.msra.gmra.mrb[164].mxu0 %v3564_v54  ;;  %v3606_v54 = vcombine.high %v3598_v39, %v3598_v39 }
 0x312   : > { %17810 = vmatmul.mubr.f32.vlgmr.msra.gmra.mrb[164].mxu1 %v3571_v59  ;;  %33857 = vmatpush1.bf16.xpose.msra.mxu0 %v33856_v27  ;;  %v775_v59 = vld [vmem:[%s35344_s8 + $0xaa0] sm:$0xff]  ;;  %v784_v27 = vld [vmem:[%s35344_s8 + $0xae8] sm:$0xff] }
 0x313   : > { %33861 = vmatpush1.bf16.xpose.msra.mxu1 %v33860_v28  ;;  %17879 = vmatprep.mubr.f32.mxu0 %v3589_v30  ;;  %v33872_v11 = vpack.c.bf16 %v1543_v60, %v775_v59  ;;  %v1552_v28 = vld [vmem:[%s35344_s8 + $0x22e8] sm:$0x3]  ;;  %v331_v59 = vld [vmem:[%s35337_s10 + $0x2c0] sm:$0xff] }
 0x314   : > { %33863 = vmatprep.subr.bf16.mxu0 %v33862_v31  ;;  %v14101_v40 = vpop.f32.mrb[112].mxu0  ;;  %17949 = vmatprep.mubr.f32.mxu1 %v3590_v32  ;;  %v3659_v3 = vcombine.high %v331_v59, %v331_v59  ;;  %v3666_v8 = vrot.slane %v331_v59, %v35369_v25 }
 0x315   : > { %v14171_v41 = vpop.f32.mrb[112].mxu1  ;;  %33867 = vmatprep.subr.bf16.mxu1 %v33866_v33  ;;  %v14102_v45 = vadd.f32 %v14101_v40, %v14032_v29  ;;  %v14103_v46 = vpop.f32.mrb[113].mxu0  ;;  %v3639_v29 = vrot.slane %v3625_v18, %v35369_v25  ;;  %v786_v33 = vld [vmem:[%s35344_s8 + $0xaf8] sm:$0xff]  ;;  %v33886_v40 = vpack.c.bf16 %v1552_v28, %v784_v27 }
 0x316   : > { %v14173_v47 = vpop.f32.mrb[113].mxu1  ;;  %v33890_v42 = vpack.c.bf16 %v1554_v34, %v786_v33  ;;  %v785_v46 = vld [vmem:[%s35344_s8 + $0xaf0] sm:$0xff]  ;;  %v1562_v18 = vld [vmem:[%s35344_s8 + $0x2338] sm:$0x3] }
 0x317   : > { %v14172_v53 = vadd.f32 %v14171_v41, %v14102_v45  ;;  %v3641_v41 = vcombine.high %v3639_v29, %v3639_v29  ;;  %v1551_v45 = vld [vmem:[%s35344_s8 + $0x22e0] sm:$0x3]  ;;  %v1553_v47 = vld [vmem:[%s35344_s8 + $0x22f0] sm:$0x3] }
 0x318   : > { %v33892_v61 = vpack.c.bf16 %v1553_v47, %v785_v46 }
 0x319   : > { %17880 = vmatmul.mubr.f32.vlgmr.msra.gmra.mrb[166].mxu0 %v3581_v14  ;;  %v3623_v14 = vcombine.high %v3615_v63, %v3615_v63 }
 0x31a   : > { %17950 = vmatmul.mubr.f32.vlgmr.msra.gmra.mrb[166].mxu1 %v3588_v19  ;;  %33865 = vmatpush1.bf16.xpose.msra.mxu0 %v33864_v51  ;;  %v779_v19 = vld [vmem:[%s35344_s8 + $0xac0] sm:$0xff]  ;;  %v788_v51 = vld [vmem:[%s35344_s8 + $0xb08] sm:$0xff] }
 0x31b   : > { %33869 = vmatpush1.bf16.xpose.msra.mxu1 %v33868_v52  ;;  %18019 = vmatprep.mubr.f32.mxu0 %v3606_v54  ;;  %v33880_v36 = vpack.c.bf16 %v1547_v20, %v779_v19  ;;  %v1556_v52 = vld [vmem:[%s35344_s8 + $0x2308] sm:$0x3] }
 0x31c   : > { %33871 = vmatprep.subr.bf16.mxu0 %v33870_v55  ;;  %v14241_v0 = vpop.f32.mrb[114].mxu0  ;;  %18089 = vmatprep.mubr.f32.mxu1 %v3607_v56  ;;  %v332_v19 = vld [vmem:[%s35337_s10 + $0x2c8] sm:$0xff] }
 0x31d   : > { %v14311_v1 = vpop.f32.mrb[114].mxu1  ;;  %33875 = vmatprep.subr.bf16.mxu1 %v33874_v57  ;;  %v14242_v5 = vadd.f32 %v14241_v0, %v14172_v53  ;;  %v14243_v6 = vpop.f32.mrb[115].mxu0  ;;  %v3656_v53 = vrot.slane %v3642_v43, %v35369_v25  ;;  %v790_v57 = vld [vmem:[%s35344_s8 + $0xb18] sm:$0xff]  ;;  %v33894_v0 = vpack.c.bf16 %v1556_v52, %v788_v51  ;;  %v3676_v28 = vcombine.high %v332_v19, %v332_v19 }
 0x31e   : > { %v14313_v7 = vpop.f32.mrb[115].mxu1  ;;  %v33898_v2 = vpack.c.bf16 %v1558_v58, %v790_v57  ;;  %v789_v6 = vld [vmem:[%s35344_s8 + $0xb10] sm:$0xff]  ;;  %v3683_v33 = vrot.slane %v332_v19, %v35369_v25  ;;  %v1566_v43 = vld [vmem:[%s35344_s8 + $0x2358] sm:$0x3] }
 0x31f   : > { %v14312_v13 = vadd.f32 %v14311_v1, %v14242_v5  ;;  %v3658_v1 = vcombine.high %v3656_v53, %v3656_v53  ;;  %v1555_v5 = vld [vmem:[%s35344_s8 + $0x2300] sm:$0x3]  ;;  %v1557_v7 = vld [vmem:[%s35344_s8 + $0x2310] sm:$0x3] }
 0x320   : > { %v33900_v21 = vpack.c.bf16 %v1557_v7, %v789_v6 }
 0x321   : > { %18020 = vmatmul.mubr.f32.vlgmr.msra.gmra.mrb[168].mxu0 %v3598_v39  ;;  %v3640_v39 = vcombine.high %v3632_v23, %v3632_v23 }
 0x322   : > { %18090 = vmatmul.mubr.f32.vlgmr.msra.gmra.mrb[168].mxu1 %v3605_v44  ;;  %33873 = vmatpush1.bf16.xpose.msra.mxu0 %v33872_v11  ;;  %v783_v44 = vld [vmem:[%s35344_s8 + $0xae0] sm:$0xff]  ;;  %v792_v11 = vld [vmem:[%s35344_s8 + $0xb28] sm:$0xff] }
 0x323   : > { %33877 = vmatpush1.bf16.xpose.msra.mxu1 %v33876_v12  ;;  %18159 = vmatprep.mubr.f32.mxu0 %v3623_v14  ;;  %v33888_v60 = vpack.c.bf16 %v1551_v45, %v783_v44  ;;  %v1560_v12 = vld [vmem:[%s35344_s8 + $0x2328] sm:$0x3]  ;;  %v333_v44 = vld [vmem:[%s35337_s10 + $0x2d0] sm:$0xff] }
 0x324   : > { %33879 = vmatprep.subr.bf16.mxu0 %v33878_v15  ;;  %v14381_v24 = vpop.f32.mrb[116].mxu0  ;;  %18229 = vmatprep.mubr.f32.mxu1 %v3624_v16  ;;  %v3693_v52 = vcombine.high %v333_v44, %v333_v44  ;;  %v3700_v57 = vrot.slane %v333_v44, %v35369_v25 }
 0x325   : > { %v14451_v26 = vpop.f32.mrb[116].mxu1  ;;  %33883 = vmatprep.subr.bf16.mxu1 %v33882_v17  ;;  %v14382_v30 = vadd.f32 %v14381_v24, %v14312_v13  ;;  %v14383_v31 = vpop.f32.mrb[117].mxu0  ;;  %v3673_v13 = vrot.slane %v3659_v3, %v35369_v25  ;;  %v794_v17 = vld [vmem:[%s35344_s8 + $0xb38] sm:$0xff]  ;;  %v33902_v24 = vpack.c.bf16 %v1560_v12, %v792_v11 }
 0x326   : > { %v14453_v32 = vpop.f32.mrb[117].mxu1  ;;  %v33906_v27 = vpack.c.bf16 %v1562_v18, %v794_v17  ;;  %v793_v31 = vld [vmem:[%s35344_s8 + $0xb30] sm:$0xff]  ;;  %v1570_v3 = vld [vmem:[%s35344_s8 + $0x2378] sm:$0x3] }
 0x327   : > { %v14452_v38 = vadd.f32 %v14451_v26, %v14382_v30  ;;  %v3675_v26 = vcombine.high %v3673_v13, %v3673_v13  ;;  %v1559_v30 = vld [vmem:[%s35344_s8 + $0x2320] sm:$0x3]  ;;  %v1561_v32 = vld [vmem:[%s35344_s8 + $0x2330] sm:$0x3] }
 0x328   : > { %v33908_v46 = vpack.c.bf16 %v1561_v32, %v793_v31 }
 0x329   : > { %18160 = vmatmul.mubr.f32.vlgmr.msra.gmra.mrb[170].mxu0 %v3615_v63  ;;  %v3657_v63 = vcombine.high %v3649_v48, %v3649_v48 }
 0x32a   : > { %18230 = vmatmul.mubr.f32.vlgmr.msra.gmra.mrb[170].mxu1 %v3622_v4  ;;  %33881 = vmatpush1.bf16.xpose.msra.mxu0 %v33880_v36  ;;  %v787_v4 = vld [vmem:[%s35344_s8 + $0xb00] sm:$0xff]  ;;  %v796_v36 = vld [vmem:[%s35344_s8 + $0xb48] sm:$0xff] }
 0x32b   : > { %33885 = vmatpush1.bf16.xpose.msra.mxu1 %v33884_v37  ;;  %18299 = vmatprep.mubr.f32.mxu0 %v3640_v39  ;;  %v33896_v20 = vpack.c.bf16 %v1555_v5, %v787_v4  ;;  %v1564_v37 = vld [vmem:[%s35344_s8 + $0x2348] sm:$0x3]  ;;  %v334_v4 = vld [vmem:[%s35337_s10 + $0x2d8] sm:$0xff] }
 0x32c   : > { %33887 = vmatprep.subr.bf16.mxu0 %v33886_v40  ;;  %v14521_v49 = vpop.f32.mrb[118].mxu0  ;;  %18369 = vmatprep.mubr.f32.mxu1 %v3641_v41  ;;  %v3710_v12 = vcombine.high %v334_v4, %v334_v4  ;;  %v3717_v17 = vrot.slane %v334_v4, %v35369_v25 }
 0x32d   : > { %v14591_v50 = vpop.f32.mrb[118].mxu1  ;;  %33891 = vmatprep.subr.bf16.mxu1 %v33890_v42  ;;  %v14522_v54 = vadd.f32 %v14521_v49, %v14452_v38  ;;  %v14523_v55 = vpop.f32.mrb[119].mxu0  ;;  %v3690_v38 = vrot.slane %v3676_v28, %v35369_v25  ;;  %v798_v42 = vld [vmem:[%s35344_s8 + $0xb58] sm:$0xff]  ;;  %v33910_v49 = vpack.c.bf16 %v1564_v37, %v796_v36 }
 0x32e   : > { %v14593_v56 = vpop.f32.mrb[119].mxu1  ;;  %v33914_v51 = vpack.c.bf16 %v1566_v43, %v798_v42  ;;  %v797_v55 = vld [vmem:[%s35344_s8 + $0xb50] sm:$0xff]  ;;  %v1574_v28 = vld [vmem:[%s35344_s8 + $0x2398] sm:$0x3] }
 0x32f   : > { %v14592_v62 = vadd.f32 %v14591_v50, %v14522_v54  ;;  %v3692_v50 = vcombine.high %v3690_v38, %v3690_v38  ;;  %v1563_v54 = vld [vmem:[%s35344_s8 + $0x2340] sm:$0x3]  ;;  %v1565_v56 = vld [vmem:[%s35344_s8 + $0x2350] sm:$0x3] }
 0x330   : > { %v33916_v6 = vpack.c.bf16 %v1565_v56, %v797_v55 }
 0x331   : > { %18300 = vmatmul.mubr.f32.vlgmr.msra.gmra.mrb[172].mxu0 %v3632_v23  ;;  %v3674_v23 = vcombine.high %v3666_v8, %v3666_v8 }
 0x332   : > { %18370 = vmatmul.mubr.f32.vlgmr.msra.gmra.mrb[172].mxu1 %v3639_v29  ;;  %33889 = vmatpush1.bf16.xpose.msra.mxu0 %v33888_v60  ;;  %v791_v29 = vld [vmem:[%s35344_s8 + $0xb20] sm:$0xff]  ;;  %v800_v60 = vld [vmem:[%s35344_s8 + $0xb68] sm:$0xff] }
 0x333   : > { %33893 = vmatpush1.bf16.xpose.msra.mxu1 %v33892_v61  ;;  %18439 = vmatprep.mubr.f32.mxu0 %v3657_v63  ;;  %v33904_v45 = vpack.c.bf16 %v1559_v30, %v791_v29  ;;  %v1568_v61 = vld [vmem:[%s35344_s8 + $0x2368] sm:$0x3]  ;;  %v335_v29 = vld [vmem:[%s35337_s10 + $0x2e0] sm:$0xff] }
 0x334   : > { %33895 = vmatprep.subr.bf16.mxu0 %v33894_v0  ;;  %v14661_v9 = vpop.f32.mrb[120].mxu0  ;;  %18509 = vmatprep.mubr.f32.mxu1 %v3658_v1  ;;  %v3727_v37 = vcombine.high %v335_v29, %v335_v29  ;;  %v3734_v42 = vrot.slane %v335_v29, %v35369_v25 }
 0x335   : > { %v14731_v10 = vpop.f32.mrb[120].mxu1  ;;  %33899 = vmatprep.subr.bf16.mxu1 %v33898_v2  ;;  %v14662_v14 = vadd.f32 %v14661_v9, %v14592_v62  ;;  %v14663_v15 = vpop.f32.mrb[121].mxu0  ;;  %v3707_v62 = vrot.slane %v3693_v52, %v35369_v25  ;;  %v802_v2 = vld [vmem:[%s35344_s8 + $0xb78] sm:$0xff]  ;;  %v33918_v9 = vpack.c.bf16 %v1568_v61, %v800_v60 }
 0x336   : > { %v14733_v16 = vpop.f32.mrb[121].mxu1  ;;  %v33922_v11 = vpack.c.bf16 %v1570_v3, %v802_v2  ;;  %v801_v15 = vld [vmem:[%s35344_s8 + $0xb70] sm:$0xff]  ;;  %v1578_v52 = vld [vmem:[%s35344_s8 + $0x23b8] sm:$0x3] }
 0x337   : > { %v14732_v22 = vadd.f32 %v14731_v10, %v14662_v14  ;;  %v3709_v10 = vcombine.high %v3707_v62, %v3707_v62  ;;  %v1567_v14 = vld [vmem:[%s35344_s8 + $0x2360] sm:$0x3]  ;;  %v1569_v16 = vld [vmem:[%s35344_s8 + $0x2370] sm:$0x3] }
 0x338   : > { %v33924_v31 = vpack.c.bf16 %v1569_v16, %v801_v15 }
 0x339   : > { %18440 = vmatmul.mubr.f32.vlgmr.msra.gmra.mrb[174].mxu0 %v3649_v48  ;;  %v3691_v48 = vcombine.high %v3683_v33, %v3683_v33 }
 0x33a   : > { %18510 = vmatmul.mubr.f32.vlgmr.msra.gmra.mrb[174].mxu1 %v3656_v53  ;;  %33897 = vmatpush1.bf16.xpose.msra.mxu0 %v33896_v20  ;;  %v795_v53 = vld [vmem:[%s35344_s8 + $0xb40] sm:$0xff]  ;;  %v804_v20 = vld [vmem:[%s35344_s8 + $0xb88] sm:$0xff] }
 0x33b   : > { %33901 = vmatpush1.bf16.xpose.msra.mxu1 %v33900_v21  ;;  %18579 = vmatprep.mubr.f32.mxu0 %v3674_v23  ;;  %v33912_v5 = vpack.c.bf16 %v1563_v54, %v795_v53  ;;  %v1572_v21 = vld [vmem:[%s35344_s8 + $0x2388] sm:$0x3] }
 0x33c   : > { %33903 = vmatprep.subr.bf16.mxu0 %v33902_v24  ;;  %v14801_v34 = vpop.f32.mrb[122].mxu0  ;;  %18649 = vmatprep.mubr.f32.mxu1 %v3675_v26  ;;  %v336_v53 = vld [vmem:[%s35337_s10 + $0x2e8] sm:$0xff] }
 0x33d   : > { %v14871_v35 = vpop.f32.mrb[122].mxu1  ;;  %33907 = vmatprep.subr.bf16.mxu1 %v33906_v27  ;;  %v14802_v39 = vadd.f32 %v14801_v34, %v14732_v22  ;;  %v14803_v40 = vpop.f32.mrb[123].mxu0  ;;  %v3724_v22 = vrot.slane %v3710_v12, %v35369_v25  ;;  %v806_v27 = vld [vmem:[%s35344_s8 + $0xb98] sm:$0xff]  ;;  %v33926_v34 = vpack.c.bf16 %v1572_v21, %v804_v20  ;;  %v3744_v61 = vcombine.high %v336_v53, %v336_v53 }
 0x33e   : > { %v14873_v41 = vpop.f32.mrb[123].mxu1  ;;  %v33930_v36 = vpack.c.bf16 %v1574_v28, %v806_v27  ;;  %v805_v40 = vld [vmem:[%s35344_s8 + $0xb90] sm:$0xff]  ;;  %v3751_v2 = vrot.slane %v336_v53, %v35369_v25  ;;  %v1582_v12 = vld [vmem:[%s35344_s8 + $0x23d8] sm:$0x3] }
 0x33f   : > { %v14872_v47 = vadd.f32 %v14871_v35, %v14802_v39  ;;  %v3726_v35 = vcombine.high %v3724_v22, %v3724_v22  ;;  %v1571_v39 = vld [vmem:[%s35344_s8 + $0x2380] sm:$0x3]  ;;  %v1573_v41 = vld [vmem:[%s35344_s8 + $0x2390] sm:$0x3] }
 0x340   : > { %v33932_v55 = vpack.c.bf16 %v1573_v41, %v805_v40 }
 0x341   : > { %18580 = vmatmul.mubr.f32.vlgmr.msra.gmra.mrb[176].mxu0 %v3666_v8  ;;  %v3708_v8 = vcombine.high %v3700_v57, %v3700_v57 }
 0x342   : > { %18650 = vmatmul.mubr.f32.vlgmr.msra.gmra.mrb[176].mxu1 %v3673_v13  ;;  %33905 = vmatpush1.bf16.xpose.msra.mxu0 %v33904_v45  ;;  %v799_v13 = vld [vmem:[%s35344_s8 + $0xb60] sm:$0xff]  ;;  %v808_v45 = vld [vmem:[%s35344_s8 + $0xba8] sm:$0xff] }
 0x343   : > { %33909 = vmatpush1.bf16.xpose.msra.mxu1 %v33908_v46  ;;  %18719 = vmatprep.mubr.f32.mxu0 %v3691_v48  ;;  %v33920_v30 = vpack.c.bf16 %v1567_v14, %v799_v13  ;;  %v1576_v46 = vld [vmem:[%s35344_s8 + $0x23a8] sm:$0x3]  ;;  %v337_v13 = vld [vmem:[%s35337_s10 + $0x2f0] sm:$0xff] }
 0x344   : > { %33911 = vmatprep.subr.bf16.mxu0 %v33910_v49  ;;  %v14941_v58 = vpop.f32.mrb[124].mxu0  ;;  %18789 = vmatprep.mubr.f32.mxu1 %v3692_v50  ;;  %v3761_v21 = vcombine.high %v337_v13, %v337_v13  ;;  %v3768_v27 = vrot.slane %v337_v13, %v35369_v25 }
 0x345   : > { %v15011_v59 = vpop.f32.mrb[124].mxu1  ;;  %33915 = vmatprep.subr.bf16.mxu1 %v33914_v51  ;;  %v14942_v63 = vadd.f32 %v14941_v58, %v14872_v47  ;;  %v14943_v0 = vpop.f32.mrb[125].mxu0  ;;  %v3741_v47 = vrot.slane %v3727_v37, %v35369_v25  ;;  %v810_v51 = vld [vmem:[%s35344_s8 + $0xbb8] sm:$0xff]  ;;  %v33934_v58 = vpack.c.bf16 %v1576_v46, %v808_v45 }
 0x346   : > { %v15013_v1 = vpop.f32.mrb[125].mxu1  ;;  %v33938_v60 = vpack.c.bf16 %v1578_v52, %v810_v51  ;;  %v809_v0 = vld [vmem:[%s35344_s8 + $0xbb0] sm:$0xff]  ;;  %v1586_v37 = vld [vmem:[%s35344_s8 + $0x23f8] sm:$0x3] }
 0x347   : > { %v15012_v7 = vadd.f32 %v15011_v59, %v14942_v63  ;;  %v3743_v59 = vcombine.high %v3741_v47, %v3741_v47  ;;  %v1575_v63 = vld [vmem:[%s35344_s8 + $0x23a0] sm:$0x3]  ;;  %v1577_v1 = vld [vmem:[%s35344_s8 + $0x23b0] sm:$0x3] }
 0x348   : > { %v33940_v15 = vpack.c.bf16 %v1577_v1, %v809_v0 }
 0x349   : > { %18720 = vmatmul.mubr.f32.vlgmr.msra.gmra.mrb[178].mxu0 %v3683_v33  ;;  %v3725_v33 = vcombine.high %v3717_v17, %v3717_v17 }
 0x34a   : > { %18790 = vmatmul.mubr.f32.vlgmr.msra.gmra.mrb[178].mxu1 %v3690_v38  ;;  %33913 = vmatpush1.bf16.xpose.msra.mxu0 %v33912_v5  ;;  %v803_v38 = vld [vmem:[%s35344_s8 + $0xb80] sm:$0xff]  ;;  %v812_v5 = vld [vmem:[%s35344_s8 + $0xbc8] sm:$0xff] }
 0x34b   : > { %33917 = vmatpush1.bf16.xpose.msra.mxu1 %v33916_v6  ;;  %18859 = vmatprep.mubr.f32.mxu0 %v3708_v8  ;;  %v33928_v54 = vpack.c.bf16 %v1571_v39, %v803_v38  ;;  %v1580_v6 = vld [vmem:[%s35344_s8 + $0x23c8] sm:$0x3]  ;;  %v338_v38 = vld [vmem:[%s35337_s10 + $0x2f8] sm:$0xff] }
 0x34c   : > { %33919 = vmatprep.subr.bf16.mxu0 %v33918_v9  ;;  %v15081_v18 = vpop.f32.mrb[126].mxu0  ;;  %18929 = vmatprep.mubr.f32.mxu1 %v3709_v10  ;;  %v3778_v46 = vcombine.high %v338_v38, %v338_v38  ;;  %v3785_v51 = vrot.slane %v338_v38, %v35369_v25 }
 0x34d   : > { %v15151_v19 = vpop.f32.mrb[126].mxu1  ;;  %33923 = vmatprep.subr.bf16.mxu1 %v33922_v11  ;;  %v15082_v23 = vadd.f32 %v15081_v18, %v15012_v7  ;;  %v15083_v24 = vpop.f32.mrb[127].mxu0  ;;  %v3758_v7 = vrot.slane %v3744_v61, %v35369_v25  ;;  %v814_v11 = vld [vmem:[%s35344_s8 + $0xbd8] sm:$0xff]  ;;  %v33942_v18 = vpack.c.bf16 %v1580_v6, %v812_v5 }
 0x34e   : > { %v15153_v26 = vpop.f32.mrb[127].mxu1  ;;  %v33946_v20 = vpack.c.bf16 %v1582_v12, %v814_v11  ;;  %v813_v24 = vld [vmem:[%s35344_s8 + $0xbd0] sm:$0xff]  ;;  %v1590_v61 = vld [vmem:[%s35344_s8 + $0x2418] sm:$0x3] }
 0x34f   : > { %v15152_v32 = vadd.f32 %v15151_v19, %v15082_v23  ;;  %v3760_v19 = vcombine.high %v3758_v7, %v3758_v7  ;;  %v1579_v23 = vld [vmem:[%s35344_s8 + $0x23c0] sm:$0x3]  ;;  %v1581_v26 = vld [vmem:[%s35344_s8 + $0x23d0] sm:$0x3] }
 0x350   : > { %v33948_v40 = vpack.c.bf16 %v1581_v26, %v813_v24 }
 0x351   : > { %18860 = vmatmul.mubr.f32.vlgmr.msra.gmra.mrb[180].mxu0 %v3700_v57  ;;  %v3742_v57 = vcombine.high %v3734_v42, %v3734_v42 }
 0x352   : > { %18930 = vmatmul.mubr.f32.vlgmr.msra.gmra.mrb[180].mxu1 %v3707_v62  ;;  %33921 = vmatpush1.bf16.xpose.msra.mxu0 %v33920_v30  ;;  %v807_v62 = vld [vmem:[%s35344_s8 + $0xba0] sm:$0xff]  ;;  %v816_v30 = vld [vmem:[%s35344_s8 + $0xbe8] sm:$0xff] }
 0x353   : > { %33925 = vmatpush1.bf16.xpose.msra.mxu1 %v33924_v31  ;;  %18999 = vmatprep.mubr.f32.mxu0 %v3725_v33  ;;  %v33936_v14 = vpack.c.bf16 %v1575_v63, %v807_v62  ;;  %v1584_v31 = vld [vmem:[%s35344_s8 + $0x23e8] sm:$0x3]  ;;  %v339_v62 = vld [vmem:[%s35337_s10 + $0x300] sm:$0xff] }
 0x354   : > { %33927 = vmatprep.subr.bf16.mxu0 %v33926_v34  ;;  %v15221_v43 = vpop.f32.mrb[128].mxu0  ;;  %19069 = vmatprep.mubr.f32.mxu1 %v3726_v35  ;;  %v3795_v6 = vcombine.high %v339_v62, %v339_v62  ;;  %v3802_v11 = vrot.slane %v339_v62, %v35369_v25 }
 0x355   : > { %v15291_v44 = vpop.f32.mrb[128].mxu1  ;;  %33931 = vmatprep.subr.bf16.mxu1 %v33930_v36  ;;  %v15222_v48 = vadd.f32 %v15221_v43, %v15152_v32  ;;  %v15223_v49 = vpop.f32.mrb[129].mxu0  ;;  %v3775_v32 = vrot.slane %v3761_v21, %v35369_v25  ;;  %v818_v36 = vld [vmem:[%s35344_s8 + $0xbf8] sm:$0xff]  ;;  %v33950_v43 = vpack.c.bf16 %v1584_v31, %v816_v30 }
 0x356   : > { %v15293_v50 = vpop.f32.mrb[129].mxu1  ;;  %v33954_v45 = vpack.c.bf16 %v1586_v37, %v818_v36  ;;  %v817_v49 = vld [vmem:[%s35344_s8 + $0xbf0] sm:$0xff]  ;;  %v1594_v21 = vld [vmem:[%s35344_s8 + $0x2438] sm:$0x3] }
 0x357   : > { %v15292_v56 = vadd.f32 %v15291_v44, %v15222_v48  ;;  %v3777_v44 = vcombine.high %v3775_v32, %v3775_v32  ;;  %v1583_v48 = vld [vmem:[%s35344_s8 + $0x23e0] sm:$0x3]  ;;  %v1585_v50 = vld [vmem:[%s35344_s8 + $0x23f0] sm:$0x3] }
 0x358   : > { %v33956_v0 = vpack.c.bf16 %v1585_v50, %v817_v49 }
 0x359   : > { %19000 = vmatmul.mubr.f32.vlgmr.msra.gmra.mrb[182].mxu0 %v3717_v17  ;;  %v3759_v17 = vcombine.high %v3751_v2, %v3751_v2 }
 0x35a   : > { %19070 = vmatmul.mubr.f32.vlgmr.msra.gmra.mrb[182].mxu1 %v3724_v22  ;;  %33929 = vmatpush1.bf16.xpose.msra.mxu0 %v33928_v54  ;;  %v811_v22 = vld [vmem:[%s35344_s8 + $0xbc0] sm:$0xff]  ;;  %v820_v54 = vld [vmem:[%s35344_s8 + $0xc08] sm:$0xff] }
 0x35b   : > { %33933 = vmatpush1.bf16.xpose.msra.mxu1 %v33932_v55  ;;  %19139 = vmatprep.mubr.f32.mxu0 %v3742_v57  ;;  %v33944_v39 = vpack.c.bf16 %v1579_v23, %v811_v22  ;;  %v1588_v55 = vld [vmem:[%s35344_s8 + $0x2408] sm:$0x3] }
 0x35c   : > { %33935 = vmatprep.subr.bf16.mxu0 %v33934_v58  ;;  %v15361_v3 = vpop.f32.mrb[130].mxu0  ;;  %19209 = vmatprep.mubr.f32.mxu1 %v3743_v59  ;;  %v340_v22 = vld [vmem:[%s35337_s10 + $0x308] sm:$0xff] }
 0x35d   : > { %v15431_v4 = vpop.f32.mrb[130].mxu1  ;;  %33939 = vmatprep.subr.bf16.mxu1 %v33938_v60  ;;  %v15362_v8 = vadd.f32 %v15361_v3, %v15292_v56  ;;  %v15363_v9 = vpop.f32.mrb[131].mxu0  ;;  %v3792_v56 = vrot.slane %v3778_v46, %v35369_v25  ;;  %v822_v60 = vld [vmem:[%s35344_s8 + $0xc18] sm:$0xff]  ;;  %v33958_v3 = vpack.c.bf16 %v1588_v55, %v820_v54  ;;  %v3812_v31 = vcombine.high %v340_v22, %v340_v22 }
 0x35e   : > { %v15433_v10 = vpop.f32.mrb[131].mxu1  ;;  %v33962_v5 = vpack.c.bf16 %v1590_v61, %v822_v60  ;;  %v821_v9 = vld [vmem:[%s35344_s8 + $0xc10] sm:$0xff]  ;;  %v3819_v36 = vrot.slane %v340_v22, %v35369_v25  ;;  %v1598_v46 = vld [vmem:[%s35344_s8 + $0x2458] sm:$0x3] }
 0x35f   : > { %v15432_v16 = vadd.f32 %v15431_v4, %v15362_v8  ;;  %v3794_v4 = vcombine.high %v3792_v56, %v3792_v56  ;;  %v1587_v8 = vld [vmem:[%s35344_s8 + $0x2400] sm:$0x3]  ;;  %v1589_v10 = vld [vmem:[%s35344_s8 + $0x2410] sm:$0x3] }
 0x360   : > { %v33964_v24 = vpack.c.bf16 %v1589_v10, %v821_v9 }
 0x361   : > { %19140 = vmatmul.mubr.f32.vlgmr.msra.gmra.mrb[184].mxu0 %v3734_v42  ;;  %v3776_v42 = vcombine.high %v3768_v27, %v3768_v27 }
 0x362   : > { %19210 = vmatmul.mubr.f32.vlgmr.msra.gmra.mrb[184].mxu1 %v3741_v47  ;;  %33937 = vmatpush1.bf16.xpose.msra.mxu0 %v33936_v14  ;;  %v815_v47 = vld [vmem:[%s35344_s8 + $0xbe0] sm:$0xff]  ;;  %v824_v14 = vld [vmem:[%s35344_s8 + $0xc28] sm:$0xff] }
 0x363   : > { %33941 = vmatpush1.bf16.xpose.msra.mxu1 %v33940_v15  ;;  %19279 = vmatprep.mubr.f32.mxu0 %v3759_v17  ;;  %v33952_v63 = vpack.c.bf16 %v1583_v48, %v815_v47  ;;  %v1592_v15 = vld [vmem:[%s35344_s8 + $0x2428] sm:$0x3]  ;;  %v341_v47 = vld [vmem:[%s35337_s10 + $0x310] sm:$0xff] }
 0x364   : > { %33943 = vmatprep.subr.bf16.mxu0 %v33942_v18  ;;  %v15501_v28 = vpop.f32.mrb[132].mxu0  ;;  %19349 = vmatprep.mubr.f32.mxu1 %v3760_v19  ;;  %v3829_v55 = vcombine.high %v341_v47, %v341_v47  ;;  %v3836_v60 = vrot.slane %v341_v47, %v35369_v25 }
 0x365   : > { %v15571_v29 = vpop.f32.mrb[132].mxu1  ;;  %33947 = vmatprep.subr.bf16.mxu1 %v33946_v20  ;;  %v15502_v33 = vadd.f32 %v15501_v28, %v15432_v16  ;;  %v15503_v34 = vpop.f32.mrb[133].mxu0  ;;  %v3809_v16 = vrot.slane %v3795_v6, %v35369_v25  ;;  %v826_v20 = vld [vmem:[%s35344_s8 + $0xc38] sm:$0xff]  ;;  %v33966_v28 = vpack.c.bf16 %v1592_v15, %v824_v14 }
 0x366   : > { %v15573_v35 = vpop.f32.mrb[133].mxu1  ;;  %v33970_v30 = vpack.c.bf16 %v1594_v21, %v826_v20  ;;  %v825_v34 = vld [vmem:[%s35344_s8 + $0xc30] sm:$0xff]  ;;  %v1602_v6 = vld [vmem:[%s35344_s8 + $0x2478] sm:$0x3] }
 0x367   : > { %v15572_v41 = vadd.f32 %v15571_v29, %v15502_v33  ;;  %v3811_v29 = vcombine.high %v3809_v16, %v3809_v16  ;;  %v1591_v33 = vld [vmem:[%s35344_s8 + $0x2420] sm:$0x3]  ;;  %v1593_v35 = vld [vmem:[%s35344_s8 + $0x2430] sm:$0x3] }
 0x368   : > { %v33972_v49 = vpack.c.bf16 %v1593_v35, %v825_v34 }
 0x369   : > { %19280 = vmatmul.mubr.f32.vlgmr.msra.gmra.mrb[186].mxu0 %v3751_v2  ;;  %v3793_v2 = vcombine.high %v3785_v51, %v3785_v51 }
 0x36a   : > { %19350 = vmatmul.mubr.f32.vlgmr.msra.gmra.mrb[186].mxu1 %v3758_v7  ;;  %33945 = vmatpush1.bf16.xpose.msra.mxu0 %v33944_v39  ;;  %v819_v7 = vld [vmem:[%s35344_s8 + $0xc00] sm:$0xff]  ;;  %v828_v39 = vld [vmem:[%s35344_s8 + $0xc48] sm:$0xff] }
 0x36b   : > { %33949 = vmatpush1.bf16.xpose.msra.mxu1 %v33948_v40  ;;  %19419 = vmatprep.mubr.f32.mxu0 %v3776_v42  ;;  %v33960_v23 = vpack.c.bf16 %v1587_v8, %v819_v7  ;;  %v1596_v40 = vld [vmem:[%s35344_s8 + $0x2448] sm:$0x3]  ;;  %v342_v7 = vld [vmem:[%s35337_s10 + $0x318] sm:$0xff] }
 0x36c   : > { %33951 = vmatprep.subr.bf16.mxu0 %v33950_v43  ;;  %v15641_v52 = vpop.f32.mrb[134].mxu0  ;;  %19489 = vmatprep.mubr.f32.mxu1 %v3777_v44  ;;  %v3846_v15 = vcombine.high %v342_v7, %v342_v7  ;;  %v3853_v20 = vrot.slane %v342_v7, %v35369_v25 }
 0x36d   : > { %v15711_v53 = vpop.f32.mrb[134].mxu1  ;;  %33955 = vmatprep.subr.bf16.mxu1 %v33954_v45  ;;  %v15642_v57 = vadd.f32 %v15641_v52, %v15572_v41  ;;  %v15643_v58 = vpop.f32.mrb[135].mxu0  ;;  %v3826_v41 = vrot.slane %v3812_v31, %v35369_v25  ;;  %v830_v45 = vld [vmem:[%s35344_s8 + $0xc58] sm:$0xff]  ;;  %v33974_v52 = vpack.c.bf16 %v1596_v40, %v828_v39 }
 0x36e   : > { %v15713_v59 = vpop.f32.mrb[135].mxu1  ;;  %v33978_v54 = vpack.c.bf16 %v1598_v46, %v830_v45  ;;  %v829_v58 = vld [vmem:[%s35344_s8 + $0xc50] sm:$0xff]  ;;  %v1606_v31 = vld [vmem:[%s35344_s8 + $0x2498] sm:$0x3] }
 0x36f   : > { %v15712_v1 = vadd.f32 %v15711_v53, %v15642_v57  ;;  %v3828_v53 = vcombine.high %v3826_v41, %v3826_v41  ;;  %v1595_v57 = vld [vmem:[%s35344_s8 + $0x2440] sm:$0x3]  ;;  %v1597_v59 = vld [vmem:[%s35344_s8 + $0x2450] sm:$0x3] }
 0x370   : > { %v33980_v9 = vpack.c.bf16 %v1597_v59, %v829_v58 }
 0x371   : > { %19420 = vmatmul.mubr.f32.vlgmr.msra.gmra.mrb[188].mxu0 %v3768_v27  ;;  %v3810_v27 = vcombine.high %v3802_v11, %v3802_v11 }
 0x372   : > { %19490 = vmatmul.mubr.f32.vlgmr.msra.gmra.mrb[188].mxu1 %v3775_v32  ;;  %33953 = vmatpush1.bf16.xpose.msra.mxu0 %v33952_v63  ;;  %v823_v32 = vld [vmem:[%s35344_s8 + $0xc20] sm:$0xff]  ;;  %v832_v63 = vld [vmem:[%s35344_s8 + $0xc68] sm:$0xff] }
 0x373   : > { %33957 = vmatpush1.bf16.xpose.msra.mxu1 %v33956_v0  ;;  %19559 = vmatprep.mubr.f32.mxu0 %v3793_v2  ;;  %v33968_v48 = vpack.c.bf16 %v1591_v33, %v823_v32  ;;  %v1600_v0 = vld [vmem:[%s35344_s8 + $0x2468] sm:$0x3]  ;;  %v343_v32 = vld [vmem:[%s35337_s10 + $0x320] sm:$0xff] }
 0x374   : > { %33959 = vmatprep.subr.bf16.mxu0 %v33958_v3  ;;  %v15781_v12 = vpop.f32.mrb[136].mxu0  ;;  %19629 = vmatprep.mubr.f32.mxu1 %v3794_v4  ;;  %v3863_v40 = vcombine.high %v343_v32, %v343_v32  ;;  %v3870_v45 = vrot.slane %v343_v32, %v35369_v25 }
 0x375   : > { %v15851_v13 = vpop.f32.mrb[136].mxu1  ;;  %33963 = vmatprep.subr.bf16.mxu1 %v33962_v5  ;;  %v15782_v17 = vadd.f32 %v15781_v12, %v15712_v1  ;;  %v15783_v18 = vpop.f32.mrb[137].mxu0  ;;  %v3843_v1 = vrot.slane %v3829_v55, %v35369_v25  ;;  %v834_v5 = vld [vmem:[%s35344_s8 + $0xc78] sm:$0xff]  ;;  %v33982_v12 = vpack.c.bf16 %v1600_v0, %v832_v63 }
 0x376   : > { %v15853_v19 = vpop.f32.mrb[137].mxu1  ;;  %v33986_v14 = vpack.c.bf16 %v1602_v6, %v834_v5  ;;  %v833_v18 = vld [vmem:[%s35344_s8 + $0xc70] sm:$0xff]  ;;  %v1610_v55 = vld [vmem:[%s35344_s8 + $0x24b8] sm:$0x3] }
 0x377   : > { %v15852_v26 = vadd.f32 %v15851_v13, %v15782_v17  ;;  %v3845_v13 = vcombine.high %v3843_v1, %v3843_v1  ;;  %v1599_v17 = vld [vmem:[%s35344_s8 + $0x2460] sm:$0x3]  ;;  %v1601_v19 = vld [vmem:[%s35344_s8 + $0x2470] sm:$0x3] }
 0x378   : > { %v33988_v34 = vpack.c.bf16 %v1601_v19, %v833_v18 }
 0x379   : > { %19560 = vmatmul.mubr.f32.vlgmr.msra.gmra.mrb[190].mxu0 %v3785_v51  ;;  %v3827_v51 = vcombine.high %v3819_v36, %v3819_v36 }
 0x37a   : > { %19630 = vmatmul.mubr.f32.vlgmr.msra.gmra.mrb[190].mxu1 %v3792_v56  ;;  %33961 = vmatpush1.bf16.xpose.msra.mxu0 %v33960_v23  ;;  %v827_v56 = vld [vmem:[%s35344_s8 + $0xc40] sm:$0xff]  ;;  %v836_v23 = vld [vmem:[%s35344_s8 + $0xc88] sm:$0xff] }
 0x37b   : > { %33965 = vmatpush1.bf16.xpose.msra.mxu1 %v33964_v24  ;;  %19699 = vmatprep.mubr.f32.mxu0 %v3810_v27  ;;  %v33976_v8 = vpack.c.bf16 %v1595_v57, %v827_v56  ;;  %v1604_v24 = vld [vmem:[%s35344_s8 + $0x2488] sm:$0x3] }
 0x37c   : > { %33967 = vmatprep.subr.bf16.mxu0 %v33966_v28  ;;  %v15921_v37 = vpop.f32.mrb[138].mxu0  ;;  %19769 = vmatprep.mubr.f32.mxu1 %v3811_v29  ;;  %v344_v56 = vld [vmem:[%s35337_s10 + $0x328] sm:$0xff] }
 0x37d   : > { %v15991_v38 = vpop.f32.mrb[138].mxu1  ;;  %33971 = vmatprep.subr.bf16.mxu1 %v33970_v30  ;;  %v15922_v42 = vadd.f32 %v15921_v37, %v15852_v26  ;;  %v15923_v43 = vpop.f32.mrb[139].mxu0  ;;  %v3860_v26 = vrot.slane %v3846_v15, %v35369_v25  ;;  %v838_v30 = vld [vmem:[%s35344_s8 + $0xc98] sm:$0xff]  ;;  %v33990_v37 = vpack.c.bf16 %v1604_v24, %v836_v23  ;;  %v3880_v0 = vcombine.high %v344_v56, %v344_v56 }
 0x37e   : > { %v15993_v44 = vpop.f32.mrb[139].mxu1  ;;  %v33994_v39 = vpack.c.bf16 %v1606_v31, %v838_v30  ;;  %v837_v43 = vld [vmem:[%s35344_s8 + $0xc90] sm:$0xff]  ;;  %v3887_v5 = vrot.slane %v344_v56, %v35369_v25  ;;  %v1614_v15 = vld [vmem:[%s35344_s8 + $0x24d8] sm:$0x3] }
 0x37f   : > { %v15992_v50 = vadd.f32 %v15991_v38, %v15922_v42  ;;  %v3862_v38 = vcombine.high %v3860_v26, %v3860_v26  ;;  %v1603_v42 = vld [vmem:[%s35344_s8 + $0x2480] sm:$0x3]  ;;  %v1605_v44 = vld [vmem:[%s35344_s8 + $0x2490] sm:$0x3] }
 0x380   : > { %v33996_v58 = vpack.c.bf16 %v1605_v44, %v837_v43 }
 0x381   : > { %19700 = vmatmul.mubr.f32.vlgmr.msra.gmra.mrb[192].mxu0 %v3802_v11  ;;  %v3844_v11 = vcombine.high %v3836_v60, %v3836_v60 }
 0x382   : > { %19770 = vmatmul.mubr.f32.vlgmr.msra.gmra.mrb[192].mxu1 %v3809_v16  ;;  %33969 = vmatpush1.bf16.xpose.msra.mxu0 %v33968_v48  ;;  %v831_v16 = vld [vmem:[%s35344_s8 + $0xc60] sm:$0xff]  ;;  %v840_v48 = vld [vmem:[%s35344_s8 + $0xca8] sm:$0xff] }
 0x383   : > { %33973 = vmatpush1.bf16.xpose.msra.mxu1 %v33972_v49  ;;  %19839 = vmatprep.mubr.f32.mxu0 %v3827_v51  ;;  %v33984_v33 = vpack.c.bf16 %v1599_v17, %v831_v16  ;;  %v1608_v49 = vld [vmem:[%s35344_s8 + $0x24a8] sm:$0x3]  ;;  %v345_v16 = vld [vmem:[%s35337_s10 + $0x330] sm:$0xff] }
 0x384   : > { %33975 = vmatprep.subr.bf16.mxu0 %v33974_v52  ;;  %v16061_v61 = vpop.f32.mrb[140].mxu0  ;;  %19909 = vmatprep.mubr.f32.mxu1 %v3828_v53  ;;  %v3897_v24 = vcombine.high %v345_v16, %v345_v16  ;;  %v3904_v30 = vrot.slane %v345_v16, %v35369_v25 }
 0x385   : > { %v16131_v62 = vpop.f32.mrb[140].mxu1  ;;  %33979 = vmatprep.subr.bf16.mxu1 %v33978_v54  ;;  %v16062_v2 = vadd.f32 %v16061_v61, %v15992_v50  ;;  %v16063_v3 = vpop.f32.mrb[141].mxu0  ;;  %v3877_v50 = vrot.slane %v3863_v40, %v35369_v25  ;;  %v842_v54 = vld [vmem:[%s35344_s8 + $0xcb8] sm:$0xff]  ;;  %v33998_v61 = vpack.c.bf16 %v1608_v49, %v840_v48 }
 0x386   : > { %v16133_v4 = vpop.f32.mrb[141].mxu1  ;;  %v34002_v63 = vpack.c.bf16 %v1610_v55, %v842_v54  ;;  %v841_v3 = vld [vmem:[%s35344_s8 + $0xcb0] sm:$0xff]  ;;  %v1618_v40 = vld [vmem:[%s35344_s8 + $0x24f8] sm:$0x3] }
 0x387   : > { %v16132_v10 = vadd.f32 %v16131_v62, %v16062_v2  ;;  %v3879_v62 = vcombine.high %v3877_v50, %v3877_v50  ;;  %v1607_v2 = vld [vmem:[%s35344_s8 + $0x24a0] sm:$0x3]  ;;  %v1609_v4 = vld [vmem:[%s35344_s8 + $0x24b0] sm:$0x3] }
 0x388   : > { %v34004_v18 = vpack.c.bf16 %v1609_v4, %v841_v3 }
 0x389   : > { %19840 = vmatmul.mubr.f32.vlgmr.msra.gmra.mrb[194].mxu0 %v3819_v36  ;;  %v3861_v36 = vcombine.high %v3853_v20, %v3853_v20 }
 0x38a   : > { %19910 = vmatmul.mubr.f32.vlgmr.msra.gmra.mrb[194].mxu1 %v3826_v41  ;;  %33977 = vmatpush1.bf16.xpose.msra.mxu0 %v33976_v8  ;;  %v835_v41 = vld [vmem:[%s35344_s8 + $0xc80] sm:$0xff]  ;;  %v844_v8 = vld [vmem:[%s35344_s8 + $0xcc8] sm:$0xff] }
 0x38b   : > { %33981 = vmatpush1.bf16.xpose.msra.mxu1 %v33980_v9  ;;  %19979 = vmatprep.mubr.f32.mxu0 %v3844_v11  ;;  %v33992_v57 = vpack.c.bf16 %v1603_v42, %v835_v41  ;;  %v1612_v9 = vld [vmem:[%s35344_s8 + $0x24c8] sm:$0x3]  ;;  %v346_v41 = vld [vmem:[%s35337_s10 + $0x338] sm:$0xff] }
 0x38c   : > { %33983 = vmatprep.subr.bf16.mxu0 %v33982_v12  ;;  %v16201_v21 = vpop.f32.mrb[142].mxu0  ;;  %20049 = vmatprep.mubr.f32.mxu1 %v3845_v13  ;;  %v3914_v49 = vcombine.high %v346_v41, %v346_v41  ;;  %v3921_v54 = vrot.slane %v346_v41, %v35369_v25 }
 0x38d   : > { %v16271_v22 = vpop.f32.mrb[142].mxu1  ;;  %33987 = vmatprep.subr.bf16.mxu1 %v33986_v14  ;;  %v16202_v27 = vadd.f32 %v16201_v21, %v16132_v10  ;;  %v16203_v28 = vpop.f32.mrb[143].mxu0  ;;  %v3894_v10 = vrot.slane %v3880_v0, %v35369_v25  ;;  %v846_v14 = vld [vmem:[%s35344_s8 + $0xcd8] sm:$0xff]  ;;  %v34006_v21 = vpack.c.bf16 %v1612_v9, %v844_v8 }
 0x38e   : > { %v16273_v29 = vpop.f32.mrb[143].mxu1  ;;  %v34010_v23 = vpack.c.bf16 %v1614_v15, %v846_v14  ;;  %v845_v28 = vld [vmem:[%s35344_s8 + $0xcd0] sm:$0xff]  ;;  %v1622_v0 = vld [vmem:[%s35344_s8 + $0x2518] sm:$0x3] }
 0x38f   : > { %v16272_v35 = vadd.f32 %v16271_v22, %v16202_v27  ;;  %v3896_v22 = vcombine.high %v3894_v10, %v3894_v10  ;;  %v1611_v27 = vld [vmem:[%s35344_s8 + $0x24c0] sm:$0x3]  ;;  %v1613_v29 = vld [vmem:[%s35344_s8 + $0x24d0] sm:$0x3] }
 0x390   : > { %v34012_v43 = vpack.c.bf16 %v1613_v29, %v845_v28 }
 0x391   : > { %19980 = vmatmul.mubr.f32.vlgmr.msra.gmra.mrb[196].mxu0 %v3836_v60  ;;  %v3878_v60 = vcombine.high %v3870_v45, %v3870_v45 }
 0x392   : > { %20050 = vmatmul.mubr.f32.vlgmr.msra.gmra.mrb[196].mxu1 %v3843_v1  ;;  %33985 = vmatpush1.bf16.xpose.msra.mxu0 %v33984_v33  ;;  %v839_v1 = vld [vmem:[%s35344_s8 + $0xca0] sm:$0xff]  ;;  %v848_v33 = vld [vmem:[%s35344_s8 + $0xce8] sm:$0xff] }
 0x393   : > { %33989 = vmatpush1.bf16.xpose.msra.mxu1 %v33988_v34  ;;  %20119 = vmatprep.mubr.f32.mxu0 %v3861_v36  ;;  %v34000_v17 = vpack.c.bf16 %v1607_v2, %v839_v1  ;;  %v1616_v34 = vld [vmem:[%s35344_s8 + $0x24e8] sm:$0x3]  ;;  %v347_v1 = vld [vmem:[%s35337_s10 + $0x340] sm:$0xff] }
 0x394   : > { %33991 = vmatprep.subr.bf16.mxu0 %v33990_v37  ;;  %v16341_v46 = vpop.f32.mrb[144].mxu0  ;;  %20189 = vmatprep.mubr.f32.mxu1 %v3862_v38  ;;  %v3931_v9 = vcombine.high %v347_v1, %v347_v1  ;;  %v3938_v14 = vrot.slane %v347_v1, %v35369_v25 }
 0x395   : > { %v16411_v47 = vpop.f32.mrb[144].mxu1  ;;  %33995 = vmatprep.subr.bf16.mxu1 %v33994_v39  ;;  %v16342_v51 = vadd.f32 %v16341_v46, %v16272_v35  ;;  %v16343_v52 = vpop.f32.mrb[145].mxu0  ;;  %v3911_v35 = vrot.slane %v3897_v24, %v35369_v25  ;;  %v850_v39 = vld [vmem:[%s35344_s8 + $0xcf8] sm:$0xff]  ;;  %v34014_v46 = vpack.c.bf16 %v1616_v34, %v848_v33 }
 0x396   : > { %v16413_v53 = vpop.f32.mrb[145].mxu1  ;;  %v34018_v48 = vpack.c.bf16 %v1618_v40, %v850_v39  ;;  %v849_v52 = vld [vmem:[%s35344_s8 + $0xcf0] sm:$0xff]  ;;  %v1626_v24 = vld [vmem:[%s35344_s8 + $0x2538] sm:$0x3] }
 0x397   : > { %v16412_v59 = vadd.f32 %v16411_v47, %v16342_v51  ;;  %v3913_v47 = vcombine.high %v3911_v35, %v3911_v35  ;;  %v1615_v51 = vld [vmem:[%s35344_s8 + $0x24e0] sm:$0x3]  ;;  %v1617_v53 = vld [vmem:[%s35344_s8 + $0x24f0] sm:$0x3] }
 0x398   : > { %v34020_v3 = vpack.c.bf16 %v1617_v53, %v849_v52 }
 0x399   : > { %20120 = vmatmul.mubr.f32.vlgmr.msra.gmra.mrb[198].mxu0 %v3853_v20  ;;  %v3895_v20 = vcombine.high %v3887_v5, %v3887_v5 }
 0x39a   : > { %20190 = vmatmul.mubr.f32.vlgmr.msra.gmra.mrb[198].mxu1 %v3860_v26  ;;  %33993 = vmatpush1.bf16.xpose.msra.mxu0 %v33992_v57  ;;  %v843_v26 = vld [vmem:[%s35344_s8 + $0xcc0] sm:$0xff]  ;;  %v852_v57 = vld [vmem:[%s35344_s8 + $0xd08] sm:$0xff] }
 0x39b   : > { %33997 = vmatpush1.bf16.xpose.msra.mxu1 %v33996_v58  ;;  %20259 = vmatprep.mubr.f32.mxu0 %v3878_v60  ;;  %v34008_v42 = vpack.c.bf16 %v1611_v27, %v843_v26  ;;  %v1620_v58 = vld [vmem:[%s35344_s8 + $0x2508] sm:$0x3] }
 0x39c   : > { %33999 = vmatprep.subr.bf16.mxu0 %v33998_v61  ;;  %v16481_v6 = vpop.f32.mrb[146].mxu0  ;;  %20329 = vmatprep.mubr.f32.mxu1 %v3879_v62  ;;  %v348_v26 = vld [vmem:[%s35337_s10 + $0x348] sm:$0xff] }
 0x39d   : > { %v16551_v7 = vpop.f32.mrb[146].mxu1  ;;  %34003 = vmatprep.subr.bf16.mxu1 %v34002_v63  ;;  %v16482_v11 = vadd.f32 %v16481_v6, %v16412_v59  ;;  %v16483_v12 = vpop.f32.mrb[147].mxu0  ;;  %v3928_v59 = vrot.slane %v3914_v49, %v35369_v25  ;;  %v854_v63 = vld [vmem:[%s35344_s8 + $0xd18] sm:$0xff]  ;;  %v34022_v6 = vpack.c.bf16 %v1620_v58, %v852_v57  ;;  %v3948_v34 = vcombine.high %v348_v26, %v348_v26 }
 0x39e   : > { %v16553_v13 = vpop.f32.mrb[147].mxu1  ;;  %v34026_v8 = vpack.c.bf16 %v1622_v0, %v854_v63  ;;  %v853_v12 = vld [vmem:[%s35344_s8 + $0xd10] sm:$0xff]  ;;  %v3955_v39 = vrot.slane %v348_v26, %v35369_v25  ;;  %v1630_v49 = vld [vmem:[%s35344_s8 + $0x2558] sm:$0x3] }
 0x39f   : > { %v16552_v19 = vadd.f32 %v16551_v7, %v16482_v11  ;;  %v3930_v7 = vcombine.high %v3928_v59, %v3928_v59  ;;  %v1619_v11 = vld [vmem:[%s35344_s8 + $0x2500] sm:$0x3]  ;;  %v1621_v13 = vld [vmem:[%s35344_s8 + $0x2510] sm:$0x3] }
 0x3a0   : > { %v34028_v28 = vpack.c.bf16 %v1621_v13, %v853_v12 }
 0x3a1   : > { %20260 = vmatmul.mubr.f32.vlgmr.msra.gmra.mrb[200].mxu0 %v3870_v45  ;;  %v3912_v45 = vcombine.high %v3904_v30, %v3904_v30 }
 0x3a2   : > { %20330 = vmatmul.mubr.f32.vlgmr.msra.gmra.mrb[200].mxu1 %v3877_v50  ;;  %34001 = vmatpush1.bf16.xpose.msra.mxu0 %v34000_v17  ;;  %v847_v50 = vld [vmem:[%s35344_s8 + $0xce0] sm:$0xff]  ;;  %v856_v17 = vld [vmem:[%s35344_s8 + $0xd28] sm:$0xff] }
 0x3a3   : > { %34005 = vmatpush1.bf16.xpose.msra.mxu1 %v34004_v18  ;;  %20399 = vmatprep.mubr.f32.mxu0 %v3895_v20  ;;  %v34016_v2 = vpack.c.bf16 %v1615_v51, %v847_v50  ;;  %v1624_v18 = vld [vmem:[%s35344_s8 + $0x2528] sm:$0x3]  ;;  %v349_v50 = vld [vmem:[%s35337_s10 + $0x350] sm:$0xff] }
 0x3a4   : > { %34007 = vmatprep.subr.bf16.mxu0 %v34006_v21  ;;  %v16621_v31 = vpop.f32.mrb[148].mxu0  ;;  %20469 = vmatprep.mubr.f32.mxu1 %v3896_v22  ;;  %v3965_v58 = vcombine.high %v349_v50, %v349_v50  ;;  %v3972_v63 = vrot.slane %v349_v50, %v35369_v25 }
 0x3a5   : > { %v16691_v32 = vpop.f32.mrb[148].mxu1  ;;  %34011 = vmatprep.subr.bf16.mxu1 %v34010_v23  ;;  %v16622_v36 = vadd.f32 %v16621_v31, %v16552_v19  ;;  %v16623_v37 = vpop.f32.mrb[149].mxu0  ;;  %v3945_v19 = vrot.slane %v3931_v9, %v35369_v25  ;;  %v858_v23 = vld [vmem:[%s35344_s8 + $0xd38] sm:$0xff]  ;;  %v34030_v31 = vpack.c.bf16 %v1624_v18, %v856_v17 }
 0x3a6   : > { %v16693_v38 = vpop.f32.mrb[149].mxu1  ;;  %v34034_v33 = vpack.c.bf16 %v1626_v24, %v858_v23  ;;  %v857_v37 = vld [vmem:[%s35344_s8 + $0xd30] sm:$0xff]  ;;  %v1634_v9 = vld [vmem:[%s35344_s8 + $0x2578] sm:$0x3] }
 0x3a7   : > { %v16692_v44 = vadd.f32 %v16691_v32, %v16622_v36  ;;  %v3947_v32 = vcombine.high %v3945_v19, %v3945_v19  ;;  %v1623_v36 = vld [vmem:[%s35344_s8 + $0x2520] sm:$0x3]  ;;  %v1625_v38 = vld [vmem:[%s35344_s8 + $0x2530] sm:$0x3] }
 0x3a8   : > { %v34036_v52 = vpack.c.bf16 %v1625_v38, %v857_v37 }
 0x3a9   : > { %20400 = vmatmul.mubr.f32.vlgmr.msra.gmra.mrb[202].mxu0 %v3887_v5  ;;  %v3929_v5 = vcombine.high %v3921_v54, %v3921_v54 }
 0x3aa   : > { %20470 = vmatmul.mubr.f32.vlgmr.msra.gmra.mrb[202].mxu1 %v3894_v10  ;;  %34009 = vmatpush1.bf16.xpose.msra.mxu0 %v34008_v42  ;;  %v851_v10 = vld [vmem:[%s35344_s8 + $0xd00] sm:$0xff]  ;;  %v860_v42 = vld [vmem:[%s35344_s8 + $0xd48] sm:$0xff] }
 0x3ab   : > { %34013 = vmatpush1.bf16.xpose.msra.mxu1 %v34012_v43  ;;  %20539 = vmatprep.mubr.f32.mxu0 %v3912_v45  ;;  %v34024_v27 = vpack.c.bf16 %v1619_v11, %v851_v10  ;;  %v1628_v43 = vld [vmem:[%s35344_s8 + $0x2548] sm:$0x3]  ;;  %v350_v10 = vld [vmem:[%s35337_s10 + $0x358] sm:$0xff] }
 0x3ac   : > { %34015 = vmatprep.subr.bf16.mxu0 %v34014_v46  ;;  %v16761_v55 = vpop.f32.mrb[150].mxu0  ;;  %20609 = vmatprep.mubr.f32.mxu1 %v3913_v47  ;;  %v3982_v18 = vcombine.high %v350_v10, %v350_v10  ;;  %v3989_v23 = vrot.slane %v350_v10, %v35369_v25 }
 0x3ad   : > { %v16831_v56 = vpop.f32.mrb[150].mxu1  ;;  %34019 = vmatprep.subr.bf16.mxu1 %v34018_v48  ;;  %v16762_v60 = vadd.f32 %v16761_v55, %v16692_v44  ;;  %v16763_v61 = vpop.f32.mrb[151].mxu0  ;;  %v3962_v44 = vrot.slane %v3948_v34, %v35369_v25  ;;  %v862_v48 = vld [vmem:[%s35344_s8 + $0xd58] sm:$0xff]  ;;  %v34038_v55 = vpack.c.bf16 %v1628_v43, %v860_v42 }
 0x3ae   : > { %v16833_v62 = vpop.f32.mrb[151].mxu1  ;;  %v34042_v57 = vpack.c.bf16 %v1630_v49, %v862_v48  ;;  %v861_v61 = vld [vmem:[%s35344_s8 + $0xd50] sm:$0xff]  ;;  %v1638_v34 = vld [vmem:[%s35344_s8 + $0x2598] sm:$0x3] }
 0x3af   : > { %v16832_v4 = vadd.f32 %v16831_v56, %v16762_v60  ;;  %v3964_v56 = vcombine.high %v3962_v44, %v3962_v44  ;;  %v1627_v60 = vld [vmem:[%s35344_s8 + $0x2540] sm:$0x3]  ;;  %v1629_v62 = vld [vmem:[%s35344_s8 + $0x2550] sm:$0x3] }
 0x3b0   : > { %v34044_v12 = vpack.c.bf16 %v1629_v62, %v861_v61 }
 0x3b1   : > { %20540 = vmatmul.mubr.f32.vlgmr.msra.gmra.mrb[204].mxu0 %v3904_v30  ;;  %v3946_v30 = vcombine.high %v3938_v14, %v3938_v14 }
 0x3b2   : > { %20610 = vmatmul.mubr.f32.vlgmr.msra.gmra.mrb[204].mxu1 %v3911_v35  ;;  %34017 = vmatpush1.bf16.xpose.msra.mxu0 %v34016_v2  ;;  %v855_v35 = vld [vmem:[%s35344_s8 + $0xd20] sm:$0xff]  ;;  %v864_v2 = vld [vmem:[%s35344_s8 + $0xd68] sm:$0xff] }
 0x3b3   : > { %34021 = vmatpush1.bf16.xpose.msra.mxu1 %v34020_v3  ;;  %20679 = vmatprep.mubr.f32.mxu0 %v3929_v5  ;;  %v34032_v51 = vpack.c.bf16 %v1623_v36, %v855_v35  ;;  %v1632_v3 = vld [vmem:[%s35344_s8 + $0x2568] sm:$0x3]  ;;  %v351_v35 = vld [vmem:[%s35337_s10 + $0x360] sm:$0xff] }
 0x3b4   : > { %34023 = vmatprep.subr.bf16.mxu0 %v34022_v6  ;;  %v16901_v15 = vpop.f32.mrb[152].mxu0  ;;  %20749 = vmatprep.mubr.f32.mxu1 %v3930_v7  ;;  %v3999_v43 = vcombine.high %v351_v35, %v351_v35  ;;  %v4006_v48 = vrot.slane %v351_v35, %v35369_v25 }
 0x3b5   : > { %v16971_v16 = vpop.f32.mrb[152].mxu1  ;;  %34027 = vmatprep.subr.bf16.mxu1 %v34026_v8  ;;  %v16902_v20 = vadd.f32 %v16901_v15, %v16832_v4  ;;  %v16903_v21 = vpop.f32.mrb[153].mxu0  ;;  %v3979_v4 = vrot.slane %v3965_v58, %v35369_v25  ;;  %v866_v8 = vld [vmem:[%s35344_s8 + $0xd78] sm:$0xff]  ;;  %v34046_v15 = vpack.c.bf16 %v1632_v3, %v864_v2 }
 0x3b6   : > { %v16973_v22 = vpop.f32.mrb[153].mxu1  ;;  %v34050_v17 = vpack.c.bf16 %v1634_v9, %v866_v8  ;;  %v865_v21 = vld [vmem:[%s35344_s8 + $0xd70] sm:$0xff]  ;;  %v1642_v58 = vld [vmem:[%s35344_s8 + $0x25b8] sm:$0x3] }
 0x3b7   : > { %v16972_v29 = vadd.f32 %v16971_v16, %v16902_v20  ;;  %v3981_v16 = vcombine.high %v3979_v4, %v3979_v4  ;;  %v1631_v20 = vld [vmem:[%s35344_s8 + $0x2560] sm:$0x3]  ;;  %v1633_v22 = vld [vmem:[%s35344_s8 + $0x2570] sm:$0x3] }
 0x3b8   : > { %v34052_v37 = vpack.c.bf16 %v1633_v22, %v865_v21 }
 0x3b9   : > { %20680 = vmatmul.mubr.f32.vlgmr.msra.gmra.mrb[206].mxu0 %v3921_v54  ;;  %v3963_v54 = vcombine.high %v3955_v39, %v3955_v39 }
 0x3ba   : > { %20750 = vmatmul.mubr.f32.vlgmr.msra.gmra.mrb[206].mxu1 %v3928_v59  ;;  %34025 = vmatpush1.bf16.xpose.msra.mxu0 %v34024_v27  ;;  %v859_v59 = vld [vmem:[%s35344_s8 + $0xd40] sm:$0xff]  ;;  %v868_v27 = vld [vmem:[%s35344_s8 + $0xd88] sm:$0xff] }
 0x3bb   : > { %34029 = vmatpush1.bf16.xpose.msra.mxu1 %v34028_v28  ;;  %20819 = vmatprep.mubr.f32.mxu0 %v3946_v30  ;;  %v34040_v11 = vpack.c.bf16 %v1627_v60, %v859_v59  ;;  %v1636_v28 = vld [vmem:[%s35344_s8 + $0x2588] sm:$0x3] }
 0x3bc   : > { %34031 = vmatprep.subr.bf16.mxu0 %v34030_v31  ;;  %v17041_v40 = vpop.f32.mrb[154].mxu0  ;;  %20889 = vmatprep.mubr.f32.mxu1 %v3947_v32  ;;  %v352_v59 = vld [vmem:[%s35337_s10 + $0x368] sm:$0xff] }
 0x3bd   : > { %v17111_v41 = vpop.f32.mrb[154].mxu1  ;;  %34035 = vmatprep.subr.bf16.mxu1 %v34034_v33  ;;  %v17042_v45 = vadd.f32 %v17041_v40, %v16972_v29  ;;  %v17043_v46 = vpop.f32.mrb[155].mxu0  ;;  %v3996_v29 = vrot.slane %v3982_v18, %v35369_v25  ;;  %v870_v33 = vld [vmem:[%s35344_s8 + $0xd98] sm:$0xff]  ;;  %v34054_v40 = vpack.c.bf16 %v1636_v28, %v868_v27  ;;  %v4016_v3 = vcombine.high %v352_v59, %v352_v59 }
 0x3be   : > { %v17113_v47 = vpop.f32.mrb[155].mxu1  ;;  %v34058_v42 = vpack.c.bf16 %v1638_v34, %v870_v33  ;;  %v869_v46 = vld [vmem:[%s35344_s8 + $0xd90] sm:$0xff]  ;;  %v4023_v8 = vrot.slane %v352_v59, %v35369_v25  ;;  %v1646_v18 = vld [vmem:[%s35344_s8 + $0x25d8] sm:$0x3] }
 0x3bf   : > { %v17112_v53 = vadd.f32 %v17111_v41, %v17042_v45  ;;  %v3998_v41 = vcombine.high %v3996_v29, %v3996_v29  ;;  %v1635_v45 = vld [vmem:[%s35344_s8 + $0x2580] sm:$0x3]  ;;  %v1637_v47 = vld [vmem:[%s35344_s8 + $0x2590] sm:$0x3] }
 0x3c0   : > { %v34060_v61 = vpack.c.bf16 %v1637_v47, %v869_v46 }
 0x3c1   : > { %20820 = vmatmul.mubr.f32.vlgmr.msra.gmra.mrb[208].mxu0 %v3938_v14  ;;  %v3980_v14 = vcombine.high %v3972_v63, %v3972_v63 }
 0x3c2   : > { %20890 = vmatmul.mubr.f32.vlgmr.msra.gmra.mrb[208].mxu1 %v3945_v19  ;;  %34033 = vmatpush1.bf16.xpose.msra.mxu0 %v34032_v51  ;;  %v863_v19 = vld [vmem:[%s35344_s8 + $0xd60] sm:$0xff]  ;;  %v872_v51 = vld [vmem:[%s35344_s8 + $0xda8] sm:$0xff] }
 0x3c3   : > { %34037 = vmatpush1.bf16.xpose.msra.mxu1 %v34036_v52  ;;  %20959 = vmatprep.mubr.f32.mxu0 %v3963_v54  ;;  %v34048_v36 = vpack.c.bf16 %v1631_v20, %v863_v19  ;;  %v1640_v52 = vld [vmem:[%s35344_s8 + $0x25a8] sm:$0x3]  ;;  %v353_v19 = vld [vmem:[%s35337_s10 + $0x370] sm:$0xff] }
 0x3c4   : > { %34039 = vmatprep.subr.bf16.mxu0 %v34038_v55  ;;  %v17181_v0 = vpop.f32.mrb[156].mxu0  ;;  %21029 = vmatprep.mubr.f32.mxu1 %v3964_v56  ;;  %v4033_v28 = vcombine.high %v353_v19, %v353_v19  ;;  %v4040_v33 = vrot.slane %v353_v19, %v35369_v25 }
 0x3c5   : > { %v17251_v1 = vpop.f32.mrb[156].mxu1  ;;  %34043 = vmatprep.subr.bf16.mxu1 %v34042_v57  ;;  %v17182_v5 = vadd.f32 %v17181_v0, %v17112_v53  ;;  %v17183_v6 = vpop.f32.mrb[157].mxu0  ;;  %v4013_v53 = vrot.slane %v3999_v43, %v35369_v25  ;;  %v874_v57 = vld [vmem:[%s35344_s8 + $0xdb8] sm:$0xff]  ;;  %v34062_v0 = vpack.c.bf16 %v1640_v52, %v872_v51 }
 0x3c6   : > { %v17253_v7 = vpop.f32.mrb[157].mxu1  ;;  %v34066_v2 = vpack.c.bf16 %v1642_v58, %v874_v57  ;;  %v873_v6 = vld [vmem:[%s35344_s8 + $0xdb0] sm:$0xff]  ;;  %v1650_v43 = vld [vmem:[%s35344_s8 + $0x25f8] sm:$0x3] }
 0x3c7   : > { %v17252_v13 = vadd.f32 %v17251_v1, %v17182_v5  ;;  %v4015_v1 = vcombine.high %v4013_v53, %v4013_v53  ;;  %v1639_v5 = vld [vmem:[%s35344_s8 + $0x25a0] sm:$0x3]  ;;  %v1641_v7 = vld [vmem:[%s35344_s8 + $0x25b0] sm:$0x3] }
 0x3c8   : > { %v34068_v21 = vpack.c.bf16 %v1641_v7, %v873_v6 }
 0x3c9   : > { %20960 = vmatmul.mubr.f32.vlgmr.msra.gmra.mrb[210].mxu0 %v3955_v39  ;;  %v3997_v39 = vcombine.high %v3989_v23, %v3989_v23 }
 0x3ca   : > { %21030 = vmatmul.mubr.f32.vlgmr.msra.gmra.mrb[210].mxu1 %v3962_v44  ;;  %34041 = vmatpush1.bf16.xpose.msra.mxu0 %v34040_v11  ;;  %v867_v44 = vld [vmem:[%s35344_s8 + $0xd80] sm:$0xff]  ;;  %v876_v11 = vld [vmem:[%s35344_s8 + $0xdc8] sm:$0xff] }
 0x3cb   : > { %34045 = vmatpush1.bf16.xpose.msra.mxu1 %v34044_v12  ;;  %21099 = vmatprep.mubr.f32.mxu0 %v3980_v14  ;;  %v34056_v60 = vpack.c.bf16 %v1635_v45, %v867_v44  ;;  %v1644_v12 = vld [vmem:[%s35344_s8 + $0x25c8] sm:$0x3]  ;;  %v354_v44 = vld [vmem:[%s35337_s10 + $0x378] sm:$0xff] }
 0x3cc   : > { %34047 = vmatprep.subr.bf16.mxu0 %v34046_v15  ;;  %v17321_v24 = vpop.f32.mrb[158].mxu0  ;;  %21169 = vmatprep.mubr.f32.mxu1 %v3981_v16  ;;  %v4050_v52 = vcombine.high %v354_v44, %v354_v44  ;;  %v4057_v57 = vrot.slane %v354_v44, %v35369_v25 }
 0x3cd   : > { %v17391_v26 = vpop.f32.mrb[158].mxu1  ;;  %34051 = vmatprep.subr.bf16.mxu1 %v34050_v17  ;;  %v17322_v30 = vadd.f32 %v17321_v24, %v17252_v13  ;;  %v17323_v31 = vpop.f32.mrb[159].mxu0  ;;  %v4030_v13 = vrot.slane %v4016_v3, %v35369_v25  ;;  %v878_v17 = vld [vmem:[%s35344_s8 + $0xdd8] sm:$0xff]  ;;  %v34070_v24 = vpack.c.bf16 %v1644_v12, %v876_v11 }
 0x3ce   : > { %v17393_v32 = vpop.f32.mrb[159].mxu1  ;;  %v34074_v27 = vpack.c.bf16 %v1646_v18, %v878_v17  ;;  %v877_v31 = vld [vmem:[%s35344_s8 + $0xdd0] sm:$0xff]  ;;  %v1654_v3 = vld [vmem:[%s35344_s8 + $0x2618] sm:$0x3] }
 0x3cf   : > { %v17392_v38 = vadd.f32 %v17391_v26, %v17322_v30  ;;  %v4032_v26 = vcombine.high %v4030_v13, %v4030_v13  ;;  %v1643_v30 = vld [vmem:[%s35344_s8 + $0x25c0] sm:$0x3]  ;;  %v1645_v32 = vld [vmem:[%s35344_s8 + $0x25d0] sm:$0x3] }
 0x3d0   : > { %v34076_v46 = vpack.c.bf16 %v1645_v32, %v877_v31 }
 0x3d1   : > { %21100 = vmatmul.mubr.f32.vlgmr.msra.gmra.mrb[212].mxu0 %v3972_v63  ;;  %v4014_v63 = vcombine.high %v4006_v48, %v4006_v48 }
 0x3d2   : > { %21170 = vmatmul.mubr.f32.vlgmr.msra.gmra.mrb[212].mxu1 %v3979_v4  ;;  %34049 = vmatpush1.bf16.xpose.msra.mxu0 %v34048_v36  ;;  %v871_v4 = vld [vmem:[%s35344_s8 + $0xda0] sm:$0xff]  ;;  %v880_v36 = vld [vmem:[%s35344_s8 + $0xde8] sm:$0xff] }
 0x3d3   : > { %34053 = vmatpush1.bf16.xpose.msra.mxu1 %v34052_v37  ;;  %21239 = vmatprep.mubr.f32.mxu0 %v3997_v39  ;;  %v34064_v20 = vpack.c.bf16 %v1639_v5, %v871_v4  ;;  %v1648_v37 = vld [vmem:[%s35344_s8 + $0x25e8] sm:$0x3]  ;;  %v355_v4 = vld [vmem:[%s35337_s10 + $0x380] sm:$0xff] }
 0x3d4   : > { %34055 = vmatprep.subr.bf16.mxu0 %v34054_v40  ;;  %v17461_v49 = vpop.f32.mrb[160].mxu0  ;;  %21309 = vmatprep.mubr.f32.mxu1 %v3998_v41  ;;  %v4067_v12 = vcombine.high %v355_v4, %v355_v4  ;;  %v4074_v17 = vrot.slane %v355_v4, %v35369_v25 }
 0x3d5   : > { %v17531_v50 = vpop.f32.mrb[160].mxu1  ;;  %34059 = vmatprep.subr.bf16.mxu1 %v34058_v42  ;;  %v17462_v54 = vadd.f32 %v17461_v49, %v17392_v38  ;;  %v17463_v55 = vpop.f32.mrb[161].mxu0  ;;  %v4047_v38 = vrot.slane %v4033_v28, %v35369_v25  ;;  %v882_v42 = vld [vmem:[%s35344_s8 + $0xdf8] sm:$0xff]  ;;  %v34078_v49 = vpack.c.bf16 %v1648_v37, %v880_v36 }
 0x3d6   : > { %v17533_v56 = vpop.f32.mrb[161].mxu1  ;;  %v34082_v51 = vpack.c.bf16 %v1650_v43, %v882_v42  ;;  %v881_v55 = vld [vmem:[%s35344_s8 + $0xdf0] sm:$0xff]  ;;  %v1658_v28 = vld [vmem:[%s35344_s8 + $0x2638] sm:$0x3] }
 0x3d7   : > { %v17532_v62 = vadd.f32 %v17531_v50, %v17462_v54  ;;  %v4049_v50 = vcombine.high %v4047_v38, %v4047_v38  ;;  %v1647_v54 = vld [vmem:[%s35344_s8 + $0x25e0] sm:$0x3]  ;;  %v1649_v56 = vld [vmem:[%s35344_s8 + $0x25f0] sm:$0x3] }
 0x3d8   : > { %v34084_v6 = vpack.c.bf16 %v1649_v56, %v881_v55 }
 0x3d9   : > { %21240 = vmatmul.mubr.f32.vlgmr.msra.gmra.mrb[214].mxu0 %v3989_v23  ;;  %v4031_v23 = vcombine.high %v4023_v8, %v4023_v8 }
 0x3da   : > { %21310 = vmatmul.mubr.f32.vlgmr.msra.gmra.mrb[214].mxu1 %v3996_v29  ;;  %34057 = vmatpush1.bf16.xpose.msra.mxu0 %v34056_v60  ;;  %v875_v29 = vld [vmem:[%s35344_s8 + $0xdc0] sm:$0xff]  ;;  %v884_v60 = vld [vmem:[%s35344_s8 + $0xe08] sm:$0xff] }
 0x3db   : > { %34061 = vmatpush1.bf16.xpose.msra.mxu1 %v34060_v61  ;;  %21379 = vmatprep.mubr.f32.mxu0 %v4014_v63  ;;  %v34072_v45 = vpack.c.bf16 %v1643_v30, %v875_v29  ;;  %v1652_v61 = vld [vmem:[%s35344_s8 + $0x2608] sm:$0x3] }
 0x3dc   : > { %34063 = vmatprep.subr.bf16.mxu0 %v34062_v0  ;;  %v17601_v9 = vpop.f32.mrb[162].mxu0  ;;  %21449 = vmatprep.mubr.f32.mxu1 %v4015_v1  ;;  %v356_v29 = vld [vmem:[%s35337_s10 + $0x388] sm:$0xff] }
 0x3dd   : > { %v17671_v10 = vpop.f32.mrb[162].mxu1  ;;  %34067 = vmatprep.subr.bf16.mxu1 %v34066_v2  ;;  %v17602_v14 = vadd.f32 %v17601_v9, %v17532_v62  ;;  %v17603_v15 = vpop.f32.mrb[163].mxu0  ;;  %v4064_v62 = vrot.slane %v4050_v52, %v35369_v25  ;;  %v886_v2 = vld [vmem:[%s35344_s8 + $0xe18] sm:$0xff]  ;;  %v34086_v9 = vpack.c.bf16 %v1652_v61, %v884_v60  ;;  %v4084_v37 = vcombine.high %v356_v29, %v356_v29 }
 0x3de   : > { %v17673_v16 = vpop.f32.mrb[163].mxu1  ;;  %v34090_v11 = vpack.c.bf16 %v1654_v3, %v886_v2  ;;  %v885_v15 = vld [vmem:[%s35344_s8 + $0xe10] sm:$0xff]  ;;  %v4091_v42 = vrot.slane %v356_v29, %v35369_v25  ;;  %v1662_v52 = vld [vmem:[%s35344_s8 + $0x2658] sm:$0x3] }
 0x3df   : > { %v17672_v22 = vadd.f32 %v17671_v10, %v17602_v14  ;;  %v4066_v10 = vcombine.high %v4064_v62, %v4064_v62  ;;  %v1651_v14 = vld [vmem:[%s35344_s8 + $0x2600] sm:$0x3]  ;;  %v1653_v16 = vld [vmem:[%s35344_s8 + $0x2610] sm:$0x3] }
 0x3e0   : > { %v34092_v31 = vpack.c.bf16 %v1653_v16, %v885_v15 }
 0x3e1   : > { %21380 = vmatmul.mubr.f32.vlgmr.msra.gmra.mrb[216].mxu0 %v4006_v48  ;;  %v4048_v48 = vcombine.high %v4040_v33, %v4040_v33 }
 0x3e2   : > { %21450 = vmatmul.mubr.f32.vlgmr.msra.gmra.mrb[216].mxu1 %v4013_v53  ;;  %34065 = vmatpush1.bf16.xpose.msra.mxu0 %v34064_v20  ;;  %v879_v53 = vld [vmem:[%s35344_s8 + $0xde0] sm:$0xff]  ;;  %v888_v20 = vld [vmem:[%s35344_s8 + $0xe28] sm:$0xff] }
 0x3e3   : > { %34069 = vmatpush1.bf16.xpose.msra.mxu1 %v34068_v21  ;;  %21519 = vmatprep.mubr.f32.mxu0 %v4031_v23  ;;  %v34080_v5 = vpack.c.bf16 %v1647_v54, %v879_v53  ;;  %v1656_v21 = vld [vmem:[%s35344_s8 + $0x2628] sm:$0x3]  ;;  %v357_v53 = vld [vmem:[%s35337_s10 + $0x390] sm:$0xff] }
 0x3e4   : > { %34071 = vmatprep.subr.bf16.mxu0 %v34070_v24  ;;  %v17741_v34 = vpop.f32.mrb[164].mxu0  ;;  %21589 = vmatprep.mubr.f32.mxu1 %v4032_v26  ;;  %v4101_v61 = vcombine.high %v357_v53, %v357_v53  ;;  %v4108_v2 = vrot.slane %v357_v53, %v35369_v25 }
 0x3e5   : > { %v17811_v35 = vpop.f32.mrb[164].mxu1  ;;  %34075 = vmatprep.subr.bf16.mxu1 %v34074_v27  ;;  %v17742_v39 = vadd.f32 %v17741_v34, %v17672_v22  ;;  %v17743_v40 = vpop.f32.mrb[165].mxu0  ;;  %v4081_v22 = vrot.slane %v4067_v12, %v35369_v25  ;;  %v890_v27 = vld [vmem:[%s35344_s8 + $0xe38] sm:$0xff]  ;;  %v34094_v34 = vpack.c.bf16 %v1656_v21, %v888_v20 }
 0x3e6   : > { %v17813_v41 = vpop.f32.mrb[165].mxu1  ;;  %v34098_v36 = vpack.c.bf16 %v1658_v28, %v890_v27  ;;  %v889_v40 = vld [vmem:[%s35344_s8 + $0xe30] sm:$0xff]  ;;  %v1666_v12 = vld [vmem:[%s35344_s8 + $0x2678] sm:$0x3] }
 0x3e7   : > { %v17812_v47 = vadd.f32 %v17811_v35, %v17742_v39  ;;  %v4083_v35 = vcombine.high %v4081_v22, %v4081_v22  ;;  %v1655_v39 = vld [vmem:[%s35344_s8 + $0x2620] sm:$0x3]  ;;  %v1657_v41 = vld [vmem:[%s35344_s8 + $0x2630] sm:$0x3] }
 0x3e8   : > { %v34100_v55 = vpack.c.bf16 %v1657_v41, %v889_v40 }
 0x3e9   : > { %21520 = vmatmul.mubr.f32.vlgmr.msra.gmra.mrb[218].mxu0 %v4023_v8  ;;  %v4065_v8 = vcombine.high %v4057_v57, %v4057_v57 }
 0x3ea   : > { %21590 = vmatmul.mubr.f32.vlgmr.msra.gmra.mrb[218].mxu1 %v4030_v13  ;;  %34073 = vmatpush1.bf16.xpose.msra.mxu0 %v34072_v45  ;;  %v883_v13 = vld [vmem:[%s35344_s8 + $0xe00] sm:$0xff]  ;;  %v892_v45 = vld [vmem:[%s35344_s8 + $0xe48] sm:$0xff] }
 0x3eb   : > { %34077 = vmatpush1.bf16.xpose.msra.mxu1 %v34076_v46  ;;  %21659 = vmatprep.mubr.f32.mxu0 %v4048_v48  ;;  %v34088_v30 = vpack.c.bf16 %v1651_v14, %v883_v13  ;;  %v1660_v46 = vld [vmem:[%s35344_s8 + $0x2648] sm:$0x3]  ;;  %v358_v13 = vld [vmem:[%s35337_s10 + $0x398] sm:$0xff] }
 0x3ec   : > { %34079 = vmatprep.subr.bf16.mxu0 %v34078_v49  ;;  %v17881_v58 = vpop.f32.mrb[166].mxu0  ;;  %21729 = vmatprep.mubr.f32.mxu1 %v4049_v50  ;;  %v4118_v21 = vcombine.high %v358_v13, %v358_v13  ;;  %v4125_v27 = vrot.slane %v358_v13, %v35369_v25 }
 0x3ed   : > { %v17951_v59 = vpop.f32.mrb[166].mxu1  ;;  %34083 = vmatprep.subr.bf16.mxu1 %v34082_v51  ;;  %v17882_v63 = vadd.f32 %v17881_v58, %v17812_v47  ;;  %v17883_v0 = vpop.f32.mrb[167].mxu0  ;;  %v4098_v47 = vrot.slane %v4084_v37, %v35369_v25  ;;  %v894_v51 = vld [vmem:[%s35344_s8 + $0xe58] sm:$0xff]  ;;  %v34102_v58 = vpack.c.bf16 %v1660_v46, %v892_v45 }
 0x3ee   : > { %v17953_v1 = vpop.f32.mrb[167].mxu1  ;;  %v34106_v60 = vpack.c.bf16 %v1662_v52, %v894_v51  ;;  %v893_v0 = vld [vmem:[%s35344_s8 + $0xe50] sm:$0xff]  ;;  %v1670_v37 = vld [vmem:[%s35344_s8 + $0x2698] sm:$0x3] }
 0x3ef   : > { %v17952_v7 = vadd.f32 %v17951_v59, %v17882_v63  ;;  %v4100_v59 = vcombine.high %v4098_v47, %v4098_v47  ;;  %v1659_v63 = vld [vmem:[%s35344_s8 + $0x2640] sm:$0x3]  ;;  %v1661_v1 = vld [vmem:[%s35344_s8 + $0x2650] sm:$0x3] }
 0x3f0   : > { %v34108_v15 = vpack.c.bf16 %v1661_v1, %v893_v0 }
 0x3f1   : > { %21660 = vmatmul.mubr.f32.vlgmr.msra.gmra.mrb[220].mxu0 %v4040_v33  ;;  %v4082_v33 = vcombine.high %v4074_v17, %v4074_v17 }
 0x3f2   : > { %21730 = vmatmul.mubr.f32.vlgmr.msra.gmra.mrb[220].mxu1 %v4047_v38  ;;  %34081 = vmatpush1.bf16.xpose.msra.mxu0 %v34080_v5  ;;  %v887_v38 = vld [vmem:[%s35344_s8 + $0xe20] sm:$0xff]  ;;  %v896_v5 = vld [vmem:[%s35344_s8 + $0xe68] sm:$0xff] }
 0x3f3   : > { %34085 = vmatpush1.bf16.xpose.msra.mxu1 %v34084_v6  ;;  %21799 = vmatprep.mubr.f32.mxu0 %v4065_v8  ;;  %v34096_v54 = vpack.c.bf16 %v1655_v39, %v887_v38  ;;  %v1664_v6 = vld [vmem:[%s35344_s8 + $0x2668] sm:$0x3]  ;;  %v359_v38 = vld [vmem:[%s35337_s10 + $0x3a0] sm:$0xff] }
 0x3f4   : > { %34087 = vmatprep.subr.bf16.mxu0 %v34086_v9  ;;  %v18021_v18 = vpop.f32.mrb[168].mxu0  ;;  %21869 = vmatprep.mubr.f32.mxu1 %v4066_v10  ;;  %v4135_v46 = vcombine.high %v359_v38, %v359_v38  ;;  %v4142_v51 = vrot.slane %v359_v38, %v35369_v25 }
 0x3f5   : > { %v18091_v19 = vpop.f32.mrb[168].mxu1  ;;  %34091 = vmatprep.subr.bf16.mxu1 %v34090_v11  ;;  %v18022_v23 = vadd.f32 %v18021_v18, %v17952_v7  ;;  %v18023_v24 = vpop.f32.mrb[169].mxu0  ;;  %v4115_v7 = vrot.slane %v4101_v61, %v35369_v25  ;;  %v898_v11 = vld [vmem:[%s35344_s8 + $0xe78] sm:$0xff]  ;;  %v34110_v18 = vpack.c.bf16 %v1664_v6, %v896_v5 }
 0x3f6   : > { %v18093_v26 = vpop.f32.mrb[169].mxu1  ;;  %v34114_v20 = vpack.c.bf16 %v1666_v12, %v898_v11  ;;  %v897_v24 = vld [vmem:[%s35344_s8 + $0xe70] sm:$0xff]  ;;  %v1674_v61 = vld [vmem:[%s35344_s8 + $0x26b8] sm:$0x3] }
 0x3f7   : > { %v18092_v32 = vadd.f32 %v18091_v19, %v18022_v23  ;;  %v4117_v19 = vcombine.high %v4115_v7, %v4115_v7  ;;  %v1663_v23 = vld [vmem:[%s35344_s8 + $0x2660] sm:$0x3]  ;;  %v1665_v26 = vld [vmem:[%s35344_s8 + $0x2670] sm:$0x3] }
 0x3f8   : > { %v34116_v40 = vpack.c.bf16 %v1665_v26, %v897_v24 }
 0x3f9   : > { %21800 = vmatmul.mubr.f32.vlgmr.msra.gmra.mrb[222].mxu0 %v4057_v57  ;;  %v4099_v57 = vcombine.high %v4091_v42, %v4091_v42 }
 0x3fa   : > { %21870 = vmatmul.mubr.f32.vlgmr.msra.gmra.mrb[222].mxu1 %v4064_v62  ;;  %34089 = vmatpush1.bf16.xpose.msra.mxu0 %v34088_v30  ;;  %v891_v62 = vld [vmem:[%s35344_s8 + $0xe40] sm:$0xff]  ;;  %v900_v30 = vld [vmem:[%s35344_s8 + $0xe88] sm:$0xff] }
 0x3fb   : > { %34093 = vmatpush1.bf16.xpose.msra.mxu1 %v34092_v31  ;;  %21939 = vmatprep.mubr.f32.mxu0 %v4082_v33  ;;  %v34104_v14 = vpack.c.bf16 %v1659_v63, %v891_v62  ;;  %v1668_v31 = vld [vmem:[%s35344_s8 + $0x2688] sm:$0x3] }
 0x3fc   : > { %34095 = vmatprep.subr.bf16.mxu0 %v34094_v34  ;;  %v18161_v43 = vpop.f32.mrb[170].mxu0  ;;  %22009 = vmatprep.mubr.f32.mxu1 %v4083_v35  ;;  %v360_v62 = vld [vmem:[%s35337_s10 + $0x3a8] sm:$0xff] }
 0x3fd   : > { %v18231_v44 = vpop.f32.mrb[170].mxu1  ;;  %34099 = vmatprep.subr.bf16.mxu1 %v34098_v36  ;;  %v18162_v48 = vadd.f32 %v18161_v43, %v18092_v32  ;;  %v18163_v49 = vpop.f32.mrb[171].mxu0  ;;  %v4132_v32 = vrot.slane %v4118_v21, %v35369_v25  ;;  %v902_v36 = vld [vmem:[%s35344_s8 + $0xe98] sm:$0xff]  ;;  %v34118_v43 = vpack.c.bf16 %v1668_v31, %v900_v30  ;;  %v4152_v6 = vcombine.high %v360_v62, %v360_v62 }
 0x3fe   : > { %v18233_v50 = vpop.f32.mrb[171].mxu1  ;;  %v34122_v45 = vpack.c.bf16 %v1670_v37, %v902_v36  ;;  %v901_v49 = vld [vmem:[%s35344_s8 + $0xe90] sm:$0xff]  ;;  %v4159_v11 = vrot.slane %v360_v62, %v35369_v25  ;;  %v1678_v21 = vld [vmem:[%s35344_s8 + $0x26d8] sm:$0x3] }
 0x3ff   : > { %v18232_v56 = vadd.f32 %v18231_v44, %v18162_v48  ;;  %v4134_v44 = vcombine.high %v4132_v32, %v4132_v32  ;;  %v1667_v48 = vld [vmem:[%s35344_s8 + $0x2680] sm:$0x3]  ;;  %v1669_v50 = vld [vmem:[%s35344_s8 + $0x2690] sm:$0x3] }
 0x400   : > { %v34124_v0 = vpack.c.bf16 %v1669_v50, %v901_v49 }
 0x401   : > { %21940 = vmatmul.mubr.f32.vlgmr.msra.gmra.mrb[224].mxu0 %v4074_v17  ;;  %v4116_v17 = vcombine.high %v4108_v2, %v4108_v2 }
 0x402   : > { %22010 = vmatmul.mubr.f32.vlgmr.msra.gmra.mrb[224].mxu1 %v4081_v22  ;;  %34097 = vmatpush1.bf16.xpose.msra.mxu0 %v34096_v54  ;;  %v895_v22 = vld [vmem:[%s35344_s8 + $0xe60] sm:$0xff]  ;;  %v904_v54 = vld [vmem:[%s35344_s8 + $0xea8] sm:$0xff] }
 0x403   : > { %34101 = vmatpush1.bf16.xpose.msra.mxu1 %v34100_v55  ;;  %22079 = vmatprep.mubr.f32.mxu0 %v4099_v57  ;;  %v34112_v39 = vpack.c.bf16 %v1663_v23, %v895_v22  ;;  %v1672_v55 = vld [vmem:[%s35344_s8 + $0x26a8] sm:$0x3]  ;;  %v361_v22 = vld [vmem:[%s35337_s10 + $0x3b0] sm:$0xff] }
 0x404   : > { %34103 = vmatprep.subr.bf16.mxu0 %v34102_v58  ;;  %v18301_v3 = vpop.f32.mrb[172].mxu0  ;;  %22149 = vmatprep.mubr.f32.mxu1 %v4100_v59  ;;  %v4169_v31 = vcombine.high %v361_v22, %v361_v22  ;;  %v4176_v36 = vrot.slane %v361_v22, %v35369_v25 }
 0x405   : > { %v18371_v4 = vpop.f32.mrb[172].mxu1  ;;  %34107 = vmatprep.subr.bf16.mxu1 %v34106_v60  ;;  %v18302_v8 = vadd.f32 %v18301_v3, %v18232_v56  ;;  %v18303_v9 = vpop.f32.mrb[173].mxu0  ;;  %v4149_v56 = vrot.slane %v4135_v46, %v35369_v25  ;;  %v906_v60 = vld [vmem:[%s35344_s8 + $0xeb8] sm:$0xff]  ;;  %v34126_v3 = vpack.c.bf16 %v1672_v55, %v904_v54 }
 0x406   : > { %v18373_v10 = vpop.f32.mrb[173].mxu1  ;;  %v34130_v5 = vpack.c.bf16 %v1674_v61, %v906_v60  ;;  %v905_v9 = vld [vmem:[%s35344_s8 + $0xeb0] sm:$0xff]  ;;  %v1682_v46 = vld [vmem:[%s35344_s8 + $0x26f8] sm:$0x3] }
 0x407   : > { %v18372_v16 = vadd.f32 %v18371_v4, %v18302_v8  ;;  %v4151_v4 = vcombine.high %v4149_v56, %v4149_v56  ;;  %v1671_v8 = vld [vmem:[%s35344_s8 + $0x26a0] sm:$0x3]  ;;  %v1673_v10 = vld [vmem:[%s35344_s8 + $0x26b0] sm:$0x3] }
 0x408   : > { %v34132_v24 = vpack.c.bf16 %v1673_v10, %v905_v9 }
 0x409   : > { %22080 = vmatmul.mubr.f32.vlgmr.msra.gmra.mrb[226].mxu0 %v4091_v42  ;;  %v4133_v42 = vcombine.high %v4125_v27, %v4125_v27 }
 0x40a   : > { %22150 = vmatmul.mubr.f32.vlgmr.msra.gmra.mrb[226].mxu1 %v4098_v47  ;;  %34105 = vmatpush1.bf16.xpose.msra.mxu0 %v34104_v14  ;;  %v899_v47 = vld [vmem:[%s35344_s8 + $0xe80] sm:$0xff]  ;;  %v908_v14 = vld [vmem:[%s35344_s8 + $0xec8] sm:$0xff] }
 0x40b   : > { %34109 = vmatpush1.bf16.xpose.msra.mxu1 %v34108_v15  ;;  %22219 = vmatprep.mubr.f32.mxu0 %v4116_v17  ;;  %v34120_v63 = vpack.c.bf16 %v1667_v48, %v899_v47  ;;  %v1676_v15 = vld [vmem:[%s35344_s8 + $0x26c8] sm:$0x3]  ;;  %v362_v47 = vld [vmem:[%s35337_s10 + $0x3b8] sm:$0xff] }
 0x40c   : > { %34111 = vmatprep.subr.bf16.mxu0 %v34110_v18  ;;  %v18441_v28 = vpop.f32.mrb[174].mxu0  ;;  %22289 = vmatprep.mubr.f32.mxu1 %v4117_v19  ;;  %v4186_v55 = vcombine.high %v362_v47, %v362_v47  ;;  %v4193_v60 = vrot.slane %v362_v47, %v35369_v25 }
 0x40d   : > { %v18511_v29 = vpop.f32.mrb[174].mxu1  ;;  %34115 = vmatprep.subr.bf16.mxu1 %v34114_v20  ;;  %v18442_v33 = vadd.f32 %v18441_v28, %v18372_v16  ;;  %v18443_v34 = vpop.f32.mrb[175].mxu0  ;;  %v4166_v16 = vrot.slane %v4152_v6, %v35369_v25  ;;  %v910_v20 = vld [vmem:[%s35344_s8 + $0xed8] sm:$0xff]  ;;  %v34134_v28 = vpack.c.bf16 %v1676_v15, %v908_v14 }
 0x40e   : > { %v18513_v35 = vpop.f32.mrb[175].mxu1  ;;  %v34138_v30 = vpack.c.bf16 %v1678_v21, %v910_v20  ;;  %v909_v34 = vld [vmem:[%s35344_s8 + $0xed0] sm:$0xff]  ;;  %v1686_v6 = vld [vmem:[%s35344_s8 + $0x2718] sm:$0x3] }
 0x40f   : > { %v18512_v41 = vadd.f32 %v18511_v29, %v18442_v33  ;;  %v4168_v29 = vcombine.high %v4166_v16, %v4166_v16  ;;  %v1675_v33 = vld [vmem:[%s35344_s8 + $0x26c0] sm:$0x3]  ;;  %v1677_v35 = vld [vmem:[%s35344_s8 + $0x26d0] sm:$0x3] }
 0x410   : > { %v34140_v49 = vpack.c.bf16 %v1677_v35, %v909_v34 }
 0x411   : > { %22220 = vmatmul.mubr.f32.vlgmr.msra.gmra.mrb[228].mxu0 %v4108_v2  ;;  %v4150_v2 = vcombine.high %v4142_v51, %v4142_v51 }
 0x412   : > { %22290 = vmatmul.mubr.f32.vlgmr.msra.gmra.mrb[228].mxu1 %v4115_v7  ;;  %34113 = vmatpush1.bf16.xpose.msra.mxu0 %v34112_v39  ;;  %v903_v7 = vld [vmem:[%s35344_s8 + $0xea0] sm:$0xff]  ;;  %v912_v39 = vld [vmem:[%s35344_s8 + $0xee8] sm:$0xff] }
 0x413   : > { %34117 = vmatpush1.bf16.xpose.msra.mxu1 %v34116_v40  ;;  %22359 = vmatprep.mubr.f32.mxu0 %v4133_v42  ;;  %v34128_v23 = vpack.c.bf16 %v1671_v8, %v903_v7  ;;  %v1680_v40 = vld [vmem:[%s35344_s8 + $0x26e8] sm:$0x3]  ;;  %v363_v7 = vld [vmem:[%s35337_s10 + $0x3c0] sm:$0xff] }
 0x414   : > { %34119 = vmatprep.subr.bf16.mxu0 %v34118_v43  ;;  %v18581_v52 = vpop.f32.mrb[176].mxu0  ;;  %22429 = vmatprep.mubr.f32.mxu1 %v4134_v44  ;;  %v4203_v15 = vcombine.high %v363_v7, %v363_v7  ;;  %v4210_v20 = vrot.slane %v363_v7, %v35369_v25 }
 0x415   : > { %v18651_v53 = vpop.f32.mrb[176].mxu1  ;;  %34123 = vmatprep.subr.bf16.mxu1 %v34122_v45  ;;  %v18582_v57 = vadd.f32 %v18581_v52, %v18512_v41  ;;  %v18583_v58 = vpop.f32.mrb[177].mxu0  ;;  %v4183_v41 = vrot.slane %v4169_v31, %v35369_v25  ;;  %v914_v45 = vld [vmem:[%s35344_s8 + $0xef8] sm:$0xff]  ;;  %v34142_v52 = vpack.c.bf16 %v1680_v40, %v912_v39 }
 0x416   : > { %v18653_v59 = vpop.f32.mrb[177].mxu1  ;;  %v34146_v54 = vpack.c.bf16 %v1682_v46, %v914_v45  ;;  %v913_v58 = vld [vmem:[%s35344_s8 + $0xef0] sm:$0xff]  ;;  %v1690_v31 = vld [vmem:[%s35344_s8 + $0x2738] sm:$0x3] }
 0x417   : > { %v18652_v1 = vadd.f32 %v18651_v53, %v18582_v57  ;;  %v4185_v53 = vcombine.high %v4183_v41, %v4183_v41  ;;  %v1679_v57 = vld [vmem:[%s35344_s8 + $0x26e0] sm:$0x3]  ;;  %v1681_v59 = vld [vmem:[%s35344_s8 + $0x26f0] sm:$0x3] }
 0x418   : > { %v34148_v9 = vpack.c.bf16 %v1681_v59, %v913_v58 }
 0x419   : > { %22360 = vmatmul.mubr.f32.vlgmr.msra.gmra.mrb[230].mxu0 %v4125_v27  ;;  %v4167_v27 = vcombine.high %v4159_v11, %v4159_v11 }
 0x41a   : > { %22430 = vmatmul.mubr.f32.vlgmr.msra.gmra.mrb[230].mxu1 %v4132_v32  ;;  %34121 = vmatpush1.bf16.xpose.msra.mxu0 %v34120_v63  ;;  %v907_v32 = vld [vmem:[%s35344_s8 + $0xec0] sm:$0xff]  ;;  %v916_v63 = vld [vmem:[%s35344_s8 + $0xf08] sm:$0xff] }
 0x41b   : > { %34125 = vmatpush1.bf16.xpose.msra.mxu1 %v34124_v0  ;;  %22499 = vmatprep.mubr.f32.mxu0 %v4150_v2  ;;  %v34136_v48 = vpack.c.bf16 %v1675_v33, %v907_v32  ;;  %v1684_v0 = vld [vmem:[%s35344_s8 + $0x2708] sm:$0x3] }
 0x41c   : > { %34127 = vmatprep.subr.bf16.mxu0 %v34126_v3  ;;  %v18721_v12 = vpop.f32.mrb[178].mxu0  ;;  %22569 = vmatprep.mubr.f32.mxu1 %v4151_v4  ;;  %v364_v32 = vld [vmem:[%s35337_s10 + $0x3c8] sm:$0xff] }
 0x41d   : > { %v18791_v13 = vpop.f32.mrb[178].mxu1  ;;  %34131 = vmatprep.subr.bf16.mxu1 %v34130_v5  ;;  %v18722_v17 = vadd.f32 %v18721_v12, %v18652_v1  ;;  %v18723_v18 = vpop.f32.mrb[179].mxu0  ;;  %v4200_v1 = vrot.slane %v4186_v55, %v35369_v25  ;;  %v918_v5 = vld [vmem:[%s35344_s8 + $0xf18] sm:$0xff]  ;;  %v34150_v12 = vpack.c.bf16 %v1684_v0, %v916_v63  ;;  %v4220_v40 = vcombine.high %v364_v32, %v364_v32 }
 0x41e   : > { %v18793_v19 = vpop.f32.mrb[179].mxu1  ;;  %v34154_v14 = vpack.c.bf16 %v1686_v6, %v918_v5  ;;  %v917_v18 = vld [vmem:[%s35344_s8 + $0xf10] sm:$0xff]  ;;  %v4227_v45 = vrot.slane %v364_v32, %v35369_v25  ;;  %v1694_v55 = vld [vmem:[%s35344_s8 + $0x2758] sm:$0x3] }
 0x41f   : > { %v18792_v26 = vadd.f32 %v18791_v13, %v18722_v17  ;;  %v4202_v13 = vcombine.high %v4200_v1, %v4200_v1  ;;  %v1683_v17 = vld [vmem:[%s35344_s8 + $0x2700] sm:$0x3]  ;;  %v1685_v19 = vld [vmem:[%s35344_s8 + $0x2710] sm:$0x3] }
 0x420   : > { %v34156_v34 = vpack.c.bf16 %v1685_v19, %v917_v18 }
 0x421   : > { %22500 = vmatmul.mubr.f32.vlgmr.msra.gmra.mrb[232].mxu0 %v4142_v51  ;;  %v4184_v51 = vcombine.high %v4176_v36, %v4176_v36 }
 0x422   : > { %22570 = vmatmul.mubr.f32.vlgmr.msra.gmra.mrb[232].mxu1 %v4149_v56  ;;  %34129 = vmatpush1.bf16.xpose.msra.mxu0 %v34128_v23  ;;  %v911_v56 = vld [vmem:[%s35344_s8 + $0xee0] sm:$0xff]  ;;  %v920_v23 = vld [vmem:[%s35344_s8 + $0xf28] sm:$0xff] }
 0x423   : > { %34133 = vmatpush1.bf16.xpose.msra.mxu1 %v34132_v24  ;;  %22639 = vmatprep.mubr.f32.mxu0 %v4167_v27  ;;  %v34144_v8 = vpack.c.bf16 %v1679_v57, %v911_v56  ;;  %v1688_v24 = vld [vmem:[%s35344_s8 + $0x2728] sm:$0x3]  ;;  %v365_v56 = vld [vmem:[%s35337_s10 + $0x3d0] sm:$0xff] }
 0x424   : > { %34135 = vmatprep.subr.bf16.mxu0 %v34134_v28  ;;  %v18861_v37 = vpop.f32.mrb[180].mxu0  ;;  %22709 = vmatprep.mubr.f32.mxu1 %v4168_v29  ;;  %v4237_v0 = vcombine.high %v365_v56, %v365_v56  ;;  %v4244_v5 = vrot.slane %v365_v56, %v35369_v25 }
 0x425   : > { %v18931_v38 = vpop.f32.mrb[180].mxu1  ;;  %34139 = vmatprep.subr.bf16.mxu1 %v34138_v30  ;;  %v18862_v42 = vadd.f32 %v18861_v37, %v18792_v26  ;;  %v18863_v43 = vpop.f32.mrb[181].mxu0  ;;  %v4217_v26 = vrot.slane %v4203_v15, %v35369_v25  ;;  %v922_v30 = vld [vmem:[%s35344_s8 + $0xf38] sm:$0xff]  ;;  %v34158_v37 = vpack.c.bf16 %v1688_v24, %v920_v23 }
 0x426   : > { %v18933_v44 = vpop.f32.mrb[181].mxu1  ;;  %v34162_v39 = vpack.c.bf16 %v1690_v31, %v922_v30  ;;  %v921_v43 = vld [vmem:[%s35344_s8 + $0xf30] sm:$0xff]  ;;  %v1698_v15 = vld [vmem:[%s35344_s8 + $0x2778] sm:$0x3] }
 0x427   : > { %v18932_v50 = vadd.f32 %v18931_v38, %v18862_v42  ;;  %v4219_v38 = vcombine.high %v4217_v26, %v4217_v26  ;;  %v1687_v42 = vld [vmem:[%s35344_s8 + $0x2720] sm:$0x3]  ;;  %v1689_v44 = vld [vmem:[%s35344_s8 + $0x2730] sm:$0x3] }
 0x428   : > { %v34164_v58 = vpack.c.bf16 %v1689_v44, %v921_v43 }
 0x429   : > { %22640 = vmatmul.mubr.f32.vlgmr.msra.gmra.mrb[234].mxu0 %v4159_v11  ;;  %v4201_v11 = vcombine.high %v4193_v60, %v4193_v60 }
 0x42a   : > { %22710 = vmatmul.mubr.f32.vlgmr.msra.gmra.mrb[234].mxu1 %v4166_v16  ;;  %34137 = vmatpush1.bf16.xpose.msra.mxu0 %v34136_v48  ;;  %v915_v16 = vld [vmem:[%s35344_s8 + $0xf00] sm:$0xff]  ;;  %v924_v48 = vld [vmem:[%s35344_s8 + $0xf48] sm:$0xff] }
 0x42b   : > { %34141 = vmatpush1.bf16.xpose.msra.mxu1 %v34140_v49  ;;  %22779 = vmatprep.mubr.f32.mxu0 %v4184_v51  ;;  %v34152_v33 = vpack.c.bf16 %v1683_v17, %v915_v16  ;;  %v1692_v49 = vld [vmem:[%s35344_s8 + $0x2748] sm:$0x3]  ;;  %v366_v16 = vld [vmem:[%s35337_s10 + $0x3d8] sm:$0xff] }
 0x42c   : > { %34143 = vmatprep.subr.bf16.mxu0 %v34142_v52  ;;  %v19001_v61 = vpop.f32.mrb[182].mxu0  ;;  %22849 = vmatprep.mubr.f32.mxu1 %v4185_v53  ;;  %v4254_v24 = vcombine.high %v366_v16, %v366_v16  ;;  %v4261_v30 = vrot.slane %v366_v16, %v35369_v25 }
 0x42d   : > { %v19071_v62 = vpop.f32.mrb[182].mxu1  ;;  %34147 = vmatprep.subr.bf16.mxu1 %v34146_v54  ;;  %v19002_v2 = vadd.f32 %v19001_v61, %v18932_v50  ;;  %v19003_v3 = vpop.f32.mrb[183].mxu0  ;;  %v4234_v50 = vrot.slane %v4220_v40, %v35369_v25  ;;  %v926_v54 = vld [vmem:[%s35344_s8 + $0xf58] sm:$0xff]  ;;  %v34166_v61 = vpack.c.bf16 %v1692_v49, %v924_v48 }
 0x42e   : > { %v19073_v4 = vpop.f32.mrb[183].mxu1  ;;  %v34170_v63 = vpack.c.bf16 %v1694_v55, %v926_v54  ;;  %v925_v3 = vld [vmem:[%s35344_s8 + $0xf50] sm:$0xff]  ;;  %v1702_v40 = vld [vmem:[%s35344_s8 + $0x2798] sm:$0x3] }
 0x42f   : > { %v19072_v10 = vadd.f32 %v19071_v62, %v19002_v2  ;;  %v4236_v62 = vcombine.high %v4234_v50, %v4234_v50  ;;  %v1691_v2 = vld [vmem:[%s35344_s8 + $0x2740] sm:$0x3]  ;;  %v1693_v4 = vld [vmem:[%s35344_s8 + $0x2750] sm:$0x3] }
 0x430   : > { %v34172_v18 = vpack.c.bf16 %v1693_v4, %v925_v3 }
 0x431   : > { %22780 = vmatmul.mubr.f32.vlgmr.msra.gmra.mrb[236].mxu0 %v4176_v36  ;;  %v4218_v36 = vcombine.high %v4210_v20, %v4210_v20 }
 0x432   : > { %22850 = vmatmul.mubr.f32.vlgmr.msra.gmra.mrb[236].mxu1 %v4183_v41  ;;  %34145 = vmatpush1.bf16.xpose.msra.mxu0 %v34144_v8  ;;  %v919_v41 = vld [vmem:[%s35344_s8 + $0xf20] sm:$0xff]  ;;  %v928_v8 = vld [vmem:[%s35344_s8 + $0xf68] sm:$0xff] }
 0x433   : > { %34149 = vmatpush1.bf16.xpose.msra.mxu1 %v34148_v9  ;;  %22919 = vmatprep.mubr.f32.mxu0 %v4201_v11  ;;  %v34160_v57 = vpack.c.bf16 %v1687_v42, %v919_v41  ;;  %v1696_v9 = vld [vmem:[%s35344_s8 + $0x2768] sm:$0x3]  ;;  %v367_v41 = vld [vmem:[%s35337_s10 + $0x3e0] sm:$0xff] }
 0x434   : > { %34151 = vmatprep.subr.bf16.mxu0 %v34150_v12  ;;  %v19141_v21 = vpop.f32.mrb[184].mxu0  ;;  %22989 = vmatprep.mubr.f32.mxu1 %v4202_v13  ;;  %v4271_v49 = vcombine.high %v367_v41, %v367_v41  ;;  %v4278_v54 = vrot.slane %v367_v41, %v35369_v25 }
 0x435   : > { %v19211_v22 = vpop.f32.mrb[184].mxu1  ;;  %34155 = vmatprep.subr.bf16.mxu1 %v34154_v14  ;;  %v19142_v27 = vadd.f32 %v19141_v21, %v19072_v10  ;;  %v19143_v28 = vpop.f32.mrb[185].mxu0  ;;  %v4251_v10 = vrot.slane %v4237_v0, %v35369_v25  ;;  %v930_v14 = vld [vmem:[%s35344_s8 + $0xf78] sm:$0xff]  ;;  %v34174_v21 = vpack.c.bf16 %v1696_v9, %v928_v8 }
 0x436   : > { %v19213_v29 = vpop.f32.mrb[185].mxu1  ;;  %v34178_v23 = vpack.c.bf16 %v1698_v15, %v930_v14  ;;  %v929_v28 = vld [vmem:[%s35344_s8 + $0xf70] sm:$0xff]  ;;  %v1706_v0 = vld [vmem:[%s35344_s8 + $0x27b8] sm:$0x3] }
 0x437   : > { %v19212_v35 = vadd.f32 %v19211_v22, %v19142_v27  ;;  %v4253_v22 = vcombine.high %v4251_v10, %v4251_v10  ;;  %v1695_v27 = vld [vmem:[%s35344_s8 + $0x2760] sm:$0x3]  ;;  %v1697_v29 = vld [vmem:[%s35344_s8 + $0x2770] sm:$0x3] }
 0x438   : > { %v34180_v43 = vpack.c.bf16 %v1697_v29, %v929_v28 }
 0x439   : > { %22920 = vmatmul.mubr.f32.vlgmr.msra.gmra.mrb[238].mxu0 %v4193_v60  ;;  %v4235_v60 = vcombine.high %v4227_v45, %v4227_v45 }
 0x43a   : > { %22990 = vmatmul.mubr.f32.vlgmr.msra.gmra.mrb[238].mxu1 %v4200_v1  ;;  %34153 = vmatpush1.bf16.xpose.msra.mxu0 %v34152_v33  ;;  %v923_v1 = vld [vmem:[%s35344_s8 + $0xf40] sm:$0xff]  ;;  %v932_v33 = vld [vmem:[%s35344_s8 + $0xf88] sm:$0xff] }
 0x43b   : > { %34157 = vmatpush1.bf16.xpose.msra.mxu1 %v34156_v34  ;;  %23059 = vmatprep.mubr.f32.mxu0 %v4218_v36  ;;  %v34168_v17 = vpack.c.bf16 %v1691_v2, %v923_v1  ;;  %v1700_v34 = vld [vmem:[%s35344_s8 + $0x2788] sm:$0x3] }
 0x43c   : > { %34159 = vmatprep.subr.bf16.mxu0 %v34158_v37  ;;  %v19281_v46 = vpop.f32.mrb[186].mxu0  ;;  %23129 = vmatprep.mubr.f32.mxu1 %v4219_v38  ;;  %v368_v1 = vld [vmem:[%s35337_s10 + $0x3e8] sm:$0xff] }
 0x43d   : > { %v19351_v47 = vpop.f32.mrb[186].mxu1  ;;  %34163 = vmatprep.subr.bf16.mxu1 %v34162_v39  ;;  %v19282_v51 = vadd.f32 %v19281_v46, %v19212_v35  ;;  %v19283_v52 = vpop.f32.mrb[187].mxu0  ;;  %v4268_v35 = vrot.slane %v4254_v24, %v35369_v25  ;;  %v934_v39 = vld [vmem:[%s35344_s8 + $0xf98] sm:$0xff]  ;;  %v34182_v46 = vpack.c.bf16 %v1700_v34, %v932_v33  ;;  %v4288_v9 = vcombine.high %v368_v1, %v368_v1 }
 0x43e   : > { %v19353_v53 = vpop.f32.mrb[187].mxu1  ;;  %v34186_v48 = vpack.c.bf16 %v1702_v40, %v934_v39  ;;  %v933_v52 = vld [vmem:[%s35344_s8 + $0xf90] sm:$0xff]  ;;  %v4295_v14 = vrot.slane %v368_v1, %v35369_v25  ;;  %v1710_v24 = vld [vmem:[%s35344_s8 + $0x27d8] sm:$0x3] }
 0x43f   : > { %v19352_v59 = vadd.f32 %v19351_v47, %v19282_v51  ;;  %v4270_v47 = vcombine.high %v4268_v35, %v4268_v35  ;;  %v1699_v51 = vld [vmem:[%s35344_s8 + $0x2780] sm:$0x3]  ;;  %v1701_v53 = vld [vmem:[%s35344_s8 + $0x2790] sm:$0x3] }
 0x440   : > { %v34188_v3 = vpack.c.bf16 %v1701_v53, %v933_v52 }
 0x441   : > { %23060 = vmatmul.mubr.f32.vlgmr.msra.gmra.mrb[240].mxu0 %v4210_v20  ;;  %v4252_v20 = vcombine.high %v4244_v5, %v4244_v5 }
 0x442   : > { %23130 = vmatmul.mubr.f32.vlgmr.msra.gmra.mrb[240].mxu1 %v4217_v26  ;;  %34161 = vmatpush1.bf16.xpose.msra.mxu0 %v34160_v57  ;;  %v927_v26 = vld [vmem:[%s35344_s8 + $0xf60] sm:$0xff]  ;;  %v936_v57 = vld [vmem:[%s35344_s8 + $0xfa8] sm:$0xff] }
 0x443   : > { %34165 = vmatpush1.bf16.xpose.msra.mxu1 %v34164_v58  ;;  %23199 = vmatprep.mubr.f32.mxu0 %v4235_v60  ;;  %v34176_v42 = vpack.c.bf16 %v1695_v27, %v927_v26  ;;  %v1704_v58 = vld [vmem:[%s35344_s8 + $0x27a8] sm:$0x3]  ;;  %v369_v26 = vld [vmem:[%s35337_s10 + $0x3f0] sm:$0xff] }
 0x444   : > { %34167 = vmatprep.subr.bf16.mxu0 %v34166_v61  ;;  %v19421_v6 = vpop.f32.mrb[188].mxu0  ;;  %23269 = vmatprep.mubr.f32.mxu1 %v4236_v62  ;;  %v4305_v34 = vcombine.high %v369_v26, %v369_v26  ;;  %v4312_v39 = vrot.slane %v369_v26, %v35369_v25 }
 0x445   : > { %v19491_v7 = vpop.f32.mrb[188].mxu1  ;;  %34171 = vmatprep.subr.bf16.mxu1 %v34170_v63  ;;  %v19422_v11 = vadd.f32 %v19421_v6, %v19352_v59  ;;  %v19423_v12 = vpop.f32.mrb[189].mxu0  ;;  %v4285_v59 = vrot.slane %v4271_v49, %v35369_v25  ;;  %v938_v63 = vld [vmem:[%s35344_s8 + $0xfb8] sm:$0xff]  ;;  %v34190_v6 = vpack.c.bf16 %v1704_v58, %v936_v57 }
 0x446   : > { %v19493_v13 = vpop.f32.mrb[189].mxu1  ;;  %v34194_v8 = vpack.c.bf16 %v1706_v0, %v938_v63  ;;  %v937_v12 = vld [vmem:[%s35344_s8 + $0xfb0] sm:$0xff]  ;;  %v1714_v49 = vld [vmem:[%s35344_s8 + $0x27f8] sm:$0x3] }
 0x447   : > { %v19492_v19 = vadd.f32 %v19491_v7, %v19422_v11  ;;  %v4287_v7 = vcombine.high %v4285_v59, %v4285_v59  ;;  %v1703_v11 = vld [vmem:[%s35344_s8 + $0x27a0] sm:$0x3]  ;;  %v1705_v13 = vld [vmem:[%s35344_s8 + $0x27b0] sm:$0x3] }
 0x448   : > { %v34196_v28 = vpack.c.bf16 %v1705_v13, %v937_v12 }
 0x449   : > { %23200 = vmatmul.mubr.f32.vlgmr.msra.gmra.mrb[242].mxu0 %v4227_v45  ;;  %v4269_v45 = vcombine.high %v4261_v30, %v4261_v30 }
 0x44a   : > { %23270 = vmatmul.mubr.f32.vlgmr.msra.gmra.mrb[242].mxu1 %v4234_v50  ;;  %34169 = vmatpush1.bf16.xpose.msra.mxu0 %v34168_v17  ;;  %v931_v50 = vld [vmem:[%s35344_s8 + $0xf80] sm:$0xff]  ;;  %v940_v17 = vld [vmem:[%s35344_s8 + $0xfc8] sm:$0xff] }
 0x44b   : > { %34173 = vmatpush1.bf16.xpose.msra.mxu1 %v34172_v18  ;;  %23339 = vmatprep.mubr.f32.mxu0 %v4252_v20  ;;  %v34184_v2 = vpack.c.bf16 %v1699_v51, %v931_v50  ;;  %v1708_v18 = vld [vmem:[%s35344_s8 + $0x27c8] sm:$0x3]  ;;  %v370_v50 = vld [vmem:[%s35337_s10 + $0x3f8] sm:$0xff] }
 0x44c   : > { %34175 = vmatprep.subr.bf16.mxu0 %v34174_v21  ;;  %v19561_v31 = vpop.f32.mrb[190].mxu0  ;;  %23409 = vmatprep.mubr.f32.mxu1 %v4253_v22  ;;  %v4322_v58 = vcombine.high %v370_v50, %v370_v50  ;;  %v4329_v63 = vrot.slane %v370_v50, %v35369_v25 }
 0x44d   : > { %v19631_v32 = vpop.f32.mrb[190].mxu1  ;;  %34179 = vmatprep.subr.bf16.mxu1 %v34178_v23  ;;  %v19562_v36 = vadd.f32 %v19561_v31, %v19492_v19  ;;  %v19563_v37 = vpop.f32.mrb[191].mxu0  ;;  %v4302_v19 = vrot.slane %v4288_v9, %v35369_v25  ;;  %v942_v23 = vld [vmem:[%s35344_s8 + $0xfd8] sm:$0xff]  ;;  %v34198_v31 = vpack.c.bf16 %v1708_v18, %v940_v17 }
 0x44e   : > { %v19633_v38 = vpop.f32.mrb[191].mxu1  ;;  %v34202_v33 = vpack.c.bf16 %v1710_v24, %v942_v23  ;;  %v941_v37 = vld [vmem:[%s35344_s8 + $0xfd0] sm:$0xff]  ;;  %v1718_v9 = vld [vmem:[%s35344_s8 + $0x2818] sm:$0x3] }
 0x44f   : > { %v19632_v44 = vadd.f32 %v19631_v32, %v19562_v36  ;;  %v4304_v32 = vcombine.high %v4302_v19, %v4302_v19  ;;  %v1707_v36 = vld [vmem:[%s35344_s8 + $0x27c0] sm:$0x3]  ;;  %v1709_v38 = vld [vmem:[%s35344_s8 + $0x27d0] sm:$0x3] }
 0x450   : > { %v34204_v52 = vpack.c.bf16 %v1709_v38, %v941_v37 }
 0x451   : > { %23340 = vmatmul.mubr.f32.vlgmr.msra.gmra.mrb[244].mxu0 %v4244_v5  ;;  %v4286_v5 = vcombine.high %v4278_v54, %v4278_v54 }
 0x452   : > { %23410 = vmatmul.mubr.f32.vlgmr.msra.gmra.mrb[244].mxu1 %v4251_v10  ;;  %34177 = vmatpush1.bf16.xpose.msra.mxu0 %v34176_v42  ;;  %v935_v10 = vld [vmem:[%s35344_s8 + $0xfa0] sm:$0xff]  ;;  %v944_v42 = vld [vmem:[%s35344_s8 + $0xfe8] sm:$0xff] }
 0x453   : > { %34181 = vmatpush1.bf16.xpose.msra.mxu1 %v34180_v43  ;;  %23479 = vmatprep.mubr.f32.mxu0 %v4269_v45  ;;  %v34192_v27 = vpack.c.bf16 %v1703_v11, %v935_v10  ;;  %v1712_v43 = vld [vmem:[%s35344_s8 + $0x27e8] sm:$0x3]  ;;  %v371_v10 = vld [vmem:[%s35337_s10 + $0x400] sm:$0xff] }
 0x454   : > { %34183 = vmatprep.subr.bf16.mxu0 %v34182_v46  ;;  %v19701_v55 = vpop.f32.mrb[192].mxu0  ;;  %23549 = vmatprep.mubr.f32.mxu1 %v4270_v47  ;;  %v4339_v18 = vcombine.high %v371_v10, %v371_v10  ;;  %v4346_v23 = vrot.slane %v371_v10, %v35369_v25 }
 0x455   : > { %v19771_v56 = vpop.f32.mrb[192].mxu1  ;;  %34187 = vmatprep.subr.bf16.mxu1 %v34186_v48  ;;  %v19702_v60 = vadd.f32 %v19701_v55, %v19632_v44  ;;  %v19703_v61 = vpop.f32.mrb[193].mxu0  ;;  %v4319_v44 = vrot.slane %v4305_v34, %v35369_v25  ;;  %v946_v48 = vld [vmem:[%s35344_s8 + $0xff8] sm:$0xff]  ;;  %v34206_v55 = vpack.c.bf16 %v1712_v43, %v944_v42 }
 0x456   : > { %v19773_v62 = vpop.f32.mrb[193].mxu1  ;;  %v34210_v57 = vpack.c.bf16 %v1714_v49, %v946_v48  ;;  %v945_v61 = vld [vmem:[%s35344_s8 + $0xff0] sm:$0xff]  ;;  %v1722_v34 = vld [vmem:[%s35344_s8 + $0x2838] sm:$0x3] }
 0x457   : > { %v19772_v4 = vadd.f32 %v19771_v56, %v19702_v60  ;;  %v4321_v56 = vcombine.high %v4319_v44, %v4319_v44  ;;  %v1711_v60 = vld [vmem:[%s35344_s8 + $0x27e0] sm:$0x3]  ;;  %v1713_v62 = vld [vmem:[%s35344_s8 + $0x27f0] sm:$0x3] }
 0x458   : > { %v34212_v12 = vpack.c.bf16 %v1713_v62, %v945_v61 }
 0x459   : > { %23480 = vmatmul.mubr.f32.vlgmr.msra.gmra.mrb[246].mxu0 %v4261_v30  ;;  %v4303_v30 = vcombine.high %v4295_v14, %v4295_v14 }
 0x45a   : > { %23550 = vmatmul.mubr.f32.vlgmr.msra.gmra.mrb[246].mxu1 %v4268_v35  ;;  %34185 = vmatpush1.bf16.xpose.msra.mxu0 %v34184_v2  ;;  %v939_v35 = vld [vmem:[%s35344_s8 + $0xfc0] sm:$0xff]  ;;  %v948_v2 = vld [vmem:[%s35344_s8 + $0x1008] sm:$0xff] }
 0x45b   : > { %34189 = vmatpush1.bf16.xpose.msra.mxu1 %v34188_v3  ;;  %23619 = vmatprep.mubr.f32.mxu0 %v4286_v5  ;;  %v34200_v51 = vpack.c.bf16 %v1707_v36, %v939_v35  ;;  %v1716_v3 = vld [vmem:[%s35344_s8 + $0x2808] sm:$0x3] }
 0x45c   : > { %34191 = vmatprep.subr.bf16.mxu0 %v34190_v6  ;;  %v19841_v15 = vpop.f32.mrb[194].mxu0  ;;  %23689 = vmatprep.mubr.f32.mxu1 %v4287_v7  ;;  %v372_v35 = vld [vmem:[%s35337_s10 + $0x408] sm:$0xff] }
 0x45d   : > { %v19911_v16 = vpop.f32.mrb[194].mxu1  ;;  %34195 = vmatprep.subr.bf16.mxu1 %v34194_v8  ;;  %v19842_v20 = vadd.f32 %v19841_v15, %v19772_v4  ;;  %v19843_v21 = vpop.f32.mrb[195].mxu0  ;;  %v4336_v4 = vrot.slane %v4322_v58, %v35369_v25  ;;  %v950_v8 = vld [vmem:[%s35344_s8 + $0x1018] sm:$0xff]  ;;  %v34214_v15 = vpack.c.bf16 %v1716_v3, %v948_v2  ;;  %v4356_v43 = vcombine.high %v372_v35, %v372_v35 }
 0x45e   : > { %v19913_v22 = vpop.f32.mrb[195].mxu1  ;;  %v34218_v17 = vpack.c.bf16 %v1718_v9, %v950_v8  ;;  %v949_v21 = vld [vmem:[%s35344_s8 + $0x1010] sm:$0xff]  ;;  %v4363_v48 = vrot.slane %v372_v35, %v35369_v25  ;;  %v1726_v58 = vld [vmem:[%s35344_s8 + $0x2858] sm:$0x3] }
 0x45f   : > { %v19912_v29 = vadd.f32 %v19911_v16, %v19842_v20  ;;  %v4338_v16 = vcombine.high %v4336_v4, %v4336_v4  ;;  %v1715_v20 = vld [vmem:[%s35344_s8 + $0x2800] sm:$0x3]  ;;  %v1717_v22 = vld [vmem:[%s35344_s8 + $0x2810] sm:$0x3] }
 0x460   : > { %v34220_v37 = vpack.c.bf16 %v1717_v22, %v949_v21 }
 0x461   : > { %23620 = vmatmul.mubr.f32.vlgmr.msra.gmra.mrb[248].mxu0 %v4278_v54  ;;  %v4320_v54 = vcombine.high %v4312_v39, %v4312_v39 }
 0x462   : > { %23690 = vmatmul.mubr.f32.vlgmr.msra.gmra.mrb[248].mxu1 %v4285_v59  ;;  %34193 = vmatpush1.bf16.xpose.msra.mxu0 %v34192_v27  ;;  %v943_v59 = vld [vmem:[%s35344_s8 + $0xfe0] sm:$0xff]  ;;  %v952_v27 = vld [vmem:[%s35344_s8 + $0x1028] sm:$0xff] }
 0x463   : > { %34197 = vmatpush1.bf16.xpose.msra.mxu1 %v34196_v28  ;;  %23759 = vmatprep.mubr.f32.mxu0 %v4303_v30  ;;  %v34208_v11 = vpack.c.bf16 %v1711_v60, %v943_v59  ;;  %v1720_v28 = vld [vmem:[%s35344_s8 + $0x2828] sm:$0x3]  ;;  %v373_v59 = vld [vmem:[%s35337_s10 + $0x410] sm:$0xff] }
 0x464   : > { %34199 = vmatprep.subr.bf16.mxu0 %v34198_v31  ;;  %v19981_v40 = vpop.f32.mrb[196].mxu0  ;;  %23829 = vmatprep.mubr.f32.mxu1 %v4304_v32  ;;  %v4373_v3 = vcombine.high %v373_v59, %v373_v59  ;;  %v4380_v8 = vrot.slane %v373_v59, %v35369_v25 }
 0x465   : > { %v20051_v41 = vpop.f32.mrb[196].mxu1  ;;  %34203 = vmatprep.subr.bf16.mxu1 %v34202_v33  ;;  %v19982_v45 = vadd.f32 %v19981_v40, %v19912_v29  ;;  %v19983_v46 = vpop.f32.mrb[197].mxu0  ;;  %v4353_v29 = vrot.slane %v4339_v18, %v35369_v25  ;;  %v954_v33 = vld [vmem:[%s35344_s8 + $0x1038] sm:$0xff]  ;;  %v34222_v40 = vpack.c.bf16 %v1720_v28, %v952_v27 }
 0x466   : > { %v20053_v47 = vpop.f32.mrb[197].mxu1  ;;  %v34226_v42 = vpack.c.bf16 %v1722_v34, %v954_v33  ;;  %v953_v46 = vld [vmem:[%s35344_s8 + $0x1030] sm:$0xff]  ;;  %v1730_v18 = vld [vmem:[%s35344_s8 + $0x2878] sm:$0x3] }
 0x467   : > { %v20052_v53 = vadd.f32 %v20051_v41, %v19982_v45  ;;  %v4355_v41 = vcombine.high %v4353_v29, %v4353_v29  ;;  %v1719_v45 = vld [vmem:[%s35344_s8 + $0x2820] sm:$0x3]  ;;  %v1721_v47 = vld [vmem:[%s35344_s8 + $0x2830] sm:$0x3] }
 0x468   : > { %v34228_v61 = vpack.c.bf16 %v1721_v47, %v953_v46 }
 0x469   : > { %23760 = vmatmul.mubr.f32.vlgmr.msra.gmra.mrb[250].mxu0 %v4295_v14  ;;  %v4337_v14 = vcombine.high %v4329_v63, %v4329_v63 }
 0x46a   : > { %23830 = vmatmul.mubr.f32.vlgmr.msra.gmra.mrb[250].mxu1 %v4302_v19  ;;  %34201 = vmatpush1.bf16.xpose.msra.mxu0 %v34200_v51  ;;  %v947_v19 = vld [vmem:[%s35344_s8 + $0x1000] sm:$0xff]  ;;  %v956_v51 = vld [vmem:[%s35344_s8 + $0x1048] sm:$0xff] }
 0x46b   : > { %34205 = vmatpush1.bf16.xpose.msra.mxu1 %v34204_v52  ;;  %23899 = vmatprep.mubr.f32.mxu0 %v4320_v54  ;;  %v34216_v36 = vpack.c.bf16 %v1715_v20, %v947_v19  ;;  %v1724_v52 = vld [vmem:[%s35344_s8 + $0x2848] sm:$0x3]  ;;  %v374_v19 = vld [vmem:[%s35337_s10 + $0x418] sm:$0xff] }
 0x46c   : > { %34207 = vmatprep.subr.bf16.mxu0 %v34206_v55  ;;  %v20121_v0 = vpop.f32.mrb[198].mxu0  ;;  %23969 = vmatprep.mubr.f32.mxu1 %v4321_v56  ;;  %v4390_v28 = vcombine.high %v374_v19, %v374_v19  ;;  %v4397_v33 = vrot.slane %v374_v19, %v35369_v25 }
 0x46d   : > { %v20191_v1 = vpop.f32.mrb[198].mxu1  ;;  %34211 = vmatprep.subr.bf16.mxu1 %v34210_v57  ;;  %v20122_v5 = vadd.f32 %v20121_v0, %v20052_v53  ;;  %v20123_v6 = vpop.f32.mrb[199].mxu0  ;;  %v4370_v53 = vrot.slane %v4356_v43, %v35369_v25  ;;  %v958_v57 = vld [vmem:[%s35344_s8 + $0x1058] sm:$0xff]  ;;  %v34230_v0 = vpack.c.bf16 %v1724_v52, %v956_v51 }
 0x46e   : > { %v20193_v7 = vpop.f32.mrb[199].mxu1  ;;  %v34234_v2 = vpack.c.bf16 %v1726_v58, %v958_v57  ;;  %v957_v6 = vld [vmem:[%s35344_s8 + $0x1050] sm:$0xff]  ;;  %v1734_v43 = vld [vmem:[%s35344_s8 + $0x2898] sm:$0x3] }
 0x46f   : > { %v20192_v13 = vadd.f32 %v20191_v1, %v20122_v5  ;;  %v4372_v1 = vcombine.high %v4370_v53, %v4370_v53  ;;  %v1723_v5 = vld [vmem:[%s35344_s8 + $0x2840] sm:$0x3]  ;;  %v1725_v7 = vld [vmem:[%s35344_s8 + $0x2850] sm:$0x3] }
 0x470   : > { %v34236_v21 = vpack.c.bf16 %v1725_v7, %v957_v6 }
 0x471   : > { %23900 = vmatmul.mubr.f32.vlgmr.msra.gmra.mrb[252].mxu0 %v4312_v39  ;;  %v4354_v39 = vcombine.high %v4346_v23, %v4346_v23 }
 0x472   : > { %23970 = vmatmul.mubr.f32.vlgmr.msra.gmra.mrb[252].mxu1 %v4319_v44  ;;  %34209 = vmatpush1.bf16.xpose.msra.mxu0 %v34208_v11  ;;  %v951_v44 = vld [vmem:[%s35344_s8 + $0x1020] sm:$0xff]  ;;  %v960_v11 = vld [vmem:[%s35344_s8 + $0x1068] sm:$0xff] }
 0x473   : > { %34213 = vmatpush1.bf16.xpose.msra.mxu1 %v34212_v12  ;;  %24039 = vmatprep.mubr.f32.mxu0 %v4337_v14  ;;  %v34224_v60 = vpack.c.bf16 %v1719_v45, %v951_v44  ;;  %v1728_v12 = vld [vmem:[%s35344_s8 + $0x2868] sm:$0x3]  ;;  %v375_v44 = vld [vmem:[%s35337_s10 + $0x420] sm:$0xff] }
 0x474   : > { %34215 = vmatprep.subr.bf16.mxu0 %v34214_v15  ;;  %v20261_v24 = vpop.f32.mrb[200].mxu0  ;;  %24109 = vmatprep.mubr.f32.mxu1 %v4338_v16  ;;  %v4407_v52 = vcombine.high %v375_v44, %v375_v44  ;;  %v4414_v57 = vrot.slane %v375_v44, %v35369_v25 }
 0x475   : > { %v20331_v26 = vpop.f32.mrb[200].mxu1  ;;  %34219 = vmatprep.subr.bf16.mxu1 %v34218_v17  ;;  %v20262_v30 = vadd.f32 %v20261_v24, %v20192_v13  ;;  %v20263_v31 = vpop.f32.mrb[201].mxu0  ;;  %v4387_v13 = vrot.slane %v4373_v3, %v35369_v25  ;;  %v962_v17 = vld [vmem:[%s35344_s8 + $0x1078] sm:$0xff]  ;;  %v34238_v24 = vpack.c.bf16 %v1728_v12, %v960_v11 }
 0x476   : > { %v20333_v32 = vpop.f32.mrb[201].mxu1  ;;  %v34242_v27 = vpack.c.bf16 %v1730_v18, %v962_v17  ;;  %v961_v31 = vld [vmem:[%s35344_s8 + $0x1070] sm:$0xff]  ;;  %v1738_v3 = vld [vmem:[%s35344_s8 + $0x28b8] sm:$0x3] }
 0x477   : > { %v20332_v38 = vadd.f32 %v20331_v26, %v20262_v30  ;;  %v4389_v26 = vcombine.high %v4387_v13, %v4387_v13  ;;  %v1727_v30 = vld [vmem:[%s35344_s8 + $0x2860] sm:$0x3]  ;;  %v1729_v32 = vld [vmem:[%s35344_s8 + $0x2870] sm:$0x3] }
 0x478   : > { %v34244_v46 = vpack.c.bf16 %v1729_v32, %v961_v31 }
 0x479   : > { %24040 = vmatmul.mubr.f32.vlgmr.msra.gmra.mrb[254].mxu0 %v4329_v63  ;;  %v4371_v63 = vcombine.high %v4363_v48, %v4363_v48 }
 0x47a   : > { %24110 = vmatmul.mubr.f32.vlgmr.msra.gmra.mrb[254].mxu1 %v4336_v4  ;;  %34217 = vmatpush1.bf16.xpose.msra.mxu0 %v34216_v36  ;;  %v955_v4 = vld [vmem:[%s35344_s8 + $0x1040] sm:$0xff]  ;;  %v964_v36 = vld [vmem:[%s35344_s8 + $0x1088] sm:$0xff] }
 0x47b   : > { %34221 = vmatpush1.bf16.xpose.msra.mxu1 %v34220_v37  ;;  %24179 = vmatprep.mubr.f32.mxu0 %v4354_v39  ;;  %v34232_v20 = vpack.c.bf16 %v1723_v5, %v955_v4  ;;  %v1732_v37 = vld [vmem:[%s35344_s8 + $0x2888] sm:$0x3] }
 0x47c   : > { %34223 = vmatprep.subr.bf16.mxu0 %v34222_v40  ;;  %v20401_v49 = vpop.f32.mrb[202].mxu0  ;;  %24249 = vmatprep.mubr.f32.mxu1 %v4355_v41  ;;  %v376_v4 = vld [vmem:[%s35337_s10 + $0x428] sm:$0xff] }
 0x47d   : > { %v20471_v50 = vpop.f32.mrb[202].mxu1  ;;  %34227 = vmatprep.subr.bf16.mxu1 %v34226_v42  ;;  %v20402_v54 = vadd.f32 %v20401_v49, %v20332_v38  ;;  %v20403_v55 = vpop.f32.mrb[203].mxu0  ;;  %v4404_v38 = vrot.slane %v4390_v28, %v35369_v25  ;;  %v966_v42 = vld [vmem:[%s35344_s8 + $0x1098] sm:$0xff]  ;;  %v34246_v49 = vpack.c.bf16 %v1732_v37, %v964_v36  ;;  %v4424_v12 = vcombine.high %v376_v4, %v376_v4 }
 0x47e   : > { %v20473_v56 = vpop.f32.mrb[203].mxu1  ;;  %v34250_v51 = vpack.c.bf16 %v1734_v43, %v966_v42  ;;  %v965_v55 = vld [vmem:[%s35344_s8 + $0x1090] sm:$0xff]  ;;  %v4431_v17 = vrot.slane %v376_v4, %v35369_v25  ;;  %v1742_v28 = vld [vmem:[%s35344_s8 + $0x28d8] sm:$0x3] }
 0x47f   : > { %v20472_v62 = vadd.f32 %v20471_v50, %v20402_v54  ;;  %v4406_v50 = vcombine.high %v4404_v38, %v4404_v38  ;;  %v1731_v54 = vld [vmem:[%s35344_s8 + $0x2880] sm:$0x3]  ;;  %v1733_v56 = vld [vmem:[%s35344_s8 + $0x2890] sm:$0x3] }
 0x480   : > { %v34252_v6 = vpack.c.bf16 %v1733_v56, %v965_v55 }
 0x481   : > { %24180 = vmatmul.mubr.f32.vlgmr.msra.gmra.mrb[0].mxu0 %v4346_v23  ;;  %v4388_v23 = vcombine.high %v4380_v8, %v4380_v8 }
 0x482   : > { %24250 = vmatmul.mubr.f32.vlgmr.msra.gmra.mrb[0].mxu1 %v4353_v29  ;;  %34225 = vmatpush1.bf16.xpose.msra.mxu0 %v34224_v60  ;;  %v959_v29 = vld [vmem:[%s35344_s8 + $0x1060] sm:$0xff]  ;;  %v968_v60 = vld [vmem:[%s35344_s8 + $0x10a8] sm:$0xff] }
 0x483   : > { %34229 = vmatpush1.bf16.xpose.msra.mxu1 %v34228_v61  ;;  %24319 = vmatprep.mubr.f32.mxu0 %v4371_v63  ;;  %v34240_v45 = vpack.c.bf16 %v1727_v30, %v959_v29  ;;  %v1736_v61 = vld [vmem:[%s35344_s8 + $0x28a8] sm:$0x3]  ;;  %v377_v29 = vld [vmem:[%s35337_s10 + $0x430] sm:$0xff] }
 0x484   : > { %34231 = vmatprep.subr.bf16.mxu0 %v34230_v0  ;;  %v20541_v9 = vpop.f32.mrb[204].mxu0  ;;  %24389 = vmatprep.mubr.f32.mxu1 %v4372_v1  ;;  %v4441_v37 = vcombine.high %v377_v29, %v377_v29  ;;  %v4448_v42 = vrot.slane %v377_v29, %v35369_v25 }
 0x485   : > { %v20611_v10 = vpop.f32.mrb[204].mxu1  ;;  %34235 = vmatprep.subr.bf16.mxu1 %v34234_v2  ;;  %v20542_v14 = vadd.f32 %v20541_v9, %v20472_v62  ;;  %v20543_v15 = vpop.f32.mrb[205].mxu0  ;;  %v4421_v62 = vrot.slane %v4407_v52, %v35369_v25  ;;  %v970_v2 = vld [vmem:[%s35344_s8 + $0x10b8] sm:$0xff]  ;;  %v34254_v9 = vpack.c.bf16 %v1736_v61, %v968_v60 }
 0x486   : > { %v20613_v16 = vpop.f32.mrb[205].mxu1  ;;  %v34258_v11 = vpack.c.bf16 %v1738_v3, %v970_v2  ;;  %v969_v15 = vld [vmem:[%s35344_s8 + $0x10b0] sm:$0xff]  ;;  %v1746_v52 = vld [vmem:[%s35344_s8 + $0x28f8] sm:$0x3] }
 0x487   : > { %v20612_v22 = vadd.f32 %v20611_v10, %v20542_v14  ;;  %v4423_v10 = vcombine.high %v4421_v62, %v4421_v62  ;;  %v1735_v14 = vld [vmem:[%s35344_s8 + $0x28a0] sm:$0x3]  ;;  %v1737_v16 = vld [vmem:[%s35344_s8 + $0x28b0] sm:$0x3] }
 0x488   : > { %v34260_v31 = vpack.c.bf16 %v1737_v16, %v969_v15 }
 0x489   : > { %24320 = vmatmul.mubr.f32.vlgmr.msra.gmra.mrb[2].mxu0 %v4363_v48  ;;  %v4405_v48 = vcombine.high %v4397_v33, %v4397_v33 }
 0x48a   : > { %24390 = vmatmul.mubr.f32.vlgmr.msra.gmra.mrb[2].mxu1 %v4370_v53  ;;  %34233 = vmatpush1.bf16.xpose.msra.mxu0 %v34232_v20  ;;  %v963_v53 = vld [vmem:[%s35344_s8 + $0x1080] sm:$0xff]  ;;  %v972_v20 = vld [vmem:[%s35344_s8 + $0x10c8] sm:$0xff] }
 0x48b   : > { %34237 = vmatpush1.bf16.xpose.msra.mxu1 %v34236_v21  ;;  %24459 = vmatprep.mubr.f32.mxu0 %v4388_v23  ;;  %v34248_v5 = vpack.c.bf16 %v1731_v54, %v963_v53  ;;  %v1740_v21 = vld [vmem:[%s35344_s8 + $0x28c8] sm:$0x3]  ;;  %v378_v53 = vld [vmem:[%s35337_s10 + $0x438] sm:$0xff] }
 0x48c   : > { %34239 = vmatprep.subr.bf16.mxu0 %v34238_v24  ;;  %v20681_v34 = vpop.f32.mrb[206].mxu0  ;;  %24529 = vmatprep.mubr.f32.mxu1 %v4389_v26  ;;  %v4458_v61 = vcombine.high %v378_v53, %v378_v53  ;;  %v4465_v2 = vrot.slane %v378_v53, %v35369_v25 }
 0x48d   : > { %v20751_v35 = vpop.f32.mrb[206].mxu1  ;;  %34243 = vmatprep.subr.bf16.mxu1 %v34242_v27  ;;  %v20682_v39 = vadd.f32 %v20681_v34, %v20612_v22  ;;  %v20683_v40 = vpop.f32.mrb[207].mxu0  ;;  %v4438_v22 = vrot.slane %v4424_v12, %v35369_v25  ;;  %v974_v27 = vld [vmem:[%s35344_s8 + $0x10d8] sm:$0xff]  ;;  %v34262_v34 = vpack.c.bf16 %v1740_v21, %v972_v20 }
 0x48e   : > { %v20753_v41 = vpop.f32.mrb[207].mxu1  ;;  %v34266_v36 = vpack.c.bf16 %v1742_v28, %v974_v27  ;;  %v973_v40 = vld [vmem:[%s35344_s8 + $0x10d0] sm:$0xff]  ;;  %v1750_v12 = vld [vmem:[%s35344_s8 + $0x2918] sm:$0x3] }
 0x48f   : > { %v20752_v47 = vadd.f32 %v20751_v35, %v20682_v39  ;;  %v4440_v35 = vcombine.high %v4438_v22, %v4438_v22  ;;  %v1739_v39 = vld [vmem:[%s35344_s8 + $0x28c0] sm:$0x3]  ;;  %v1741_v41 = vld [vmem:[%s35344_s8 + $0x28d0] sm:$0x3] }
 0x490   : > { %v34268_v55 = vpack.c.bf16 %v1741_v41, %v973_v40 }
 0x491   : > { %24460 = vmatmul.mubr.f32.vlgmr.msra.gmra.mrb[4].mxu0 %v4380_v8  ;;  %v4422_v8 = vcombine.high %v4414_v57, %v4414_v57 }
 0x492   : > { %24530 = vmatmul.mubr.f32.vlgmr.msra.gmra.mrb[4].mxu1 %v4387_v13  ;;  %34241 = vmatpush1.bf16.xpose.msra.mxu0 %v34240_v45  ;;  %v967_v13 = vld [vmem:[%s35344_s8 + $0x10a0] sm:$0xff]  ;;  %v976_v45 = vld [vmem:[%s35344_s8 + $0x10e8] sm:$0xff] }
 0x493   : > { %34245 = vmatpush1.bf16.xpose.msra.mxu1 %v34244_v46  ;;  %24599 = vmatprep.mubr.f32.mxu0 %v4405_v48  ;;  %v34256_v30 = vpack.c.bf16 %v1735_v14, %v967_v13  ;;  %v1744_v46 = vld [vmem:[%s35344_s8 + $0x28e8] sm:$0x3]  ;;  %v379_v13 = vld [vmem:[%s35337_s10 + $0x440] sm:$0xff] }
 0x494   : > { %34247 = vmatprep.subr.bf16.mxu0 %v34246_v49  ;;  %v20821_v58 = vpop.f32.mrb[208].mxu0  ;;  %24669 = vmatprep.mubr.f32.mxu1 %v4406_v50  ;;  %v4475_v21 = vcombine.high %v379_v13, %v379_v13  ;;  %v4482_v27 = vrot.slane %v379_v13, %v35369_v25 }
 0x495   : > { %v20891_v59 = vpop.f32.mrb[208].mxu1  ;;  %34251 = vmatprep.subr.bf16.mxu1 %v34250_v51  ;;  %v20822_v63 = vadd.f32 %v20821_v58, %v20752_v47  ;;  %v20823_v0 = vpop.f32.mrb[209].mxu0  ;;  %v4455_v47 = vrot.slane %v4441_v37, %v35369_v25  ;;  %v978_v51 = vld [vmem:[%s35344_s8 + $0x10f8] sm:$0xff]  ;;  %v34270_v58 = vpack.c.bf16 %v1744_v46, %v976_v45 }
 0x496   : > { %v20893_v1 = vpop.f32.mrb[209].mxu1  ;;  %v34274_v60 = vpack.c.bf16 %v1746_v52, %v978_v51  ;;  %v977_v0 = vld [vmem:[%s35344_s8 + $0x10f0] sm:$0xff]  ;;  %v1754_v37 = vld [vmem:[%s35344_s8 + $0x2938] sm:$0x3] }
 0x497   : > { %v20892_v7 = vadd.f32 %v20891_v59, %v20822_v63  ;;  %v4457_v59 = vcombine.high %v4455_v47, %v4455_v47  ;;  %v1743_v63 = vld [vmem:[%s35344_s8 + $0x28e0] sm:$0x3]  ;;  %v1745_v1 = vld [vmem:[%s35344_s8 + $0x28f0] sm:$0x3] }
 0x498   : > { %v34276_v15 = vpack.c.bf16 %v1745_v1, %v977_v0 }
 0x499   : > { %24600 = vmatmul.mubr.f32.vlgmr.msra.gmra.mrb[6].mxu0 %v4397_v33  ;;  %v4439_v33 = vcombine.high %v4431_v17, %v4431_v17 }
 0x49a   : > { %24670 = vmatmul.mubr.f32.vlgmr.msra.gmra.mrb[6].mxu1 %v4404_v38  ;;  %34249 = vmatpush1.bf16.xpose.msra.mxu0 %v34248_v5  ;;  %v971_v38 = vld [vmem:[%s35344_s8 + $0x10c0] sm:$0xff]  ;;  %v980_v5 = vld [vmem:[%s35344_s8 + $0x1108] sm:$0xff] }
 0x49b   : > { %34253 = vmatpush1.bf16.xpose.msra.mxu1 %v34252_v6  ;;  %24739 = vmatprep.mubr.f32.mxu0 %v4422_v8  ;;  %v34264_v54 = vpack.c.bf16 %v1739_v39, %v971_v38  ;;  %v1748_v6 = vld [vmem:[%s35344_s8 + $0x2908] sm:$0x3] }
 0x49c   : > { %34255 = vmatprep.subr.bf16.mxu0 %v34254_v9  ;;  %v20961_v18 = vpop.f32.mrb[210].mxu0  ;;  %24809 = vmatprep.mubr.f32.mxu1 %v4423_v10  ;;  %v380_v38 = vld [vmem:[%s35337_s10 + $0x448] sm:$0xff] }
 0x49d   : > { %v21031_v19 = vpop.f32.mrb[210].mxu1  ;;  %34259 = vmatprep.subr.bf16.mxu1 %v34258_v11  ;;  %v20962_v23 = vadd.f32 %v20961_v18, %v20892_v7  ;;  %v20963_v24 = vpop.f32.mrb[211].mxu0  ;;  %v4472_v7 = vrot.slane %v4458_v61, %v35369_v25  ;;  %v982_v11 = vld [vmem:[%s35344_s8 + $0x1118] sm:$0xff]  ;;  %v34278_v18 = vpack.c.bf16 %v1748_v6, %v980_v5  ;;  %v4492_v46 = vcombine.high %v380_v38, %v380_v38 }
 0x49e   : > { %v21033_v26 = vpop.f32.mrb[211].mxu1  ;;  %v34282_v20 = vpack.c.bf16 %v1750_v12, %v982_v11  ;;  %v981_v24 = vld [vmem:[%s35344_s8 + $0x1110] sm:$0xff]  ;;  %v4499_v51 = vrot.slane %v380_v38, %v35369_v25  ;;  %v1758_v61 = vld [vmem:[%s35344_s8 + $0x2958] sm:$0x3] }
 0x49f   : > { %v21032_v32 = vadd.f32 %v21031_v19, %v20962_v23  ;;  %v4474_v19 = vcombine.high %v4472_v7, %v4472_v7  ;;  %v1747_v23 = vld [vmem:[%s35344_s8 + $0x2900] sm:$0x3]  ;;  %v1749_v26 = vld [vmem:[%s35344_s8 + $0x2910] sm:$0x3] }
 0x4a0   : > { %v34284_v40 = vpack.c.bf16 %v1749_v26, %v981_v24 }
 0x4a1   : > { %24740 = vmatmul.mubr.f32.vlgmr.msra.gmra.mrb[8].mxu0 %v4414_v57  ;;  %v4456_v57 = vcombine.high %v4448_v42, %v4448_v42 }
 0x4a2   : > { %24810 = vmatmul.mubr.f32.vlgmr.msra.gmra.mrb[8].mxu1 %v4421_v62  ;;  %34257 = vmatpush1.bf16.xpose.msra.mxu0 %v34256_v30  ;;  %v975_v62 = vld [vmem:[%s35344_s8 + $0x10e0] sm:$0xff]  ;;  %v984_v30 = vld [vmem:[%s35344_s8 + $0x1128] sm:$0xff] }
 0x4a3   : > { %34261 = vmatpush1.bf16.xpose.msra.mxu1 %v34260_v31  ;;  %24879 = vmatprep.mubr.f32.mxu0 %v4439_v33  ;;  %v34272_v14 = vpack.c.bf16 %v1743_v63, %v975_v62  ;;  %v1752_v31 = vld [vmem:[%s35344_s8 + $0x2928] sm:$0x3]  ;;  %v381_v62 = vld [vmem:[%s35337_s10 + $0x450] sm:$0xff] }
 0x4a4   : > { %34263 = vmatprep.subr.bf16.mxu0 %v34262_v34  ;;  %v21101_v43 = vpop.f32.mrb[212].mxu0  ;;  %24949 = vmatprep.mubr.f32.mxu1 %v4440_v35  ;;  %v4509_v6 = vcombine.high %v381_v62, %v381_v62  ;;  %v4516_v11 = vrot.slane %v381_v62, %v35369_v25 }
 0x4a5   : > { %v21171_v44 = vpop.f32.mrb[212].mxu1  ;;  %34267 = vmatprep.subr.bf16.mxu1 %v34266_v36  ;;  %v21102_v48 = vadd.f32 %v21101_v43, %v21032_v32  ;;  %v21103_v49 = vpop.f32.mrb[213].mxu0  ;;  %v4489_v32 = vrot.slane %v4475_v21, %v35369_v25  ;;  %v986_v36 = vld [vmem:[%s35344_s8 + $0x1138] sm:$0xff]  ;;  %v34286_v43 = vpack.c.bf16 %v1752_v31, %v984_v30 }
 0x4a6   : > { %v21173_v50 = vpop.f32.mrb[213].mxu1  ;;  %v34290_v45 = vpack.c.bf16 %v1754_v37, %v986_v36  ;;  %v985_v49 = vld [vmem:[%s35344_s8 + $0x1130] sm:$0xff]  ;;  %v1762_v21 = vld [vmem:[%s35344_s8 + $0x2978] sm:$0x3] }
 0x4a7   : > { %v21172_v56 = vadd.f32 %v21171_v44, %v21102_v48  ;;  %v4491_v44 = vcombine.high %v4489_v32, %v4489_v32  ;;  %v1751_v48 = vld [vmem:[%s35344_s8 + $0x2920] sm:$0x3]  ;;  %v1753_v50 = vld [vmem:[%s35344_s8 + $0x2930] sm:$0x3] }
 0x4a8   : > { %v34292_v0 = vpack.c.bf16 %v1753_v50, %v985_v49 }
 0x4a9   : > { %24880 = vmatmul.mubr.f32.vlgmr.msra.gmra.mrb[10].mxu0 %v4431_v17  ;;  %v4473_v17 = vcombine.high %v4465_v2, %v4465_v2 }
 0x4aa   : > { %24950 = vmatmul.mubr.f32.vlgmr.msra.gmra.mrb[10].mxu1 %v4438_v22  ;;  %34265 = vmatpush1.bf16.xpose.msra.mxu0 %v34264_v54  ;;  %v979_v22 = vld [vmem:[%s35344_s8 + $0x1100] sm:$0xff]  ;;  %v988_v54 = vld [vmem:[%s35344_s8 + $0x1148] sm:$0xff] }
 0x4ab   : > { %34269 = vmatpush1.bf16.xpose.msra.mxu1 %v34268_v55  ;;  %25019 = vmatprep.mubr.f32.mxu0 %v4456_v57  ;;  %v34280_v39 = vpack.c.bf16 %v1747_v23, %v979_v22  ;;  %v1756_v55 = vld [vmem:[%s35344_s8 + $0x2948] sm:$0x3]  ;;  %v382_v22 = vld [vmem:[%s35337_s10 + $0x458] sm:$0xff] }
 0x4ac   : > { %34271 = vmatprep.subr.bf16.mxu0 %v34270_v58  ;;  %v21241_v3 = vpop.f32.mrb[214].mxu0  ;;  %25089 = vmatprep.mubr.f32.mxu1 %v4457_v59  ;;  %v4526_v31 = vcombine.high %v382_v22, %v382_v22  ;;  %v4533_v36 = vrot.slane %v382_v22, %v35369_v25 }
 0x4ad   : > { %v21311_v4 = vpop.f32.mrb[214].mxu1  ;;  %34275 = vmatprep.subr.bf16.mxu1 %v34274_v60  ;;  %v21242_v8 = vadd.f32 %v21241_v3, %v21172_v56  ;;  %v21243_v9 = vpop.f32.mrb[215].mxu0  ;;  %v4506_v56 = vrot.slane %v4492_v46, %v35369_v25  ;;  %v990_v60 = vld [vmem:[%s35344_s8 + $0x1158] sm:$0xff]  ;;  %v34294_v3 = vpack.c.bf16 %v1756_v55, %v988_v54 }
 0x4ae   : > { %v21313_v10 = vpop.f32.mrb[215].mxu1  ;;  %v34298_v5 = vpack.c.bf16 %v1758_v61, %v990_v60  ;;  %v989_v9 = vld [vmem:[%s35344_s8 + $0x1150] sm:$0xff]  ;;  %v1766_v46 = vld [vmem:[%s35344_s8 + $0x2998] sm:$0x3] }
 0x4af   : > { %v21312_v16 = vadd.f32 %v21311_v4, %v21242_v8  ;;  %v4508_v4 = vcombine.high %v4506_v56, %v4506_v56  ;;  %v1755_v8 = vld [vmem:[%s35344_s8 + $0x2940] sm:$0x3]  ;;  %v1757_v10 = vld [vmem:[%s35344_s8 + $0x2950] sm:$0x3] }
 0x4b0   : > { %v34300_v24 = vpack.c.bf16 %v1757_v10, %v989_v9 }
 0x4b1   : > { %25020 = vmatmul.mubr.f32.vlgmr.msra.gmra.mrb[12].mxu0 %v4448_v42  ;;  %v4490_v42 = vcombine.high %v4482_v27, %v4482_v27 }
 0x4b2   : > { %25090 = vmatmul.mubr.f32.vlgmr.msra.gmra.mrb[12].mxu1 %v4455_v47  ;;  %34273 = vmatpush1.bf16.xpose.msra.mxu0 %v34272_v14  ;;  %v983_v47 = vld [vmem:[%s35344_s8 + $0x1120] sm:$0xff]  ;;  %v992_v14 = vld [vmem:[%s35344_s8 + $0x1168] sm:$0xff] }
 0x4b3   : > { %34277 = vmatpush1.bf16.xpose.msra.mxu1 %v34276_v15  ;;  %25159 = vmatprep.mubr.f32.mxu0 %v4473_v17  ;;  %v34288_v63 = vpack.c.bf16 %v1751_v48, %v983_v47  ;;  %v1760_v15 = vld [vmem:[%s35344_s8 + $0x2968] sm:$0x3]  ;;  %v383_v47 = vld [vmem:[%s35337_s10 + $0x460] sm:$0xff] }
 0x4b4   : > { %34279 = vmatprep.subr.bf16.mxu0 %v34278_v18  ;;  %v21381_v28 = vpop.f32.mrb[216].mxu0  ;;  %25229 = vmatprep.mubr.f32.mxu1 %v4474_v19  ;;  %v4543_v55 = vcombine.high %v383_v47, %v383_v47  ;;  %v4550_v60 = vrot.slane %v383_v47, %v35369_v25 }
 0x4b5   : > { %v21451_v29 = vpop.f32.mrb[216].mxu1  ;;  %34283 = vmatprep.subr.bf16.mxu1 %v34282_v20  ;;  %v21382_v33 = vadd.f32 %v21381_v28, %v21312_v16  ;;  %v21383_v34 = vpop.f32.mrb[217].mxu0  ;;  %v4523_v16 = vrot.slane %v4509_v6, %v35369_v25  ;;  %v994_v20 = vld [vmem:[%s35344_s8 + $0x1178] sm:$0xff]  ;;  %v34302_v28 = vpack.c.bf16 %v1760_v15, %v992_v14 }
 0x4b6   : > { %v21453_v35 = vpop.f32.mrb[217].mxu1  ;;  %v34306_v30 = vpack.c.bf16 %v1762_v21, %v994_v20  ;;  %v993_v34 = vld [vmem:[%s35344_s8 + $0x1170] sm:$0xff]  ;;  %v1770_v6 = vld [vmem:[%s35344_s8 + $0x29b8] sm:$0x3] }
 0x4b7   : > { %v21452_v41 = vadd.f32 %v21451_v29, %v21382_v33  ;;  %v4525_v29 = vcombine.high %v4523_v16, %v4523_v16  ;;  %v1759_v33 = vld [vmem:[%s35344_s8 + $0x2960] sm:$0x3]  ;;  %v1761_v35 = vld [vmem:[%s35344_s8 + $0x2970] sm:$0x3] }
 0x4b8   : > { %v34308_v49 = vpack.c.bf16 %v1761_v35, %v993_v34 }
 0x4b9   : > { %25160 = vmatmul.mubr.f32.vlgmr.msra.gmra.mrb[14].mxu0 %v4465_v2  ;;  %v4507_v2 = vcombine.high %v4499_v51, %v4499_v51 }
 0x4ba   : > { %25230 = vmatmul.mubr.f32.vlgmr.msra.gmra.mrb[14].mxu1 %v4472_v7  ;;  %34281 = vmatpush1.bf16.xpose.msra.mxu0 %v34280_v39  ;;  %v987_v7 = vld [vmem:[%s35344_s8 + $0x1140] sm:$0xff]  ;;  %v996_v39 = vld [vmem:[%s35344_s8 + $0x1188] sm:$0xff] }
 0x4bb   : > { %34285 = vmatpush1.bf16.xpose.msra.mxu1 %v34284_v40  ;;  %25299 = vmatprep.mubr.f32.mxu0 %v4490_v42  ;;  %v34296_v23 = vpack.c.bf16 %v1755_v8, %v987_v7  ;;  %v1764_v40 = vld [vmem:[%s35344_s8 + $0x2988] sm:$0x3] }
 0x4bc   : > { %34287 = vmatprep.subr.bf16.mxu0 %v34286_v43  ;;  %v21521_v52 = vpop.f32.mrb[218].mxu0  ;;  %25369 = vmatprep.mubr.f32.mxu1 %v4491_v44  ;;  %v384_v7 = vld [vmem:[%s35337_s10 + $0x468] sm:$0xff] }
 0x4bd   : > { %v21591_v53 = vpop.f32.mrb[218].mxu1  ;;  %34291 = vmatprep.subr.bf16.mxu1 %v34290_v45  ;;  %v21522_v57 = vadd.f32 %v21521_v52, %v21452_v41  ;;  %v21523_v58 = vpop.f32.mrb[219].mxu0  ;;  %v4540_v41 = vrot.slane %v4526_v31, %v35369_v25  ;;  %v998_v45 = vld [vmem:[%s35344_s8 + $0x1198] sm:$0xff]  ;;  %v34310_v52 = vpack.c.bf16 %v1764_v40, %v996_v39  ;;  %v4560_v15 = vcombine.high %v384_v7, %v384_v7 }
 0x4be   : > { %v21593_v59 = vpop.f32.mrb[219].mxu1  ;;  %v34314_v54 = vpack.c.bf16 %v1766_v46, %v998_v45  ;;  %v997_v58 = vld [vmem:[%s35344_s8 + $0x1190] sm:$0xff]  ;;  %v4567_v20 = vrot.slane %v384_v7, %v35369_v25  ;;  %v1774_v31 = vld [vmem:[%s35344_s8 + $0x29d8] sm:$0x3] }
 0x4bf   : > { %v21592_v1 = vadd.f32 %v21591_v53, %v21522_v57  ;;  %v4542_v53 = vcombine.high %v4540_v41, %v4540_v41  ;;  %v1763_v57 = vld [vmem:[%s35344_s8 + $0x2980] sm:$0x3]  ;;  %v1765_v59 = vld [vmem:[%s35344_s8 + $0x2990] sm:$0x3] }
 0x4c0   : > { %v34316_v9 = vpack.c.bf16 %v1765_v59, %v997_v58 }
 0x4c1   : > { %25300 = vmatmul.mubr.f32.vlgmr.msra.gmra.mrb[16].mxu0 %v4482_v27  ;;  %v4524_v27 = vcombine.high %v4516_v11, %v4516_v11 }
 0x4c2   : > { %25370 = vmatmul.mubr.f32.vlgmr.msra.gmra.mrb[16].mxu1 %v4489_v32  ;;  %34289 = vmatpush1.bf16.xpose.msra.mxu0 %v34288_v63  ;;  %v991_v32 = vld [vmem:[%s35344_s8 + $0x1160] sm:$0xff]  ;;  %v1000_v63 = vld [vmem:[%s35344_s8 + $0x11a8] sm:$0xff] }
 0x4c3   : > { %34293 = vmatpush1.bf16.xpose.msra.mxu1 %v34292_v0  ;;  %25439 = vmatprep.mubr.f32.mxu0 %v4507_v2  ;;  %v34304_v48 = vpack.c.bf16 %v1759_v33, %v991_v32  ;;  %v1768_v0 = vld [vmem:[%s35344_s8 + $0x29a8] sm:$0x3]  ;;  %v385_v32 = vld [vmem:[%s35337_s10 + $0x470] sm:$0xff] }
 0x4c4   : > { %34295 = vmatprep.subr.bf16.mxu0 %v34294_v3  ;;  %v21661_v12 = vpop.f32.mrb[220].mxu0  ;;  %25509 = vmatprep.mubr.f32.mxu1 %v4508_v4  ;;  %v4577_v40 = vcombine.high %v385_v32, %v385_v32  ;;  %v4584_v45 = vrot.slane %v385_v32, %v35369_v25 }
 0x4c5   : > { %v21731_v13 = vpop.f32.mrb[220].mxu1  ;;  %34299 = vmatprep.subr.bf16.mxu1 %v34298_v5  ;;  %v21662_v17 = vadd.f32 %v21661_v12, %v21592_v1  ;;  %v21663_v18 = vpop.f32.mrb[221].mxu0  ;;  %v4557_v1 = vrot.slane %v4543_v55, %v35369_v25  ;;  %v1002_v5 = vld [vmem:[%s35344_s8 + $0x11b8] sm:$0xff]  ;;  %v34318_v12 = vpack.c.bf16 %v1768_v0, %v1000_v63 }
 0x4c6   : > { %v21733_v19 = vpop.f32.mrb[221].mxu1  ;;  %v34322_v14 = vpack.c.bf16 %v1770_v6, %v1002_v5  ;;  %v1001_v18 = vld [vmem:[%s35344_s8 + $0x11b0] sm:$0xff]  ;;  %v1778_v55 = vld [vmem:[%s35344_s8 + $0x29f8] sm:$0x3] }
 0x4c7   : > { %v21732_v26 = vadd.f32 %v21731_v13, %v21662_v17  ;;  %v4559_v13 = vcombine.high %v4557_v1, %v4557_v1  ;;  %v1767_v17 = vld [vmem:[%s35344_s8 + $0x29a0] sm:$0x3]  ;;  %v1769_v19 = vld [vmem:[%s35344_s8 + $0x29b0] sm:$0x3] }
 0x4c8   : > { %v34324_v34 = vpack.c.bf16 %v1769_v19, %v1001_v18 }
 0x4c9   : > { %25440 = vmatmul.mubr.f32.vlgmr.msra.gmra.mrb[18].mxu0 %v4499_v51  ;;  %v4541_v51 = vcombine.high %v4533_v36, %v4533_v36 }
 0x4ca   : > { %25510 = vmatmul.mubr.f32.vlgmr.msra.gmra.mrb[18].mxu1 %v4506_v56  ;;  %34297 = vmatpush1.bf16.xpose.msra.mxu0 %v34296_v23  ;;  %v995_v56 = vld [vmem:[%s35344_s8 + $0x1180] sm:$0xff]  ;;  %v1004_v23 = vld [vmem:[%s35344_s8 + $0x11c8] sm:$0xff] }
 0x4cb   : > { %34301 = vmatpush1.bf16.xpose.msra.mxu1 %v34300_v24  ;;  %25579 = vmatprep.mubr.f32.mxu0 %v4524_v27  ;;  %v34312_v8 = vpack.c.bf16 %v1763_v57, %v995_v56  ;;  %v1772_v24 = vld [vmem:[%s35344_s8 + $0x29c8] sm:$0x3]  ;;  %v386_v56 = vld [vmem:[%s35337_s10 + $0x478] sm:$0xff] }
 0x4cc   : > { %34303 = vmatprep.subr.bf16.mxu0 %v34302_v28  ;;  %v21801_v37 = vpop.f32.mrb[222].mxu0  ;;  %25649 = vmatprep.mubr.f32.mxu1 %v4525_v29  ;;  %v4594_v0 = vcombine.high %v386_v56, %v386_v56  ;;  %v4601_v5 = vrot.slane %v386_v56, %v35369_v25 }
 0x4cd   : > { %v21871_v38 = vpop.f32.mrb[222].mxu1  ;;  %34307 = vmatprep.subr.bf16.mxu1 %v34306_v30  ;;  %v21802_v42 = vadd.f32 %v21801_v37, %v21732_v26  ;;  %v21803_v43 = vpop.f32.mrb[223].mxu0  ;;  %v4574_v26 = vrot.slane %v4560_v15, %v35369_v25  ;;  %v1006_v30 = vld [vmem:[%s35344_s8 + $0x11d8] sm:$0xff]  ;;  %v34326_v37 = vpack.c.bf16 %v1772_v24, %v1004_v23 }
 0x4ce   : > { %v21873_v44 = vpop.f32.mrb[223].mxu1  ;;  %v34330_v39 = vpack.c.bf16 %v1774_v31, %v1006_v30  ;;  %v1005_v43 = vld [vmem:[%s35344_s8 + $0x11d0] sm:$0xff]  ;;  %v1782_v15 = vld [vmem:[%s35344_s8 + $0x2a18] sm:$0x3] }
 0x4cf   : > { %v21872_v50 = vadd.f32 %v21871_v38, %v21802_v42  ;;  %v4576_v38 = vcombine.high %v4574_v26, %v4574_v26  ;;  %v1771_v42 = vld [vmem:[%s35344_s8 + $0x29c0] sm:$0x3]  ;;  %v1773_v44 = vld [vmem:[%s35344_s8 + $0x29d0] sm:$0x3] }
 0x4d0   : > { %v34332_v58 = vpack.c.bf16 %v1773_v44, %v1005_v43 }
 0x4d1   : > { %25580 = vmatmul.mubr.f32.vlgmr.msra.gmra.mrb[20].mxu0 %v4516_v11  ;;  %v4558_v11 = vcombine.high %v4550_v60, %v4550_v60 }
 0x4d2   : > { %25650 = vmatmul.mubr.f32.vlgmr.msra.gmra.mrb[20].mxu1 %v4523_v16  ;;  %34305 = vmatpush1.bf16.xpose.msra.mxu0 %v34304_v48  ;;  %v999_v16 = vld [vmem:[%s35344_s8 + $0x11a0] sm:$0xff]  ;;  %v1008_v48 = vld [vmem:[%s35344_s8 + $0x11e8] sm:$0xff] }
 0x4d3   : > { %34309 = vmatpush1.bf16.xpose.msra.mxu1 %v34308_v49  ;;  %25719 = vmatprep.mubr.f32.mxu0 %v4541_v51  ;;  %v34320_v33 = vpack.c.bf16 %v1767_v17, %v999_v16  ;;  %v1776_v49 = vld [vmem:[%s35344_s8 + $0x29e8] sm:$0x3]  ;;  %v387_v16 = vld [vmem:[%s35337_s10 + $0x480] sm:$0xff] }
 0x4d4   : > { %34311 = vmatprep.subr.bf16.mxu0 %v34310_v52  ;;  %v21941_v61 = vpop.f32.mrb[224].mxu0  ;;  %25789 = vmatprep.mubr.f32.mxu1 %v4542_v53  ;;  %v4611_v24 = vcombine.high %v387_v16, %v387_v16  ;;  %v4618_v30 = vrot.slane %v387_v16, %v35369_v25 }
 0x4d5   : > { %v22011_v62 = vpop.f32.mrb[224].mxu1  ;;  %34315 = vmatprep.subr.bf16.mxu1 %v34314_v54  ;;  %v21942_v2 = vadd.f32 %v21941_v61, %v21872_v50  ;;  %v21943_v3 = vpop.f32.mrb[225].mxu0  ;;  %v4591_v50 = vrot.slane %v4577_v40, %v35369_v25  ;;  %v1010_v54 = vld [vmem:[%s35344_s8 + $0x11f8] sm:$0xff]  ;;  %v34334_v61 = vpack.c.bf16 %v1776_v49, %v1008_v48 }
 0x4d6   : > { %v22013_v4 = vpop.f32.mrb[225].mxu1  ;;  %v34338_v63 = vpack.c.bf16 %v1778_v55, %v1010_v54  ;;  %v1009_v3 = vld [vmem:[%s35344_s8 + $0x11f0] sm:$0xff]  ;;  %v1786_v40 = vld [vmem:[%s35344_s8 + $0x2a38] sm:$0x3] }
 0x4d7   : > { %v22012_v10 = vadd.f32 %v22011_v62, %v21942_v2  ;;  %v4593_v62 = vcombine.high %v4591_v50, %v4591_v50  ;;  %v1775_v2 = vld [vmem:[%s35344_s8 + $0x29e0] sm:$0x3]  ;;  %v1777_v4 = vld [vmem:[%s35344_s8 + $0x29f0] sm:$0x3] }
 0x4d8   : > { %v34340_v18 = vpack.c.bf16 %v1777_v4, %v1009_v3 }
 0x4d9   : > { %25720 = vmatmul.mubr.f32.vlgmr.msra.gmra.mrb[22].mxu0 %v4533_v36  ;;  %v4575_v36 = vcombine.high %v4567_v20, %v4567_v20 }
 0x4da   : > { %25790 = vmatmul.mubr.f32.vlgmr.msra.gmra.mrb[22].mxu1 %v4540_v41  ;;  %34313 = vmatpush1.bf16.xpose.msra.mxu0 %v34312_v8  ;;  %v1003_v41 = vld [vmem:[%s35344_s8 + $0x11c0] sm:$0xff]  ;;  %v1012_v8 = vld [vmem:[%s35344_s8 + $0x1208] sm:$0xff] }
 0x4db   : > { %34317 = vmatpush1.bf16.xpose.msra.mxu1 %v34316_v9  ;;  %25859 = vmatprep.mubr.f32.mxu0 %v4558_v11  ;;  %v34328_v57 = vpack.c.bf16 %v1771_v42, %v1003_v41  ;;  %v1780_v9 = vld [vmem:[%s35344_s8 + $0x2a08] sm:$0x3] }
 0x4dc   : > { %34319 = vmatprep.subr.bf16.mxu0 %v34318_v12  ;;  %v22081_v21 = vpop.f32.mrb[226].mxu0  ;;  %25929 = vmatprep.mubr.f32.mxu1 %v4559_v13  ;;  %v388_v41 = vld [vmem:[%s35337_s10 + $0x488] sm:$0xff] }
 0x4dd   : > { %v22151_v22 = vpop.f32.mrb[226].mxu1  ;;  %34323 = vmatprep.subr.bf16.mxu1 %v34322_v14  ;;  %v22082_v27 = vadd.f32 %v22081_v21, %v22012_v10  ;;  %v22083_v28 = vpop.f32.mrb[227].mxu0  ;;  %v4608_v10 = vrot.slane %v4594_v0, %v35369_v25  ;;  %v1014_v14 = vld [vmem:[%s35344_s8 + $0x1218] sm:$0xff]  ;;  %v34342_v21 = vpack.c.bf16 %v1780_v9, %v1012_v8  ;;  %v4628_v49 = vcombine.high %v388_v41, %v388_v41 }
 0x4de   : > { %v22153_v29 = vpop.f32.mrb[227].mxu1  ;;  %v34346_v23 = vpack.c.bf16 %v1782_v15, %v1014_v14  ;;  %v1013_v28 = vld [vmem:[%s35344_s8 + $0x1210] sm:$0xff]  ;;  %v4635_v54 = vrot.slane %v388_v41, %v35369_v25  ;;  %v1790_v0 = vld [vmem:[%s35344_s8 + $0x2a58] sm:$0x3] }
 0x4df   : > { %v22152_v35 = vadd.f32 %v22151_v22, %v22082_v27  ;;  %v4610_v22 = vcombine.high %v4608_v10, %v4608_v10  ;;  %v1779_v27 = vld [vmem:[%s35344_s8 + $0x2a00] sm:$0x3]  ;;  %v1781_v29 = vld [vmem:[%s35344_s8 + $0x2a10] sm:$0x3] }
 0x4e0   : > { %v34348_v43 = vpack.c.bf16 %v1781_v29, %v1013_v28 }
 0x4e1   : > { %25860 = vmatmul.mubr.f32.vlgmr.msra.gmra.mrb[24].mxu0 %v4550_v60  ;;  %v4592_v60 = vcombine.high %v4584_v45, %v4584_v45 }
 0x4e2   : > { %25930 = vmatmul.mubr.f32.vlgmr.msra.gmra.mrb[24].mxu1 %v4557_v1  ;;  %34321 = vmatpush1.bf16.xpose.msra.mxu0 %v34320_v33  ;;  %v1007_v1 = vld [vmem:[%s35344_s8 + $0x11e0] sm:$0xff]  ;;  %v1016_v33 = vld [vmem:[%s35344_s8 + $0x1228] sm:$0xff] }
 0x4e3   : > { %34325 = vmatpush1.bf16.xpose.msra.mxu1 %v34324_v34  ;;  %25999 = vmatprep.mubr.f32.mxu0 %v4575_v36  ;;  %v34336_v17 = vpack.c.bf16 %v1775_v2, %v1007_v1  ;;  %v1784_v34 = vld [vmem:[%s35344_s8 + $0x2a28] sm:$0x3]  ;;  %v389_v1 = vld [vmem:[%s35337_s10 + $0x490] sm:$0xff] }
 0x4e4   : > { %34327 = vmatprep.subr.bf16.mxu0 %v34326_v37  ;;  %v22221_v46 = vpop.f32.mrb[228].mxu0  ;;  %26069 = vmatprep.mubr.f32.mxu1 %v4576_v38  ;;  %v4645_v9 = vcombine.high %v389_v1, %v389_v1  ;;  %v4652_v14 = vrot.slane %v389_v1, %v35369_v25 }
 0x4e5   : > { %v22291_v47 = vpop.f32.mrb[228].mxu1  ;;  %34331 = vmatprep.subr.bf16.mxu1 %v34330_v39  ;;  %v22222_v51 = vadd.f32 %v22221_v46, %v22152_v35  ;;  %v22223_v52 = vpop.f32.mrb[229].mxu0  ;;  %v4625_v35 = vrot.slane %v4611_v24, %v35369_v25  ;;  %v1018_v39 = vld [vmem:[%s35344_s8 + $0x1238] sm:$0xff]  ;;  %v34350_v46 = vpack.c.bf16 %v1784_v34, %v1016_v33 }
 0x4e6   : > { %v22293_v53 = vpop.f32.mrb[229].mxu1  ;;  %v34354_v48 = vpack.c.bf16 %v1786_v40, %v1018_v39  ;;  %v1017_v52 = vld [vmem:[%s35344_s8 + $0x1230] sm:$0xff]  ;;  %v1794_v24 = vld [vmem:[%s35344_s8 + $0x2a78] sm:$0x3] }
 0x4e7   : > { %v22292_v59 = vadd.f32 %v22291_v47, %v22222_v51  ;;  %v4627_v47 = vcombine.high %v4625_v35, %v4625_v35  ;;  %v1783_v51 = vld [vmem:[%s35344_s8 + $0x2a20] sm:$0x3]  ;;  %v1785_v53 = vld [vmem:[%s35344_s8 + $0x2a30] sm:$0x3] }
 0x4e8   : > { %v34356_v3 = vpack.c.bf16 %v1785_v53, %v1017_v52 }
 0x4e9   : > { %26000 = vmatmul.mubr.f32.vlgmr.msra.gmra.mrb[26].mxu0 %v4567_v20  ;;  %v4609_v20 = vcombine.high %v4601_v5, %v4601_v5 }
 0x4ea   : > { %26070 = vmatmul.mubr.f32.vlgmr.msra.gmra.mrb[26].mxu1 %v4574_v26  ;;  %34329 = vmatpush1.bf16.xpose.msra.mxu0 %v34328_v57  ;;  %v1011_v26 = vld [vmem:[%s35344_s8 + $0x1200] sm:$0xff]  ;;  %v1020_v57 = vld [vmem:[%s35344_s8 + $0x1248] sm:$0xff] }
 0x4eb   : > { %34333 = vmatpush1.bf16.xpose.msra.mxu1 %v34332_v58  ;;  %26139 = vmatprep.mubr.f32.mxu0 %v4592_v60  ;;  %v34344_v42 = vpack.c.bf16 %v1779_v27, %v1011_v26  ;;  %v1788_v58 = vld [vmem:[%s35344_s8 + $0x2a48] sm:$0x3]  ;;  %v390_v26 = vld [vmem:[%s35337_s10 + $0x498] sm:$0xff] }
 0x4ec   : > { %34335 = vmatprep.subr.bf16.mxu0 %v34334_v61  ;;  %v22361_v6 = vpop.f32.mrb[230].mxu0  ;;  %26209 = vmatprep.mubr.f32.mxu1 %v4593_v62  ;;  %v4662_v34 = vcombine.high %v390_v26, %v390_v26  ;;  %v4669_v39 = vrot.slane %v390_v26, %v35369_v25 }
 0x4ed   : > { %v22431_v7 = vpop.f32.mrb[230].mxu1  ;;  %34339 = vmatprep.subr.bf16.mxu1 %v34338_v63  ;;  %v22362_v11 = vadd.f32 %v22361_v6, %v22292_v59  ;;  %v22363_v12 = vpop.f32.mrb[231].mxu0  ;;  %v4642_v59 = vrot.slane %v4628_v49, %v35369_v25  ;;  %v1022_v63 = vld [vmem:[%s35344_s8 + $0x1258] sm:$0xff]  ;;  %v34358_v6 = vpack.c.bf16 %v1788_v58, %v1020_v57 }
 0x4ee   : > { %v22433_v13 = vpop.f32.mrb[231].mxu1  ;;  %v34362_v8 = vpack.c.bf16 %v1790_v0, %v1022_v63  ;;  %v1021_v12 = vld [vmem:[%s35344_s8 + $0x1250] sm:$0xff]  ;;  %v1798_v49 = vld [vmem:[%s35344_s8 + $0x2a98] sm:$0x3] }
 0x4ef   : > { %v22432_v19 = vadd.f32 %v22431_v7, %v22362_v11  ;;  %v4644_v7 = vcombine.high %v4642_v59, %v4642_v59  ;;  %v1787_v11 = vld [vmem:[%s35344_s8 + $0x2a40] sm:$0x3]  ;;  %v1789_v13 = vld [vmem:[%s35344_s8 + $0x2a50] sm:$0x3] }
 0x4f0   : > { %v34364_v28 = vpack.c.bf16 %v1789_v13, %v1021_v12 }
 0x4f1   : > { %26140 = vmatmul.mubr.f32.vlgmr.msra.gmra.mrb[28].mxu0 %v4584_v45  ;;  %v4626_v45 = vcombine.high %v4618_v30, %v4618_v30 }
 0x4f2   : > { %26210 = vmatmul.mubr.f32.vlgmr.msra.gmra.mrb[28].mxu1 %v4591_v50  ;;  %34337 = vmatpush1.bf16.xpose.msra.mxu0 %v34336_v17  ;;  %v1015_v50 = vld [vmem:[%s35344_s8 + $0x1220] sm:$0xff]  ;;  %v1024_v17 = vld [vmem:[%s35344_s8 + $0x1268] sm:$0xff] }
 0x4f3   : > { %34341 = vmatpush1.bf16.xpose.msra.mxu1 %v34340_v18  ;;  %26279 = vmatprep.mubr.f32.mxu0 %v4609_v20  ;;  %v34352_v2 = vpack.c.bf16 %v1783_v51, %v1015_v50  ;;  %v1792_v18 = vld [vmem:[%s35344_s8 + $0x2a68] sm:$0x3]  ;;  %v391_v50 = vld [vmem:[%s35337_s10 + $0x4a0] sm:$0xff] }
 0x4f4   : > { %34343 = vmatprep.subr.bf16.mxu0 %v34342_v21  ;;  %v22501_v31 = vpop.f32.mrb[232].mxu0  ;;  %26349 = vmatprep.mubr.f32.mxu1 %v4610_v22  ;;  %v4679_v58 = vcombine.high %v391_v50, %v391_v50  ;;  %v4686_v63 = vrot.slane %v391_v50, %v35369_v25 }
 0x4f5   : > { %v22571_v32 = vpop.f32.mrb[232].mxu1  ;;  %34347 = vmatprep.subr.bf16.mxu1 %v34346_v23  ;;  %v22502_v36 = vadd.f32 %v22501_v31, %v22432_v19  ;;  %v22503_v37 = vpop.f32.mrb[233].mxu0  ;;  %v4659_v19 = vrot.slane %v4645_v9, %v35369_v25  ;;  %v1026_v23 = vld [vmem:[%s35344_s8 + $0x1278] sm:$0xff]  ;;  %v34366_v31 = vpack.c.bf16 %v1792_v18, %v1024_v17 }
 0x4f6   : > { %v22573_v38 = vpop.f32.mrb[233].mxu1  ;;  %v34370_v33 = vpack.c.bf16 %v1794_v24, %v1026_v23  ;;  %v1025_v37 = vld [vmem:[%s35344_s8 + $0x1270] sm:$0xff]  ;;  %v1802_v9 = vld [vmem:[%s35344_s8 + $0x2ab8] sm:$0x3] }
 0x4f7   : > { %v22572_v44 = vadd.f32 %v22571_v32, %v22502_v36  ;;  %v4661_v32 = vcombine.high %v4659_v19, %v4659_v19  ;;  %v1791_v36 = vld [vmem:[%s35344_s8 + $0x2a60] sm:$0x3]  ;;  %v1793_v38 = vld [vmem:[%s35344_s8 + $0x2a70] sm:$0x3] }
 0x4f8   : > { %v34372_v52 = vpack.c.bf16 %v1793_v38, %v1025_v37 }
 0x4f9   : > { %26280 = vmatmul.mubr.f32.vlgmr.msra.gmra.mrb[30].mxu0 %v4601_v5  ;;  %v4643_v5 = vcombine.high %v4635_v54, %v4635_v54 }
 0x4fa   : > { %26350 = vmatmul.mubr.f32.vlgmr.msra.gmra.mrb[30].mxu1 %v4608_v10  ;;  %34345 = vmatpush1.bf16.xpose.msra.mxu0 %v34344_v42  ;;  %v1019_v10 = vld [vmem:[%s35344_s8 + $0x1240] sm:$0xff]  ;;  %v1028_v42 = vld [vmem:[%s35344_s8 + $0x1288] sm:$0xff] }
 0x4fb   : > { %34349 = vmatpush1.bf16.xpose.msra.mxu1 %v34348_v43  ;;  %26419 = vmatprep.mubr.f32.mxu0 %v4626_v45  ;;  %v34360_v27 = vpack.c.bf16 %v1787_v11, %v1019_v10  ;;  %v1796_v43 = vld [vmem:[%s35344_s8 + $0x2a88] sm:$0x3] }
 0x4fc   : > { %34351 = vmatprep.subr.bf16.mxu0 %v34350_v46  ;;  %v22641_v55 = vpop.f32.mrb[234].mxu0  ;;  %26489 = vmatprep.mubr.f32.mxu1 %v4627_v47  ;;  %v392_v10 = vld [vmem:[%s35337_s10 + $0x4a8] sm:$0xff] }
 0x4fd   : > { %v22711_v56 = vpop.f32.mrb[234].mxu1  ;;  %34355 = vmatprep.subr.bf16.mxu1 %v34354_v48  ;;  %v22642_v60 = vadd.f32 %v22641_v55, %v22572_v44  ;;  %v22643_v61 = vpop.f32.mrb[235].mxu0  ;;  %v4676_v44 = vrot.slane %v4662_v34, %v35369_v25  ;;  %v1030_v48 = vld [vmem:[%s35344_s8 + $0x1298] sm:$0xff]  ;;  %v34374_v55 = vpack.c.bf16 %v1796_v43, %v1028_v42  ;;  %v4696_v18 = vcombine.high %v392_v10, %v392_v10 }
 0x4fe   : > { %v22713_v62 = vpop.f32.mrb[235].mxu1  ;;  %v34378_v57 = vpack.c.bf16 %v1798_v49, %v1030_v48  ;;  %v1029_v61 = vld [vmem:[%s35344_s8 + $0x1290] sm:$0xff]  ;;  %v4703_v23 = vrot.slane %v392_v10, %v35369_v25  ;;  %v1806_v34 = vld [vmem:[%s35344_s8 + $0x2ad8] sm:$0x3] }
 0x4ff   : > { %v22712_v4 = vadd.f32 %v22711_v56, %v22642_v60  ;;  %v4678_v56 = vcombine.high %v4676_v44, %v4676_v44  ;;  %v1795_v60 = vld [vmem:[%s35344_s8 + $0x2a80] sm:$0x3]  ;;  %v1797_v62 = vld [vmem:[%s35344_s8 + $0x2a90] sm:$0x3] }
 0x500   : > { %v34380_v12 = vpack.c.bf16 %v1797_v62, %v1029_v61 }
 0x501   : > { %26420 = vmatmul.mubr.f32.vlgmr.msra.gmra.mrb[32].mxu0 %v4618_v30  ;;  %v4660_v30 = vcombine.high %v4652_v14, %v4652_v14 }
 0x502   : > { %26490 = vmatmul.mubr.f32.vlgmr.msra.gmra.mrb[32].mxu1 %v4625_v35  ;;  %34353 = vmatpush1.bf16.xpose.msra.mxu0 %v34352_v2  ;;  %v1023_v35 = vld [vmem:[%s35344_s8 + $0x1260] sm:$0xff]  ;;  %v1032_v2 = vld [vmem:[%s35344_s8 + $0x12a8] sm:$0xff] }
 0x503   : > { %34357 = vmatpush1.bf16.xpose.msra.mxu1 %v34356_v3  ;;  %26559 = vmatprep.mubr.f32.mxu0 %v4643_v5  ;;  %v34368_v51 = vpack.c.bf16 %v1791_v36, %v1023_v35  ;;  %v1800_v3 = vld [vmem:[%s35344_s8 + $0x2aa8] sm:$0x3]  ;;  %v393_v35 = vld [vmem:[%s35337_s10 + $0x4b0] sm:$0xff] }
 0x504   : > { %34359 = vmatprep.subr.bf16.mxu0 %v34358_v6  ;;  %v22781_v15 = vpop.f32.mrb[236].mxu0  ;;  %26629 = vmatprep.mubr.f32.mxu1 %v4644_v7  ;;  %v4713_v43 = vcombine.high %v393_v35, %v393_v35  ;;  %v4720_v48 = vrot.slane %v393_v35, %v35369_v25 }
 0x505   : > { %v22851_v16 = vpop.f32.mrb[236].mxu1  ;;  %34363 = vmatprep.subr.bf16.mxu1 %v34362_v8  ;;  %v22782_v20 = vadd.f32 %v22781_v15, %v22712_v4  ;;  %v22783_v21 = vpop.f32.mrb[237].mxu0  ;;  %v4693_v4 = vrot.slane %v4679_v58, %v35369_v25  ;;  %v1034_v8 = vld [vmem:[%s35344_s8 + $0x12b8] sm:$0xff]  ;;  %v34382_v15 = vpack.c.bf16 %v1800_v3, %v1032_v2 }
 0x506   : > { %v22853_v22 = vpop.f32.mrb[237].mxu1  ;;  %v34386_v17 = vpack.c.bf16 %v1802_v9, %v1034_v8  ;;  %v1033_v21 = vld [vmem:[%s35344_s8 + $0x12b0] sm:$0xff]  ;;  %v1810_v58 = vld [vmem:[%s35344_s8 + $0x2af8] sm:$0x3] }
 0x507   : > { %v22852_v29 = vadd.f32 %v22851_v16, %v22782_v20  ;;  %v4695_v16 = vcombine.high %v4693_v4, %v4693_v4  ;;  %v1799_v20 = vld [vmem:[%s35344_s8 + $0x2aa0] sm:$0x3]  ;;  %v1801_v22 = vld [vmem:[%s35344_s8 + $0x2ab0] sm:$0x3] }
 0x508   : > { %v34388_v37 = vpack.c.bf16 %v1801_v22, %v1033_v21 }
 0x509   : > { %26560 = vmatmul.mubr.f32.vlgmr.msra.gmra.mrb[34].mxu0 %v4635_v54  ;;  %v4677_v54 = vcombine.high %v4669_v39, %v4669_v39 }
 0x50a   : > { %26630 = vmatmul.mubr.f32.vlgmr.msra.gmra.mrb[34].mxu1 %v4642_v59  ;;  %34361 = vmatpush1.bf16.xpose.msra.mxu0 %v34360_v27  ;;  %v1027_v59 = vld [vmem:[%s35344_s8 + $0x1280] sm:$0xff]  ;;  %v1036_v27 = vld [vmem:[%s35344_s8 + $0x12c8] sm:$0xff] }
 0x50b   : > { %34365 = vmatpush1.bf16.xpose.msra.mxu1 %v34364_v28  ;;  %26699 = vmatprep.mubr.f32.mxu0 %v4660_v30  ;;  %v34376_v11 = vpack.c.bf16 %v1795_v60, %v1027_v59  ;;  %v1804_v28 = vld [vmem:[%s35344_s8 + $0x2ac8] sm:$0x3]  ;;  %v394_v59 = vld [vmem:[%s35337_s10 + $0x4b8] sm:$0xff] }
 0x50c   : > { %34367 = vmatprep.subr.bf16.mxu0 %v34366_v31  ;;  %v22921_v40 = vpop.f32.mrb[238].mxu0  ;;  %26769 = vmatprep.mubr.f32.mxu1 %v4661_v32  ;;  %v4730_v3 = vcombine.high %v394_v59, %v394_v59  ;;  %v4737_v8 = vrot.slane %v394_v59, %v35369_v25 }
 0x50d   : > { %v22991_v41 = vpop.f32.mrb[238].mxu1  ;;  %34371 = vmatprep.subr.bf16.mxu1 %v34370_v33  ;;  %v22922_v45 = vadd.f32 %v22921_v40, %v22852_v29  ;;  %v22923_v46 = vpop.f32.mrb[239].mxu0  ;;  %v4710_v29 = vrot.slane %v4696_v18, %v35369_v25  ;;  %v1038_v33 = vld [vmem:[%s35344_s8 + $0x12d8] sm:$0xff]  ;;  %v34390_v40 = vpack.c.bf16 %v1804_v28, %v1036_v27 }
 0x50e   : > { %v22993_v47 = vpop.f32.mrb[239].mxu1  ;;  %v34394_v42 = vpack.c.bf16 %v1806_v34, %v1038_v33  ;;  %v1037_v46 = vld [vmem:[%s35344_s8 + $0x12d0] sm:$0xff]  ;;  %v1814_v18 = vld [vmem:[%s35344_s8 + $0x2b18] sm:$0x3] }
 0x50f   : > { %v22992_v53 = vadd.f32 %v22991_v41, %v22922_v45  ;;  %v4712_v41 = vcombine.high %v4710_v29, %v4710_v29  ;;  %v1803_v45 = vld [vmem:[%s35344_s8 + $0x2ac0] sm:$0x3]  ;;  %v1805_v47 = vld [vmem:[%s35344_s8 + $0x2ad0] sm:$0x3] }
 0x510   : > { %v34396_v61 = vpack.c.bf16 %v1805_v47, %v1037_v46 }
 0x511   : > { %26700 = vmatmul.mubr.f32.vlgmr.msra.gmra.mrb[36].mxu0 %v4652_v14  ;;  %v4694_v14 = vcombine.high %v4686_v63, %v4686_v63 }
 0x512   : > { %26770 = vmatmul.mubr.f32.vlgmr.msra.gmra.mrb[36].mxu1 %v4659_v19  ;;  %34369 = vmatpush1.bf16.xpose.msra.mxu0 %v34368_v51  ;;  %v1031_v19 = vld [vmem:[%s35344_s8 + $0x12a0] sm:$0xff]  ;;  %v1040_v51 = vld [vmem:[%s35344_s8 + $0x12e8] sm:$0xff] }
 0x513   : > { %34373 = vmatpush1.bf16.xpose.msra.mxu1 %v34372_v52  ;;  %26839 = vmatprep.mubr.f32.mxu0 %v4677_v54  ;;  %v34384_v36 = vpack.c.bf16 %v1799_v20, %v1031_v19  ;;  %v1808_v52 = vld [vmem:[%s35344_s8 + $0x2ae8] sm:$0x3]  ;;  %v395_v19 = vld [vmem:[%s35337_s10 + $0x4c0] sm:$0xff] }
 0x514   : > { %34375 = vmatprep.subr.bf16.mxu0 %v34374_v55  ;;  %v23061_v0 = vpop.f32.mrb[240].mxu0  ;;  %26909 = vmatprep.mubr.f32.mxu1 %v4678_v56  ;;  %v4747_v28 = vcombine.high %v395_v19, %v395_v19  ;;  %v4754_v33 = vrot.slane %v395_v19, %v35369_v25 }
 0x515   : > { %v23131_v1 = vpop.f32.mrb[240].mxu1  ;;  %34379 = vmatprep.subr.bf16.mxu1 %v34378_v57  ;;  %v23062_v5 = vadd.f32 %v23061_v0, %v22992_v53  ;;  %v23063_v6 = vpop.f32.mrb[241].mxu0  ;;  %v4727_v53 = vrot.slane %v4713_v43, %v35369_v25  ;;  %v1042_v57 = vld [vmem:[%s35344_s8 + $0x12f8] sm:$0xff]  ;;  %v34398_v0 = vpack.c.bf16 %v1808_v52, %v1040_v51 }
 0x516   : > { %v23133_v7 = vpop.f32.mrb[241].mxu1  ;;  %v34402_v2 = vpack.c.bf16 %v1810_v58, %v1042_v57  ;;  %v1041_v6 = vld [vmem:[%s35344_s8 + $0x12f0] sm:$0xff]  ;;  %v1818_v43 = vld [vmem:[%s35344_s8 + $0x2b38] sm:$0x3] }
 0x517   : > { %v23132_v13 = vadd.f32 %v23131_v1, %v23062_v5  ;;  %v4729_v1 = vcombine.high %v4727_v53, %v4727_v53  ;;  %v1807_v5 = vld [vmem:[%s35344_s8 + $0x2ae0] sm:$0x3]  ;;  %v1809_v7 = vld [vmem:[%s35344_s8 + $0x2af0] sm:$0x3] }
 0x518   : > { %v34404_v21 = vpack.c.bf16 %v1809_v7, %v1041_v6 }
 0x519   : > { %26840 = vmatmul.mubr.f32.vlgmr.msra.gmra.mrb[38].mxu0 %v4669_v39  ;;  %v4711_v39 = vcombine.high %v4703_v23, %v4703_v23 }
 0x51a   : > { %26910 = vmatmul.mubr.f32.vlgmr.msra.gmra.mrb[38].mxu1 %v4676_v44  ;;  %34377 = vmatpush1.bf16.xpose.msra.mxu0 %v34376_v11  ;;  %v1035_v44 = vld [vmem:[%s35344_s8 + $0x12c0] sm:$0xff]  ;;  %v1044_v11 = vld [vmem:[%s35344_s8 + $0x1308] sm:$0xff] }
 0x51b   : > { %34381 = vmatpush1.bf16.xpose.msra.mxu1 %v34380_v12  ;;  %26979 = vmatprep.mubr.f32.mxu0 %v4694_v14  ;;  %v34392_v60 = vpack.c.bf16 %v1803_v45, %v1035_v44  ;;  %v1812_v12 = vld [vmem:[%s35344_s8 + $0x2b08] sm:$0x3] }
 0x51c   : > { %34383 = vmatprep.subr.bf16.mxu0 %v34382_v15  ;;  %v23201_v24 = vpop.f32.mrb[242].mxu0  ;;  %27049 = vmatprep.mubr.f32.mxu1 %v4695_v16  ;;  %v396_v44 = vld [vmem:[%s35337_s10 + $0x4c8] sm:$0xff] }
 0x51d   : > { %v23271_v26 = vpop.f32.mrb[242].mxu1  ;;  %34387 = vmatprep.subr.bf16.mxu1 %v34386_v17  ;;  %v23202_v30 = vadd.f32 %v23201_v24, %v23132_v13  ;;  %v23203_v31 = vpop.f32.mrb[243].mxu0  ;;  %v4744_v13 = vrot.slane %v4730_v3, %v35369_v25  ;;  %v1046_v17 = vld [vmem:[%s35344_s8 + $0x1318] sm:$0xff]  ;;  %v34406_v24 = vpack.c.bf16 %v1812_v12, %v1044_v11  ;;  %v4764_v52 = vcombine.high %v396_v44, %v396_v44 }
 0x51e   : > { %v23273_v32 = vpop.f32.mrb[243].mxu1  ;;  %v34410_v27 = vpack.c.bf16 %v1814_v18, %v1046_v17  ;;  %v1045_v31 = vld [vmem:[%s35344_s8 + $0x1310] sm:$0xff]  ;;  %v4771_v57 = vrot.slane %v396_v44, %v35369_v25  ;;  %v1822_v3 = vld [vmem:[%s35344_s8 + $0x2b58] sm:$0x3] }
 0x51f   : > { %v23272_v38 = vadd.f32 %v23271_v26, %v23202_v30  ;;  %v4746_v26 = vcombine.high %v4744_v13, %v4744_v13  ;;  %v1811_v30 = vld [vmem:[%s35344_s8 + $0x2b00] sm:$0x3]  ;;  %v1813_v32 = vld [vmem:[%s35344_s8 + $0x2b10] sm:$0x3] }
 0x520   : > { %v34412_v46 = vpack.c.bf16 %v1813_v32, %v1045_v31 }
 0x521   : > { %26980 = vmatmul.mubr.f32.vlgmr.msra.gmra.mrb[40].mxu0 %v4686_v63  ;;  %v4728_v63 = vcombine.high %v4720_v48, %v4720_v48 }
 0x522   : > { %27050 = vmatmul.mubr.f32.vlgmr.msra.gmra.mrb[40].mxu1 %v4693_v4  ;;  %34385 = vmatpush1.bf16.xpose.msra.mxu0 %v34384_v36  ;;  %v1039_v4 = vld [vmem:[%s35344_s8 + $0x12e0] sm:$0xff]  ;;  %v1048_v36 = vld [vmem:[%s35344_s8 + $0x1328] sm:$0xff] }
 0x523   : > { %34389 = vmatpush1.bf16.xpose.msra.mxu1 %v34388_v37  ;;  %27119 = vmatprep.mubr.f32.mxu0 %v4711_v39  ;;  %v34400_v20 = vpack.c.bf16 %v1807_v5, %v1039_v4  ;;  %v1816_v37 = vld [vmem:[%s35344_s8 + $0x2b28] sm:$0x3]  ;;  %v397_v4 = vld [vmem:[%s35337_s10 + $0x4d0] sm:$0xff] }
 0x524   : > { %34391 = vmatprep.subr.bf16.mxu0 %v34390_v40  ;;  %v23341_v49 = vpop.f32.mrb[244].mxu0  ;;  %27189 = vmatprep.mubr.f32.mxu1 %v4712_v41  ;;  %v4781_v12 = vcombine.high %v397_v4, %v397_v4  ;;  %v4788_v17 = vrot.slane %v397_v4, %v35369_v25 }
 0x525   : > { %v23411_v50 = vpop.f32.mrb[244].mxu1  ;;  %34395 = vmatprep.subr.bf16.mxu1 %v34394_v42  ;;  %v23342_v54 = vadd.f32 %v23341_v49, %v23272_v38  ;;  %v23343_v55 = vpop.f32.mrb[245].mxu0  ;;  %v4761_v38 = vrot.slane %v4747_v28, %v35369_v25  ;;  %v1050_v42 = vld [vmem:[%s35344_s8 + $0x1338] sm:$0xff]  ;;  %v34414_v49 = vpack.c.bf16 %v1816_v37, %v1048_v36 }
 0x526   : > { %v23413_v56 = vpop.f32.mrb[245].mxu1  ;;  %v34418_v51 = vpack.c.bf16 %v1818_v43, %v1050_v42  ;;  %v1049_v55 = vld [vmem:[%s35344_s8 + $0x1330] sm:$0xff]  ;;  %v1826_v28 = vld [vmem:[%s35344_s8 + $0x2b78] sm:$0x3] }
 0x527   : > { %v23412_v62 = vadd.f32 %v23411_v50, %v23342_v54  ;;  %v4763_v50 = vcombine.high %v4761_v38, %v4761_v38  ;;  %v1815_v54 = vld [vmem:[%s35344_s8 + $0x2b20] sm:$0x3]  ;;  %v1817_v56 = vld [vmem:[%s35344_s8 + $0x2b30] sm:$0x3] }
 0x528   : > { %v34420_v6 = vpack.c.bf16 %v1817_v56, %v1049_v55 }
 0x529   : > { %27120 = vmatmul.mubr.f32.vlgmr.msra.gmra.mrb[42].mxu0 %v4703_v23  ;;  %v4745_v23 = vcombine.high %v4737_v8, %v4737_v8 }
 0x52a   : > { %27190 = vmatmul.mubr.f32.vlgmr.msra.gmra.mrb[42].mxu1 %v4710_v29  ;;  %34393 = vmatpush1.bf16.xpose.msra.mxu0 %v34392_v60  ;;  %v1043_v29 = vld [vmem:[%s35344_s8 + $0x1300] sm:$0xff]  ;;  %v1052_v60 = vld [vmem:[%s35344_s8 + $0x1348] sm:$0xff] }
 0x52b   : > { %34397 = vmatpush1.bf16.xpose.msra.mxu1 %v34396_v61  ;;  %27259 = vmatprep.mubr.f32.mxu0 %v4728_v63  ;;  %v34408_v45 = vpack.c.bf16 %v1811_v30, %v1043_v29  ;;  %v1820_v61 = vld [vmem:[%s35344_s8 + $0x2b48] sm:$0x3]  ;;  %v398_v29 = vld [vmem:[%s35337_s10 + $0x4d8] sm:$0xff] }
 0x52c   : > { %34399 = vmatprep.subr.bf16.mxu0 %v34398_v0  ;;  %v23481_v9 = vpop.f32.mrb[246].mxu0  ;;  %27329 = vmatprep.mubr.f32.mxu1 %v4729_v1  ;;  %v4798_v37 = vcombine.high %v398_v29, %v398_v29  ;;  %v4805_v42 = vrot.slane %v398_v29, %v35369_v25 }
 0x52d   : > { %v23551_v10 = vpop.f32.mrb[246].mxu1  ;;  %34403 = vmatprep.subr.bf16.mxu1 %v34402_v2  ;;  %v23482_v14 = vadd.f32 %v23481_v9, %v23412_v62  ;;  %v23483_v15 = vpop.f32.mrb[247].mxu0  ;;  %v4778_v62 = vrot.slane %v4764_v52, %v35369_v25  ;;  %v1054_v2 = vld [vmem:[%s35344_s8 + $0x1358] sm:$0xff]  ;;  %v34422_v9 = vpack.c.bf16 %v1820_v61, %v1052_v60 }
 0x52e   : > { %v23553_v16 = vpop.f32.mrb[247].mxu1  ;;  %v34426_v11 = vpack.c.bf16 %v1822_v3, %v1054_v2  ;;  %v1053_v15 = vld [vmem:[%s35344_s8 + $0x1350] sm:$0xff]  ;;  %v1830_v52 = vld [vmem:[%s35344_s8 + $0x2b98] sm:$0x3] }
 0x52f   : > { %v23552_v22 = vadd.f32 %v23551_v10, %v23482_v14  ;;  %v4780_v10 = vcombine.high %v4778_v62, %v4778_v62  ;;  %v1819_v14 = vld [vmem:[%s35344_s8 + $0x2b40] sm:$0x3]  ;;  %v1821_v16 = vld [vmem:[%s35344_s8 + $0x2b50] sm:$0x3] }
 0x530   : > { %v34428_v31 = vpack.c.bf16 %v1821_v16, %v1053_v15 }
 0x531   : > { %27260 = vmatmul.mubr.f32.vlgmr.msra.gmra.mrb[44].mxu0 %v4720_v48  ;;  %v4762_v48 = vcombine.high %v4754_v33, %v4754_v33 }
 0x532   : > { %27330 = vmatmul.mubr.f32.vlgmr.msra.gmra.mrb[44].mxu1 %v4727_v53  ;;  %34401 = vmatpush1.bf16.xpose.msra.mxu0 %v34400_v20  ;;  %v1047_v53 = vld [vmem:[%s35344_s8 + $0x1320] sm:$0xff]  ;;  %v1056_v20 = vld [vmem:[%s35344_s8 + $0x1368] sm:$0xff] }
 0x533   : > { %34405 = vmatpush1.bf16.xpose.msra.mxu1 %v34404_v21  ;;  %27399 = vmatprep.mubr.f32.mxu0 %v4745_v23  ;;  %v34416_v5 = vpack.c.bf16 %v1815_v54, %v1047_v53  ;;  %v1824_v21 = vld [vmem:[%s35344_s8 + $0x2b68] sm:$0x3]  ;;  %v399_v53 = vld [vmem:[%s35337_s10 + $0x4e0] sm:$0xff] }
 0x534   : > { %34407 = vmatprep.subr.bf16.mxu0 %v34406_v24  ;;  %v23621_v34 = vpop.f32.mrb[248].mxu0  ;;  %27469 = vmatprep.mubr.f32.mxu1 %v4746_v26  ;;  %v4815_v61 = vcombine.high %v399_v53, %v399_v53  ;;  %v4822_v2 = vrot.slane %v399_v53, %v35369_v25 }
 0x535   : > { %v23691_v35 = vpop.f32.mrb[248].mxu1  ;;  %34411 = vmatprep.subr.bf16.mxu1 %v34410_v27  ;;  %v23622_v39 = vadd.f32 %v23621_v34, %v23552_v22  ;;  %v23623_v40 = vpop.f32.mrb[249].mxu0  ;;  %v4795_v22 = vrot.slane %v4781_v12, %v35369_v25  ;;  %v1058_v27 = vld [vmem:[%s35344_s8 + $0x1378] sm:$0xff]  ;;  %v34430_v34 = vpack.c.bf16 %v1824_v21, %v1056_v20 }
 0x536   : > { %v23693_v41 = vpop.f32.mrb[249].mxu1  ;;  %v34434_v36 = vpack.c.bf16 %v1826_v28, %v1058_v27  ;;  %v1057_v40 = vld [vmem:[%s35344_s8 + $0x1370] sm:$0xff]  ;;  %v1834_v12 = vld [vmem:[%s35344_s8 + $0x2bb8] sm:$0x3] }
 0x537   : > { %v23692_v47 = vadd.f32 %v23691_v35, %v23622_v39  ;;  %v4797_v35 = vcombine.high %v4795_v22, %v4795_v22  ;;  %v1823_v39 = vld [vmem:[%s35344_s8 + $0x2b60] sm:$0x3]  ;;  %v1825_v41 = vld [vmem:[%s35344_s8 + $0x2b70] sm:$0x3] }
 0x538   : > { %v34436_v55 = vpack.c.bf16 %v1825_v41, %v1057_v40 }
 0x539   : > { %27400 = vmatmul.mubr.f32.vlgmr.msra.gmra.mrb[46].mxu0 %v4737_v8  ;;  %v4779_v8 = vcombine.high %v4771_v57, %v4771_v57 }
 0x53a   : > { %27470 = vmatmul.mubr.f32.vlgmr.msra.gmra.mrb[46].mxu1 %v4744_v13  ;;  %34409 = vmatpush1.bf16.xpose.msra.mxu0 %v34408_v45  ;;  %v1051_v13 = vld [vmem:[%s35344_s8 + $0x1340] sm:$0xff]  ;;  %v1060_v45 = vld [vmem:[%s35344_s8 + $0x1388] sm:$0xff] }
 0x53b   : > { %34413 = vmatpush1.bf16.xpose.msra.mxu1 %v34412_v46  ;;  %27539 = vmatprep.mubr.f32.mxu0 %v4762_v48  ;;  %v34424_v30 = vpack.c.bf16 %v1819_v14, %v1051_v13  ;;  %v1828_v46 = vld [vmem:[%s35344_s8 + $0x2b88] sm:$0x3] }
 0x53c   : > { %34415 = vmatprep.subr.bf16.mxu0 %v34414_v49  ;;  %v23761_v58 = vpop.f32.mrb[250].mxu0  ;;  %27609 = vmatprep.mubr.f32.mxu1 %v4763_v50  ;;  %v400_v13 = vld [vmem:[%s35337_s10 + $0x4e8] sm:$0xff] }
 0x53d   : > { %v23831_v59 = vpop.f32.mrb[250].mxu1  ;;  %34419 = vmatprep.subr.bf16.mxu1 %v34418_v51  ;;  %v23762_v63 = vadd.f32 %v23761_v58, %v23692_v47  ;;  %v23763_v0 = vpop.f32.mrb[251].mxu0  ;;  %v4812_v47 = vrot.slane %v4798_v37, %v35369_v25  ;;  %v1062_v51 = vld [vmem:[%s35344_s8 + $0x1398] sm:$0xff]  ;;  %v34438_v58 = vpack.c.bf16 %v1828_v46, %v1060_v45  ;;  %v4832_v21 = vcombine.high %v400_v13, %v400_v13 }
 0x53e   : > { %v23833_v1 = vpop.f32.mrb[251].mxu1  ;;  %v34442_v60 = vpack.c.bf16 %v1830_v52, %v1062_v51  ;;  %v1061_v0 = vld [vmem:[%s35344_s8 + $0x1390] sm:$0xff]  ;;  %v4839_v27 = vrot.slane %v400_v13, %v35369_v25  ;;  %v1838_v37 = vld [vmem:[%s35344_s8 + $0x2bd8] sm:$0x3] }
 0x53f   : > { %v23832_v7 = vadd.f32 %v23831_v59, %v23762_v63  ;;  %v4814_v59 = vcombine.high %v4812_v47, %v4812_v47  ;;  %v1827_v63 = vld [vmem:[%s35344_s8 + $0x2b80] sm:$0x3]  ;;  %v1829_v1 = vld [vmem:[%s35344_s8 + $0x2b90] sm:$0x3] }
 0x540   : > { %v34444_v15 = vpack.c.bf16 %v1829_v1, %v1061_v0 }
 0x541   : > { %27540 = vmatmul.mubr.f32.vlgmr.msra.gmra.mrb[48].mxu0 %v4754_v33  ;;  %v4796_v33 = vcombine.high %v4788_v17, %v4788_v17 }
 0x542   : > { %27610 = vmatmul.mubr.f32.vlgmr.msra.gmra.mrb[48].mxu1 %v4761_v38  ;;  %34417 = vmatpush1.bf16.xpose.msra.mxu0 %v34416_v5  ;;  %v1055_v38 = vld [vmem:[%s35344_s8 + $0x1360] sm:$0xff]  ;;  %v1064_v5 = vld [vmem:[%s35344_s8 + $0x13a8] sm:$0xff] }
 0x543   : > { %34421 = vmatpush1.bf16.xpose.msra.mxu1 %v34420_v6  ;;  %27679 = vmatprep.mubr.f32.mxu0 %v4779_v8  ;;  %v34432_v54 = vpack.c.bf16 %v1823_v39, %v1055_v38  ;;  %v1832_v6 = vld [vmem:[%s35344_s8 + $0x2ba8] sm:$0x3]  ;;  %v401_v38 = vld [vmem:[%s35337_s10 + $0x4f0] sm:$0xff] }
 0x544   : > { %34423 = vmatprep.subr.bf16.mxu0 %v34422_v9  ;;  %v23901_v18 = vpop.f32.mrb[252].mxu0  ;;  %27749 = vmatprep.mubr.f32.mxu1 %v4780_v10  ;;  %v4849_v46 = vcombine.high %v401_v38, %v401_v38  ;;  %v4856_v51 = vrot.slane %v401_v38, %v35369_v25 }
 0x545   : > { %v23971_v19 = vpop.f32.mrb[252].mxu1  ;;  %34427 = vmatprep.subr.bf16.mxu1 %v34426_v11  ;;  %v23902_v23 = vadd.f32 %v23901_v18, %v23832_v7  ;;  %v23903_v24 = vpop.f32.mrb[253].mxu0  ;;  %v4829_v7 = vrot.slane %v4815_v61, %v35369_v25  ;;  %v1066_v11 = vld [vmem:[%s35344_s8 + $0x13b8] sm:$0xff]  ;;  %v34446_v18 = vpack.c.bf16 %v1832_v6, %v1064_v5 }
 0x546   : > { %v23973_v26 = vpop.f32.mrb[253].mxu1  ;;  %v34450_v20 = vpack.c.bf16 %v1834_v12, %v1066_v11  ;;  %v1065_v24 = vld [vmem:[%s35344_s8 + $0x13b0] sm:$0xff]  ;;  %v1842_v61 = vld [vmem:[%s35344_s8 + $0x2bf8] sm:$0x3] }
 0x547   : > { %v23972_v32 = vadd.f32 %v23971_v19, %v23902_v23  ;;  %v4831_v19 = vcombine.high %v4829_v7, %v4829_v7  ;;  %v1831_v23 = vld [vmem:[%s35344_s8 + $0x2ba0] sm:$0x3]  ;;  %v1833_v26 = vld [vmem:[%s35344_s8 + $0x2bb0] sm:$0x3] }
 0x548   : > { %v34452_v40 = vpack.c.bf16 %v1833_v26, %v1065_v24 }
 0x549   : > { %27680 = vmatmul.mubr.f32.vlgmr.msra.gmra.mrb[50].mxu0 %v4771_v57  ;;  %v4813_v57 = vcombine.high %v4805_v42, %v4805_v42 }
 0x54a   : > { %27750 = vmatmul.mubr.f32.vlgmr.msra.gmra.mrb[50].mxu1 %v4778_v62  ;;  %34425 = vmatpush1.bf16.xpose.msra.mxu0 %v34424_v30  ;;  %v1059_v62 = vld [vmem:[%s35344_s8 + $0x1380] sm:$0xff]  ;;  %v1068_v30 = vld [vmem:[%s35344_s8 + $0x13c8] sm:$0xff] }
 0x54b   : > { %34429 = vmatpush1.bf16.xpose.msra.mxu1 %v34428_v31  ;;  %27819 = vmatprep.mubr.f32.mxu0 %v4796_v33  ;;  %v34440_v14 = vpack.c.bf16 %v1827_v63, %v1059_v62  ;;  %v1836_v31 = vld [vmem:[%s35344_s8 + $0x2bc8] sm:$0x3]  ;;  %v402_v62 = vld [vmem:[%s35337_s10 + $0x4f8] sm:$0xff] }
 0x54c   : > { %34431 = vmatprep.subr.bf16.mxu0 %v34430_v34  ;;  %v24041_v43 = vpop.f32.mrb[254].mxu0  ;;  %27889 = vmatprep.mubr.f32.mxu1 %v4797_v35  ;;  %v4866_v6 = vcombine.high %v402_v62, %v402_v62  ;;  %v4873_v11 = vrot.slane %v402_v62, %v35369_v25 }
 0x54d   : > { %v24111_v44 = vpop.f32.mrb[254].mxu1  ;;  %34435 = vmatprep.subr.bf16.mxu1 %v34434_v36  ;;  %v24042_v48 = vadd.f32 %v24041_v43, %v23972_v32  ;;  %v24043_v49 = vpop.f32.mrb[255].mxu0  ;;  %v4846_v32 = vrot.slane %v4832_v21, %v35369_v25  ;;  %v1070_v36 = vld [vmem:[%s35344_s8 + $0x13d8] sm:$0xff]  ;;  %v34454_v43 = vpack.c.bf16 %v1836_v31, %v1068_v30 }
 0x54e   : > { %v24113_v50 = vpop.f32.mrb[255].mxu1  ;;  %v34458_v45 = vpack.c.bf16 %v1838_v37, %v1070_v36  ;;  %v1069_v49 = vld [vmem:[%s35344_s8 + $0x13d0] sm:$0xff]  ;;  %v1846_v21 = vld [vmem:[%s35344_s8 + $0x2c18] sm:$0x3] }
 0x54f   : > { %v24112_v56 = vadd.f32 %v24111_v44, %v24042_v48  ;;  %v4848_v44 = vcombine.high %v4846_v32, %v4846_v32  ;;  %v1835_v48 = vld [vmem:[%s35344_s8 + $0x2bc0] sm:$0x3]  ;;  %v1837_v50 = vld [vmem:[%s35344_s8 + $0x2bd0] sm:$0x3] }
 0x550   : > { %v34460_v0 = vpack.c.bf16 %v1837_v50, %v1069_v49 }
 0x551   : > { %27820 = vmatmul.mubr.f32.vlgmr.msra.gmra.mrb[52].mxu0 %v4788_v17  ;;  %v4830_v17 = vcombine.high %v4822_v2, %v4822_v2 }
 0x552   : > { %27890 = vmatmul.mubr.f32.vlgmr.msra.gmra.mrb[52].mxu1 %v4795_v22  ;;  %34433 = vmatpush1.bf16.xpose.msra.mxu0 %v34432_v54  ;;  %v1063_v22 = vld [vmem:[%s35344_s8 + $0x13a0] sm:$0xff]  ;;  %v1072_v54 = vld [vmem:[%s35344_s8 + $0x13e8] sm:$0xff] }
 0x553   : > { %34437 = vmatpush1.bf16.xpose.msra.mxu1 %v34436_v55  ;;  %27959 = vmatprep.mubr.f32.mxu0 %v4813_v57  ;;  %v34448_v39 = vpack.c.bf16 %v1831_v23, %v1063_v22  ;;  %v1840_v55 = vld [vmem:[%s35344_s8 + $0x2be8] sm:$0x3]  ;;  %v403_v22 = vld [vmem:[%s35337_s10 + $0x500] sm:$0xff] }
 0x554   : > { %34439 = vmatprep.subr.bf16.mxu0 %v34438_v58  ;;  %v24181_v3 = vpop.f32.mrb[0].mxu0  ;;  %28029 = vmatprep.mubr.f32.mxu1 %v4814_v59  ;;  %v4883_v31 = vcombine.high %v403_v22, %v403_v22  ;;  %v4890_v36 = vrot.slane %v403_v22, %v35369_v25 }
 0x555   : > { %v24251_v4 = vpop.f32.mrb[0].mxu1  ;;  %34443 = vmatprep.subr.bf16.mxu1 %v34442_v60  ;;  %v24182_v8 = vadd.f32 %v24181_v3, %v24112_v56  ;;  %v24183_v9 = vpop.f32.mrb[1].mxu0  ;;  %v4863_v56 = vrot.slane %v4849_v46, %v35369_v25  ;;  %v1074_v60 = vld [vmem:[%s35344_s8 + $0x13f8] sm:$0xff]  ;;  %v34462_v3 = vpack.c.bf16 %v1840_v55, %v1072_v54 }
 0x556   : > { %v24253_v10 = vpop.f32.mrb[1].mxu1  ;;  %v34466_v5 = vpack.c.bf16 %v1842_v61, %v1074_v60  ;;  %v1073_v9 = vld [vmem:[%s35344_s8 + $0x13f0] sm:$0xff]  ;;  %v1850_v46 = vld [vmem:[%s35344_s8 + $0x2c38] sm:$0x3] }
 0x557   : > { %v24252_v16 = vadd.f32 %v24251_v4, %v24182_v8  ;;  %v4865_v4 = vcombine.high %v4863_v56, %v4863_v56  ;;  %v1839_v8 = vld [vmem:[%s35344_s8 + $0x2be0] sm:$0x3]  ;;  %v1841_v10 = vld [vmem:[%s35344_s8 + $0x2bf0] sm:$0x3] }
 0x558   : > { %v34468_v24 = vpack.c.bf16 %v1841_v10, %v1073_v9 }
 0x559   : > { %27960 = vmatmul.mubr.f32.vlgmr.msra.gmra.mrb[54].mxu0 %v4805_v42  ;;  %v4847_v42 = vcombine.high %v4839_v27, %v4839_v27 }
 0x55a   : > { %28030 = vmatmul.mubr.f32.vlgmr.msra.gmra.mrb[54].mxu1 %v4812_v47  ;;  %34441 = vmatpush1.bf16.xpose.msra.mxu0 %v34440_v14  ;;  %v1067_v47 = vld [vmem:[%s35344_s8 + $0x13c0] sm:$0xff]  ;;  %v1076_v14 = vld [vmem:[%s35344_s8 + $0x1408] sm:$0xff] }
 0x55b   : > { %34445 = vmatpush1.bf16.xpose.msra.mxu1 %v34444_v15  ;;  %28099 = vmatprep.mubr.f32.mxu0 %v4830_v17  ;;  %v34456_v63 = vpack.c.bf16 %v1835_v48, %v1067_v47  ;;  %v1844_v15 = vld [vmem:[%s35344_s8 + $0x2c08] sm:$0x3] }
 0x55c   : > { %34447 = vmatprep.subr.bf16.mxu0 %v34446_v18  ;;  %v24321_v28 = vpop.f32.mrb[2].mxu0  ;;  %28169 = vmatprep.mubr.f32.mxu1 %v4831_v19  ;;  %v404_v47 = vld [vmem:[%s35337_s10 + $0x508] sm:$0xff] }
 0x55d   : > { %v24391_v29 = vpop.f32.mrb[2].mxu1  ;;  %34451 = vmatprep.subr.bf16.mxu1 %v34450_v20  ;;  %v24322_v33 = vadd.f32 %v24321_v28, %v24252_v16  ;;  %v24323_v34 = vpop.f32.mrb[3].mxu0  ;;  %v4880_v16 = vrot.slane %v4866_v6, %v35369_v25  ;;  %v1078_v20 = vld [vmem:[%s35344_s8 + $0x1418] sm:$0xff]  ;;  %v34470_v28 = vpack.c.bf16 %v1844_v15, %v1076_v14  ;;  %v4900_v55 = vcombine.high %v404_v47, %v404_v47 }
 0x55e   : > { %v24393_v35 = vpop.f32.mrb[3].mxu1  ;;  %v34474_v30 = vpack.c.bf16 %v1846_v21, %v1078_v20  ;;  %v1077_v34 = vld [vmem:[%s35344_s8 + $0x1410] sm:$0xff]  ;;  %v4907_v60 = vrot.slane %v404_v47, %v35369_v25  ;;  %v1854_v6 = vld [vmem:[%s35344_s8 + $0x2c58] sm:$0x3] }
 0x55f   : > { %v24392_v41 = vadd.f32 %v24391_v29, %v24322_v33  ;;  %v4882_v29 = vcombine.high %v4880_v16, %v4880_v16  ;;  %v1843_v33 = vld [vmem:[%s35344_s8 + $0x2c00] sm:$0x3]  ;;  %v1845_v35 = vld [vmem:[%s35344_s8 + $0x2c10] sm:$0x3] }
 0x560   : > { %v34476_v49 = vpack.c.bf16 %v1845_v35, %v1077_v34 }
 0x561   : > { %28100 = vmatmul.mubr.f32.vlgmr.msra.gmra.mrb[56].mxu0 %v4822_v2  ;;  %v4864_v2 = vcombine.high %v4856_v51, %v4856_v51 }
 0x562   : > { %28170 = vmatmul.mubr.f32.vlgmr.msra.gmra.mrb[56].mxu1 %v4829_v7  ;;  %34449 = vmatpush1.bf16.xpose.msra.mxu0 %v34448_v39  ;;  %v1071_v7 = vld [vmem:[%s35344_s8 + $0x13e0] sm:$0xff]  ;;  %v1080_v39 = vld [vmem:[%s35344_s8 + $0x1428] sm:$0xff] }
 0x563   : > { %34453 = vmatpush1.bf16.xpose.msra.mxu1 %v34452_v40  ;;  %28239 = vmatprep.mubr.f32.mxu0 %v4847_v42  ;;  %v34464_v23 = vpack.c.bf16 %v1839_v8, %v1071_v7  ;;  %v1848_v40 = vld [vmem:[%s35344_s8 + $0x2c28] sm:$0x3]  ;;  %v405_v7 = vld [vmem:[%s35337_s10 + $0x510] sm:$0xff] }
 0x564   : > { %34455 = vmatprep.subr.bf16.mxu0 %v34454_v43  ;;  %v24461_v52 = vpop.f32.mrb[4].mxu0  ;;  %28309 = vmatprep.mubr.f32.mxu1 %v4848_v44  ;;  %v4917_v15 = vcombine.high %v405_v7, %v405_v7  ;;  %v4924_v20 = vrot.slane %v405_v7, %v35369_v25 }
 0x565   : > { %v24531_v53 = vpop.f32.mrb[4].mxu1  ;;  %34459 = vmatprep.subr.bf16.mxu1 %v34458_v45  ;;  %v24462_v57 = vadd.f32 %v24461_v52, %v24392_v41  ;;  %v24463_v58 = vpop.f32.mrb[5].mxu0  ;;  %v4897_v41 = vrot.slane %v4883_v31, %v35369_v25  ;;  %v1082_v45 = vld [vmem:[%s35344_s8 + $0x1438] sm:$0xff]  ;;  %v34478_v52 = vpack.c.bf16 %v1848_v40, %v1080_v39 }
 0x566   : > { %v24533_v59 = vpop.f32.mrb[5].mxu1  ;;  %v34482_v54 = vpack.c.bf16 %v1850_v46, %v1082_v45  ;;  %v1081_v58 = vld [vmem:[%s35344_s8 + $0x1430] sm:$0xff]  ;;  %v1858_v31 = vld [vmem:[%s35344_s8 + $0x2c78] sm:$0x3] }
 0x567   : > { %v24532_v1 = vadd.f32 %v24531_v53, %v24462_v57  ;;  %v4899_v53 = vcombine.high %v4897_v41, %v4897_v41  ;;  %v1847_v57 = vld [vmem:[%s35344_s8 + $0x2c20] sm:$0x3]  ;;  %v1849_v59 = vld [vmem:[%s35344_s8 + $0x2c30] sm:$0x3] }
 0x568   : > { %v34484_v9 = vpack.c.bf16 %v1849_v59, %v1081_v58 }
 0x569   : > { %28240 = vmatmul.mubr.f32.vlgmr.msra.gmra.mrb[58].mxu0 %v4839_v27  ;;  %v4881_v27 = vcombine.high %v4873_v11, %v4873_v11 }
 0x56a   : > { %28310 = vmatmul.mubr.f32.vlgmr.msra.gmra.mrb[58].mxu1 %v4846_v32  ;;  %34457 = vmatpush1.bf16.xpose.msra.mxu0 %v34456_v63  ;;  %v1075_v32 = vld [vmem:[%s35344_s8 + $0x1400] sm:$0xff]  ;;  %v1084_v63 = vld [vmem:[%s35344_s8 + $0x1448] sm:$0xff] }
 0x56b   : > { %34461 = vmatpush1.bf16.xpose.msra.mxu1 %v34460_v0  ;;  %28379 = vmatprep.mubr.f32.mxu0 %v4864_v2  ;;  %v34472_v48 = vpack.c.bf16 %v1843_v33, %v1075_v32  ;;  %v1852_v0 = vld [vmem:[%s35344_s8 + $0x2c48] sm:$0x3]  ;;  %v406_v32 = vld [vmem:[%s35337_s10 + $0x518] sm:$0xff] }
 0x56c   : > { %34463 = vmatprep.subr.bf16.mxu0 %v34462_v3  ;;  %v24601_v12 = vpop.f32.mrb[6].mxu0  ;;  %28449 = vmatprep.mubr.f32.mxu1 %v4865_v4  ;;  %v4934_v40 = vcombine.high %v406_v32, %v406_v32  ;;  %v4941_v45 = vrot.slane %v406_v32, %v35369_v25 }
 0x56d   : > { %v24671_v13 = vpop.f32.mrb[6].mxu1  ;;  %34467 = vmatprep.subr.bf16.mxu1 %v34466_v5  ;;  %v24602_v17 = vadd.f32 %v24601_v12, %v24532_v1  ;;  %v24603_v18 = vpop.f32.mrb[7].mxu0  ;;  %v4914_v1 = vrot.slane %v4900_v55, %v35369_v25  ;;  %v1086_v5 = vld [vmem:[%s35344_s8 + $0x1458] sm:$0xff]  ;;  %v34486_v12 = vpack.c.bf16 %v1852_v0, %v1084_v63 }
 0x56e   : > { %v24673_v19 = vpop.f32.mrb[7].mxu1  ;;  %v34490_v14 = vpack.c.bf16 %v1854_v6, %v1086_v5  ;;  %v1085_v18 = vld [vmem:[%s35344_s8 + $0x1450] sm:$0xff]  ;;  %v1862_v55 = vld [vmem:[%s35344_s8 + $0x2c98] sm:$0x3] }
 0x56f   : > { %v24672_v26 = vadd.f32 %v24671_v13, %v24602_v17  ;;  %v4916_v13 = vcombine.high %v4914_v1, %v4914_v1  ;;  %v1851_v17 = vld [vmem:[%s35344_s8 + $0x2c40] sm:$0x3]  ;;  %v1853_v19 = vld [vmem:[%s35344_s8 + $0x2c50] sm:$0x3] }
 0x570   : > { %v34492_v34 = vpack.c.bf16 %v1853_v19, %v1085_v18 }
 0x571   : > { %28380 = vmatmul.mubr.f32.vlgmr.msra.gmra.mrb[60].mxu0 %v4856_v51  ;;  %v4898_v51 = vcombine.high %v4890_v36, %v4890_v36 }
 0x572   : > { %28450 = vmatmul.mubr.f32.vlgmr.msra.gmra.mrb[60].mxu1 %v4863_v56  ;;  %34465 = vmatpush1.bf16.xpose.msra.mxu0 %v34464_v23  ;;  %v1079_v56 = vld [vmem:[%s35344_s8 + $0x1420] sm:$0xff]  ;;  %v1088_v23 = vld [vmem:[%s35344_s8 + $0x1468] sm:$0xff] }
 0x573   : > { %34469 = vmatpush1.bf16.xpose.msra.mxu1 %v34468_v24  ;;  %28519 = vmatprep.mubr.f32.mxu0 %v4881_v27  ;;  %v34480_v8 = vpack.c.bf16 %v1847_v57, %v1079_v56  ;;  %v1856_v24 = vld [vmem:[%s35344_s8 + $0x2c68] sm:$0x3]  ;;  %v407_v56 = vld [vmem:[%s35337_s10 + $0x520] sm:$0xff] }
 0x574   : > { %34471 = vmatprep.subr.bf16.mxu0 %v34470_v28  ;;  %v24741_v37 = vpop.f32.mrb[8].mxu0  ;;  %28589 = vmatprep.mubr.f32.mxu1 %v4882_v29  ;;  %v4951_v0 = vcombine.high %v407_v56, %v407_v56  ;;  %v4958_v5 = vrot.slane %v407_v56, %v35369_v25 }
 0x575   : > { %v24811_v38 = vpop.f32.mrb[8].mxu1  ;;  %34475 = vmatprep.subr.bf16.mxu1 %v34474_v30  ;;  %v24742_v42 = vadd.f32 %v24741_v37, %v24672_v26  ;;  %v24743_v43 = vpop.f32.mrb[9].mxu0  ;;  %v4931_v26 = vrot.slane %v4917_v15, %v35369_v25  ;;  %v1090_v30 = vld [vmem:[%s35344_s8 + $0x1478] sm:$0xff]  ;;  %v34494_v37 = vpack.c.bf16 %v1856_v24, %v1088_v23 }
 0x576   : > { %v24813_v44 = vpop.f32.mrb[9].mxu1  ;;  %v34498_v39 = vpack.c.bf16 %v1858_v31, %v1090_v30  ;;  %v1089_v43 = vld [vmem:[%s35344_s8 + $0x1470] sm:$0xff]  ;;  %v1866_v15 = vld [vmem:[%s35344_s8 + $0x2cb8] sm:$0x3] }
 0x577   : > { %v24812_v50 = vadd.f32 %v24811_v38, %v24742_v42  ;;  %v4933_v38 = vcombine.high %v4931_v26, %v4931_v26  ;;  %v1855_v42 = vld [vmem:[%s35344_s8 + $0x2c60] sm:$0x3]  ;;  %v1857_v44 = vld [vmem:[%s35344_s8 + $0x2c70] sm:$0x3] }
 0x578   : > { %v34500_v58 = vpack.c.bf16 %v1857_v44, %v1089_v43 }
 0x579   : > { %28520 = vmatmul.mubr.f32.vlgmr.msra.gmra.mrb[62].mxu0 %v4873_v11  ;;  %v4915_v11 = vcombine.high %v4907_v60, %v4907_v60 }
 0x57a   : > { %28590 = vmatmul.mubr.f32.vlgmr.msra.gmra.mrb[62].mxu1 %v4880_v16  ;;  %34473 = vmatpush1.bf16.xpose.msra.mxu0 %v34472_v48  ;;  %v1083_v16 = vld [vmem:[%s35344_s8 + $0x1440] sm:$0xff]  ;;  %v1092_v48 = vld [vmem:[%s35344_s8 + $0x1488] sm:$0xff] }
 0x57b   : > { %34477 = vmatpush1.bf16.xpose.msra.mxu1 %v34476_v49  ;;  %28659 = vmatprep.mubr.f32.mxu0 %v4898_v51  ;;  %v34488_v33 = vpack.c.bf16 %v1851_v17, %v1083_v16  ;;  %v1860_v49 = vld [vmem:[%s35344_s8 + $0x2c88] sm:$0x3] }
 0x57c   : > { %34479 = vmatprep.subr.bf16.mxu0 %v34478_v52  ;;  %v24881_v61 = vpop.f32.mrb[10].mxu0  ;;  %28729 = vmatprep.mubr.f32.mxu1 %v4899_v53  ;;  %v408_v16 = vld [vmem:[%s35337_s10 + $0x528] sm:$0xff] }
 0x57d   : > { %v24951_v62 = vpop.f32.mrb[10].mxu1  ;;  %34483 = vmatprep.subr.bf16.mxu1 %v34482_v54  ;;  %v24882_v2 = vadd.f32 %v24881_v61, %v24812_v50  ;;  %v24883_v3 = vpop.f32.mrb[11].mxu0  ;;  %v4948_v50 = vrot.slane %v4934_v40, %v35369_v25  ;;  %v1094_v54 = vld [vmem:[%s35344_s8 + $0x1498] sm:$0xff]  ;;  %v34502_v61 = vpack.c.bf16 %v1860_v49, %v1092_v48  ;;  %v4968_v24 = vcombine.high %v408_v16, %v408_v16 }
 0x57e   : > { %v24953_v4 = vpop.f32.mrb[11].mxu1  ;;  %v34506_v63 = vpack.c.bf16 %v1862_v55, %v1094_v54  ;;  %v1093_v3 = vld [vmem:[%s35344_s8 + $0x1490] sm:$0xff]  ;;  %v4975_v30 = vrot.slane %v408_v16, %v35369_v25  ;;  %v1870_v40 = vld [vmem:[%s35344_s8 + $0x2cd8] sm:$0x3] }
 0x57f   : > { %v24952_v10 = vadd.f32 %v24951_v62, %v24882_v2  ;;  %v4950_v62 = vcombine.high %v4948_v50, %v4948_v50  ;;  %v1859_v2 = vld [vmem:[%s35344_s8 + $0x2c80] sm:$0x3]  ;;  %v1861_v4 = vld [vmem:[%s35344_s8 + $0x2c90] sm:$0x3] }
 0x580   : > { %v34508_v18 = vpack.c.bf16 %v1861_v4, %v1093_v3 }
 0x581   : > { %28660 = vmatmul.mubr.f32.vlgmr.msra.gmra.mrb[64].mxu0 %v4890_v36  ;;  %v4932_v36 = vcombine.high %v4924_v20, %v4924_v20 }
 0x582   : > { %28730 = vmatmul.mubr.f32.vlgmr.msra.gmra.mrb[64].mxu1 %v4897_v41  ;;  %34481 = vmatpush1.bf16.xpose.msra.mxu0 %v34480_v8  ;;  %v1087_v41 = vld [vmem:[%s35344_s8 + $0x1460] sm:$0xff]  ;;  %v1096_v8 = vld [vmem:[%s35344_s8 + $0x14a8] sm:$0xff] }
 0x583   : > { %34485 = vmatpush1.bf16.xpose.msra.mxu1 %v34484_v9  ;;  %28799 = vmatprep.mubr.f32.mxu0 %v4915_v11  ;;  %v34496_v57 = vpack.c.bf16 %v1855_v42, %v1087_v41  ;;  %v1864_v9 = vld [vmem:[%s35344_s8 + $0x2ca8] sm:$0x3]  ;;  %v409_v41 = vld [vmem:[%s35337_s10 + $0x530] sm:$0xff] }
 0x584   : > { %34487 = vmatprep.subr.bf16.mxu0 %v34486_v12  ;;  %v25021_v21 = vpop.f32.mrb[12].mxu0  ;;  %28869 = vmatprep.mubr.f32.mxu1 %v4916_v13  ;;  %v4985_v49 = vcombine.high %v409_v41, %v409_v41  ;;  %v4992_v54 = vrot.slane %v409_v41, %v35369_v25 }
 0x585   : > { %v25091_v22 = vpop.f32.mrb[12].mxu1  ;;  %34491 = vmatprep.subr.bf16.mxu1 %v34490_v14  ;;  %v25022_v27 = vadd.f32 %v25021_v21, %v24952_v10  ;;  %v25023_v28 = vpop.f32.mrb[13].mxu0  ;;  %v4965_v10 = vrot.slane %v4951_v0, %v35369_v25  ;;  %v1098_v14 = vld [vmem:[%s35344_s8 + $0x14b8] sm:$0xff]  ;;  %v34510_v21 = vpack.c.bf16 %v1864_v9, %v1096_v8 }
 0x586   : > { %v25093_v29 = vpop.f32.mrb[13].mxu1  ;;  %v34514_v23 = vpack.c.bf16 %v1866_v15, %v1098_v14  ;;  %v1097_v28 = vld [vmem:[%s35344_s8 + $0x14b0] sm:$0xff]  ;;  %v1874_v0 = vld [vmem:[%s35344_s8 + $0x2cf8] sm:$0x3] }
 0x587   : > { %v25092_v35 = vadd.f32 %v25091_v22, %v25022_v27  ;;  %v4967_v22 = vcombine.high %v4965_v10, %v4965_v10  ;;  %v1863_v27 = vld [vmem:[%s35344_s8 + $0x2ca0] sm:$0x3]  ;;  %v1865_v29 = vld [vmem:[%s35344_s8 + $0x2cb0] sm:$0x3] }
 0x588   : > { %v34516_v43 = vpack.c.bf16 %v1865_v29, %v1097_v28 }
 0x589   : > { %28800 = vmatmul.mubr.f32.vlgmr.msra.gmra.mrb[66].mxu0 %v4907_v60  ;;  %v4949_v60 = vcombine.high %v4941_v45, %v4941_v45 }
 0x58a   : > { %28870 = vmatmul.mubr.f32.vlgmr.msra.gmra.mrb[66].mxu1 %v4914_v1  ;;  %34489 = vmatpush1.bf16.xpose.msra.mxu0 %v34488_v33  ;;  %v1091_v1 = vld [vmem:[%s35344_s8 + $0x1480] sm:$0xff]  ;;  %v1100_v33 = vld [vmem:[%s35344_s8 + $0x14c8] sm:$0xff] }
 0x58b   : > { %34493 = vmatpush1.bf16.xpose.msra.mxu1 %v34492_v34  ;;  %28939 = vmatprep.mubr.f32.mxu0 %v4932_v36  ;;  %v34504_v17 = vpack.c.bf16 %v1859_v2, %v1091_v1  ;;  %v1868_v34 = vld [vmem:[%s35344_s8 + $0x2cc8] sm:$0x3]  ;;  %v410_v1 = vld [vmem:[%s35337_s10 + $0x538] sm:$0xff] }
 0x58c   : > { %34495 = vmatprep.subr.bf16.mxu0 %v34494_v37  ;;  %v25161_v46 = vpop.f32.mrb[14].mxu0  ;;  %29009 = vmatprep.mubr.f32.mxu1 %v4933_v38  ;;  %v5002_v9 = vcombine.high %v410_v1, %v410_v1  ;;  %v5009_v14 = vrot.slane %v410_v1, %v35369_v25 }
 0x58d   : > { %v25231_v47 = vpop.f32.mrb[14].mxu1  ;;  %34499 = vmatprep.subr.bf16.mxu1 %v34498_v39  ;;  %v25162_v51 = vadd.f32 %v25161_v46, %v25092_v35  ;;  %v25163_v52 = vpop.f32.mrb[15].mxu0  ;;  %v4982_v35 = vrot.slane %v4968_v24, %v35369_v25  ;;  %v1102_v39 = vld [vmem:[%s35344_s8 + $0x14d8] sm:$0xff]  ;;  %v34518_v46 = vpack.c.bf16 %v1868_v34, %v1100_v33 }
 0x58e   : > { %v25233_v53 = vpop.f32.mrb[15].mxu1  ;;  %v34522_v48 = vpack.c.bf16 %v1870_v40, %v1102_v39  ;;  %v1101_v52 = vld [vmem:[%s35344_s8 + $0x14d0] sm:$0xff]  ;;  %v1878_v24 = vld [vmem:[%s35344_s8 + $0x2d18] sm:$0x3] }
 0x58f   : > { %v25232_v59 = vadd.f32 %v25231_v47, %v25162_v51  ;;  %v4984_v47 = vcombine.high %v4982_v35, %v4982_v35  ;;  %v1867_v51 = vld [vmem:[%s35344_s8 + $0x2cc0] sm:$0x3]  ;;  %v1869_v53 = vld [vmem:[%s35344_s8 + $0x2cd0] sm:$0x3] }
 0x590   : > { %v34524_v3 = vpack.c.bf16 %v1869_v53, %v1101_v52 }
 0x591   : > { %28940 = vmatmul.mubr.f32.vlgmr.msra.gmra.mrb[68].mxu0 %v4924_v20  ;;  %v4966_v20 = vcombine.high %v4958_v5, %v4958_v5 }
 0x592   : > { %29010 = vmatmul.mubr.f32.vlgmr.msra.gmra.mrb[68].mxu1 %v4931_v26  ;;  %34497 = vmatpush1.bf16.xpose.msra.mxu0 %v34496_v57  ;;  %v1095_v26 = vld [vmem:[%s35344_s8 + $0x14a0] sm:$0xff]  ;;  %v1104_v57 = vld [vmem:[%s35344_s8 + $0x14e8] sm:$0xff] }
 0x593   : > { %34501 = vmatpush1.bf16.xpose.msra.mxu1 %v34500_v58  ;;  %29079 = vmatprep.mubr.f32.mxu0 %v4949_v60  ;;  %v34512_v42 = vpack.c.bf16 %v1863_v27, %v1095_v26  ;;  %v1872_v58 = vld [vmem:[%s35344_s8 + $0x2ce8] sm:$0x3]  ;;  %v411_v26 = vld [vmem:[%s35337_s10 + $0x540] sm:$0xff] }
 0x594   : > { %34503 = vmatprep.subr.bf16.mxu0 %v34502_v61  ;;  %v25301_v6 = vpop.f32.mrb[16].mxu0  ;;  %29149 = vmatprep.mubr.f32.mxu1 %v4950_v62  ;;  %v5019_v34 = vcombine.high %v411_v26, %v411_v26  ;;  %v5026_v39 = vrot.slane %v411_v26, %v35369_v25 }
 0x595   : > { %v25371_v7 = vpop.f32.mrb[16].mxu1  ;;  %34507 = vmatprep.subr.bf16.mxu1 %v34506_v63  ;;  %v25302_v11 = vadd.f32 %v25301_v6, %v25232_v59  ;;  %v25303_v12 = vpop.f32.mrb[17].mxu0  ;;  %v4999_v59 = vrot.slane %v4985_v49, %v35369_v25  ;;  %v1106_v63 = vld [vmem:[%s35344_s8 + $0x14f8] sm:$0xff]  ;;  %v34526_v6 = vpack.c.bf16 %v1872_v58, %v1104_v57 }
 0x596   : > { %v25373_v13 = vpop.f32.mrb[17].mxu1  ;;  %v34530_v8 = vpack.c.bf16 %v1874_v0, %v1106_v63  ;;  %v1105_v12 = vld [vmem:[%s35344_s8 + $0x14f0] sm:$0xff]  ;;  %v1882_v49 = vld [vmem:[%s35344_s8 + $0x2d38] sm:$0x3] }
 0x597   : > { %v25372_v19 = vadd.f32 %v25371_v7, %v25302_v11  ;;  %v5001_v7 = vcombine.high %v4999_v59, %v4999_v59  ;;  %v1871_v11 = vld [vmem:[%s35344_s8 + $0x2ce0] sm:$0x3]  ;;  %v1873_v13 = vld [vmem:[%s35344_s8 + $0x2cf0] sm:$0x3] }
 0x598   : > { %v34532_v28 = vpack.c.bf16 %v1873_v13, %v1105_v12 }
 0x599   : > { %29080 = vmatmul.mubr.f32.vlgmr.msra.gmra.mrb[70].mxu0 %v4941_v45  ;;  %v4983_v45 = vcombine.high %v4975_v30, %v4975_v30 }
 0x59a   : > { %29150 = vmatmul.mubr.f32.vlgmr.msra.gmra.mrb[70].mxu1 %v4948_v50  ;;  %34505 = vmatpush1.bf16.xpose.msra.mxu0 %v34504_v17  ;;  %v1099_v50 = vld [vmem:[%s35344_s8 + $0x14c0] sm:$0xff]  ;;  %v1108_v17 = vld [vmem:[%s35344_s8 + $0x1508] sm:$0xff] }
 0x59b   : > { %34509 = vmatpush1.bf16.xpose.msra.mxu1 %v34508_v18  ;;  %29219 = vmatprep.mubr.f32.mxu0 %v4966_v20  ;;  %v34520_v2 = vpack.c.bf16 %v1867_v51, %v1099_v50  ;;  %v1876_v18 = vld [vmem:[%s35344_s8 + $0x2d08] sm:$0x3] }
 0x59c   : > { %34511 = vmatprep.subr.bf16.mxu0 %v34510_v21  ;;  %v25441_v31 = vpop.f32.mrb[18].mxu0  ;;  %29289 = vmatprep.mubr.f32.mxu1 %v4967_v22  ;;  %v412_v50 = vld [vmem:[%s35337_s10 + $0x548] sm:$0xff] }
 0x59d   : > { %v25511_v32 = vpop.f32.mrb[18].mxu1  ;;  %34515 = vmatprep.subr.bf16.mxu1 %v34514_v23  ;;  %v25442_v36 = vadd.f32 %v25441_v31, %v25372_v19  ;;  %v25443_v37 = vpop.f32.mrb[19].mxu0  ;;  %v5016_v19 = vrot.slane %v5002_v9, %v35369_v25  ;;  %v1110_v23 = vld [vmem:[%s35344_s8 + $0x1518] sm:$0xff]  ;;  %v34534_v31 = vpack.c.bf16 %v1876_v18, %v1108_v17  ;;  %v5036_v58 = vcombine.high %v412_v50, %v412_v50 }
 0x59e   : > { %v25513_v38 = vpop.f32.mrb[19].mxu1  ;;  %v34538_v33 = vpack.c.bf16 %v1878_v24, %v1110_v23  ;;  %v1109_v37 = vld [vmem:[%s35344_s8 + $0x1510] sm:$0xff]  ;;  %v5043_v63 = vrot.slane %v412_v50, %v35369_v25  ;;  %v1886_v9 = vld [vmem:[%s35344_s8 + $0x2d58] sm:$0x3] }
 0x59f   : > { %v25512_v44 = vadd.f32 %v25511_v32, %v25442_v36  ;;  %v5018_v32 = vcombine.high %v5016_v19, %v5016_v19  ;;  %v1875_v36 = vld [vmem:[%s35344_s8 + $0x2d00] sm:$0x3]  ;;  %v1877_v38 = vld [vmem:[%s35344_s8 + $0x2d10] sm:$0x3] }
 0x5a0   : > { %v34540_v52 = vpack.c.bf16 %v1877_v38, %v1109_v37 }
 0x5a1   : > { %29220 = vmatmul.mubr.f32.vlgmr.msra.gmra.mrb[72].mxu0 %v4958_v5  ;;  %v5000_v5 = vcombine.high %v4992_v54, %v4992_v54 }
 0x5a2   : > { %29290 = vmatmul.mubr.f32.vlgmr.msra.gmra.mrb[72].mxu1 %v4965_v10  ;;  %34513 = vmatpush1.bf16.xpose.msra.mxu0 %v34512_v42  ;;  %v1103_v10 = vld [vmem:[%s35344_s8 + $0x14e0] sm:$0xff]  ;;  %v1112_v42 = vld [vmem:[%s35344_s8 + $0x1528] sm:$0xff] }
 0x5a3   : > { %34517 = vmatpush1.bf16.xpose.msra.mxu1 %v34516_v43  ;;  %29359 = vmatprep.mubr.f32.mxu0 %v4983_v45  ;;  %v34528_v27 = vpack.c.bf16 %v1871_v11, %v1103_v10  ;;  %v1880_v43 = vld [vmem:[%s35344_s8 + $0x2d28] sm:$0x3]  ;;  %v413_v10 = vld [vmem:[%s35337_s10 + $0x550] sm:$0xff] }
 0x5a4   : > { %34519 = vmatprep.subr.bf16.mxu0 %v34518_v46  ;;  %v25581_v55 = vpop.f32.mrb[20].mxu0  ;;  %29429 = vmatprep.mubr.f32.mxu1 %v4984_v47  ;;  %v5053_v18 = vcombine.high %v413_v10, %v413_v10  ;;  %v5060_v23 = vrot.slane %v413_v10, %v35369_v25 }
 0x5a5   : > { %v25651_v56 = vpop.f32.mrb[20].mxu1  ;;  %34523 = vmatprep.subr.bf16.mxu1 %v34522_v48  ;;  %v25582_v60 = vadd.f32 %v25581_v55, %v25512_v44  ;;  %v25583_v61 = vpop.f32.mrb[21].mxu0  ;;  %v5033_v44 = vrot.slane %v5019_v34, %v35369_v25  ;;  %v1114_v48 = vld [vmem:[%s35344_s8 + $0x1538] sm:$0xff]  ;;  %v34542_v55 = vpack.c.bf16 %v1880_v43, %v1112_v42 }
 0x5a6   : > { %v25653_v62 = vpop.f32.mrb[21].mxu1  ;;  %v34546_v57 = vpack.c.bf16 %v1882_v49, %v1114_v48  ;;  %v1113_v61 = vld [vmem:[%s35344_s8 + $0x1530] sm:$0xff]  ;;  %v1890_v34 = vld [vmem:[%s35344_s8 + $0x2d78] sm:$0x3] }
 0x5a7   : > { %v25652_v4 = vadd.f32 %v25651_v56, %v25582_v60  ;;  %v5035_v56 = vcombine.high %v5033_v44, %v5033_v44  ;;  %v1879_v60 = vld [vmem:[%s35344_s8 + $0x2d20] sm:$0x3]  ;;  %v1881_v62 = vld [vmem:[%s35344_s8 + $0x2d30] sm:$0x3] }
 0x5a8   : > { %v34548_v12 = vpack.c.bf16 %v1881_v62, %v1113_v61 }
 0x5a9   : > { %29360 = vmatmul.mubr.f32.vlgmr.msra.gmra.mrb[74].mxu0 %v4975_v30  ;;  %v5017_v30 = vcombine.high %v5009_v14, %v5009_v14 }
 0x5aa   : > { %29430 = vmatmul.mubr.f32.vlgmr.msra.gmra.mrb[74].mxu1 %v4982_v35  ;;  %34521 = vmatpush1.bf16.xpose.msra.mxu0 %v34520_v2  ;;  %v1107_v35 = vld [vmem:[%s35344_s8 + $0x1500] sm:$0xff]  ;;  %v1116_v2 = vld [vmem:[%s35344_s8 + $0x1548] sm:$0xff] }
 0x5ab   : > { %34525 = vmatpush1.bf16.xpose.msra.mxu1 %v34524_v3  ;;  %29499 = vmatprep.mubr.f32.mxu0 %v5000_v5  ;;  %v34536_v51 = vpack.c.bf16 %v1875_v36, %v1107_v35  ;;  %v1884_v3 = vld [vmem:[%s35344_s8 + $0x2d48] sm:$0x3]  ;;  %v414_v35 = vld [vmem:[%s35337_s10 + $0x558] sm:$0xff] }
 0x5ac   : > { %34527 = vmatprep.subr.bf16.mxu0 %v34526_v6  ;;  %v25721_v15 = vpop.f32.mrb[22].mxu0  ;;  %29569 = vmatprep.mubr.f32.mxu1 %v5001_v7  ;;  %v5070_v43 = vcombine.high %v414_v35, %v414_v35  ;;  %v5077_v48 = vrot.slane %v414_v35, %v35369_v25 }
 0x5ad   : > { %v25791_v16 = vpop.f32.mrb[22].mxu1  ;;  %34531 = vmatprep.subr.bf16.mxu1 %v34530_v8  ;;  %v25722_v20 = vadd.f32 %v25721_v15, %v25652_v4  ;;  %v25723_v21 = vpop.f32.mrb[23].mxu0  ;;  %v5050_v4 = vrot.slane %v5036_v58, %v35369_v25  ;;  %v1118_v8 = vld [vmem:[%s35344_s8 + $0x1558] sm:$0xff]  ;;  %v34550_v15 = vpack.c.bf16 %v1884_v3, %v1116_v2 }
 0x5ae   : > { %v25793_v22 = vpop.f32.mrb[23].mxu1  ;;  %v34554_v17 = vpack.c.bf16 %v1886_v9, %v1118_v8  ;;  %v1117_v21 = vld [vmem:[%s35344_s8 + $0x1550] sm:$0xff]  ;;  %v1894_v58 = vld [vmem:[%s35344_s8 + $0x2d98] sm:$0x3] }
 0x5af   : > { %v25792_v29 = vadd.f32 %v25791_v16, %v25722_v20  ;;  %v5052_v16 = vcombine.high %v5050_v4, %v5050_v4  ;;  %v1883_v20 = vld [vmem:[%s35344_s8 + $0x2d40] sm:$0x3]  ;;  %v1885_v22 = vld [vmem:[%s35344_s8 + $0x2d50] sm:$0x3] }
 0x5b0   : > { %v34556_v37 = vpack.c.bf16 %v1885_v22, %v1117_v21 }
 0x5b1   : > { %29500 = vmatmul.mubr.f32.vlgmr.msra.gmra.mrb[76].mxu0 %v4992_v54  ;;  %v5034_v54 = vcombine.high %v5026_v39, %v5026_v39 }
 0x5b2   : > { %29570 = vmatmul.mubr.f32.vlgmr.msra.gmra.mrb[76].mxu1 %v4999_v59  ;;  %34529 = vmatpush1.bf16.xpose.msra.mxu0 %v34528_v27  ;;  %v1111_v59 = vld [vmem:[%s35344_s8 + $0x1520] sm:$0xff]  ;;  %v1120_v27 = vld [vmem:[%s35344_s8 + $0x1568] sm:$0xff] }
 0x5b3   : > { %34533 = vmatpush1.bf16.xpose.msra.mxu1 %v34532_v28  ;;  %29639 = vmatprep.mubr.f32.mxu0 %v5017_v30  ;;  %v34544_v11 = vpack.c.bf16 %v1879_v60, %v1111_v59  ;;  %v1888_v28 = vld [vmem:[%s35344_s8 + $0x2d68] sm:$0x3]  ;;  %v415_v59 = vld [vmem:[%s35337_s10 + $0x560] sm:$0xff] }
 0x5b4   : > { %34535 = vmatprep.subr.bf16.mxu0 %v34534_v31  ;;  %v25861_v40 = vpop.f32.mrb[24].mxu0  ;;  %29709 = vmatprep.mubr.f32.mxu1 %v5018_v32  ;;  %v5087_v3 = vcombine.high %v415_v59, %v415_v59  ;;  %v5094_v8 = vrot.slane %v415_v59, %v35369_v25 }
 0x5b5   : > { %v25931_v41 = vpop.f32.mrb[24].mxu1  ;;  %34539 = vmatprep.subr.bf16.mxu1 %v34538_v33  ;;  %v25862_v45 = vadd.f32 %v25861_v40, %v25792_v29  ;;  %v25863_v46 = vpop.f32.mrb[25].mxu0  ;;  %v5067_v29 = vrot.slane %v5053_v18, %v35369_v25  ;;  %v1122_v33 = vld [vmem:[%s35344_s8 + $0x1578] sm:$0xff]  ;;  %v34558_v40 = vpack.c.bf16 %v1888_v28, %v1120_v27 }
 0x5b6   : > { %v25933_v47 = vpop.f32.mrb[25].mxu1  ;;  %v34562_v42 = vpack.c.bf16 %v1890_v34, %v1122_v33  ;;  %v1121_v46 = vld [vmem:[%s35344_s8 + $0x1570] sm:$0xff]  ;;  %v1898_v18 = vld [vmem:[%s35344_s8 + $0x2db8] sm:$0x3] }
 0x5b7   : > { %v25932_v53 = vadd.f32 %v25931_v41, %v25862_v45  ;;  %v5069_v41 = vcombine.high %v5067_v29, %v5067_v29  ;;  %v1887_v45 = vld [vmem:[%s35344_s8 + $0x2d60] sm:$0x3]  ;;  %v1889_v47 = vld [vmem:[%s35344_s8 + $0x2d70] sm:$0x3] }
 0x5b8   : > { %v34564_v61 = vpack.c.bf16 %v1889_v47, %v1121_v46 }
 0x5b9   : > { %29640 = vmatmul.mubr.f32.vlgmr.msra.gmra.mrb[78].mxu0 %v5009_v14  ;;  %v5051_v14 = vcombine.high %v5043_v63, %v5043_v63 }
 0x5ba   : > { %29710 = vmatmul.mubr.f32.vlgmr.msra.gmra.mrb[78].mxu1 %v5016_v19  ;;  %34537 = vmatpush1.bf16.xpose.msra.mxu0 %v34536_v51  ;;  %v1115_v19 = vld [vmem:[%s35344_s8 + $0x1540] sm:$0xff]  ;;  %v1124_v51 = vld [vmem:[%s35344_s8 + $0x1588] sm:$0xff] }
 0x5bb   : > { %34541 = vmatpush1.bf16.xpose.msra.mxu1 %v34540_v52  ;;  %29779 = vmatprep.mubr.f32.mxu0 %v5034_v54  ;;  %v34552_v36 = vpack.c.bf16 %v1883_v20, %v1115_v19  ;;  %v1892_v52 = vld [vmem:[%s35344_s8 + $0x2d88] sm:$0x3] }
 0x5bc   : > { %34543 = vmatprep.subr.bf16.mxu0 %v34542_v55  ;;  %v26001_v0 = vpop.f32.mrb[26].mxu0  ;;  %29849 = vmatprep.mubr.f32.mxu1 %v5035_v56  ;;  %v416_v19 = vld [vmem:[%s35337_s10 + $0x568] sm:$0xff] }
 0x5bd   : > { %v26071_v1 = vpop.f32.mrb[26].mxu1  ;;  %34547 = vmatprep.subr.bf16.mxu1 %v34546_v57  ;;  %v26002_v5 = vadd.f32 %v26001_v0, %v25932_v53  ;;  %v26003_v6 = vpop.f32.mrb[27].mxu0  ;;  %v5084_v53 = vrot.slane %v5070_v43, %v35369_v25  ;;  %v1126_v57 = vld [vmem:[%s35344_s8 + $0x1598] sm:$0xff]  ;;  %v34566_v0 = vpack.c.bf16 %v1892_v52, %v1124_v51  ;;  %v5104_v28 = vcombine.high %v416_v19, %v416_v19 }
 0x5be   : > { %v26073_v7 = vpop.f32.mrb[27].mxu1  ;;  %v34570_v2 = vpack.c.bf16 %v1894_v58, %v1126_v57  ;;  %v1125_v6 = vld [vmem:[%s35344_s8 + $0x1590] sm:$0xff]  ;;  %v5111_v33 = vrot.slane %v416_v19, %v35369_v25  ;;  %v1902_v43 = vld [vmem:[%s35344_s8 + $0x2dd8] sm:$0x3] }
 0x5bf   : > { %v26072_v13 = vadd.f32 %v26071_v1, %v26002_v5  ;;  %v5086_v1 = vcombine.high %v5084_v53, %v5084_v53  ;;  %v1891_v5 = vld [vmem:[%s35344_s8 + $0x2d80] sm:$0x3]  ;;  %v1893_v7 = vld [vmem:[%s35344_s8 + $0x2d90] sm:$0x3] }
 0x5c0   : > { %v34572_v21 = vpack.c.bf16 %v1893_v7, %v1125_v6 }
 0x5c1   : > { %29780 = vmatmul.mubr.f32.vlgmr.msra.gmra.mrb[80].mxu0 %v5026_v39  ;;  %v5068_v39 = vcombine.high %v5060_v23, %v5060_v23 }
 0x5c2   : > { %29850 = vmatmul.mubr.f32.vlgmr.msra.gmra.mrb[80].mxu1 %v5033_v44  ;;  %34545 = vmatpush1.bf16.xpose.msra.mxu0 %v34544_v11  ;;  %v1119_v44 = vld [vmem:[%s35344_s8 + $0x1560] sm:$0xff]  ;;  %v1128_v11 = vld [vmem:[%s35344_s8 + $0x15a8] sm:$0xff] }
 0x5c3   : > { %34549 = vmatpush1.bf16.xpose.msra.mxu1 %v34548_v12  ;;  %29919 = vmatprep.mubr.f32.mxu0 %v5051_v14  ;;  %v34560_v60 = vpack.c.bf16 %v1887_v45, %v1119_v44  ;;  %v1896_v12 = vld [vmem:[%s35344_s8 + $0x2da8] sm:$0x3]  ;;  %v417_v44 = vld [vmem:[%s35337_s10 + $0x570] sm:$0xff] }
 0x5c4   : > { %34551 = vmatprep.subr.bf16.mxu0 %v34550_v15  ;;  %v26141_v24 = vpop.f32.mrb[28].mxu0  ;;  %29989 = vmatprep.mubr.f32.mxu1 %v5052_v16  ;;  %v5121_v52 = vcombine.high %v417_v44, %v417_v44  ;;  %v5128_v57 = vrot.slane %v417_v44, %v35369_v25 }
 0x5c5   : > { %v26211_v26 = vpop.f32.mrb[28].mxu1  ;;  %34555 = vmatprep.subr.bf16.mxu1 %v34554_v17  ;;  %v26142_v30 = vadd.f32 %v26141_v24, %v26072_v13  ;;  %v26143_v31 = vpop.f32.mrb[29].mxu0  ;;  %v5101_v13 = vrot.slane %v5087_v3, %v35369_v25  ;;  %v1130_v17 = vld [vmem:[%s35344_s8 + $0x15b8] sm:$0xff]  ;;  %v34574_v24 = vpack.c.bf16 %v1896_v12, %v1128_v11 }
 0x5c6   : > { %v26213_v32 = vpop.f32.mrb[29].mxu1  ;;  %v34578_v27 = vpack.c.bf16 %v1898_v18, %v1130_v17  ;;  %v1129_v31 = vld [vmem:[%s35344_s8 + $0x15b0] sm:$0xff]  ;;  %v1906_v3 = vld [vmem:[%s35344_s8 + $0x2df8] sm:$0x3] }
 0x5c7   : > { %v26212_v38 = vadd.f32 %v26211_v26, %v26142_v30  ;;  %v5103_v26 = vcombine.high %v5101_v13, %v5101_v13  ;;  %v1895_v30 = vld [vmem:[%s35344_s8 + $0x2da0] sm:$0x3]  ;;  %v1897_v32 = vld [vmem:[%s35344_s8 + $0x2db0] sm:$0x3] }
 0x5c8   : > { %v34580_v46 = vpack.c.bf16 %v1897_v32, %v1129_v31 }
 0x5c9   : > { %29920 = vmatmul.mubr.f32.vlgmr.msra.gmra.mrb[82].mxu0 %v5043_v63  ;;  %v5085_v63 = vcombine.high %v5077_v48, %v5077_v48 }
 0x5ca   : > { %29990 = vmatmul.mubr.f32.vlgmr.msra.gmra.mrb[82].mxu1 %v5050_v4  ;;  %34553 = vmatpush1.bf16.xpose.msra.mxu0 %v34552_v36  ;;  %v1123_v4 = vld [vmem:[%s35344_s8 + $0x1580] sm:$0xff]  ;;  %v1132_v36 = vld [vmem:[%s35344_s8 + $0x15c8] sm:$0xff] }
 0x5cb   : > { %34557 = vmatpush1.bf16.xpose.msra.mxu1 %v34556_v37  ;;  %30059 = vmatprep.mubr.f32.mxu0 %v5068_v39  ;;  %v34568_v20 = vpack.c.bf16 %v1891_v5, %v1123_v4  ;;  %v1900_v37 = vld [vmem:[%s35344_s8 + $0x2dc8] sm:$0x3]  ;;  %v418_v4 = vld [vmem:[%s35337_s10 + $0x578] sm:$0xff] }
 0x5cc   : > { %34559 = vmatprep.subr.bf16.mxu0 %v34558_v40  ;;  %v26281_v49 = vpop.f32.mrb[30].mxu0  ;;  %30129 = vmatprep.mubr.f32.mxu1 %v5069_v41  ;;  %v5138_v12 = vcombine.high %v418_v4, %v418_v4  ;;  %v5145_v17 = vrot.slane %v418_v4, %v35369_v25 }
 0x5cd   : > { %v26351_v50 = vpop.f32.mrb[30].mxu1  ;;  %34563 = vmatprep.subr.bf16.mxu1 %v34562_v42  ;;  %v26282_v54 = vadd.f32 %v26281_v49, %v26212_v38  ;;  %v26283_v55 = vpop.f32.mrb[31].mxu0  ;;  %v5118_v38 = vrot.slane %v5104_v28, %v35369_v25  ;;  %v1134_v42 = vld [vmem:[%s35344_s8 + $0x15d8] sm:$0xff]  ;;  %v34582_v49 = vpack.c.bf16 %v1900_v37, %v1132_v36 }
 0x5ce   : > { %v26353_v56 = vpop.f32.mrb[31].mxu1  ;;  %v34586_v51 = vpack.c.bf16 %v1902_v43, %v1134_v42  ;;  %v1133_v55 = vld [vmem:[%s35344_s8 + $0x15d0] sm:$0xff]  ;;  %v1910_v28 = vld [vmem:[%s35344_s8 + $0x2e18] sm:$0x3] }
 0x5cf   : > { %v26352_v62 = vadd.f32 %v26351_v50, %v26282_v54  ;;  %v5120_v50 = vcombine.high %v5118_v38, %v5118_v38  ;;  %v1899_v54 = vld [vmem:[%s35344_s8 + $0x2dc0] sm:$0x3]  ;;  %v1901_v56 = vld [vmem:[%s35344_s8 + $0x2dd0] sm:$0x3] }
 0x5d0   : > { %v34588_v6 = vpack.c.bf16 %v1901_v56, %v1133_v55 }
 0x5d1   : > { %30060 = vmatmul.mubr.f32.vlgmr.msra.gmra.mrb[84].mxu0 %v5060_v23  ;;  %v5102_v23 = vcombine.high %v5094_v8, %v5094_v8 }
 0x5d2   : > { %30130 = vmatmul.mubr.f32.vlgmr.msra.gmra.mrb[84].mxu1 %v5067_v29  ;;  %34561 = vmatpush1.bf16.xpose.msra.mxu0 %v34560_v60  ;;  %v1127_v29 = vld [vmem:[%s35344_s8 + $0x15a0] sm:$0xff]  ;;  %v1136_v60 = vld [vmem:[%s35344_s8 + $0x15e8] sm:$0xff] }
 0x5d3   : > { %34565 = vmatpush1.bf16.xpose.msra.mxu1 %v34564_v61  ;;  %30199 = vmatprep.mubr.f32.mxu0 %v5085_v63  ;;  %v34576_v45 = vpack.c.bf16 %v1895_v30, %v1127_v29  ;;  %v1904_v61 = vld [vmem:[%s35344_s8 + $0x2de8] sm:$0x3]  ;;  %v419_v29 = vld [vmem:[%s35337_s10 + $0x580] sm:$0xff] }
 0x5d4   : > { %34567 = vmatprep.subr.bf16.mxu0 %v34566_v0  ;;  %v26421_v9 = vpop.f32.mrb[32].mxu0  ;;  %30269 = vmatprep.mubr.f32.mxu1 %v5086_v1  ;;  %v5155_v37 = vcombine.high %v419_v29, %v419_v29  ;;  %v5162_v42 = vrot.slane %v419_v29, %v35369_v25 }
 0x5d5   : > { %v26491_v10 = vpop.f32.mrb[32].mxu1  ;;  %34571 = vmatprep.subr.bf16.mxu1 %v34570_v2  ;;  %v26422_v14 = vadd.f32 %v26421_v9, %v26352_v62  ;;  %v26423_v15 = vpop.f32.mrb[33].mxu0  ;;  %v5135_v62 = vrot.slane %v5121_v52, %v35369_v25  ;;  %v1138_v2 = vld [vmem:[%s35344_s8 + $0x15f8] sm:$0xff]  ;;  %v34590_v9 = vpack.c.bf16 %v1904_v61, %v1136_v60 }
 0x5d6   : > { %v26493_v16 = vpop.f32.mrb[33].mxu1  ;;  %v34594_v11 = vpack.c.bf16 %v1906_v3, %v1138_v2  ;;  %v1137_v15 = vld [vmem:[%s35344_s8 + $0x15f0] sm:$0xff]  ;;  %v1914_v52 = vld [vmem:[%s35344_s8 + $0x2e38] sm:$0x3] }
 0x5d7   : > { %v26492_v22 = vadd.f32 %v26491_v10, %v26422_v14  ;;  %v5137_v10 = vcombine.high %v5135_v62, %v5135_v62  ;;  %v1903_v14 = vld [vmem:[%s35344_s8 + $0x2de0] sm:$0x3]  ;;  %v1905_v16 = vld [vmem:[%s35344_s8 + $0x2df0] sm:$0x3] }
 0x5d8   : > { %v34596_v31 = vpack.c.bf16 %v1905_v16, %v1137_v15 }
 0x5d9   : > { %30200 = vmatmul.mubr.f32.vlgmr.msra.gmra.mrb[86].mxu0 %v5077_v48  ;;  %v5119_v48 = vcombine.high %v5111_v33, %v5111_v33 }
 0x5da   : > { %30270 = vmatmul.mubr.f32.vlgmr.msra.gmra.mrb[86].mxu1 %v5084_v53  ;;  %34569 = vmatpush1.bf16.xpose.msra.mxu0 %v34568_v20  ;;  %v1131_v53 = vld [vmem:[%s35344_s8 + $0x15c0] sm:$0xff]  ;;  %v1140_v20 = vld [vmem:[%s35344_s8 + $0x1608] sm:$0xff] }
 0x5db   : > { %34573 = vmatpush1.bf16.xpose.msra.mxu1 %v34572_v21  ;;  %30339 = vmatprep.mubr.f32.mxu0 %v5102_v23  ;;  %v34584_v5 = vpack.c.bf16 %v1899_v54, %v1131_v53  ;;  %v1908_v21 = vld [vmem:[%s35344_s8 + $0x2e08] sm:$0x3] }
 0x5dc   : > { %34575 = vmatprep.subr.bf16.mxu0 %v34574_v24  ;;  %v26561_v34 = vpop.f32.mrb[34].mxu0  ;;  %30409 = vmatprep.mubr.f32.mxu1 %v5103_v26  ;;  %v420_v53 = vld [vmem:[%s35337_s10 + $0x588] sm:$0xff] }
 0x5dd   : > { %v26631_v35 = vpop.f32.mrb[34].mxu1  ;;  %34579 = vmatprep.subr.bf16.mxu1 %v34578_v27  ;;  %v26562_v39 = vadd.f32 %v26561_v34, %v26492_v22  ;;  %v26563_v40 = vpop.f32.mrb[35].mxu0  ;;  %v5152_v22 = vrot.slane %v5138_v12, %v35369_v25  ;;  %v1142_v27 = vld [vmem:[%s35344_s8 + $0x1618] sm:$0xff]  ;;  %v34598_v34 = vpack.c.bf16 %v1908_v21, %v1140_v20  ;;  %v5172_v61 = vcombine.high %v420_v53, %v420_v53 }
 0x5de   : > { %v26633_v41 = vpop.f32.mrb[35].mxu1  ;;  %v34602_v36 = vpack.c.bf16 %v1910_v28, %v1142_v27  ;;  %v1141_v40 = vld [vmem:[%s35344_s8 + $0x1610] sm:$0xff]  ;;  %v5179_v2 = vrot.slane %v420_v53, %v35369_v25  ;;  %v1918_v12 = vld [vmem:[%s35344_s8 + $0x2e58] sm:$0x3] }
 0x5df   : > { %v26632_v47 = vadd.f32 %v26631_v35, %v26562_v39  ;;  %v5154_v35 = vcombine.high %v5152_v22, %v5152_v22  ;;  %v1907_v39 = vld [vmem:[%s35344_s8 + $0x2e00] sm:$0x3]  ;;  %v1909_v41 = vld [vmem:[%s35344_s8 + $0x2e10] sm:$0x3] }
 0x5e0   : > { %v34604_v55 = vpack.c.bf16 %v1909_v41, %v1141_v40 }
 0x5e1   : > { %30340 = vmatmul.mubr.f32.vlgmr.msra.gmra.mrb[88].mxu0 %v5094_v8  ;;  %v5136_v8 = vcombine.high %v5128_v57, %v5128_v57 }
 0x5e2   : > { %30410 = vmatmul.mubr.f32.vlgmr.msra.gmra.mrb[88].mxu1 %v5101_v13  ;;  %34577 = vmatpush1.bf16.xpose.msra.mxu0 %v34576_v45  ;;  %v1135_v13 = vld [vmem:[%s35344_s8 + $0x15e0] sm:$0xff]  ;;  %v1144_v45 = vld [vmem:[%s35344_s8 + $0x1628] sm:$0xff] }
 0x5e3   : > { %34581 = vmatpush1.bf16.xpose.msra.mxu1 %v34580_v46  ;;  %30479 = vmatprep.mubr.f32.mxu0 %v5119_v48  ;;  %v34592_v30 = vpack.c.bf16 %v1903_v14, %v1135_v13  ;;  %v1912_v46 = vld [vmem:[%s35344_s8 + $0x2e28] sm:$0x3]  ;;  %v421_v13 = vld [vmem:[%s35337_s10 + $0x590] sm:$0xff] }
 0x5e4   : > { %34583 = vmatprep.subr.bf16.mxu0 %v34582_v49  ;;  %v26701_v58 = vpop.f32.mrb[36].mxu0  ;;  %30549 = vmatprep.mubr.f32.mxu1 %v5120_v50  ;;  %v5189_v21 = vcombine.high %v421_v13, %v421_v13  ;;  %v5196_v27 = vrot.slane %v421_v13, %v35369_v25 }
 0x5e5   : > { %v26771_v59 = vpop.f32.mrb[36].mxu1  ;;  %34587 = vmatprep.subr.bf16.mxu1 %v34586_v51  ;;  %v26702_v63 = vadd.f32 %v26701_v58, %v26632_v47  ;;  %v26703_v0 = vpop.f32.mrb[37].mxu0  ;;  %v5169_v47 = vrot.slane %v5155_v37, %v35369_v25  ;;  %v1146_v51 = vld [vmem:[%s35344_s8 + $0x1638] sm:$0xff]  ;;  %v34606_v58 = vpack.c.bf16 %v1912_v46, %v1144_v45 }
 0x5e6   : > { %v26773_v1 = vpop.f32.mrb[37].mxu1  ;;  %v34610_v60 = vpack.c.bf16 %v1914_v52, %v1146_v51  ;;  %v1145_v0 = vld [vmem:[%s35344_s8 + $0x1630] sm:$0xff]  ;;  %v1922_v37 = vld [vmem:[%s35344_s8 + $0x2e78] sm:$0x3] }
 0x5e7   : > { %v26772_v7 = vadd.f32 %v26771_v59, %v26702_v63  ;;  %v5171_v59 = vcombine.high %v5169_v47, %v5169_v47  ;;  %v1911_v63 = vld [vmem:[%s35344_s8 + $0x2e20] sm:$0x3]  ;;  %v1913_v1 = vld [vmem:[%s35344_s8 + $0x2e30] sm:$0x3] }
 0x5e8   : > { %v34612_v15 = vpack.c.bf16 %v1913_v1, %v1145_v0 }
 0x5e9   : > { %30480 = vmatmul.mubr.f32.vlgmr.msra.gmra.mrb[90].mxu0 %v5111_v33  ;;  %v5153_v33 = vcombine.high %v5145_v17, %v5145_v17 }
 0x5ea   : > { %30550 = vmatmul.mubr.f32.vlgmr.msra.gmra.mrb[90].mxu1 %v5118_v38  ;;  %34585 = vmatpush1.bf16.xpose.msra.mxu0 %v34584_v5  ;;  %v1139_v38 = vld [vmem:[%s35344_s8 + $0x1600] sm:$0xff]  ;;  %v1148_v5 = vld [vmem:[%s35344_s8 + $0x1648] sm:$0xff] }
 0x5eb   : > { %34589 = vmatpush1.bf16.xpose.msra.mxu1 %v34588_v6  ;;  %30619 = vmatprep.mubr.f32.mxu0 %v5136_v8  ;;  %v34600_v54 = vpack.c.bf16 %v1907_v39, %v1139_v38  ;;  %v1916_v6 = vld [vmem:[%s35344_s8 + $0x2e48] sm:$0x3]  ;;  %v422_v38 = vld [vmem:[%s35337_s10 + $0x598] sm:$0xff] }
 0x5ec   : > { %34591 = vmatprep.subr.bf16.mxu0 %v34590_v9  ;;  %v26841_v18 = vpop.f32.mrb[38].mxu0  ;;  %30689 = vmatprep.mubr.f32.mxu1 %v5137_v10  ;;  %v5206_v46 = vcombine.high %v422_v38, %v422_v38  ;;  %v5213_v51 = vrot.slane %v422_v38, %v35369_v25 }
 0x5ed   : > { %v26911_v19 = vpop.f32.mrb[38].mxu1  ;;  %34595 = vmatprep.subr.bf16.mxu1 %v34594_v11  ;;  %v26842_v23 = vadd.f32 %v26841_v18, %v26772_v7  ;;  %v26843_v24 = vpop.f32.mrb[39].mxu0  ;;  %v5186_v7 = vrot.slane %v5172_v61, %v35369_v25  ;;  %v1150_v11 = vld [vmem:[%s35344_s8 + $0x1658] sm:$0xff]  ;;  %v34614_v18 = vpack.c.bf16 %v1916_v6, %v1148_v5 }
 0x5ee   : > { %v26913_v26 = vpop.f32.mrb[39].mxu1  ;;  %v34618_v20 = vpack.c.bf16 %v1918_v12, %v1150_v11  ;;  %v1149_v24 = vld [vmem:[%s35344_s8 + $0x1650] sm:$0xff]  ;;  %v1926_v61 = vld [vmem:[%s35344_s8 + $0x2e98] sm:$0x3] }
 0x5ef   : > { %v26912_v32 = vadd.f32 %v26911_v19, %v26842_v23  ;;  %v5188_v19 = vcombine.high %v5186_v7, %v5186_v7  ;;  %v1915_v23 = vld [vmem:[%s35344_s8 + $0x2e40] sm:$0x3]  ;;  %v1917_v26 = vld [vmem:[%s35344_s8 + $0x2e50] sm:$0x3] }
 0x5f0   : > { %v34620_v40 = vpack.c.bf16 %v1917_v26, %v1149_v24 }
 0x5f1   : > { %30620 = vmatmul.mubr.f32.vlgmr.msra.gmra.mrb[92].mxu0 %v5128_v57  ;;  %v5170_v57 = vcombine.high %v5162_v42, %v5162_v42 }
 0x5f2   : > { %30690 = vmatmul.mubr.f32.vlgmr.msra.gmra.mrb[92].mxu1 %v5135_v62  ;;  %34593 = vmatpush1.bf16.xpose.msra.mxu0 %v34592_v30  ;;  %v1143_v62 = vld [vmem:[%s35344_s8 + $0x1620] sm:$0xff]  ;;  %v1152_v30 = vld [vmem:[%s35344_s8 + $0x1668] sm:$0xff] }
 0x5f3   : > { %34597 = vmatpush1.bf16.xpose.msra.mxu1 %v34596_v31  ;;  %30759 = vmatprep.mubr.f32.mxu0 %v5153_v33  ;;  %v34608_v14 = vpack.c.bf16 %v1911_v63, %v1143_v62  ;;  %v1920_v31 = vld [vmem:[%s35344_s8 + $0x2e68] sm:$0x3]  ;;  %v423_v62 = vld [vmem:[%s35337_s10 + $0x5a0] sm:$0xff] }
 0x5f4   : > { %34599 = vmatprep.subr.bf16.mxu0 %v34598_v34  ;;  %v26981_v43 = vpop.f32.mrb[40].mxu0  ;;  %30829 = vmatprep.mubr.f32.mxu1 %v5154_v35  ;;  %v5223_v6 = vcombine.high %v423_v62, %v423_v62  ;;  %v5230_v11 = vrot.slane %v423_v62, %v35369_v25 }
 0x5f5   : > { %v27051_v44 = vpop.f32.mrb[40].mxu1  ;;  %34603 = vmatprep.subr.bf16.mxu1 %v34602_v36  ;;  %v26982_v48 = vadd.f32 %v26981_v43, %v26912_v32  ;;  %v26983_v49 = vpop.f32.mrb[41].mxu0  ;;  %v5203_v32 = vrot.slane %v5189_v21, %v35369_v25  ;;  %v1154_v36 = vld [vmem:[%s35344_s8 + $0x1678] sm:$0xff]  ;;  %v34622_v43 = vpack.c.bf16 %v1920_v31, %v1152_v30 }
 0x5f6   : > { %v27053_v50 = vpop.f32.mrb[41].mxu1  ;;  %v34626_v45 = vpack.c.bf16 %v1922_v37, %v1154_v36  ;;  %v1153_v49 = vld [vmem:[%s35344_s8 + $0x1670] sm:$0xff]  ;;  %v1930_v21 = vld [vmem:[%s35344_s8 + $0x2eb8] sm:$0x3] }
 0x5f7   : > { %v27052_v56 = vadd.f32 %v27051_v44, %v26982_v48  ;;  %v5205_v44 = vcombine.high %v5203_v32, %v5203_v32  ;;  %v1919_v48 = vld [vmem:[%s35344_s8 + $0x2e60] sm:$0x3]  ;;  %v1921_v50 = vld [vmem:[%s35344_s8 + $0x2e70] sm:$0x3] }
 0x5f8   : > { %v34628_v0 = vpack.c.bf16 %v1921_v50, %v1153_v49 }
 0x5f9   : > { %30760 = vmatmul.mubr.f32.vlgmr.msra.gmra.mrb[94].mxu0 %v5145_v17  ;;  %v5187_v17 = vcombine.high %v5179_v2, %v5179_v2 }
 0x5fa   : > { %30830 = vmatmul.mubr.f32.vlgmr.msra.gmra.mrb[94].mxu1 %v5152_v22  ;;  %34601 = vmatpush1.bf16.xpose.msra.mxu0 %v34600_v54  ;;  %v1147_v22 = vld [vmem:[%s35344_s8 + $0x1640] sm:$0xff]  ;;  %v1156_v54 = vld [vmem:[%s35344_s8 + $0x1688] sm:$0xff] }
 0x5fb   : > { %34605 = vmatpush1.bf16.xpose.msra.mxu1 %v34604_v55  ;;  %30899 = vmatprep.mubr.f32.mxu0 %v5170_v57  ;;  %v34616_v39 = vpack.c.bf16 %v1915_v23, %v1147_v22  ;;  %v1924_v55 = vld [vmem:[%s35344_s8 + $0x2e88] sm:$0x3] }
 0x5fc   : > { %34607 = vmatprep.subr.bf16.mxu0 %v34606_v58  ;;  %v27121_v3 = vpop.f32.mrb[42].mxu0  ;;  %30969 = vmatprep.mubr.f32.mxu1 %v5171_v59  ;;  %v424_v22 = vld [vmem:[%s35337_s10 + $0x5a8] sm:$0xff] }
 0x5fd   : > { %v27191_v4 = vpop.f32.mrb[42].mxu1  ;;  %34611 = vmatprep.subr.bf16.mxu1 %v34610_v60  ;;  %v27122_v8 = vadd.f32 %v27121_v3, %v27052_v56  ;;  %v27123_v9 = vpop.f32.mrb[43].mxu0  ;;  %v5220_v56 = vrot.slane %v5206_v46, %v35369_v25  ;;  %v1158_v60 = vld [vmem:[%s35344_s8 + $0x1698] sm:$0xff]  ;;  %v34630_v3 = vpack.c.bf16 %v1924_v55, %v1156_v54  ;;  %v5240_v31 = vcombine.high %v424_v22, %v424_v22 }
 0x5fe   : > { %v27193_v10 = vpop.f32.mrb[43].mxu1  ;;  %v34634_v5 = vpack.c.bf16 %v1926_v61, %v1158_v60  ;;  %v1157_v9 = vld [vmem:[%s35344_s8 + $0x1690] sm:$0xff]  ;;  %v5247_v36 = vrot.slane %v424_v22, %v35369_v25  ;;  %v1934_v46 = vld [vmem:[%s35344_s8 + $0x2ed8] sm:$0x3] }
 0x5ff   : > { %v27192_v16 = vadd.f32 %v27191_v4, %v27122_v8  ;;  %v5222_v4 = vcombine.high %v5220_v56, %v5220_v56  ;;  %v1923_v8 = vld [vmem:[%s35344_s8 + $0x2e80] sm:$0x3]  ;;  %v1925_v10 = vld [vmem:[%s35344_s8 + $0x2e90] sm:$0x3] }
 0x600   : > { %v34636_v24 = vpack.c.bf16 %v1925_v10, %v1157_v9 }
 0x601   : > { %30900 = vmatmul.mubr.f32.vlgmr.msra.gmra.mrb[96].mxu0 %v5162_v42  ;;  %v5204_v42 = vcombine.high %v5196_v27, %v5196_v27 }
 0x602   : > { %30970 = vmatmul.mubr.f32.vlgmr.msra.gmra.mrb[96].mxu1 %v5169_v47  ;;  %34609 = vmatpush1.bf16.xpose.msra.mxu0 %v34608_v14  ;;  %v1151_v47 = vld [vmem:[%s35344_s8 + $0x1660] sm:$0xff]  ;;  %v1160_v14 = vld [vmem:[%s35344_s8 + $0x16a8] sm:$0xff] }
 0x603   : > { %34613 = vmatpush1.bf16.xpose.msra.mxu1 %v34612_v15  ;;  %31039 = vmatprep.mubr.f32.mxu0 %v5187_v17  ;;  %v34624_v63 = vpack.c.bf16 %v1919_v48, %v1151_v47  ;;  %v1928_v15 = vld [vmem:[%s35344_s8 + $0x2ea8] sm:$0x3]  ;;  %v425_v47 = vld [vmem:[%s35337_s10 + $0x5b0] sm:$0xff] }
 0x604   : > { %34615 = vmatprep.subr.bf16.mxu0 %v34614_v18  ;;  %v27261_v28 = vpop.f32.mrb[44].mxu0  ;;  %31109 = vmatprep.mubr.f32.mxu1 %v5188_v19  ;;  %v5257_v55 = vcombine.high %v425_v47, %v425_v47  ;;  %v5264_v60 = vrot.slane %v425_v47, %v35369_v25 }
 0x605   : > { %v27331_v29 = vpop.f32.mrb[44].mxu1  ;;  %34619 = vmatprep.subr.bf16.mxu1 %v34618_v20  ;;  %v27262_v33 = vadd.f32 %v27261_v28, %v27192_v16  ;;  %v27263_v34 = vpop.f32.mrb[45].mxu0  ;;  %v5237_v16 = vrot.slane %v5223_v6, %v35369_v25  ;;  %v1162_v20 = vld [vmem:[%s35344_s8 + $0x16b8] sm:$0xff]  ;;  %v34638_v28 = vpack.c.bf16 %v1928_v15, %v1160_v14 }
 0x606   : > { %v27333_v35 = vpop.f32.mrb[45].mxu1  ;;  %v34642_v30 = vpack.c.bf16 %v1930_v21, %v1162_v20  ;;  %v1161_v34 = vld [vmem:[%s35344_s8 + $0x16b0] sm:$0xff]  ;;  %v1938_v6 = vld [vmem:[%s35344_s8 + $0x2ef8] sm:$0x3] }
 0x607   : > { %v27332_v41 = vadd.f32 %v27331_v29, %v27262_v33  ;;  %v5239_v29 = vcombine.high %v5237_v16, %v5237_v16  ;;  %v1927_v33 = vld [vmem:[%s35344_s8 + $0x2ea0] sm:$0x3]  ;;  %v1929_v35 = vld [vmem:[%s35344_s8 + $0x2eb0] sm:$0x3] }
 0x608   : > { %v34644_v49 = vpack.c.bf16 %v1929_v35, %v1161_v34 }
 0x609   : > { %31040 = vmatmul.mubr.f32.vlgmr.msra.gmra.mrb[98].mxu0 %v5179_v2  ;;  %v5221_v2 = vcombine.high %v5213_v51, %v5213_v51 }
 0x60a   : > { %31110 = vmatmul.mubr.f32.vlgmr.msra.gmra.mrb[98].mxu1 %v5186_v7  ;;  %34617 = vmatpush1.bf16.xpose.msra.mxu0 %v34616_v39  ;;  %v1155_v7 = vld [vmem:[%s35344_s8 + $0x1680] sm:$0xff]  ;;  %v1164_v39 = vld [vmem:[%s35344_s8 + $0x16c8] sm:$0xff] }
 0x60b   : > { %34621 = vmatpush1.bf16.xpose.msra.mxu1 %v34620_v40  ;;  %31179 = vmatprep.mubr.f32.mxu0 %v5204_v42  ;;  %v34632_v23 = vpack.c.bf16 %v1923_v8, %v1155_v7  ;;  %v1932_v40 = vld [vmem:[%s35344_s8 + $0x2ec8] sm:$0x3]  ;;  %v426_v7 = vld [vmem:[%s35337_s10 + $0x5b8] sm:$0xff] }
 0x60c   : > { %34623 = vmatprep.subr.bf16.mxu0 %v34622_v43  ;;  %v27401_v52 = vpop.f32.mrb[46].mxu0  ;;  %31249 = vmatprep.mubr.f32.mxu1 %v5205_v44  ;;  %v5274_v15 = vcombine.high %v426_v7, %v426_v7  ;;  %v5281_v20 = vrot.slane %v426_v7, %v35369_v25 }
 0x60d   : > { %v27471_v53 = vpop.f32.mrb[46].mxu1  ;;  %34627 = vmatprep.subr.bf16.mxu1 %v34626_v45  ;;  %v27402_v57 = vadd.f32 %v27401_v52, %v27332_v41  ;;  %v27403_v58 = vpop.f32.mrb[47].mxu0  ;;  %v5254_v41 = vrot.slane %v5240_v31, %v35369_v25  ;;  %v1166_v45 = vld [vmem:[%s35344_s8 + $0x16d8] sm:$0xff]  ;;  %v34646_v52 = vpack.c.bf16 %v1932_v40, %v1164_v39 }
 0x60e   : > { %v27473_v59 = vpop.f32.mrb[47].mxu1  ;;  %v34650_v54 = vpack.c.bf16 %v1934_v46, %v1166_v45  ;;  %v1165_v58 = vld [vmem:[%s35344_s8 + $0x16d0] sm:$0xff]  ;;  %v1942_v31 = vld [vmem:[%s35344_s8 + $0x2f18] sm:$0x3] }
 0x60f   : > { %v27472_v1 = vadd.f32 %v27471_v53, %v27402_v57  ;;  %v5256_v53 = vcombine.high %v5254_v41, %v5254_v41  ;;  %v1931_v57 = vld [vmem:[%s35344_s8 + $0x2ec0] sm:$0x3]  ;;  %v1933_v59 = vld [vmem:[%s35344_s8 + $0x2ed0] sm:$0x3] }
 0x610   : > { %v34652_v9 = vpack.c.bf16 %v1933_v59, %v1165_v58 }
 0x611   : > { %31180 = vmatmul.mubr.f32.vlgmr.msra.gmra.mrb[100].mxu0 %v5196_v27  ;;  %v5238_v27 = vcombine.high %v5230_v11, %v5230_v11 }
 0x612   : > { %31250 = vmatmul.mubr.f32.vlgmr.msra.gmra.mrb[100].mxu1 %v5203_v32  ;;  %34625 = vmatpush1.bf16.xpose.msra.mxu0 %v34624_v63  ;;  %v1159_v32 = vld [vmem:[%s35344_s8 + $0x16a0] sm:$0xff]  ;;  %v1168_v63 = vld [vmem:[%s35344_s8 + $0x16e8] sm:$0xff] }
 0x613   : > { %34629 = vmatpush1.bf16.xpose.msra.mxu1 %v34628_v0  ;;  %31319 = vmatprep.mubr.f32.mxu0 %v5221_v2  ;;  %v34640_v48 = vpack.c.bf16 %v1927_v33, %v1159_v32  ;;  %v1936_v0 = vld [vmem:[%s35344_s8 + $0x2ee8] sm:$0x3]  ;;  %v427_v32 = vld [vmem:[%s35337_s10 + $0x5c0] sm:$0xff] }
 0x614   : > { %34631 = vmatprep.subr.bf16.mxu0 %v34630_v3  ;;  %v27541_v12 = vpop.f32.mrb[48].mxu0  ;;  %31389 = vmatprep.mubr.f32.mxu1 %v5222_v4  ;;  %v5291_v40 = vcombine.high %v427_v32, %v427_v32  ;;  %v5298_v45 = vrot.slane %v427_v32, %v35369_v25 }
 0x615   : > { %v27611_v13 = vpop.f32.mrb[48].mxu1  ;;  %34635 = vmatprep.subr.bf16.mxu1 %v34634_v5  ;;  %v27542_v17 = vadd.f32 %v27541_v12, %v27472_v1  ;;  %v27543_v18 = vpop.f32.mrb[49].mxu0  ;;  %v5271_v1 = vrot.slane %v5257_v55, %v35369_v25  ;;  %v1170_v5 = vld [vmem:[%s35344_s8 + $0x16f8] sm:$0xff]  ;;  %v34654_v12 = vpack.c.bf16 %v1936_v0, %v1168_v63 }
 0x616   : > { %v27613_v19 = vpop.f32.mrb[49].mxu1  ;;  %v34658_v14 = vpack.c.bf16 %v1938_v6, %v1170_v5  ;;  %v1169_v18 = vld [vmem:[%s35344_s8 + $0x16f0] sm:$0xff]  ;;  %v1946_v55 = vld [vmem:[%s35344_s8 + $0x2f38] sm:$0x3] }
 0x617   : > { %v27612_v26 = vadd.f32 %v27611_v13, %v27542_v17  ;;  %v5273_v13 = vcombine.high %v5271_v1, %v5271_v1  ;;  %v1935_v17 = vld [vmem:[%s35344_s8 + $0x2ee0] sm:$0x3]  ;;  %v1937_v19 = vld [vmem:[%s35344_s8 + $0x2ef0] sm:$0x3] }
 0x618   : > { %v34660_v34 = vpack.c.bf16 %v1937_v19, %v1169_v18 }
 0x619   : > { %31320 = vmatmul.mubr.f32.vlgmr.msra.gmra.mrb[102].mxu0 %v5213_v51  ;;  %v5255_v51 = vcombine.high %v5247_v36, %v5247_v36 }
 0x61a   : > { %31390 = vmatmul.mubr.f32.vlgmr.msra.gmra.mrb[102].mxu1 %v5220_v56  ;;  %34633 = vmatpush1.bf16.xpose.msra.mxu0 %v34632_v23  ;;  %v1163_v56 = vld [vmem:[%s35344_s8 + $0x16c0] sm:$0xff]  ;;  %v1172_v23 = vld [vmem:[%s35344_s8 + $0x1708] sm:$0xff] }
 0x61b   : > { %34637 = vmatpush1.bf16.xpose.msra.mxu1 %v34636_v24  ;;  %31459 = vmatprep.mubr.f32.mxu0 %v5238_v27  ;;  %v34648_v8 = vpack.c.bf16 %v1931_v57, %v1163_v56  ;;  %v1940_v24 = vld [vmem:[%s35344_s8 + $0x2f08] sm:$0x3] }
 0x61c   : > { %34639 = vmatprep.subr.bf16.mxu0 %v34638_v28  ;;  %v27681_v37 = vpop.f32.mrb[50].mxu0  ;;  %31529 = vmatprep.mubr.f32.mxu1 %v5239_v29  ;;  %v428_v56 = vld [vmem:[%s35337_s10 + $0x5c8] sm:$0xff] }
 0x61d   : > { %v27751_v38 = vpop.f32.mrb[50].mxu1  ;;  %34643 = vmatprep.subr.bf16.mxu1 %v34642_v30  ;;  %v27682_v42 = vadd.f32 %v27681_v37, %v27612_v26  ;;  %v27683_v43 = vpop.f32.mrb[51].mxu0  ;;  %v5288_v26 = vrot.slane %v5274_v15, %v35369_v25  ;;  %v1174_v30 = vld [vmem:[%s35344_s8 + $0x1718] sm:$0xff]  ;;  %v34662_v37 = vpack.c.bf16 %v1940_v24, %v1172_v23  ;;  %v5308_v0 = vcombine.high %v428_v56, %v428_v56 }
 0x61e   : > { %v27753_v44 = vpop.f32.mrb[51].mxu1  ;;  %v34666_v39 = vpack.c.bf16 %v1942_v31, %v1174_v30  ;;  %v1173_v43 = vld [vmem:[%s35344_s8 + $0x1710] sm:$0xff]  ;;  %v5315_v5 = vrot.slane %v428_v56, %v35369_v25  ;;  %v1950_v15 = vld [vmem:[%s35344_s8 + $0x2f58] sm:$0x3] }
 0x61f   : > { %v27752_v50 = vadd.f32 %v27751_v38, %v27682_v42  ;;  %v5290_v38 = vcombine.high %v5288_v26, %v5288_v26  ;;  %v1939_v42 = vld [vmem:[%s35344_s8 + $0x2f00] sm:$0x3]  ;;  %v1941_v44 = vld [vmem:[%s35344_s8 + $0x2f10] sm:$0x3] }
 0x620   : > { %v34668_v58 = vpack.c.bf16 %v1941_v44, %v1173_v43 }
 0x621   : > { %31460 = vmatmul.mubr.f32.vlgmr.msra.gmra.mrb[104].mxu0 %v5230_v11  ;;  %v5272_v11 = vcombine.high %v5264_v60, %v5264_v60 }
 0x622   : > { %31530 = vmatmul.mubr.f32.vlgmr.msra.gmra.mrb[104].mxu1 %v5237_v16  ;;  %34641 = vmatpush1.bf16.xpose.msra.mxu0 %v34640_v48  ;;  %v1167_v16 = vld [vmem:[%s35344_s8 + $0x16e0] sm:$0xff]  ;;  %v1176_v48 = vld [vmem:[%s35344_s8 + $0x1728] sm:$0xff] }
 0x623   : > { %34645 = vmatpush1.bf16.xpose.msra.mxu1 %v34644_v49  ;;  %31599 = vmatprep.mubr.f32.mxu0 %v5255_v51  ;;  %v34656_v33 = vpack.c.bf16 %v1935_v17, %v1167_v16  ;;  %v1944_v49 = vld [vmem:[%s35344_s8 + $0x2f28] sm:$0x3]  ;;  %v429_v16 = vld [vmem:[%s35337_s10 + $0x5d0] sm:$0xff] }
 0x624   : > { %34647 = vmatprep.subr.bf16.mxu0 %v34646_v52  ;;  %v27821_v61 = vpop.f32.mrb[52].mxu0  ;;  %31669 = vmatprep.mubr.f32.mxu1 %v5256_v53  ;;  %v5325_v24 = vcombine.high %v429_v16, %v429_v16  ;;  %v5332_v30 = vrot.slane %v429_v16, %v35369_v25 }
 0x625   : > { %v27891_v62 = vpop.f32.mrb[52].mxu1  ;;  %34651 = vmatprep.subr.bf16.mxu1 %v34650_v54  ;;  %v27822_v2 = vadd.f32 %v27821_v61, %v27752_v50  ;;  %v27823_v3 = vpop.f32.mrb[53].mxu0  ;;  %v5305_v50 = vrot.slane %v5291_v40, %v35369_v25  ;;  %v1178_v54 = vld [vmem:[%s35344_s8 + $0x1738] sm:$0xff]  ;;  %v34670_v61 = vpack.c.bf16 %v1944_v49, %v1176_v48 }
 0x626   : > { %v27893_v4 = vpop.f32.mrb[53].mxu1  ;;  %v34674_v63 = vpack.c.bf16 %v1946_v55, %v1178_v54  ;;  %v1177_v3 = vld [vmem:[%s35344_s8 + $0x1730] sm:$0xff]  ;;  %v1954_v40 = vld [vmem:[%s35344_s8 + $0x2f78] sm:$0x3] }
 0x627   : > { %v27892_v10 = vadd.f32 %v27891_v62, %v27822_v2  ;;  %v5307_v62 = vcombine.high %v5305_v50, %v5305_v50  ;;  %v1943_v2 = vld [vmem:[%s35344_s8 + $0x2f20] sm:$0x3]  ;;  %v1945_v4 = vld [vmem:[%s35344_s8 + $0x2f30] sm:$0x3] }
 0x628   : > { %v34676_v18 = vpack.c.bf16 %v1945_v4, %v1177_v3 }
 0x629   : > { %31600 = vmatmul.mubr.f32.vlgmr.msra.gmra.mrb[106].mxu0 %v5247_v36  ;;  %v5289_v36 = vcombine.high %v5281_v20, %v5281_v20 }
 0x62a   : > { %31670 = vmatmul.mubr.f32.vlgmr.msra.gmra.mrb[106].mxu1 %v5254_v41  ;;  %34649 = vmatpush1.bf16.xpose.msra.mxu0 %v34648_v8  ;;  %v1171_v41 = vld [vmem:[%s35344_s8 + $0x1700] sm:$0xff]  ;;  %v1180_v8 = vld [vmem:[%s35344_s8 + $0x1748] sm:$0xff] }
 0x62b   : > { %34653 = vmatpush1.bf16.xpose.msra.mxu1 %v34652_v9  ;;  %31739 = vmatprep.mubr.f32.mxu0 %v5272_v11  ;;  %v34664_v57 = vpack.c.bf16 %v1939_v42, %v1171_v41  ;;  %v1948_v9 = vld [vmem:[%s35344_s8 + $0x2f48] sm:$0x3]  ;;  %v430_v41 = vld [vmem:[%s35337_s10 + $0x5d8] sm:$0xff] }
 0x62c   : > { %34655 = vmatprep.subr.bf16.mxu0 %v34654_v12  ;;  %v27961_v21 = vpop.f32.mrb[54].mxu0  ;;  %31809 = vmatprep.mubr.f32.mxu1 %v5273_v13  ;;  %v5342_v49 = vcombine.high %v430_v41, %v430_v41  ;;  %v5349_v54 = vrot.slane %v430_v41, %v35369_v25 }
 0x62d   : > { %v28031_v22 = vpop.f32.mrb[54].mxu1  ;;  %34659 = vmatprep.subr.bf16.mxu1 %v34658_v14  ;;  %v27962_v27 = vadd.f32 %v27961_v21, %v27892_v10  ;;  %v27963_v28 = vpop.f32.mrb[55].mxu0  ;;  %v5322_v10 = vrot.slane %v5308_v0, %v35369_v25  ;;  %v1182_v14 = vld [vmem:[%s35344_s8 + $0x1758] sm:$0xff]  ;;  %v34678_v21 = vpack.c.bf16 %v1948_v9, %v1180_v8 }
 0x62e   : > { %v28033_v29 = vpop.f32.mrb[55].mxu1  ;;  %v34682_v23 = vpack.c.bf16 %v1950_v15, %v1182_v14  ;;  %v1181_v28 = vld [vmem:[%s35344_s8 + $0x1750] sm:$0xff]  ;;  %v1958_v0 = vld [vmem:[%s35344_s8 + $0x2f98] sm:$0x3] }
 0x62f   : > { %v28032_v35 = vadd.f32 %v28031_v22, %v27962_v27  ;;  %v5324_v22 = vcombine.high %v5322_v10, %v5322_v10  ;;  %v1947_v27 = vld [vmem:[%s35344_s8 + $0x2f40] sm:$0x3]  ;;  %v1949_v29 = vld [vmem:[%s35344_s8 + $0x2f50] sm:$0x3] }
 0x630   : > { %v34684_v43 = vpack.c.bf16 %v1949_v29, %v1181_v28 }
 0x631   : > { %31740 = vmatmul.mubr.f32.vlgmr.msra.gmra.mrb[108].mxu0 %v5264_v60  ;;  %v5306_v60 = vcombine.high %v5298_v45, %v5298_v45 }
 0x632   : > { %31810 = vmatmul.mubr.f32.vlgmr.msra.gmra.mrb[108].mxu1 %v5271_v1  ;;  %34657 = vmatpush1.bf16.xpose.msra.mxu0 %v34656_v33  ;;  %v1175_v1 = vld [vmem:[%s35344_s8 + $0x1720] sm:$0xff]  ;;  %v1184_v33 = vld [vmem:[%s35344_s8 + $0x1768] sm:$0xff] }
 0x633   : > { %34661 = vmatpush1.bf16.xpose.msra.mxu1 %v34660_v34  ;;  %31879 = vmatprep.mubr.f32.mxu0 %v5289_v36  ;;  %v34672_v17 = vpack.c.bf16 %v1943_v2, %v1175_v1  ;;  %v1952_v34 = vld [vmem:[%s35344_s8 + $0x2f68] sm:$0x3]  ;;  %v431_v1 = vld [vmem:[%s35337_s10 + $0x5e0] sm:$0xff] }
 0x634   : > { %34663 = vmatprep.subr.bf16.mxu0 %v34662_v37  ;;  %v28101_v46 = vpop.f32.mrb[56].mxu0  ;;  %31949 = vmatprep.mubr.f32.mxu1 %v5290_v38  ;;  %v5359_v9 = vcombine.high %v431_v1, %v431_v1  ;;  %v5366_v14 = vrot.slane %v431_v1, %v35369_v25 }
 0x635   : > { %v28171_v47 = vpop.f32.mrb[56].mxu1  ;;  %34667 = vmatprep.subr.bf16.mxu1 %v34666_v39  ;;  %v28102_v51 = vadd.f32 %v28101_v46, %v28032_v35  ;;  %v28103_v52 = vpop.f32.mrb[57].mxu0  ;;  %v5339_v35 = vrot.slane %v5325_v24, %v35369_v25  ;;  %v1186_v39 = vld [vmem:[%s35344_s8 + $0x1778] sm:$0xff]  ;;  %v34686_v46 = vpack.c.bf16 %v1952_v34, %v1184_v33 }
 0x636   : > { %v28173_v53 = vpop.f32.mrb[57].mxu1  ;;  %v34690_v48 = vpack.c.bf16 %v1954_v40, %v1186_v39  ;;  %v1185_v52 = vld [vmem:[%s35344_s8 + $0x1770] sm:$0xff]  ;;  %v1962_v24 = vld [vmem:[%s35344_s8 + $0x2fb8] sm:$0x3] }
 0x637   : > { %v28172_v59 = vadd.f32 %v28171_v47, %v28102_v51  ;;  %v5341_v47 = vcombine.high %v5339_v35, %v5339_v35  ;;  %v1951_v51 = vld [vmem:[%s35344_s8 + $0x2f60] sm:$0x3]  ;;  %v1953_v53 = vld [vmem:[%s35344_s8 + $0x2f70] sm:$0x3] }
 0x638   : > { %v34692_v3 = vpack.c.bf16 %v1953_v53, %v1185_v52 }
 0x639   : > { %31880 = vmatmul.mubr.f32.vlgmr.msra.gmra.mrb[110].mxu0 %v5281_v20  ;;  %v5323_v20 = vcombine.high %v5315_v5, %v5315_v5 }
 0x63a   : > { %31950 = vmatmul.mubr.f32.vlgmr.msra.gmra.mrb[110].mxu1 %v5288_v26  ;;  %34665 = vmatpush1.bf16.xpose.msra.mxu0 %v34664_v57  ;;  %v1179_v26 = vld [vmem:[%s35344_s8 + $0x1740] sm:$0xff]  ;;  %v1188_v57 = vld [vmem:[%s35344_s8 + $0x1788] sm:$0xff] }
 0x63b   : > { %34669 = vmatpush1.bf16.xpose.msra.mxu1 %v34668_v58  ;;  %32019 = vmatprep.mubr.f32.mxu0 %v5306_v60  ;;  %v34680_v42 = vpack.c.bf16 %v1947_v27, %v1179_v26  ;;  %v1956_v58 = vld [vmem:[%s35344_s8 + $0x2f88] sm:$0x3] }
 0x63c   : > { %34671 = vmatprep.subr.bf16.mxu0 %v34670_v61  ;;  %v28241_v6 = vpop.f32.mrb[58].mxu0  ;;  %32089 = vmatprep.mubr.f32.mxu1 %v5307_v62  ;;  %v432_v26 = vld [vmem:[%s35337_s10 + $0x5e8] sm:$0xff] }
 0x63d   : > { %v28311_v7 = vpop.f32.mrb[58].mxu1  ;;  %34675 = vmatprep.subr.bf16.mxu1 %v34674_v63  ;;  %v28242_v11 = vadd.f32 %v28241_v6, %v28172_v59  ;;  %v28243_v12 = vpop.f32.mrb[59].mxu0  ;;  %v5356_v59 = vrot.slane %v5342_v49, %v35369_v25  ;;  %v1190_v63 = vld [vmem:[%s35344_s8 + $0x1798] sm:$0xff]  ;;  %v34694_v6 = vpack.c.bf16 %v1956_v58, %v1188_v57  ;;  %v5376_v34 = vcombine.high %v432_v26, %v432_v26 }
 0x63e   : > { %v28313_v13 = vpop.f32.mrb[59].mxu1  ;;  %v34698_v8 = vpack.c.bf16 %v1958_v0, %v1190_v63  ;;  %v1189_v12 = vld [vmem:[%s35344_s8 + $0x1790] sm:$0xff]  ;;  %v5383_v39 = vrot.slane %v432_v26, %v35369_v25  ;;  %v1966_v49 = vld [vmem:[%s35344_s8 + $0x2fd8] sm:$0x3] }
 0x63f   : > { %v28312_v19 = vadd.f32 %v28311_v7, %v28242_v11  ;;  %v5358_v7 = vcombine.high %v5356_v59, %v5356_v59  ;;  %v1955_v11 = vld [vmem:[%s35344_s8 + $0x2f80] sm:$0x3]  ;;  %v1957_v13 = vld [vmem:[%s35344_s8 + $0x2f90] sm:$0x3] }
 0x640   : > { %v34700_v28 = vpack.c.bf16 %v1957_v13, %v1189_v12 }
 0x641   : > { %32020 = vmatmul.mubr.f32.vlgmr.msra.gmra.mrb[112].mxu0 %v5298_v45  ;;  %v5340_v45 = vcombine.high %v5332_v30, %v5332_v30 }
 0x642   : > { %32090 = vmatmul.mubr.f32.vlgmr.msra.gmra.mrb[112].mxu1 %v5305_v50  ;;  %34673 = vmatpush1.bf16.xpose.msra.mxu0 %v34672_v17  ;;  %v1183_v50 = vld [vmem:[%s35344_s8 + $0x1760] sm:$0xff]  ;;  %v1192_v17 = vld [vmem:[%s35344_s8 + $0x17a8] sm:$0xff] }
 0x643   : > { %34677 = vmatpush1.bf16.xpose.msra.mxu1 %v34676_v18  ;;  %32159 = vmatprep.mubr.f32.mxu0 %v5323_v20  ;;  %v34688_v2 = vpack.c.bf16 %v1951_v51, %v1183_v50  ;;  %v1960_v18 = vld [vmem:[%s35344_s8 + $0x2fa8] sm:$0x3]  ;;  %v433_v50 = vld [vmem:[%s35337_s10 + $0x5f0] sm:$0xff] }
 0x644   : > { %34679 = vmatprep.subr.bf16.mxu0 %v34678_v21  ;;  %v28381_v31 = vpop.f32.mrb[60].mxu0  ;;  %32229 = vmatprep.mubr.f32.mxu1 %v5324_v22  ;;  %v5393_v58 = vcombine.high %v433_v50, %v433_v50  ;;  %v5400_v63 = vrot.slane %v433_v50, %v35369_v25 }
 0x645   : > { %v28451_v32 = vpop.f32.mrb[60].mxu1  ;;  %34683 = vmatprep.subr.bf16.mxu1 %v34682_v23  ;;  %v28382_v36 = vadd.f32 %v28381_v31, %v28312_v19  ;;  %v28383_v37 = vpop.f32.mrb[61].mxu0  ;;  %v5373_v19 = vrot.slane %v5359_v9, %v35369_v25  ;;  %v1194_v23 = vld [vmem:[%s35344_s8 + $0x17b8] sm:$0xff]  ;;  %v34702_v31 = vpack.c.bf16 %v1960_v18, %v1192_v17 }
 0x646   : > { %v28453_v38 = vpop.f32.mrb[61].mxu1  ;;  %v34706_v33 = vpack.c.bf16 %v1962_v24, %v1194_v23  ;;  %v1193_v37 = vld [vmem:[%s35344_s8 + $0x17b0] sm:$0xff]  ;;  %v1202_v9 = vld [vmem:[%s35344_s8 + $0x17f8] sm:$0xff] }
 0x647   : > { %v28452_v44 = vadd.f32 %v28451_v32, %v28382_v36  ;;  %v5375_v32 = vcombine.high %v5373_v19, %v5373_v19  ;;  %v1959_v36 = vld [vmem:[%s35344_s8 + $0x2fa0] sm:$0x3]  ;;  %v1961_v38 = vld [vmem:[%s35344_s8 + $0x2fb0] sm:$0x3] }
 0x648   : > { %v34708_v52 = vpack.c.bf16 %v1961_v38, %v1193_v37 }
 0x649   : > { %32160 = vmatmul.mubr.f32.vlgmr.msra.gmra.mrb[114].mxu0 %v5315_v5  ;;  %v5357_v5 = vcombine.high %v5349_v54, %v5349_v54 }
 0x64a   : > { %32230 = vmatmul.mubr.f32.vlgmr.msra.gmra.mrb[114].mxu1 %v5322_v10  ;;  %34681 = vmatpush1.bf16.xpose.msra.mxu0 %v34680_v42  ;;  %v1187_v10 = vld [vmem:[%s35344_s8 + $0x1780] sm:$0xff]  ;;  %v1196_v42 = vld [vmem:[%s35344_s8 + $0x17c8] sm:$0xff] }
 0x64b   : > { %34685 = vmatpush1.bf16.xpose.msra.mxu1 %v34684_v43  ;;  %32299 = vmatprep.mubr.f32.mxu0 %v5340_v45  ;;  %v34696_v27 = vpack.c.bf16 %v1955_v11, %v1187_v10  ;;  %v1964_v43 = vld [vmem:[%s35344_s8 + $0x2fc8] sm:$0x3]  ;;  %v1970_v10 = vld [vmem:[%s35344_s8 + $0x2ff8] sm:$0x3] }
 0x64c   : > { %34687 = vmatprep.subr.bf16.mxu0 %v34686_v46  ;;  %v28521_v55 = vpop.f32.mrb[62].mxu0  ;;  %32369 = vmatprep.mubr.f32.mxu1 %v5341_v47  ;;  %v34722_v18 = vpack.c.bf16 %v1970_v10, %v1202_v9 }
 0x64d   : > { %v28591_v56 = vpop.f32.mrb[62].mxu1  ;;  %34691 = vmatprep.subr.bf16.mxu1 %v34690_v48  ;;  %v28522_v60 = vadd.f32 %v28521_v55, %v28452_v44  ;;  %v28523_v61 = vpop.f32.mrb[63].mxu0  ;;  %v5390_v44 = vrot.slane %v5376_v34, %v35369_v25  ;;  %v1198_v48 = vld [vmem:[%s35344_s8 + $0x17d8] sm:$0xff]  ;;  %v34710_v55 = vpack.c.bf16 %v1964_v43, %v1196_v42 }
 0x64e   : > { %v28593_v62 = vpop.f32.mrb[63].mxu1  ;;  %v34714_v57 = vpack.c.bf16 %v1966_v49, %v1198_v48  ;;  %v1197_v61 = vld [vmem:[%s35344_s8 + $0x17d0] sm:$0xff] }
 0x64f   : > { %v28592_v4 = vadd.f32 %v28591_v56, %v28522_v60  ;;  %v5392_v56 = vcombine.high %v5390_v44, %v5390_v44  ;;  %v1963_v60 = vld [vmem:[%s35344_s8 + $0x2fc0] sm:$0x3]  ;;  %v1965_v62 = vld [vmem:[%s35344_s8 + $0x2fd0] sm:$0x3] }
 0x650   : > { %v34716_v12 = vpack.c.bf16 %v1965_v62, %v1197_v61 }
 0x651   : > { %32300 = vmatmul.mubr.f32.vlgmr.msra.gmra.mrb[116].mxu0 %v5332_v30  ;;  %v5374_v30 = vcombine.high %v5366_v14, %v5366_v14 }
 0x652   : > { %32370 = vmatmul.mubr.f32.vlgmr.msra.gmra.mrb[116].mxu1 %v5339_v35  ;;  %34689 = vmatpush1.bf16.xpose.msra.mxu0 %v34688_v2  ;;  %v1191_v35 = vld [vmem:[%s35344_s8 + $0x17a0] sm:$0xff]  ;;  %v1200_v2 = vld [vmem:[%s35344_s8 + $0x17e8] sm:$0xff] }
 0x653   : > { %34693 = vmatpush1.bf16.xpose.msra.mxu1 %v34692_v3  ;;  %32439 = vmatprep.mubr.f32.mxu0 %v5357_v5  ;;  %v34704_v51 = vpack.c.bf16 %v1959_v36, %v1191_v35  ;;  %v1968_v3 = vld [vmem:[%s35344_s8 + $0x2fe8] sm:$0x3]  ;;  %v434_v5 = vld [vmem:[%s35337_s10 + $0x5f8] sm:$0xff] }
 0x654   : > { %34695 = vmatprep.subr.bf16.mxu0 %v34694_v6  ;;  %v28661_v15 = vpop.f32.mrb[64].mxu0  ;;  %32509 = vmatprep.mubr.f32.mxu1 %v5358_v7  ;;  %v5417_v23 = vrot.slane %v434_v5, %v35369_v25 }
 0x655   : > { %v28731_v16 = vpop.f32.mrb[64].mxu1  ;;  %34699 = vmatprep.subr.bf16.mxu1 %v34698_v8  ;;  %v28662_v20 = vadd.f32 %v28661_v15, %v28592_v4  ;;  %v28663_v21 = vpop.f32.mrb[65].mxu0  ;;  %v5407_v4 = vrot.slane %v5393_v58, %v35369_v25  ;;  %v34718_v15 = vpack.c.bf16 %v1968_v3, %v1200_v2 }
 0x656   : > { %v28733_v22 = vpop.f32.mrb[65].mxu1  ;;  %v1201_v21 = vld [vmem:[%s35344_s8 + $0x17f0] sm:$0xff]  ;;  %v5425_v34 = vcombine.high %v5417_v23, %v5417_v23 }
 0x657   : > { %v28732_v29 = vadd.f32 %v28731_v16, %v28662_v20  ;;  %v5410_v16 = vcombine.high %v434_v5, %v434_v5  ;;  %v5409_v17 = vcombine.high %v5407_v4, %v5407_v4  ;;  %v1967_v20 = vld [vmem:[%s35344_s8 + $0x2fe0] sm:$0x3]  ;;  %v1969_v22 = vld [vmem:[%s35344_s8 + $0x2ff0] sm:$0x3] }
 0x659   : > { %32440 = vmatmul.mubr.f32.vlgmr.msra.gmra.mrb[118].mxu0 %v5349_v54  ;;  %v5391_v54 = vcombine.high %v5383_v39, %v5383_v39  ;;  %v5424_v24 = vrot.slane %v5410_v16, %v35369_v25 }
 0x65a   : > { %32510 = vmatmul.mubr.f32.vlgmr.msra.gmra.mrb[118].mxu1 %v5356_v59  ;;  %34697 = vmatpush1.bf16.xpose.msra.mxu0 %v34696_v27  ;;  %v1195_v59 = vld [vmem:[%s35344_s8 + $0x17c0] sm:$0xff] }
 0x65b   : > { %34701 = vmatpush1.bf16.xpose.msra.mxu1 %v34700_v28  ;;  %32579 = vmatprep.mubr.f32.mxu0 %v5374_v30  ;;  %v34712_v11 = vpack.c.bf16 %v1963_v60, %v1195_v59  ;;  %v5426_v35 = vcombine.high %v5424_v24, %v5424_v24 }
 0x65c   : > { %34703 = vmatprep.subr.bf16.mxu0 %v34702_v31  ;;  %v28801_v40 = vpop.f32.mrb[66].mxu0  ;;  %32649 = vmatprep.mubr.f32.mxu1 %v5375_v32  ;;  %v34724_v32 = vpack.c.bf16 %v1969_v22, %v1201_v21 }
 0x65d   : > { %v28871_v41 = vpop.f32.mrb[66].mxu1  ;;  %34707 = vmatprep.subr.bf16.mxu1 %v34706_v33  ;;  %v28802_v45 = vadd.f32 %v28801_v40, %v28732_v29  ;;  %v28803_v46 = vpop.f32.mrb[67].mxu0 }
 0x65e   : > { %v28873_v47 = vpop.f32.mrb[67].mxu1 }
 0x65f   : > { %v28872_v53 = vadd.f32 %v28871_v41, %v28802_v45 }
 0x661   : > { %32580 = vmatmul.mubr.f32.vlgmr.msra.gmra.mrb[120].mxu0 %v5366_v14  ;;  %v5408_v14 = vcombine.high %v5400_v63, %v5400_v63 }
 0x662   : > { %32650 = vmatmul.mubr.f32.vlgmr.msra.gmra.mrb[120].mxu1 %v5373_v19  ;;  %34705 = vmatpush1.bf16.xpose.msra.mxu0 %v34704_v51  ;;  %v1199_v19 = vld [vmem:[%s35344_s8 + $0x17e0] sm:$0xff] }
 0x663   : > { %34709 = vmatpush1.bf16.xpose.msra.mxu1 %v34708_v52  ;;  %32719 = vmatprep.mubr.f32.mxu0 %v5391_v54  ;;  %v34720_v31 = vpack.c.bf16 %v1967_v20, %v1199_v19 }
 0x664   : > { %34711 = vmatprep.subr.bf16.mxu0 %v34710_v55  ;;  %v28941_v0 = vpop.f32.mrb[68].mxu0  ;;  %32789 = vmatprep.mubr.f32.mxu1 %v5392_v56 }
 0x665   : > { %v29011_v1 = vpop.f32.mrb[68].mxu1  ;;  %34715 = vmatprep.subr.bf16.mxu1 %v34714_v57  ;;  %v28942_v6 = vadd.f32 %v28941_v0, %v28872_v53  ;;  %v28943_v7 = vpop.f32.mrb[69].mxu0 }
 0x666   : > { %v29013_v8 = vpop.f32.mrb[69].mxu1 }
 0x667   : > { %v29012_v13 = vadd.f32 %v29011_v1, %v28942_v6 }
 0x669   : > { %32720 = vmatmul.mubr.f32.vlgmr.msra.gmra.mrb[122].mxu0 %v5383_v39 }
 0x66a   : > { %32790 = vmatmul.mubr.f32.vlgmr.msra.gmra.mrb[122].mxu1 %v5390_v44  ;;  %34713 = vmatpush1.bf16.xpose.msra.mxu0 %v34712_v11 }
 0x66b   : > { %34717 = vmatpush1.bf16.xpose.msra.mxu1 %v34716_v12  ;;  %32859 = vmatprep.mubr.f32.mxu0 %v5408_v14 }
 0x66c   : > { %34719 = vmatprep.subr.bf16.mxu0 %v34718_v15  ;;  %v29081_v26 = vpop.f32.mrb[70].mxu0  ;;  %32929 = vmatprep.mubr.f32.mxu1 %v5409_v17 }
 0x66d   : > { %v29151_v27 = vpop.f32.mrb[70].mxu1  ;;  %34723 = vmatprep.subr.bf16.mxu1 %v34722_v18  ;;  %v29082_v28 = vadd.f32 %v29081_v26, %v29012_v13  ;;  %v29083_v29 = vpop.f32.mrb[71].mxu0 }
 0x66e   : > { %v29153_v30 = vpop.f32.mrb[71].mxu1 }
 0x66f   : > { %v29152_v33 = vadd.f32 %v29151_v27, %v29082_v28 }
 0x671   : > { %32860 = vmatmul.mubr.f32.vlgmr.msra.gmra.mrb[124].mxu0 %v5400_v63 }
 0x672   : > { %32930 = vmatmul.mubr.f32.vlgmr.msra.gmra.mrb[124].mxu1 %v5407_v4  ;;  %34721 = vmatpush1.bf16.xpose.msra.mxu0 %v34720_v31 }
 0x673   : > { %34725 = vmatpush1.bf16.xpose.msra.mxu1 %v34724_v32  ;;  %32999 = vmatprep.mubr.f32.mxu0 %v5425_v34 }
 0x674   : > { %33069 = vmatprep.mubr.f32.mxu1 %v5426_v35  ;;  %v29221_v36 = vpop.f32.mrb[72].mxu0 }
 0x675   : > { %v29291_v25 = vpop.f32.mrb[72].mxu1  ;;  %v29222_v37 = vadd.f32 %v29221_v36, %v29152_v33  ;;  %v29223_v38 = vpop.f32.mrb[73].mxu0 }
 0x676   : > { %v29293_v39 = vpop.f32.mrb[73].mxu1 }
 0x677   : > { %v29292_v40 = vadd.f32 %v29291_v25, %v29222_v37 }
 0x679   : > { %33000 = vmatmul.mubr.f32.vlgmr.msra.gmra.mrb[126].mxu0 %v5417_v23 }
 0x67a   : > { %33070 = vmatmul.mubr.f32.vlgmr.msra.gmra.mrb[126].mxu1 %v5424_v24 }
 0x67c   : > { %v29361_v41 = vpop.f32.mrb[74].mxu0 }
 0x67d   : > { %v29431_v42 = vpop.f32.mrb[74].mxu1  ;;  %v29362_v43 = vadd.f32 %v29361_v41, %v29292_v40  ;;  %v29363_v44 = vpop.f32.mrb[75].mxu0 }
 0x67e   : > { %v29433_v45 = vpop.f32.mrb[75].mxu1 }
 0x67f   : > { %v29432_v46 = vadd.f32 %v29431_v42, %v29362_v43 }
 0x684   : > { %v29501_v47 = vpop.f32.mrb[76].mxu0 }
 0x685   : > { %v29571_v48 = vpop.f32.mrb[76].mxu1  ;;  %v29502_v49 = vadd.f32 %v29501_v47, %v29432_v46  ;;  %v29503_v50 = vpop.f32.mrb[77].mxu0 }
 0x686   : > { %v29573_v51 = vpop.f32.mrb[77].mxu1 }
 0x687   : > { %v29572_v52 = vadd.f32 %v29571_v48, %v29502_v49 }
 0x68c   : > { %v29641_v53 = vpop.f32.mrb[78].mxu0 }
 0x68d   : > { %v29711_v54 = vpop.f32.mrb[78].mxu1  ;;  %v29642_v55 = vadd.f32 %v29641_v53, %v29572_v52  ;;  %v29643_v56 = vpop.f32.mrb[79].mxu0 }
 0x68e   : > { %v29713_v57 = vpop.f32.mrb[79].mxu1 }
 0x68f   : > { %v29712_v58 = vadd.f32 %v29711_v54, %v29642_v55 }
 0x694   : > { %v29781_v59 = vpop.f32.mrb[80].mxu0 }
 0x695   : > { %v29851_v60 = vpop.f32.mrb[80].mxu1  ;;  %v29782_v61 = vadd.f32 %v29781_v59, %v29712_v58  ;;  %v29783_v62 = vpop.f32.mrb[81].mxu0 }
 0x696   : > { %v29853_v63 = vpop.f32.mrb[81].mxu1 }
 0x697   : > { %v29852_v0 = vadd.f32 %v29851_v60, %v29782_v61 }
 0x69c   : > { %v29921_v1 = vpop.f32.mrb[82].mxu0 }
 0x69d   : > { %v29991_v2 = vpop.f32.mrb[82].mxu1  ;;  %v29922_v3 = vadd.f32 %v29921_v1, %v29852_v0  ;;  %v29923_v4 = vpop.f32.mrb[83].mxu0 }
 0x69e   : > { %v29993_v5 = vpop.f32.mrb[83].mxu1 }
 0x69f   : > { %v29992_v6 = vadd.f32 %v29991_v2, %v29922_v3 }
 0x6a4   : > { %v30061_v7 = vpop.f32.mrb[84].mxu0 }
 0x6a5   : > { %v30131_v8 = vpop.f32.mrb[84].mxu1  ;;  %v30062_v9 = vadd.f32 %v30061_v7, %v29992_v6  ;;  %v30063_v10 = vpop.f32.mrb[85].mxu0 }
 0x6a6   : > { %v30133_v11 = vpop.f32.mrb[85].mxu1 }
 0x6a7   : > { %v30132_v12 = vadd.f32 %v30131_v8, %v30062_v9 }
 0x6ac   : > { %v30201_v13 = vpop.f32.mrb[86].mxu0 }
 0x6ad   : > { %v30271_v14 = vpop.f32.mrb[86].mxu1  ;;  %v30202_v15 = vadd.f32 %v30201_v13, %v30132_v12  ;;  %v30203_v16 = vpop.f32.mrb[87].mxu0 }
 0x6ae   : > { %v30273_v17 = vpop.f32.mrb[87].mxu1 }
 0x6af   : > { %v30272_v18 = vadd.f32 %v30271_v14, %v30202_v15 }
 0x6b4   : > { %v30341_v19 = vpop.f32.mrb[88].mxu0 }
 0x6b5   : > { %v30411_v20 = vpop.f32.mrb[88].mxu1  ;;  %v30342_v21 = vadd.f32 %v30341_v19, %v30272_v18  ;;  %v30343_v22 = vpop.f32.mrb[89].mxu0 }
 0x6b6   : > { %v30413_v23 = vpop.f32.mrb[89].mxu1 }
 0x6b7   : > { %v30412_v24 = vadd.f32 %v30411_v20, %v30342_v21 }
 0x6bc   : > { %v30481_v26 = vpop.f32.mrb[90].mxu0 }
 0x6bd   : > { %v30551_v27 = vpop.f32.mrb[90].mxu1  ;;  %v30482_v28 = vadd.f32 %v30481_v26, %v30412_v24  ;;  %v30483_v29 = vpop.f32.mrb[91].mxu0 }
 0x6be   : > { %v30553_v30 = vpop.f32.mrb[91].mxu1 }
 0x6bf   : > { %v30552_v31 = vadd.f32 %v30551_v27, %v30482_v28 }
 0x6c4   : > { %v30621_v32 = vpop.f32.mrb[92].mxu0 }
 0x6c5   : > { %v30691_v33 = vpop.f32.mrb[92].mxu1  ;;  %v30622_v34 = vadd.f32 %v30621_v32, %v30552_v31  ;;  %v30623_v35 = vpop.f32.mrb[93].mxu0 }
 0x6c6   : > { %v30693_v36 = vpop.f32.mrb[93].mxu1 }
 0x6c7   : > { %v30692_v25 = vadd.f32 %v30691_v33, %v30622_v34 }
 0x6cc   : > { %v30761_v37 = vpop.f32.mrb[94].mxu0 }
 0x6cd   : > { %v30831_v38 = vpop.f32.mrb[94].mxu1  ;;  %v30762_v39 = vadd.f32 %v30761_v37, %v30692_v25  ;;  %v30763_v40 = vpop.f32.mrb[95].mxu0 }
 0x6ce   : > { %v30833_v41 = vpop.f32.mrb[95].mxu1 }
 0x6cf   : > { %v30832_v42 = vadd.f32 %v30831_v38, %v30762_v39 }
 0x6d4   : > { %v30901_v43 = vpop.f32.mrb[96].mxu0 }
 0x6d5   : > { %v30971_v44 = vpop.f32.mrb[96].mxu1  ;;  %v30902_v45 = vadd.f32 %v30901_v43, %v30832_v42  ;;  %v30903_v46 = vpop.f32.mrb[97].mxu0 }
 0x6d6   : > { %v30973_v47 = vpop.f32.mrb[97].mxu1 }
 0x6d7   : > { %v30972_v48 = vadd.f32 %v30971_v44, %v30902_v45 }
 0x6dc   : > { %v31041_v49 = vpop.f32.mrb[98].mxu0 }
 0x6dd   : > { %v31111_v50 = vpop.f32.mrb[98].mxu1  ;;  %v31042_v51 = vadd.f32 %v31041_v49, %v30972_v48  ;;  %v31043_v52 = vpop.f32.mrb[99].mxu0 }
 0x6de   : > { %v31113_v53 = vpop.f32.mrb[99].mxu1 }
 0x6df   : > { %v31112_v54 = vadd.f32 %v31111_v50, %v31042_v51 }
 0x6e4   : > { %v31181_v55 = vpop.f32.mrb[100].mxu0 }
 0x6e5   : > { %v31251_v56 = vpop.f32.mrb[100].mxu1  ;;  %v31182_v57 = vadd.f32 %v31181_v55, %v31112_v54  ;;  %v31183_v58 = vpop.f32.mrb[101].mxu0 }
 0x6e6   : > { %v31253_v59 = vpop.f32.mrb[101].mxu1 }
 0x6e7   : > { %v31252_v60 = vadd.f32 %v31251_v56, %v31182_v57 }
 0x6ec   : > { %v31321_v61 = vpop.f32.mrb[102].mxu0 }
 0x6ed   : > { %v31391_v62 = vpop.f32.mrb[102].mxu1  ;;  %v31322_v63 = vadd.f32 %v31321_v61, %v31252_v60  ;;  %v31323_v0 = vpop.f32.mrb[103].mxu0 }
 0x6ee   : > { %v31393_v1 = vpop.f32.mrb[103].mxu1 }
 0x6ef   : > { %v31392_v2 = vadd.f32 %v31391_v62, %v31322_v63 }
 0x6f4   : > { %v31461_v3 = vpop.f32.mrb[104].mxu0 }
 0x6f5   : > { %v31531_v4 = vpop.f32.mrb[104].mxu1  ;;  %v31462_v5 = vadd.f32 %v31461_v3, %v31392_v2  ;;  %v31463_v6 = vpop.f32.mrb[105].mxu0 }
 0x6f6   : > { %v31533_v7 = vpop.f32.mrb[105].mxu1 }
 0x6f7   : > { %v31532_v8 = vadd.f32 %v31531_v4, %v31462_v5 }
 0x6fc   : > { %v31601_v9 = vpop.f32.mrb[106].mxu0 }
 0x6fd   : > { %v31671_v10 = vpop.f32.mrb[106].mxu1  ;;  %v31602_v11 = vadd.f32 %v31601_v9, %v31532_v8  ;;  %v31603_v12 = vpop.f32.mrb[107].mxu0 }
 0x6fe   : > { %v31673_v13 = vpop.f32.mrb[107].mxu1 }
 0x6ff   : > { %v31672_v14 = vadd.f32 %v31671_v10, %v31602_v11  ;;  %v242_v10 = vld [vmem:[#allocation2] sm:$0x3] }
 0x704   : > { %v31741_v15 = vpop.f32.mrb[108].mxu0 }
 0x705   : > { %v31811_v16 = vpop.f32.mrb[108].mxu1  ;;  %v31742_v17 = vadd.f32 %v31741_v15, %v31672_v14  ;;  %v31743_v18 = vpop.f32.mrb[109].mxu0 }
 0x706   : > { %v31813_v19 = vpop.f32.mrb[109].mxu1 }
 0x707   : > { %v31812_v20 = vadd.f32 %v31811_v16, %v31742_v17 }
 0x70c   : > { %v31881_v21 = vpop.f32.mrb[110].mxu0 }
 0x70d   : > { %v31951_v22 = vpop.f32.mrb[110].mxu1  ;;  %v31882_v23 = vadd.f32 %v31881_v21, %v31812_v20  ;;  %v31883_v24 = vpop.f32.mrb[111].mxu0 }
 0x70e   : > { %v31953_v26 = vpop.f32.mrb[111].mxu1 }
 0x70f   : > { %v31952_v27 = vadd.f32 %v31951_v22, %v31882_v23 }
 0x714   : > { %v32021_v28 = vpop.f32.mrb[112].mxu0 }
 0x715   : > { %v32091_v29 = vpop.f32.mrb[112].mxu1  ;;  %v32022_v30 = vadd.f32 %v32021_v28, %v31952_v27  ;;  %v32023_v31 = vpop.f32.mrb[113].mxu0 }
 0x716   : > { %v32093_v32 = vpop.f32.mrb[113].mxu1 }
 0x717   : > { %v32092_v33 = vadd.f32 %v32091_v29, %v32022_v30 }
 0x71c   : > { %v32161_v34 = vpop.f32.mrb[114].mxu0 }
 0x71d   : > { %v32231_v35 = vpop.f32.mrb[114].mxu1  ;;  %v32162_v36 = vadd.f32 %v32161_v34, %v32092_v33  ;;  %v32163_v25 = vpop.f32.mrb[115].mxu0 }
 0x71e   : > { %v32233_v37 = vpop.f32.mrb[115].mxu1 }
 0x71f   : > { %v32232_v38 = vadd.f32 %v32231_v35, %v32162_v36 }
 0x724   : > { %v32301_v39 = vpop.f32.mrb[116].mxu0 }
 0x725   : > { %v32371_v40 = vpop.f32.mrb[116].mxu1  ;;  %v32302_v41 = vadd.f32 %v32301_v39, %v32232_v38  ;;  %v32303_v42 = vpop.f32.mrb[117].mxu0 }
 0x726   : > { %v32373_v43 = vpop.f32.mrb[117].mxu1 }
 0x727   : > { %v32372_v44 = vadd.f32 %v32371_v40, %v32302_v41 }
 0x72c   : > { %v32441_v45 = vpop.f32.mrb[118].mxu0 }
 0x72d   : > { %v32511_v46 = vpop.f32.mrb[118].mxu1  ;;  %v32442_v47 = vadd.f32 %v32441_v45, %v32372_v44  ;;  %v32443_v48 = vpop.f32.mrb[119].mxu0 }
 0x72e   : > { %v32513_v49 = vpop.f32.mrb[119].mxu1 }
 0x72f   : > { %v32512_v50 = vadd.f32 %v32511_v46, %v32442_v47 }
 0x734   : > { %v32581_v51 = vpop.f32.mrb[120].mxu0 }
 0x735   : > { %v32651_v52 = vpop.f32.mrb[120].mxu1  ;;  %v32582_v53 = vadd.f32 %v32581_v51, %v32512_v50  ;;  %v32583_v54 = vpop.f32.mrb[121].mxu0 }
 0x736   : > { %v32653_v55 = vpop.f32.mrb[121].mxu1 }
 0x737   : > { %v32652_v56 = vadd.f32 %v32651_v52, %v32582_v53 }
 0x73c   : > { %v32721_v57 = vpop.f32.mrb[122].mxu0 }
 0x73d   : > { %v32791_v58 = vpop.f32.mrb[122].mxu1  ;;  %v32722_v59 = vadd.f32 %v32721_v57, %v32652_v56  ;;  %v32723_v60 = vpop.f32.mrb[123].mxu0 }
 0x73e   : > { %v32793_v61 = vpop.f32.mrb[123].mxu1 }
 0x73f   : > { %v32792_v62 = vadd.f32 %v32791_v58, %v32722_v59 }
 0x744   : > { %v32861_v63 = vpop.f32.mrb[124].mxu0 }
 0x745   : > { %v32931_v0 = vpop.f32.mrb[124].mxu1  ;;  %v32862_v1 = vadd.f32 %v32861_v63, %v32792_v62  ;;  %v32863_v2 = vpop.f32.mrb[125].mxu0 }
 0x746   : > { %v32933_v3 = vpop.f32.mrb[125].mxu1 }
 0x747   : > { %v32932_v4 = vadd.f32 %v32931_v0, %v32862_v1 }
 0x74c   : > { %v33001_v5 = vpop.f32.mrb[126].mxu0 }
 0x74d   : > { %v33071_v6 = vpop.f32.mrb[126].mxu1  ;;  %v33002_v7 = vadd.f32 %v33001_v5, %v32932_v4  ;;  %v33003_v8 = vpop.f32.mrb[127].mxu0  ;;  %33081 = sbr.rel (%p33183_p12) target bundleno = 1884 (0x75c), region = 52 }
 0x74e   : > { %v33073_v9 = vpop.f32.mrb[127].mxu1 }
 0x74f   : > { %v33072_v11 = vadd.f32 %v33071_v6, %v33002_v7 }
 0x751   : > { %v33075_v12 = vadd.f32 %v33072_v11, %v242_v10 }
 0x753   : > { %33077 = vst.msk [vmem:[#allocation2] sm:$0x3] %vm33076_vm1, %v33075_v12 }
 0x75a   : > { %v33082_v13 = vld [vmem:[#allocation2] sm:$0x3] }
 0x75b   : > { %33083 = vst.msk [vmem:[#allocation9] sm:$0x3] %vm33076_vm1, %v33082_v13 }
 0x75c PF: > { %p34756_p3 = scmp.eq.s32.totalorder %s35197_s16, 1  ;;  %s35157_s21 = smov [#allocation9]  }
 0x75d   : > { %s33091_s22 = sshll.u32 %s35157_s21, 4  ;;  %s33092_s22 = int_to_ptr.vmem [resolvable:$true] %s33091_s22 }
 0x75e   : > { %s35076_s9 = scalar_lea.vmem %s33092_s22, 32  ;;  %p35083_p13 = scmp.lt.s32.totalorder %s33092_s22, %s33092_s22 }
 0x75f   : > { %p35077_p8 = scmp.ne.s32.totalorder %s33092_s22, %s35076_s9  ;;  %p35084_p2 = scmp.lt.s32.totalorder %s35076_s9, %s35076_s9 }
 0x761   : > { %p35078_p0 = pnand %p35077_p8, %p34756_p3  ;;  %p35085_p6 = por %p35084_p2, %p35083_p13 }
 0x763   : > { %p35079_p1 = pneg %p35078_p0 }
 0x765   : > { %p35086_p9 = pnand %p35085_p6, %p35079_p1 }
 0x767   : > { %35089 = shalt.err (!%p35086_p9)
}
 0x768   : > { %s35090_s5 = scalar_lea.hbm %s37510_s3, 32 }
 0x769   : > { %p35091_p7 = scmp.ne.s32.totalorder %s37510_s3, %s35090_s5  ;;  %p35096_p10 = scmp.lt.u32.totalorder %s35090_s5, %s37510_s3 }
 0x76b   : > { %p35092_p5 = pnand %p35091_p7, %p34756_p3 }
 0x76d   : > { %p35093_p4 = pneg %p35092_p5 }
 0x76f   : > { %p35098_p11 = pnand %p35096_p10, %p35093_p4 }
 0x771   : > { %35101 = shalt.err (!%p35098_p11)
}
 0x772   : > { %34739 = dma.vmem_to_hbm [thread:$0]  (%p34756_p3), %s33092_s22, 32, %s37510_s3, [#allocation5]  }
 0x773   : > { %35131 = dma.done.wait (%p34756_p3), [#allocation5], 32  }
 0x774   : > { %35133 = vsyncadd (%p34756_p3), [#allocation5], 4294967264 }
 0x775 PF: > { %p17_p12 = scmp.ge.s32.totalorder %s35200_s17, 4   ;;  %s37525_s12 = smov %s35140_s13 }
 0x776   : > { %s37526_s13 = smov %s35144_s14  ;;  %s37527_s14 = smov %s35210_s20 }
 0x777   : > { %s37528_s15 = smov %s35200_s17  ;;  %19 = sbr.rel (!%p17_p12) target bundleno = 6 (0x6), region = 94 }
 0x77e   :  { %33104 = vsyncpa [#allocation4], 1 }
 0x77f   :  { %33106 = vsyncpa [#allocation4 + $0x1], 1 }
 0x780   :  { %33107 = vsyncpa [#allocation7], 1 }
 0x781   :  { %33109 = vsyncpa [#allocation7 + $0x1], 1 }
 0x782   :  { %33110 = vsyncpa [#allocation5], 1 }
 0x783   :  { %33112 = vsyncpa [#allocation5 + $0x1], 1 }

</bundles_post_ra>
